<compile_context>
chip_gen: v7x
topology: tpu7x:2x2x1
jax: 0.10.0
libtpu: 0.0.40
codegen_flags: <defaults>
</compile_context>

<pallas_src>
import functools

import numpy as np
import jax
import jax.numpy as jnp
from jax.experimental import pallas as pl
from jax.experimental.pallas import tpu as pltpu

_LOG2PI = float(np.log(2.0 * np.pi))


def _round_up(x, m):
    return ((x + m - 1) // m) * m


def _vmem():
    return pl.BlockSpec(memory_space=pltpu.MemorySpace.VMEM)


def _resident_spec(arr):
    ndim = arr.ndim

    def imap(b):
        return (0,) * ndim

    return pl.BlockSpec(arr.shape, imap)


# ----------------------------------------------------------------------------
# Fused FlowStep kernel: ActNorm + InvConv1x1 + additive coupling with f(z1)
# (Conv3x3+AN+ReLU -> Conv1x1+AN+ReLU -> Conv2dZeros3x3), all in one pallas_call.
# ----------------------------------------------------------------------------
def make_flowstep_call(B, H, W, C, hidden):
    ch = C // 2
    Hp, Wp = H + 2, W + 2
    Nb = _round_up(Hp * Wp, 8)       # rows per image (padded spatial, 8-aligned)
    G = _round_up(Wp + 1, 8)         # guard rows so shifted conv slices stay in bounds
    offs = [(dh - 1) * Wp + (dw - 1) for dh in range(3) for dw in range(3)]
    n_scr = Nb + 2 * G

    def kernel(z_ref, m_ref, anb_ref, ans_ref, iwt_ref,
               w1_ref, b1_ref, s1_ref,
               w2_ref, b2_ref, s2_ref,
               w3_ref, b3_ref, s3_ref,
               o_ref, z1buf, hbuf):
        # ActNorm2d (center then scale) + InvertibleConv1x1, masked to the valid interior.
        z = (z_ref[...] + anb_ref[...]) * ans_ref[...]
        z = jnp.dot(z, iwt_ref[...], preferred_element_type=jnp.float32)
        z = z * m_ref[...]
        z1 = z[:, :ch]
        z2 = z[:, ch:]

        # f(z1) conv #1: 3x3 "same" conv as 9 shifted bf16 matmuls + ActNorm + ReLU.
        z1buf[...] = jnp.zeros_like(z1buf)
        z1buf[pl.ds(G, Nb), :] = z1
        acc = jnp.zeros((Nb, hidden), jnp.float32)
        for k, off in enumerate(offs):
            a = z1buf[pl.ds(G + off, Nb), :].astype(jnp.bfloat16)
            acc = acc + jnp.dot(a, w1_ref[k], preferred_element_type=jnp.float32)
        h1 = jnp.maximum((acc + b1_ref[...]) * s1_ref[...], 0.0)

        # f(z1) conv #2: 1x1 conv + ActNorm + ReLU; re-zero the padding border.
        h2 = jnp.dot(h1.astype(jnp.bfloat16), w2_ref[...],
                     preferred_element_type=jnp.float32)
        h2 = jnp.maximum((h2 + b2_ref[...]) * s2_ref[...], 0.0) * m_ref[...]

        # f(z1) conv #3: Conv2dZeros 3x3 fused with the additive-coupling update.
        hbuf[...] = jnp.zeros_like(hbuf)
        hbuf[pl.ds(G, Nb), :] = h2
        acc3 = jnp.zeros((Nb, ch), jnp.float32)
        for k, off in enumerate(offs):
            a = hbuf[pl.ds(G + off, Nb), :].astype(jnp.bfloat16)
            acc3 = acc3 + jnp.dot(a, w3_ref[k], preferred_element_type=jnp.float32)
        z2_new = z2 + (acc3 + b3_ref[...]) * s3_ref[...]

        o_ref[...] = jnp.concatenate([z1, z2_new], axis=-1)

    flops = 2 * B * Nb * (C * C + 9 * ch * hidden + hidden * hidden + 9 * hidden * ch)
    bytes_acc = (4 * B * Nb * (2 * C + 1)
                 + 2 * (9 * ch * hidden + hidden * hidden + 9 * hidden * ch)
                 + 4 * (C * C + 8 * C + 4 * hidden))

    def call(zrows, mask, p):
        args = (zrows, mask, p['an_bias'], p['an_scale'], p['inv_wt'],
                p['w1'], p['b1'], p['s1'],
                p['w2'], p['b2'], p['s2'],
                p['w3'], p['b3'], p['s3'])
        in_specs = [pl.BlockSpec((Nb, C), lambda b: (b, 0)),
                    pl.BlockSpec((Nb, 1), lambda b: (b, 0))]
        in_specs += [_resident_spec(a) for a in args[2:]]
        return pl.pallas_call(
            kernel,
            grid=(B,),
            out_shape=jax.ShapeDtypeStruct((B * Nb, C), jnp.float32),
            in_specs=in_specs,
            out_specs=pl.BlockSpec((Nb, C), lambda b: (b, 0)),
            scratch_shapes=[pltpu.VMEM((n_scr, ch), jnp.float32),
                            pltpu.VMEM((n_scr, hidden), jnp.float32)],
            input_output_aliases={0: 0},
            compiler_params=pltpu.CompilerParams(
                dimension_semantics=("parallel",)),
            cost_estimate=pl.CostEstimate(flops=flops, transcendentals=0,
                                          bytes_accessed=bytes_acc),
        )(*args)

    return call


# ----------------------------------------------------------------------------
# Split2d prior: fused Conv2dZeros 3x3 kernel (no zero "add" operand).
# ----------------------------------------------------------------------------
def make_conv_zeros_call(B, H, W, cin, cout):
    Hp, Wp = H + 2, W + 2
    N0 = B * Hp * Wp
    G = _round_up(Wp + 1, 8)
    offs = [(dh - 1) * Wp + (dw - 1) for dh in range(3) for dw in range(3)]

    def kernel(x_ref, w_ref, b_ref, s_ref, o_ref, buf):
        buf[...] = jnp.zeros_like(buf)
        buf[pl.ds(G, N0), :] = x_ref[...]
        acc = jnp.zeros((N0, cout), jnp.float32)
        for k, off in enumerate(offs):
            a = buf[pl.ds(G + off, N0), :].astype(jnp.bfloat16)
            acc = acc + jnp.dot(a, w_ref[k], preferred_element_type=jnp.float32)
        o_ref[...] = (acc + b_ref[...]) * s_ref[...]

    def call(xrows, w, b, s):
        return pl.pallas_call(
            kernel,
            out_shape=jax.ShapeDtypeStruct((N0, cout), jnp.float32),
            in_specs=[_vmem(), _vmem(), _vmem(), _vmem()],
            out_specs=_vmem(),
            scratch_shapes=[pltpu.VMEM((N0 + 2 * G, cin), jnp.float32)],
        )(xrows, w, b, s)

    return call


# ----------------------------------------------------------------------------
# GaussianDiag.logp reduction kernel (per batch element).
# ----------------------------------------------------------------------------
def _gauss_logp_kernel(mean_ref, logs_ref, x_ref, o_ref):
    d = x_ref[...] - mean_ref[...]
    ll = -0.5 * (_LOG2PI + 2.0 * logs_ref[...] + d * d * jnp.exp(-2.0 * logs_ref[...]))
    o_ref[...] = jnp.sum(ll, axis=1, keepdims=True)


def pallas_gauss_logp(mean, logs, x):
    b = x.shape[0]
    return pl.pallas_call(
        _gauss_logp_kernel,
        out_shape=jax.ShapeDtypeStruct((b, 1), jnp.float32),
        in_specs=[_vmem(), _vmem(), _vmem()],
        out_specs=_vmem(),
    )(mean, logs, x)


# ----------------------------------------------------------------------------
# Pure-JAX layout glue (cheap, 1x-sized): squeeze, pad-to-rows, unpad, mask.
# ----------------------------------------------------------------------------
def squeeze2d_nhwc(x):
    # matches glow-pytorch squeeze2d (factor=2): channel order c*4 + fh*2 + fw
    b, h, w, c = x.shape
    x = x.reshape(b, h // 2, 2, w // 2, 2, c)
    x = jnp.transpose(x, (0, 1, 3, 5, 2, 4))
    return x.reshape(b, h // 2, w // 2, c * 4)


def to_padded_rows(x, Nb):
    b, h, w, c = x.shape
    hp, wp = h + 2, w + 2
    xp = jnp.pad(x, ((0, 0), (1, 1), (1, 1), (0, 0))).reshape(b, hp * wp, c)
    if Nb > hp * wp:
        xp = jnp.pad(xp, ((0, 0), (0, Nb - hp * wp), (0, 0)))
    return xp.reshape(b * Nb, c)


def from_padded_rows(zr, b, h, w, Nb):
    hp, wp = h + 2, w + 2
    c = zr.shape[-1]
    z = zr.reshape(b, Nb, c)[:, :hp * wp, :].reshape(b, hp, wp, c)
    return z[:, 1:h + 1, 1:w + 1, :]


def make_interior_mask(b, h, w, Nb):
    hp, wp = h + 2, w + 2
    r = jnp.arange(Nb)
    i, j = r // wp, r % wp
    valid = (r < hp * wp) & (i >= 1) & (i <= h) & (j >= 1) & (j <= w)
    m = valid.astype(jnp.float32).reshape(Nb, 1)
    return jnp.tile(m, (b, 1))


# ----------------------------------------------------------------------------
# Model pieces
# ----------------------------------------------------------------------------
def split2d(z, logdet, p):
    """Split2d (encode): keep z1, accumulate Gaussian log-prob of z2 under learned prior."""
    b, h, w, c = z.shape
    ch = c // 2
    z1, z2 = z[..., :ch], z[..., ch:]
    hp, wp = h + 2, w + 2

    conv_call = make_conv_zeros_call(b, h, w, ch, c)
    hcond = conv_call(to_padded_rows(z1, hp * wp), p['w'], p['b'], p['s'])
    hcond = from_padded_rows(hcond, b, h, w, hp * wp)
    mean, logs = hcond[..., :ch], hcond[..., ch:]     # contiguous: params pre-permuted

    feat = h * w * ch
    lp = pallas_gauss_logp(mean.reshape(b, feat), logs.reshape(b, feat),
                           z2.reshape(b, feat))       # (B, 1)
    return z1, logdet + lp[:, 0]


def flownet_encode(x_nhwc, params, K, L, hidden):
    b = x_nhwc.shape[0]
    z = x_nhwc
    logdet = jnp.float32(0.0)
    idx = 0
    for i in range(L):
        z = squeeze2d_nhwc(z)
        _, h, w, c = z.shape
        Nb = _round_up((h + 2) * (w + 2), 8)
        step_call = make_flowstep_call(b, h, w, c, hidden)
        mask = make_interior_mask(b, h, w, Nb)
        zrows = to_padded_rows(z, Nb)
        pixels = float(h * w)
        for _ in range(K):
            sp = params['steps'][idx]
            zrows = step_call(zrows, mask, sp)
            logdet = logdet + pixels * sp['ppl']      # actnorm + slogdet, precomputed
            idx += 1
        z = from_padded_rows(zrows, b, h, w, Nb)
        if i < L - 1:
            z, logdet = split2d(z, logdet, params['splits'][i])
    return z, logdet


# ----------------------------------------------------------------------------
# Deterministic parameter initialization (shapes follow the PyTorch module) +
# one-time preparation (bf16 weights, hoisted exp()/slogdet()/transpose/permutation).
# ----------------------------------------------------------------------------
def init_flowstep_params(key, c, hidden):
    ks = jax.random.split(key, 12)
    ch = c // 2
    q, _ = jnp.linalg.qr(jax.random.normal(ks[2], (c, c), jnp.float32))
    return {
        'an_bias':    0.10 * jax.random.normal(ks[0], (1, c), jnp.float32),
        'an_logs':    0.10 * jax.random.normal(ks[1], (1, c), jnp.float32),
        'inv_w':      q.astype(jnp.float32),                  # InvertibleConv1x1 (C, C)
        'c1_w':       0.05 * jax.random.normal(ks[3], (3, 3, ch, hidden), jnp.float32),
        'c1_an_bias': 0.10 * jax.random.normal(ks[4], (1, hidden), jnp.float32),
        'c1_an_logs': 0.10 * jax.random.normal(ks[5], (1, hidden), jnp.float32),
        'c2_w':       0.05 * jax.random.normal(ks[6], (hidden, hidden), jnp.float32),
        'c2_an_bias': 0.10 * jax.random.normal(ks[7], (1, hidden), jnp.float32),
        'c2_an_logs': 0.10 * jax.random.normal(ks[8], (1, hidden), jnp.float32),
        # Conv2dZeros params (zero in the reference init; small deterministic here)
        'c3_w':       0.02 * jax.random.normal(ks[9], (3, 3, hidden, ch), jnp.float32),
        'c3_b':       0.02 * jax.random.normal(ks[10], (1, ch), jnp.float32),
        'c3_logs':    0.02 * jax.random.normal(ks[11], (1, ch), jnp.float32),
    }


def init_flownet_params(key, image_shape, hidden, K, L):
    h, w, c = image_shape
    assert c in (1, 3), 'image_shape should be HWC with C == 1 or C == 3'
    steps, splits = [], []
    for i in range(L):
        c, h, w = c * 4, h // 2, w // 2
        for _ in range(K):
            key, sub = jax.random.split(key)
            steps.append(init_flowstep_params(sub, c, hidden))
        if i < L - 1:
            key, sub = jax.random.split(key)
            ks = jax.random.split(sub, 3)
            splits.append({
                'w':    0.02 * jax.random.normal(ks[0], (3, 3, c // 2, c), jnp.float32),
                'b':    0.02 * jax.random.normal(ks[1], (1, c), jnp.float32),
                'logs': 0.02 * jax.random.normal(ks[2], (1, c), jnp.float32),
            })
            c = c // 2
    return {'steps': steps, 'splits': splits}


def prepare_params(raw, hidden):
    fast = {'steps': [], 'splits': []}
    for p in raw['steps']:
        c = p['an_bias'].shape[1]
        ch = c // 2
        fast['steps'].append({
            'an_bias':  p['an_bias'],
            'an_scale': jnp.exp(p['an_logs']),
            'inv_wt':   jnp.transpose(p['inv_w']),
            'w1': p['c1_w'].reshape(9, ch, hidden).astype(jnp.bfloat16),
            'b1': p['c1_an_bias'],
            's1': jnp.exp(p['c1_an_logs']),
            'w2': p['c2_w'].astype(jnp.bfloat16),
            'b2': p['c2_an_bias'],
            's2': jnp.exp(p['c2_an_logs']),
            'w3': p['c3_w'].reshape(9, hidden, ch).astype(jnp.bfloat16),
            'b3': p['c3_b'],
            's3': jnp.exp(3.0 * p['c3_logs']),
            # per-pixel logdet: sum(actnorm logs) + log|det W|, hoisted out of forward
            'ppl': jnp.sum(p['an_logs']) + jnp.linalg.slogdet(p['inv_w'])[1],
        })
    for sp in raw['splits']:
        c = sp['b'].shape[1]
        ch = c // 2
        # permute output channels so split_feature("cross") becomes contiguous halves
        perm = np.concatenate([np.arange(0, c, 2), np.arange(1, c, 2)])
        fast['splits'].append({
            'w': sp['w'].reshape(9, ch, c)[:, :, perm].astype(jnp.bfloat16),
            'b': sp['b'][:, perm],
            's': jnp.exp(3.0 * sp['logs'][:, perm]),
        })
    return fast


# ----------------------------------------------------------------------------
if __name__ == "__main__":
    key = jax.random.PRNGKey(0)
    B = 2
    image_shape = (16, 16, 1)              # (H, W, C) as the PyTorch module expects
    hidden_channels, K, L = 16, 2, 2

    pkey, xkey = jax.random.split(key)
    raw_params = init_flownet_params(pkey, image_shape, hidden_channels, K, L)
    params = prepare_params(raw_params, hidden_channels)

    # PyTorch-style NCHW input, transposed once to NHWC for the kernels.
    x_nchw = jax.random.normal(
        xkey, (B, image_shape[2], image_shape[0], image_shape[1]), jnp.float32)
    x_nhwc = jnp.transpose(x_nchw, (0, 2, 3, 1))

    encode = jax.jit(functools.partial(flownet_encode, K=K, L=L,
                                       hidden=hidden_channels))
    z, logdet = encode(x_nhwc, params)
    jax.block_until_ready((z, logdet))

    # final z (NHWC) corresponds to output_shapes[-1] = [-1, 8, 4, 4] in NCHW
    assert z.shape == (B, 4, 4, 8), z.shape
    assert logdet.shape == (B,), logdet.shape
    print("KERNEL_OK")
</pallas_src>

<mosaic_0001>
module attributes {stable_mosaic.version = 11 : i64} {
  func.func @kernel(%arg0: i32, %arg1: memref<104x4xf32, #tpu.memory_space<vmem>>, %arg2: memref<104x1xf32, #tpu.memory_space<vmem>>, %arg3: memref<1x4xf32, #tpu.memory_space<vmem>>, %arg4: memref<1x4xf32, #tpu.memory_space<vmem>>, %arg5: memref<4x4xf32, #tpu.memory_space<vmem>>, %arg6: memref<9x2x16xbf16, #tpu.memory_space<vmem>>, %arg7: memref<1x16xf32, #tpu.memory_space<vmem>>, %arg8: memref<1x16xf32, #tpu.memory_space<vmem>>, %arg9: memref<16x16xbf16, #tpu.memory_space<vmem>>, %arg10: memref<1x16xf32, #tpu.memory_space<vmem>>, %arg11: memref<1x16xf32, #tpu.memory_space<vmem>>, %arg12: memref<9x16x2xbf16, #tpu.memory_space<vmem>>, %arg13: memref<1x2xf32, #tpu.memory_space<vmem>>, %arg14: memref<1x2xf32, #tpu.memory_space<vmem>>, %arg15: memref<104x4xf32, #tpu.memory_space<vmem>>, %arg16: memref<136x2xf32, #tpu.memory_space<vmem>>, %arg17: memref<136x16xf32, #tpu.memory_space<vmem>>) attributes {dimension_semantics = [#tpu.dimension_semantics<parallel>], iteration_bounds = array<i64: 2>, scalar_prefetch = 0 : i64, scratch_operands = 2 : i64, tpu.core_type = #tpu.core_type<tc>, window_params = [{transform_indices = @transform_0, window_bounds = array<i64: 104, 4>}, {transform_indices = @transform_1, window_bounds = array<i64: 104, 1>}, {pipeline_mode = #tpu.pipeline_mode<synchronous>, transform_indices = @transform_2, window_bounds = array<i64: 1, 4>}, {pipeline_mode = #tpu.pipeline_mode<synchronous>, transform_indices = @transform_3, window_bounds = array<i64: 1, 4>}, {pipeline_mode = #tpu.pipeline_mode<synchronous>, transform_indices = @transform_4, window_bounds = array<i64: 4, 4>}, {pipeline_mode = #tpu.pipeline_mode<synchronous>, transform_indices = @transform_5, window_bounds = array<i64: 9, 2, 16>}, {pipeline_mode = #tpu.pipeline_mode<synchronous>, transform_indices = @transform_6, window_bounds = array<i64: 1, 16>}, {pipeline_mode = #tpu.pipeline_mode<synchronous>, transform_indices = @transform_7, window_bounds = array<i64: 1, 16>}, {pipeline_mode = #tpu.pipeline_mode<synchronous>, transform_indices = @transform_8, window_bounds = array<i64: 16, 16>}, {pipeline_mode = #tpu.pipeline_mode<synchronous>, transform_indices = @transform_9, window_bounds = array<i64: 1, 16>}, {pipeline_mode = #tpu.pipeline_mode<synchronous>, transform_indices = @transform_10, window_bounds = array<i64: 1, 16>}, {pipeline_mode = #tpu.pipeline_mode<synchronous>, transform_indices = @transform_11, window_bounds = array<i64: 9, 16, 2>}, {pipeline_mode = #tpu.pipeline_mode<synchronous>, transform_indices = @transform_12, window_bounds = array<i64: 1, 2>}, {pipeline_mode = #tpu.pipeline_mode<synchronous>, transform_indices = @transform_13, window_bounds = array<i64: 1, 2>}, {transform_indices = @transform_14, window_bounds = array<i64: 104, 4>}]} {
    %c0 = arith.constant 0 : index
    %c0_0 = arith.constant 0 : index
    %0 = vector.load %arg1[%c0, %c0_0] : memref<104x4xf32, #tpu.memory_space<vmem>>, vector<104x4xf32>
    %c0_1 = arith.constant 0 : index
    %c0_2 = arith.constant 0 : index
    %1 = vector.load %arg3[%c0_1, %c0_2] : memref<1x4xf32, #tpu.memory_space<vmem>>, vector<1x4xf32>
    %2 = vector.broadcast %1 : vector<1x4xf32> to vector<104x4xf32>
    %3 = arith.addf %0, %2 : vector<104x4xf32>
    %c0_3 = arith.constant 0 : index
    %c0_4 = arith.constant 0 : index
    %4 = vector.load %arg4[%c0_3, %c0_4] : memref<1x4xf32, #tpu.memory_space<vmem>>, vector<1x4xf32>
    %5 = vector.broadcast %4 : vector<1x4xf32> to vector<104x4xf32>
    %6 = arith.mulf %3, %5 : vector<104x4xf32>
    %c0_5 = arith.constant 0 : index
    %c0_6 = arith.constant 0 : index
    %7 = vector.load %arg5[%c0_5, %c0_6] : memref<4x4xf32, #tpu.memory_space<vmem>>, vector<4x4xf32>
    %cst = arith.constant dense<0.000000e+00> : vector<104x4xf32>
    %8 = tpu.matmul %6, %7, %cst {dimension_numbers = #tpu.dot_dimension_numbers<[1], [0], [0], [1], [0, 0, 1, 1], [], []>} : vector<104x4xf32>, vector<4x4xf32>, vector<104x4xf32> -> vector<104x4xf32>
    %c0_7 = arith.constant 0 : index
    %c0_8 = arith.constant 0 : index
    %9 = vector.load %arg2[%c0_7, %c0_8] : memref<104x1xf32, #tpu.memory_space<vmem>>, vector<104x1xf32>
    %10 = vector.broadcast %9 : vector<104x1xf32> to vector<104x4xf32>
    %11 = arith.mulf %8, %10 : vector<104x4xf32>
    %12 = vector.extract_strided_slice %11 {offsets = [0, 0], sizes = [104, 2], strides = [1, 1]} : vector<104x4xf32> to vector<104x2xf32>
    %13 = vector.extract_strided_slice %11 {offsets = [0, 2], sizes = [104, 2], strides = [1, 1]} : vector<104x4xf32> to vector<104x2xf32>
    %cst_9 = arith.constant 0.000000e+00 : f32
    %14 = vector.broadcast %cst_9 : f32 to vector<136x2xf32>
    %c0_10 = arith.constant 0 : index
    %c0_11 = arith.constant 0 : index
    %15 = vector.load %arg16[%c0_10, %c0_11] : memref<136x2xf32, #tpu.memory_space<vmem>>, vector<136x2xf32>
    tpu.vector_store %arg16[%c0_10, %c0_11], %14 {strides = array<i32>} : memref<136x2xf32, #tpu.memory_space<vmem>>, vector<136x2xf32>,
    %c16 = arith.constant 16 : index
    %c0_12 = arith.constant 0 : index
    %16 = vector.load %arg16[%c16, %c0_12] : memref<136x2xf32, #tpu.memory_space<vmem>>, vector<104x2xf32>
    tpu.vector_store %arg16[%c16, %c0_12], %12 {strides = array<i32>} : memref<136x2xf32, #tpu.memory_space<vmem>>, vector<104x2xf32>,
    %cst_13 = arith.constant 0.000000e+00 : f32
    %17 = vector.broadcast %cst_13 : f32 to vector<104x16xf32>
    %c5 = arith.constant 5 : index
    %c0_14 = arith.constant 0 : index
    %18 = vector.load %arg16[%c5, %c0_14] : memref<136x2xf32, #tpu.memory_space<vmem>>, vector<104x2xf32>
    %19 = arith.truncf %18 : vector<104x2xf32> to vector<104x2xbf16>
    %c0_15 = arith.constant 0 : index
    %c0_16 = arith.constant 0 : index
    %c0_17 = arith.constant 0 : index
    %20 = vector.load %arg6[%c0_15, %c0_16, %c0_17] : memref<9x2x16xbf16, #tpu.memory_space<vmem>>, vector<1x2x16xbf16>
    %21 = vector.shape_cast %20 : vector<1x2x16xbf16> to vector<2x16xbf16>
    %cst_18 = arith.constant dense<0.000000e+00> : vector<104x16xf32>
    %22 = tpu.matmul %19, %21, %cst_18 {dimension_numbers = #tpu.dot_dimension_numbers<[1], [0], [0], [1], [0, 0, 1, 1], [], []>} : vector<104x2xbf16>, vector<2x16xbf16>, vector<104x16xf32> -> vector<104x16xf32>
    %23 = arith.addf %17, %22 : vector<104x16xf32>
    %c6 = arith.constant 6 : index
    %c0_19 = arith.constant 0 : index
    %24 = vector.load %arg16[%c6, %c0_19] : memref<136x2xf32, #tpu.memory_space<vmem>>, vector<104x2xf32>
    %25 = arith.truncf %24 : vector<104x2xf32> to vector<104x2xbf16>
    %c1 = arith.constant 1 : index
    %c0_20 = arith.constant 0 : index
    %c0_21 = arith.constant 0 : index
    %26 = vector.load %arg6[%c1, %c0_20, %c0_21] : memref<9x2x16xbf16, #tpu.memory_space<vmem>>, vector<1x2x16xbf16>
    %27 = vector.shape_cast %26 : vector<1x2x16xbf16> to vector<2x16xbf16>
    %cst_22 = arith.constant dense<0.000000e+00> : vector<104x16xf32>
    %28 = tpu.matmul %25, %27, %cst_22 {dimension_numbers = #tpu.dot_dimension_numbers<[1], [0], [0], [1], [0, 0, 1, 1], [], []>} : vector<104x2xbf16>, vector<2x16xbf16>, vector<104x16xf32> -> vector<104x16xf32>
    %29 = arith.addf %23, %28 : vector<104x16xf32>
    %c7 = arith.constant 7 : index
    %c0_23 = arith.constant 0 : index
    %30 = vector.load %arg16[%c7, %c0_23] : memref<136x2xf32, #tpu.memory_space<vmem>>, vector<104x2xf32>
    %31 = arith.truncf %30 : vector<104x2xf32> to vector<104x2xbf16>
    %c2 = arith.constant 2 : index
    %c0_24 = arith.constant 0 : index
    %c0_25 = arith.constant 0 : index
    %32 = vector.load %arg6[%c2, %c0_24, %c0_25] : memref<9x2x16xbf16, #tpu.memory_space<vmem>>, vector<1x2x16xbf16>
    %33 = vector.shape_cast %32 : vector<1x2x16xbf16> to vector<2x16xbf16>
    %cst_26 = arith.constant dense<0.000000e+00> : vector<104x16xf32>
    %34 = tpu.matmul %31, %33, %cst_26 {dimension_numbers = #tpu.dot_dimension_numbers<[1], [0], [0], [1], [0, 0, 1, 1], [], []>} : vector<104x2xbf16>, vector<2x16xbf16>, vector<104x16xf32> -> vector<104x16xf32>
    %35 = arith.addf %29, %34 : vector<104x16xf32>
    %c15 = arith.constant 15 : index
    %c0_27 = arith.constant 0 : index
    %36 = vector.load %arg16[%c15, %c0_27] : memref<136x2xf32, #tpu.memory_space<vmem>>, vector<104x2xf32>
    %37 = arith.truncf %36 : vector<104x2xf32> to vector<104x2xbf16>
    %c3 = arith.constant 3 : index
    %c0_28 = arith.constant 0 : index
    %c0_29 = arith.constant 0 : index
    %38 = vector.load %arg6[%c3, %c0_28, %c0_29] : memref<9x2x16xbf16, #tpu.memory_space<vmem>>, vector<1x2x16xbf16>
    %39 = vector.shape_cast %38 : vector<1x2x16xbf16> to vector<2x16xbf16>
    %cst_30 = arith.constant dense<0.000000e+00> : vector<104x16xf32>
    %40 = tpu.matmul %37, %39, %cst_30 {dimension_numbers = #tpu.dot_dimension_numbers<[1], [0], [0], [1], [0, 0, 1, 1], [], []>} : vector<104x2xbf16>, vector<2x16xbf16>, vector<104x16xf32> -> vector<104x16xf32>
    %41 = arith.addf %35, %40 : vector<104x16xf32>
    %c16_31 = arith.constant 16 : index
    %c0_32 = arith.constant 0 : index
    %42 = vector.load %arg16[%c16_31, %c0_32] : memref<136x2xf32, #tpu.memory_space<vmem>>, vector<104x2xf32>
    %43 = arith.truncf %42 : vector<104x2xf32> to vector<104x2xbf16>
    %c4 = arith.constant 4 : index
    %c0_33 = arith.constant 0 : index
    %c0_34 = arith.constant 0 : index
    %44 = vector.load %arg6[%c4, %c0_33, %c0_34] : memref<9x2x16xbf16, #tpu.memory_space<vmem>>, vector<1x2x16xbf16>
    %45 = vector.shape_cast %44 : vector<1x2x16xbf16> to vector<2x16xbf16>
    %cst_35 = arith.constant dense<0.000000e+00> : vector<104x16xf32>
    %46 = tpu.matmul %43, %45, %cst_35 {dimension_numbers = #tpu.dot_dimension_numbers<[1], [0], [0], [1], [0, 0, 1, 1], [], []>} : vector<104x2xbf16>, vector<2x16xbf16>, vector<104x16xf32> -> vector<104x16xf32>
    %47 = arith.addf %41, %46 : vector<104x16xf32>
    %c17 = arith.constant 17 : index
    %c0_36 = arith.constant 0 : index
    %48 = vector.load %arg16[%c17, %c0_36] : memref<136x2xf32, #tpu.memory_space<vmem>>, vector<104x2xf32>
    %49 = arith.truncf %48 : vector<104x2xf32> to vector<104x2xbf16>
    %c5_37 = arith.constant 5 : index
    %c0_38 = arith.constant 0 : index
    %c0_39 = arith.constant 0 : index
    %50 = vector.load %arg6[%c5_37, %c0_38, %c0_39] : memref<9x2x16xbf16, #tpu.memory_space<vmem>>, vector<1x2x16xbf16>
    %51 = vector.shape_cast %50 : vector<1x2x16xbf16> to vector<2x16xbf16>
    %cst_40 = arith.constant dense<0.000000e+00> : vector<104x16xf32>
    %52 = tpu.matmul %49, %51, %cst_40 {dimension_numbers = #tpu.dot_dimension_numbers<[1], [0], [0], [1], [0, 0, 1, 1], [], []>} : vector<104x2xbf16>, vector<2x16xbf16>, vector<104x16xf32> -> vector<104x16xf32>
    %53 = arith.addf %47, %52 : vector<104x16xf32>
    %c25 = arith.constant 25 : index
    %c0_41 = arith.constant 0 : index
    %54 = vector.load %arg16[%c25, %c0_41] : memref<136x2xf32, #tpu.memory_space<vmem>>, vector<104x2xf32>
    %55 = arith.truncf %54 : vector<104x2xf32> to vector<104x2xbf16>
    %c6_42 = arith.constant 6 : index
    %c0_43 = arith.constant 0 : index
    %c0_44 = arith.constant 0 : index
    %56 = vector.load %arg6[%c6_42, %c0_43, %c0_44] : memref<9x2x16xbf16, #tpu.memory_space<vmem>>, vector<1x2x16xbf16>
    %57 = vector.shape_cast %56 : vector<1x2x16xbf16> to vector<2x16xbf16>
    %cst_45 = arith.constant dense<0.000000e+00> : vector<104x16xf32>
    %58 = tpu.matmul %55, %57, %cst_45 {dimension_numbers = #tpu.dot_dimension_numbers<[1], [0], [0], [1], [0, 0, 1, 1], [], []>} : vector<104x2xbf16>, vector<2x16xbf16>, vector<104x16xf32> -> vector<104x16xf32>
    %59 = arith.addf %53, %58 : vector<104x16xf32>
    %c26 = arith.constant 26 : index
    %c0_46 = arith.constant 0 : index
    %60 = vector.load %arg16[%c26, %c0_46] : memref<136x2xf32, #tpu.memory_space<vmem>>, vector<104x2xf32>
    %61 = arith.truncf %60 : vector<104x2xf32> to vector<104x2xbf16>
    %c7_47 = arith.constant 7 : index
    %c0_48 = arith.constant 0 : index
    %c0_49 = arith.constant 0 : index
    %62 = vector.load %arg6[%c7_47, %c0_48, %c0_49] : memref<9x2x16xbf16, #tpu.memory_space<vmem>>, vector<1x2x16xbf16>
    %63 = vector.shape_cast %62 : vector<1x2x16xbf16> to vector<2x16xbf16>
    %cst_50 = arith.constant dense<0.000000e+00> : vector<104x16xf32>
    %64 = tpu.matmul %61, %63, %cst_50 {dimension_numbers = #tpu.dot_dimension_numbers<[1], [0], [0], [1], [0, 0, 1, 1], [], []>} : vector<104x2xbf16>, vector<2x16xbf16>, vector<104x16xf32> -> vector<104x16xf32>
    %65 = arith.addf %59, %64 : vector<104x16xf32>
    %c27 = arith.constant 27 : index
    %c0_51 = arith.constant 0 : index
    %66 = vector.load %arg16[%c27, %c0_51] : memref<136x2xf32, #tpu.memory_space<vmem>>, vector<104x2xf32>
    %67 = arith.truncf %66 : vector<104x2xf32> to vector<104x2xbf16>
    %c8 = arith.constant 8 : index
    %c0_52 = arith.constant 0 : index
    %c0_53 = arith.constant 0 : index
    %68 = vector.load %arg6[%c8, %c0_52, %c0_53] : memref<9x2x16xbf16, #tpu.memory_space<vmem>>, vector<1x2x16xbf16>
    %69 = vector.shape_cast %68 : vector<1x2x16xbf16> to vector<2x16xbf16>
    %cst_54 = arith.constant dense<0.000000e+00> : vector<104x16xf32>
    %70 = tpu.matmul %67, %69, %cst_54 {dimension_numbers = #tpu.dot_dimension_numbers<[1], [0], [0], [1], [0, 0, 1, 1], [], []>} : vector<104x2xbf16>, vector<2x16xbf16>, vector<104x16xf32> -> vector<104x16xf32>
    %71 = arith.addf %65, %70 : vector<104x16xf32>
    %c0_55 = arith.constant 0 : index
    %c0_56 = arith.constant 0 : index
    %72 = vector.load %arg7[%c0_55, %c0_56] : memref<1x16xf32, #tpu.memory_space<vmem>>, vector<1x16xf32>
    %73 = vector.broadcast %72 : vector<1x16xf32> to vector<104x16xf32>
    %74 = arith.addf %71, %73 : vector<104x16xf32>
    %c0_57 = arith.constant 0 : index
    %c0_58 = arith.constant 0 : index
    %75 = vector.load %arg8[%c0_57, %c0_58] : memref<1x16xf32, #tpu.memory_space<vmem>>, vector<1x16xf32>
    %76 = vector.broadcast %75 : vector<1x16xf32> to vector<104x16xf32>
    %77 = arith.mulf %74, %76 : vector<104x16xf32>
    %cst_59 = arith.constant 0.000000e+00 : f32
    %78 = vector.broadcast %cst_59 : f32 to vector<104x16xf32>
    %79 = arith.maximumf %77, %78 : vector<104x16xf32>
    %80 = arith.truncf %79 : vector<104x16xf32> to vector<104x16xbf16>
    %c0_60 = arith.constant 0 : index
    %c0_61 = arith.constant 0 : index
    %81 = vector.load %arg9[%c0_60, %c0_61] : memref<16x16xbf16, #tpu.memory_space<vmem>>, vector<16x16xbf16>
    %cst_62 = arith.constant dense<0.000000e+00> : vector<104x16xf32>
    %82 = tpu.matmul %80, %81, %cst_62 {dimension_numbers = #tpu.dot_dimension_numbers<[1], [0], [0], [1], [0, 0, 1, 1], [], []>} : vector<104x16xbf16>, vector<16x16xbf16>, vector<104x16xf32> -> vector<104x16xf32>
    %c0_63 = arith.constant 0 : index
    %c0_64 = arith.constant 0 : index
    %83 = vector.load %arg10[%c0_63, %c0_64] : memref<1x16xf32, #tpu.memory_space<vmem>>, vector<1x16xf32>
    %84 = vector.broadcast %83 : vector<1x16xf32> to vector<104x16xf32>
    %85 = arith.addf %82, %84 : vector<104x16xf32>
    %c0_65 = arith.constant 0 : index
    %c0_66 = arith.constant 0 : index
    %86 = vector.load %arg11[%c0_65, %c0_66] : memref<1x16xf32, #tpu.memory_space<vmem>>, vector<1x16xf32>
    %87 = vector.broadcast %86 : vector<1x16xf32> to vector<104x16xf32>
    %88 = arith.mulf %85, %87 : vector<104x16xf32>
    %cst_67 = arith.constant 0.000000e+00 : f32
    %89 = vector.broadcast %cst_67 : f32 to vector<104x16xf32>
    %90 = arith.maximumf %88, %89 : vector<104x16xf32>
    %c0_68 = arith.constant 0 : index
    %c0_69 = arith.constant 0 : index
    %91 = vector.load %arg2[%c0_68, %c0_69] : memref<104x1xf32, #tpu.memory_space<vmem>>, vector<104x1xf32>
    %92 = vector.broadcast %91 : vector<104x1xf32> to vector<104x16xf32>
    %93 = arith.mulf %90, %92 : vector<104x16xf32>
    %cst_70 = arith.constant 0.000000e+00 : f32
    %94 = vector.broadcast %cst_70 : f32 to vector<136x16xf32>
    %c0_71 = arith.constant 0 : index
    %c0_72 = arith.constant 0 : index
    %95 = vector.load %arg17[%c0_71, %c0_72] : memref<136x16xf32, #tpu.memory_space<vmem>>, vector<136x16xf32>
    tpu.vector_store %arg17[%c0_71, %c0_72], %94 {strides = array<i32>} : memref<136x16xf32, #tpu.memory_space<vmem>>, vector<136x16xf32>,
    %c16_73 = arith.constant 16 : index
    %c0_74 = arith.constant 0 : index
    %96 = vector.load %arg17[%c16_73, %c0_74] : memref<136x16xf32, #tpu.memory_space<vmem>>, vector<104x16xf32>
    tpu.vector_store %arg17[%c16_73, %c0_74], %93 {strides = array<i32>} : memref<136x16xf32, #tpu.memory_space<vmem>>, vector<104x16xf32>,
    %cst_75 = arith.constant 0.000000e+00 : f32
    %97 = vector.broadcast %cst_75 : f32 to vector<104x2xf32>
    %c5_76 = arith.constant 5 : index
    %c0_77 = arith.constant 0 : index
    %98 = vector.load %arg17[%c5_76, %c0_77] : memref<136x16xf32, #tpu.memory_space<vmem>>, vector<104x16xf32>
    %99 = arith.truncf %98 : vector<104x16xf32> to vector<104x16xbf16>
    %c0_78 = arith.constant 0 : index
    %c0_79 = arith.constant 0 : index
    %c0_80 = arith.constant 0 : index
    %100 = vector.load %arg12[%c0_78, %c0_79, %c0_80] : memref<9x16x2xbf16, #tpu.memory_space<vmem>>, vector<1x16x2xbf16>
    %101 = vector.shape_cast %100 : vector<1x16x2xbf16> to vector<16x2xbf16>
    %cst_81 = arith.constant dense<0.000000e+00> : vector<104x2xf32>
    %102 = tpu.matmul %99, %101, %cst_81 {dimension_numbers = #tpu.dot_dimension_numbers<[1], [0], [0], [1], [0, 0, 1, 1], [], []>} : vector<104x16xbf16>, vector<16x2xbf16>, vector<104x2xf32> -> vector<104x2xf32>
    %103 = arith.addf %97, %102 : vector<104x2xf32>
    %c6_82 = arith.constant 6 : index
    %c0_83 = arith.constant 0 : index
    %104 = vector.load %arg17[%c6_82, %c0_83] : memref<136x16xf32, #tpu.memory_space<vmem>>, vector<104x16xf32>
    %105 = arith.truncf %104 : vector<104x16xf32> to vector<104x16xbf16>
    %c1_84 = arith.constant 1 : index
    %c0_85 = arith.constant 0 : index
    %c0_86 = arith.constant 0 : index
    %106 = vector.load %arg12[%c1_84, %c0_85, %c0_86] : memref<9x16x2xbf16, #tpu.memory_space<vmem>>, vector<1x16x2xbf16>
    %107 = vector.shape_cast %106 : vector<1x16x2xbf16> to vector<16x2xbf16>
    %cst_87 = arith.constant dense<0.000000e+00> : vector<104x2xf32>
    %108 = tpu.matmul %105, %107, %cst_87 {dimension_numbers = #tpu.dot_dimension_numbers<[1], [0], [0], [1], [0, 0, 1, 1], [], []>} : vector<104x16xbf16>, vector<16x2xbf16>, vector<104x2xf32> -> vector<104x2xf32>
    %109 = arith.addf %103, %108 : vector<104x2xf32>
    %c7_88 = arith.constant 7 : index
    %c0_89 = arith.constant 0 : index
    %110 = vector.load %arg17[%c7_88, %c0_89] : memref<136x16xf32, #tpu.memory_space<vmem>>, vector<104x16xf32>
    %111 = arith.truncf %110 : vector<104x16xf32> to vector<104x16xbf16>
    %c2_90 = arith.constant 2 : index
    %c0_91 = arith.constant 0 : index
    %c0_92 = arith.constant 0 : index
    %112 = vector.load %arg12[%c2_90, %c0_91, %c0_92] : memref<9x16x2xbf16, #tpu.memory_space<vmem>>, vector<1x16x2xbf16>
    %113 = vector.shape_cast %112 : vector<1x16x2xbf16> to vector<16x2xbf16>
    %cst_93 = arith.constant dense<0.000000e+00> : vector<104x2xf32>
    %114 = tpu.matmul %111, %113, %cst_93 {dimension_numbers = #tpu.dot_dimension_numbers<[1], [0], [0], [1], [0, 0, 1, 1], [], []>} : vector<104x16xbf16>, vector<16x2xbf16>, vector<104x2xf32> -> vector<104x2xf32>
    %115 = arith.addf %109, %114 : vector<104x2xf32>
    %c15_94 = arith.constant 15 : index
    %c0_95 = arith.constant 0 : index
    %116 = vector.load %arg17[%c15_94, %c0_95] : memref<136x16xf32, #tpu.memory_space<vmem>>, vector<104x16xf32>
    %117 = arith.truncf %116 : vector<104x16xf32> to vector<104x16xbf16>
    %c3_96 = arith.constant 3 : index
    %c0_97 = arith.constant 0 : index
    %c0_98 = arith.constant 0 : index
    %118 = vector.load %arg12[%c3_96, %c0_97, %c0_98] : memref<9x16x2xbf16, #tpu.memory_space<vmem>>, vector<1x16x2xbf16>
    %119 = vector.shape_cast %118 : vector<1x16x2xbf16> to vector<16x2xbf16>
    %cst_99 = arith.constant dense<0.000000e+00> : vector<104x2xf32>
    %120 = tpu.matmul %117, %119, %cst_99 {dimension_numbers = #tpu.dot_dimension_numbers<[1], [0], [0], [1], [0, 0, 1, 1], [], []>} : vector<104x16xbf16>, vector<16x2xbf16>, vector<104x2xf32> -> vector<104x2xf32>
    %121 = arith.addf %115, %120 : vector<104x2xf32>
    %c16_100 = arith.constant 16 : index
    %c0_101 = arith.constant 0 : index
    %122 = vector.load %arg17[%c16_100, %c0_101] : memref<136x16xf32, #tpu.memory_space<vmem>>, vector<104x16xf32>
    %123 = arith.truncf %122 : vector<104x16xf32> to vector<104x16xbf16>
    %c4_102 = arith.constant 4 : index
    %c0_103 = arith.constant 0 : index
    %c0_104 = arith.constant 0 : index
    %124 = vector.load %arg12[%c4_102, %c0_103, %c0_104] : memref<9x16x2xbf16, #tpu.memory_space<vmem>>, vector<1x16x2xbf16>
    %125 = vector.shape_cast %124 : vector<1x16x2xbf16> to vector<16x2xbf16>
    %cst_105 = arith.constant dense<0.000000e+00> : vector<104x2xf32>
    %126 = tpu.matmul %123, %125, %cst_105 {dimension_numbers = #tpu.dot_dimension_numbers<[1], [0], [0], [1], [0, 0, 1, 1], [], []>} : vector<104x16xbf16>, vector<16x2xbf16>, vector<104x2xf32> -> vector<104x2xf32>
    %127 = arith.addf %121, %126 : vector<104x2xf32>
    %c17_106 = arith.constant 17 : index
    %c0_107 = arith.constant 0 : index
    %128 = vector.load %arg17[%c17_106, %c0_107] : memref<136x16xf32, #tpu.memory_space<vmem>>, vector<104x16xf32>
    %129 = arith.truncf %128 : vector<104x16xf32> to vector<104x16xbf16>
    %c5_108 = arith.constant 5 : index
    %c0_109 = arith.constant 0 : index
    %c0_110 = arith.constant 0 : index
    %130 = vector.load %arg12[%c5_108, %c0_109, %c0_110] : memref<9x16x2xbf16, #tpu.memory_space<vmem>>, vector<1x16x2xbf16>
    %131 = vector.shape_cast %130 : vector<1x16x2xbf16> to vector<16x2xbf16>
    %cst_111 = arith.constant dense<0.000000e+00> : vector<104x2xf32>
    %132 = tpu.matmul %129, %131, %cst_111 {dimension_numbers = #tpu.dot_dimension_numbers<[1], [0], [0], [1], [0, 0, 1, 1], [], []>} : vector<104x16xbf16>, vector<16x2xbf16>, vector<104x2xf32> -> vector<104x2xf32>
    %133 = arith.addf %127, %132 : vector<104x2xf32>
    %c25_112 = arith.constant 25 : index
    %c0_113 = arith.constant 0 : index
    %134 = vector.load %arg17[%c25_112, %c0_113] : memref<136x16xf32, #tpu.memory_space<vmem>>, vector<104x16xf32>
    %135 = arith.truncf %134 : vector<104x16xf32> to vector<104x16xbf16>
    %c6_114 = arith.constant 6 : index
    %c0_115 = arith.constant 0 : index
    %c0_116 = arith.constant 0 : index
    %136 = vector.load %arg12[%c6_114, %c0_115, %c0_116] : memref<9x16x2xbf16, #tpu.memory_space<vmem>>, vector<1x16x2xbf16>
    %137 = vector.shape_cast %136 : vector<1x16x2xbf16> to vector<16x2xbf16>
    %cst_117 = arith.constant dense<0.000000e+00> : vector<104x2xf32>
    %138 = tpu.matmul %135, %137, %cst_117 {dimension_numbers = #tpu.dot_dimension_numbers<[1], [0], [0], [1], [0, 0, 1, 1], [], []>} : vector<104x16xbf16>, vector<16x2xbf16>, vector<104x2xf32> -> vector<104x2xf32>
    %139 = arith.addf %133, %138 : vector<104x2xf32>
    %c26_118 = arith.constant 26 : index
    %c0_119 = arith.constant 0 : index
    %140 = vector.load %arg17[%c26_118, %c0_119] : memref<136x16xf32, #tpu.memory_space<vmem>>, vector<104x16xf32>
    %141 = arith.truncf %140 : vector<104x16xf32> to vector<104x16xbf16>
    %c7_120 = arith.constant 7 : index
    %c0_121 = arith.constant 0 : index
    %c0_122 = arith.constant 0 : index
    %142 = vector.load %arg12[%c7_120, %c0_121, %c0_122] : memref<9x16x2xbf16, #tpu.memory_space<vmem>>, vector<1x16x2xbf16>
    %143 = vector.shape_cast %142 : vector<1x16x2xbf16> to vector<16x2xbf16>
    %cst_123 = arith.constant dense<0.000000e+00> : vector<104x2xf32>
    %144 = tpu.matmul %141, %143, %cst_123 {dimension_numbers = #tpu.dot_dimension_numbers<[1], [0], [0], [1], [0, 0, 1, 1], [], []>} : vector<104x16xbf16>, vector<16x2xbf16>, vector<104x2xf32> -> vector<104x2xf32>
    %145 = arith.addf %139, %144 : vector<104x2xf32>
    %c27_124 = arith.constant 27 : index
    %c0_125 = arith.constant 0 : index
    %146 = vector.load %arg17[%c27_124, %c0_125] : memref<136x16xf32, #tpu.memory_space<vmem>>, vector<104x16xf32>
    %147 = arith.truncf %146 : vector<104x16xf32> to vector<104x16xbf16>
    %c8_126 = arith.constant 8 : index
    %c0_127 = arith.constant 0 : index
    %c0_128 = arith.constant 0 : index
    %148 = vector.load %arg12[%c8_126, %c0_127, %c0_128] : memref<9x16x2xbf16, #tpu.memory_space<vmem>>, vector<1x16x2xbf16>
    %149 = vector.shape_cast %148 : vector<1x16x2xbf16> to vector<16x2xbf16>
    %cst_129 = arith.constant dense<0.000000e+00> : vector<104x2xf32>
    %150 = tpu.matmul %147, %149, %cst_129 {dimension_numbers = #tpu.dot_dimension_numbers<[1], [0], [0], [1], [0, 0, 1, 1], [], []>} : vector<104x16xbf16>, vector<16x2xbf16>, vector<104x2xf32> -> vector<104x2xf32>
    %151 = arith.addf %145, %150 : vector<104x2xf32>
    %c0_130 = arith.constant 0 : index
    %c0_131 = arith.constant 0 : index
    %152 = vector.load %arg13[%c0_130, %c0_131] : memref<1x2xf32, #tpu.memory_space<vmem>>, vector<1x2xf32>
    %153 = vector.broadcast %152 : vector<1x2xf32> to vector<104x2xf32>
    %154 = arith.addf %151, %153 : vector<104x2xf32>
    %c0_132 = arith.constant 0 : index
    %c0_133 = arith.constant 0 : index
    %155 = vector.load %arg14[%c0_132, %c0_133] : memref<1x2xf32, #tpu.memory_space<vmem>>, vector<1x2xf32>
    %156 = vector.broadcast %155 : vector<1x2xf32> to vector<104x2xf32>
    %157 = arith.mulf %154, %156 : vector<104x2xf32>
    %158 = arith.addf %13, %157 : vector<104x2xf32>
    %159 = tpu.concatenate %12, %158 in 1 : vector<104x2xf32>, vector<104x2xf32> -> vector<104x4xf32>
    %c0_134 = arith.constant 0 : index
    %c0_135 = arith.constant 0 : index
    %160 = vector.load %arg15[%c0_134, %c0_135] : memref<104x4xf32, #tpu.memory_space<vmem>>, vector<104x4xf32>
    tpu.vector_store %arg15[%c0_134, %c0_135], %159 {strides = array<i32>} : memref<104x4xf32, #tpu.memory_space<vmem>>, vector<104x4xf32>,
    return
  }
  func.func @transform_0(%arg0: i32) -> (i32, i32) {
    %c0_i32 = arith.constant 0 : i32
    %c0_i32_0 = arith.constant 0 : i32
    return %arg0, %c0_i32 : i32, i32
  }
  func.func @transform_1(%arg0: i32) -> (i32, i32) {
    %c0_i32 = arith.constant 0 : i32
    %c0_i32_0 = arith.constant 0 : i32
    return %arg0, %c0_i32 : i32, i32
  }
  func.func @transform_2(%arg0: i32) -> (i32, i32) {
    %c0_i32 = arith.constant 0 : i32
    %c0_i32_0 = arith.constant 0 : i32
    %c0_i32_1 = arith.constant 0 : i32
    return %c0_i32, %c0_i32_0 : i32, i32
  }
  func.func @transform_3(%arg0: i32) -> (i32, i32) {
    %c0_i32 = arith.constant 0 : i32
    %c0_i32_0 = arith.constant 0 : i32
    %c0_i32_1 = arith.constant 0 : i32
    return %c0_i32, %c0_i32_0 : i32, i32
  }
  func.func @transform_4(%arg0: i32) -> (i32, i32) {
    %c0_i32 = arith.constant 0 : i32
    %c0_i32_0 = arith.constant 0 : i32
    %c0_i32_1 = arith.constant 0 : i32
    return %c0_i32, %c0_i32_0 : i32, i32
  }
  func.func @transform_5(%arg0: i32) -> (i32, i32, i32) {
    %c0_i32 = arith.constant 0 : i32
    %c0_i32_0 = arith.constant 0 : i32
    %c0_i32_1 = arith.constant 0 : i32
    %c0_i32_2 = arith.constant 0 : i32
    return %c0_i32, %c0_i32_0, %c0_i32_1 : i32, i32, i32
  }
  func.func @transform_6(%arg0: i32) -> (i32, i32) {
    %c0_i32 = arith.constant 0 : i32
    %c0_i32_0 = arith.constant 0 : i32
    %c0_i32_1 = arith.constant 0 : i32
    return %c0_i32, %c0_i32_0 : i32, i32
  }
  func.func @transform_7(%arg0: i32) -> (i32, i32) {
    %c0_i32 = arith.constant 0 : i32
    %c0_i32_0 = arith.constant 0 : i32
    %c0_i32_1 = arith.constant 0 : i32
    return %c0_i32, %c0_i32_0 : i32, i32
  }
  func.func @transform_8(%arg0: i32) -> (i32, i32) {
    %c0_i32 = arith.constant 0 : i32
    %c0_i32_0 = arith.constant 0 : i32
    %c0_i32_1 = arith.constant 0 : i32
    return %c0_i32, %c0_i32_0 : i32, i32
  }
  func.func @transform_9(%arg0: i32) -> (i32, i32) {
    %c0_i32 = arith.constant 0 : i32
    %c0_i32_0 = arith.constant 0 : i32
    %c0_i32_1 = arith.constant 0 : i32
    return %c0_i32, %c0_i32_0 : i32, i32
  }
  func.func @transform_10(%arg0: i32) -> (i32, i32) {
    %c0_i32 = arith.constant 0 : i32
    %c0_i32_0 = arith.constant 0 : i32
    %c0_i32_1 = arith.constant 0 : i32
    return %c0_i32, %c0_i32_0 : i32, i32
  }
  func.func @transform_11(%arg0: i32) -> (i32, i32, i32) {
    %c0_i32 = arith.constant 0 : i32
    %c0_i32_0 = arith.constant 0 : i32
    %c0_i32_1 = arith.constant 0 : i32
    %c0_i32_2 = arith.constant 0 : i32
    return %c0_i32, %c0_i32_0, %c0_i32_1 : i32, i32, i32
  }
  func.func @transform_12(%arg0: i32) -> (i32, i32) {
    %c0_i32 = arith.constant 0 : i32
    %c0_i32_0 = arith.constant 0 : i32
    %c0_i32_1 = arith.constant 0 : i32
    return %c0_i32, %c0_i32_0 : i32, i32
  }
  func.func @transform_13(%arg0: i32) -> (i32, i32) {
    %c0_i32 = arith.constant 0 : i32
    %c0_i32_0 = arith.constant 0 : i32
    %c0_i32_1 = arith.constant 0 : i32
    return %c0_i32, %c0_i32_0 : i32, i32
  }
  func.func @transform_14(%arg0: i32) -> (i32, i32) {
    %c0_i32 = arith.constant 0 : i32
    %c0_i32_0 = arith.constant 0 : i32
    return %arg0, %c0_i32 : i32, i32
  }
}

module attributes {stable_mosaic.version = 11 : i64} {
  func.func @kernel(%arg0: memref<200x2xf32, #tpu.memory_space<vmem>>, %arg1: memref<9x2x4xbf16, #tpu.memory_space<vmem>>, %arg2: memref<1x4xf32, #tpu.memory_space<vmem>>, %arg3: memref<1x4xf32, #tpu.memory_space<vmem>>, %arg4: memref<200x4xf32, #tpu.memory_space<vmem>>, %arg5: memref<232x2xf32, #tpu.memory_space<vmem>>) attributes {dimension_semantics = [], scalar_prefetch = 0 : i64, scratch_operands = 1 : i64, tpu.core_type = #tpu.core_type<tc>} {
    %cst = arith.constant 0.000000e+00 : f32
    %0 = vector.broadcast %cst : f32 to vector<232x2xf32>
    %c0 = arith.constant 0 : index
    %c0_0 = arith.constant 0 : index
    %1 = vector.load %arg5[%c0, %c0_0] : memref<232x2xf32, #tpu.memory_space<vmem>>, vector<232x2xf32>
    tpu.vector_store %arg5[%c0, %c0_0], %0 {strides = array<i32>} : memref<232x2xf32, #tpu.memory_space<vmem>>, vector<232x2xf32>,
    %c0_1 = arith.constant 0 : index
    %c0_2 = arith.constant 0 : index
    %2 = vector.load %arg0[%c0_1, %c0_2] : memref<200x2xf32, #tpu.memory_space<vmem>>, vector<200x2xf32>
    %c16 = arith.constant 16 : index
    %c0_3 = arith.constant 0 : index
    %3 = vector.load %arg5[%c16, %c0_3] : memref<232x2xf32, #tpu.memory_space<vmem>>, vector<200x2xf32>
    tpu.vector_store %arg5[%c16, %c0_3], %2 {strides = array<i32>} : memref<232x2xf32, #tpu.memory_space<vmem>>, vector<200x2xf32>,
    %cst_4 = arith.constant 0.000000e+00 : f32
    %4 = vector.broadcast %cst_4 : f32 to vector<200x4xf32>
    %c5 = arith.constant 5 : index
    %c0_5 = arith.constant 0 : index
    %5 = vector.load %arg5[%c5, %c0_5] : memref<232x2xf32, #tpu.memory_space<vmem>>, vector<200x2xf32>
    %6 = arith.truncf %5 : vector<200x2xf32> to vector<200x2xbf16>
    %c0_6 = arith.constant 0 : index
    %c0_7 = arith.constant 0 : index
    %c0_8 = arith.constant 0 : index
    %7 = vector.load %arg1[%c0_6, %c0_7, %c0_8] : memref<9x2x4xbf16, #tpu.memory_space<vmem>>, vector<1x2x4xbf16>
    %8 = vector.shape_cast %7 : vector<1x2x4xbf16> to vector<2x4xbf16>
    %cst_9 = arith.constant dense<0.000000e+00> : vector<200x4xf32>
    %9 = tpu.matmul %6, %8, %cst_9 {dimension_numbers = #tpu.dot_dimension_numbers<[1], [0], [0], [1], [0, 0, 1, 1], [], []>} : vector<200x2xbf16>, vector<2x4xbf16>, vector<200x4xf32> -> vector<200x4xf32>
    %10 = arith.addf %4, %9 : vector<200x4xf32>
    %c6 = arith.constant 6 : index
    %c0_10 = arith.constant 0 : index
    %11 = vector.load %arg5[%c6, %c0_10] : memref<232x2xf32, #tpu.memory_space<vmem>>, vector<200x2xf32>
    %12 = arith.truncf %11 : vector<200x2xf32> to vector<200x2xbf16>
    %c1 = arith.constant 1 : index
    %c0_11 = arith.constant 0 : index
    %c0_12 = arith.constant 0 : index
    %13 = vector.load %arg1[%c1, %c0_11, %c0_12] : memref<9x2x4xbf16, #tpu.memory_space<vmem>>, vector<1x2x4xbf16>
    %14 = vector.shape_cast %13 : vector<1x2x4xbf16> to vector<2x4xbf16>
    %cst_13 = arith.constant dense<0.000000e+00> : vector<200x4xf32>
    %15 = tpu.matmul %12, %14, %cst_13 {dimension_numbers = #tpu.dot_dimension_numbers<[1], [0], [0], [1], [0, 0, 1, 1], [], []>} : vector<200x2xbf16>, vector<2x4xbf16>, vector<200x4xf32> -> vector<200x4xf32>
    %16 = arith.addf %10, %15 : vector<200x4xf32>
    %c7 = arith.constant 7 : index
    %c0_14 = arith.constant 0 : index
    %17 = vector.load %arg5[%c7, %c0_14] : memref<232x2xf32, #tpu.memory_space<vmem>>, vector<200x2xf32>
    %18 = arith.truncf %17 : vector<200x2xf32> to vector<200x2xbf16>
    %c2 = arith.constant 2 : index
    %c0_15 = arith.constant 0 : index
    %c0_16 = arith.constant 0 : index
    %19 = vector.load %arg1[%c2, %c0_15, %c0_16] : memref<9x2x4xbf16, #tpu.memory_space<vmem>>, vector<1x2x4xbf16>
    %20 = vector.shape_cast %19 : vector<1x2x4xbf16> to vector<2x4xbf16>
    %cst_17 = arith.constant dense<0.000000e+00> : vector<200x4xf32>
    %21 = tpu.matmul %18, %20, %cst_17 {dimension_numbers = #tpu.dot_dimension_numbers<[1], [0], [0], [1], [0, 0, 1, 1], [], []>} : vector<200x2xbf16>, vector<2x4xbf16>, vector<200x4xf32> -> vector<200x4xf32>
    %22 = arith.addf %16, %21 : vector<200x4xf32>
    %c15 = arith.constant 15 : index
    %c0_18 = arith.constant 0 : index
    %23 = vector.load %arg5[%c15, %c0_18] : memref<232x2xf32, #tpu.memory_space<vmem>>, vector<200x2xf32>
    %24 = arith.truncf %23 : vector<200x2xf32> to vector<200x2xbf16>
    %c3 = arith.constant 3 : index
    %c0_19 = arith.constant 0 : index
    %c0_20 = arith.constant 0 : index
    %25 = vector.load %arg1[%c3, %c0_19, %c0_20] : memref<9x2x4xbf16, #tpu.memory_space<vmem>>, vector<1x2x4xbf16>
    %26 = vector.shape_cast %25 : vector<1x2x4xbf16> to vector<2x4xbf16>
    %cst_21 = arith.constant dense<0.000000e+00> : vector<200x4xf32>
    %27 = tpu.matmul %24, %26, %cst_21 {dimension_numbers = #tpu.dot_dimension_numbers<[1], [0], [0], [1], [0, 0, 1, 1], [], []>} : vector<200x2xbf16>, vector<2x4xbf16>, vector<200x4xf32> -> vector<200x4xf32>
    %28 = arith.addf %22, %27 : vector<200x4xf32>
    %c16_22 = arith.constant 16 : index
    %c0_23 = arith.constant 0 : index
    %29 = vector.load %arg5[%c16_22, %c0_23] : memref<232x2xf32, #tpu.memory_space<vmem>>, vector<200x2xf32>
    %30 = arith.truncf %29 : vector<200x2xf32> to vector<200x2xbf16>
    %c4 = arith.constant 4 : index
    %c0_24 = arith.constant 0 : index
    %c0_25 = arith.constant 0 : index
    %31 = vector.load %arg1[%c4, %c0_24, %c0_25] : memref<9x2x4xbf16, #tpu.memory_space<vmem>>, vector<1x2x4xbf16>
    %32 = vector.shape_cast %31 : vector<1x2x4xbf16> to vector<2x4xbf16>
    %cst_26 = arith.constant dense<0.000000e+00> : vector<200x4xf32>
    %33 = tpu.matmul %30, %32, %cst_26 {dimension_numbers = #tpu.dot_dimension_numbers<[1], [0], [0], [1], [0, 0, 1, 1], [], []>} : vector<200x2xbf16>, vector<2x4xbf16>, vector<200x4xf32> -> vector<200x4xf32>
    %34 = arith.addf %28, %33 : vector<200x4xf32>
    %c17 = arith.constant 17 : index
    %c0_27 = arith.constant 0 : index
    %35 = vector.load %arg5[%c17, %c0_27] : memref<232x2xf32, #tpu.memory_space<vmem>>, vector<200x2xf32>
    %36 = arith.truncf %35 : vector<200x2xf32> to vector<200x2xbf16>
    %c5_28 = arith.constant 5 : index
    %c0_29 = arith.constant 0 : index
    %c0_30 = arith.constant 0 : index
    %37 = vector.load %arg1[%c5_28, %c0_29, %c0_30] : memref<9x2x4xbf16, #tpu.memory_space<vmem>>, vector<1x2x4xbf16>
    %38 = vector.shape_cast %37 : vector<1x2x4xbf16> to vector<2x4xbf16>
    %cst_31 = arith.constant dense<0.000000e+00> : vector<200x4xf32>
    %39 = tpu.matmul %36, %38, %cst_31 {dimension_numbers = #tpu.dot_dimension_numbers<[1], [0], [0], [1], [0, 0, 1, 1], [], []>} : vector<200x2xbf16>, vector<2x4xbf16>, vector<200x4xf32> -> vector<200x4xf32>
    %40 = arith.addf %34, %39 : vector<200x4xf32>
    %c25 = arith.constant 25 : index
    %c0_32 = arith.constant 0 : index
    %41 = vector.load %arg5[%c25, %c0_32] : memref<232x2xf32, #tpu.memory_space<vmem>>, vector<200x2xf32>
    %42 = arith.truncf %41 : vector<200x2xf32> to vector<200x2xbf16>
    %c6_33 = arith.constant 6 : index
    %c0_34 = arith.constant 0 : index
    %c0_35 = arith.constant 0 : index
    %43 = vector.load %arg1[%c6_33, %c0_34, %c0_35] : memref<9x2x4xbf16, #tpu.memory_space<vmem>>, vector<1x2x4xbf16>
    %44 = vector.shape_cast %43 : vector<1x2x4xbf16> to vector<2x4xbf16>
    %cst_36 = arith.constant dense<0.000000e+00> : vector<200x4xf32>
    %45 = tpu.matmul %42, %44, %cst_36 {dimension_numbers = #tpu.dot_dimension_numbers<[1], [0], [0], [1], [0, 0, 1, 1], [], []>} : vector<200x2xbf16>, vector<2x4xbf16>, vector<200x4xf32> -> vector<200x4xf32>
    %46 = arith.addf %40, %45 : vector<200x4xf32>
    %c26 = arith.constant 26 : index
    %c0_37 = arith.constant 0 : index
    %47 = vector.load %arg5[%c26, %c0_37] : memref<232x2xf32, #tpu.memory_space<vmem>>, vector<200x2xf32>
    %48 = arith.truncf %47 : vector<200x2xf32> to vector<200x2xbf16>
    %c7_38 = arith.constant 7 : index
    %c0_39 = arith.constant 0 : index
    %c0_40 = arith.constant 0 : index
    %49 = vector.load %arg1[%c7_38, %c0_39, %c0_40] : memref<9x2x4xbf16, #tpu.memory_space<vmem>>, vector<1x2x4xbf16>
    %50 = vector.shape_cast %49 : vector<1x2x4xbf16> to vector<2x4xbf16>
    %cst_41 = arith.constant dense<0.000000e+00> : vector<200x4xf32>
    %51 = tpu.matmul %48, %50, %cst_41 {dimension_numbers = #tpu.dot_dimension_numbers<[1], [0], [0], [1], [0, 0, 1, 1], [], []>} : vector<200x2xbf16>, vector<2x4xbf16>, vector<200x4xf32> -> vector<200x4xf32>
    %52 = arith.addf %46, %51 : vector<200x4xf32>
    %c27 = arith.constant 27 : index
    %c0_42 = arith.constant 0 : index
    %53 = vector.load %arg5[%c27, %c0_42] : memref<232x2xf32, #tpu.memory_space<vmem>>, vector<200x2xf32>
    %54 = arith.truncf %53 : vector<200x2xf32> to vector<200x2xbf16>
    %c8 = arith.constant 8 : index
    %c0_43 = arith.constant 0 : index
    %c0_44 = arith.constant 0 : index
    %55 = vector.load %arg1[%c8, %c0_43, %c0_44] : memref<9x2x4xbf16, #tpu.memory_space<vmem>>, vector<1x2x4xbf16>
    %56 = vector.shape_cast %55 : vector<1x2x4xbf16> to vector<2x4xbf16>
    %cst_45 = arith.constant dense<0.000000e+00> : vector<200x4xf32>
    %57 = tpu.matmul %54, %56, %cst_45 {dimension_numbers = #tpu.dot_dimension_numbers<[1], [0], [0], [1], [0, 0, 1, 1], [], []>} : vector<200x2xbf16>, vector<2x4xbf16>, vector<200x4xf32> -> vector<200x4xf32>
    %58 = arith.addf %52, %57 : vector<200x4xf32>
    %c0_46 = arith.constant 0 : index
    %c0_47 = arith.constant 0 : index
    %59 = vector.load %arg2[%c0_46, %c0_47] : memref<1x4xf32, #tpu.memory_space<vmem>>, vector<1x4xf32>
    %60 = vector.broadcast %59 : vector<1x4xf32> to vector<200x4xf32>
    %61 = arith.addf %58, %60 : vector<200x4xf32>
    %c0_48 = arith.constant 0 : index
    %c0_49 = arith.constant 0 : index
    %62 = vector.load %arg3[%c0_48, %c0_49] : memref<1x4xf32, #tpu.memory_space<vmem>>, vector<1x4xf32>
    %63 = vector.broadcast %62 : vector<1x4xf32> to vector<200x4xf32>
    %64 = arith.mulf %61, %63 : vector<200x4xf32>
    %c0_50 = arith.constant 0 : index
    %c0_51 = arith.constant 0 : index
    %65 = vector.load %arg4[%c0_50, %c0_51] : memref<200x4xf32, #tpu.memory_space<vmem>>, vector<200x4xf32>
    tpu.vector_store %arg4[%c0_50, %c0_51], %64 {strides = array<i32>} : memref<200x4xf32, #tpu.memory_space<vmem>>, vector<200x4xf32>,
    return
  }
}

module attributes {stable_mosaic.version = 11 : i64} {
  func.func @_gauss_logp_kernel(%arg0: memref<2x128xf32, #tpu.memory_space<vmem>>, %arg1: memref<2x128xf32, #tpu.memory_space<vmem>>, %arg2: memref<2x128xf32, #tpu.memory_space<vmem>>, %arg3: memref<2x1xf32, #tpu.memory_space<vmem>>) attributes {dimension_semantics = [], scalar_prefetch = 0 : i64, scratch_operands = 0 : i64, tpu.core_type = #tpu.core_type<tc>} {
    %c0 = arith.constant 0 : index
    %c0_0 = arith.constant 0 : index
    %0 = vector.load %arg2[%c0, %c0_0] : memref<2x128xf32, #tpu.memory_space<vmem>>, vector<2x128xf32>
    %c0_1 = arith.constant 0 : index
    %c0_2 = arith.constant 0 : index
    %1 = vector.load %arg0[%c0_1, %c0_2] : memref<2x128xf32, #tpu.memory_space<vmem>>, vector<2x128xf32>
    %2 = arith.subf %0, %1 : vector<2x128xf32>
    %c0_3 = arith.constant 0 : index
    %c0_4 = arith.constant 0 : index
    %3 = vector.load %arg1[%c0_3, %c0_4] : memref<2x128xf32, #tpu.memory_space<vmem>>, vector<2x128xf32>
    %cst = arith.constant 2.000000e+00 : f32
    %4 = vector.broadcast %cst : f32 to vector<2x128xf32>
    %5 = arith.mulf %4, %3 : vector<2x128xf32>
    %cst_5 = arith.constant 1.83787704 : f32
    %6 = vector.broadcast %cst_5 : f32 to vector<2x128xf32>
    %7 = arith.addf %6, %5 : vector<2x128xf32>
    %8 = arith.mulf %2, %2 : vector<2x128xf32>
    %c0_6 = arith.constant 0 : index
    %c0_7 = arith.constant 0 : index
    %9 = vector.load %arg1[%c0_6, %c0_7] : memref<2x128xf32, #tpu.memory_space<vmem>>, vector<2x128xf32>
    %cst_8 = arith.constant -2.000000e+00 : f32
    %10 = vector.broadcast %cst_8 : f32 to vector<2x128xf32>
    %11 = arith.mulf %10, %9 : vector<2x128xf32>
    %12 = math.exp %11 : vector<2x128xf32>
    %13 = arith.mulf %8, %12 : vector<2x128xf32>
    %14 = arith.addf %7, %13 : vector<2x128xf32>
    %cst_9 = arith.constant -5.000000e-01 : f32
    %15 = vector.broadcast %cst_9 : f32 to vector<2x128xf32>
    %16 = arith.mulf %15, %14 : vector<2x128xf32>
    %cst_10 = arith.constant dense<0.000000e+00> : vector<2xf32>
    %17 = vector.multi_reduction <add>, %16, %cst_10 [1] : vector<2x128xf32> to vector<2xf32>
    %18 = vector.shape_cast %17 : vector<2xf32> to vector<2x1xf32>
    %c0_11 = arith.constant 0 : index
    %c0_12 = arith.constant 0 : index
    %19 = vector.load %arg3[%c0_11, %c0_12] : memref<2x1xf32, #tpu.memory_space<vmem>>, vector<2x1xf32>
    tpu.vector_store %arg3[%c0_11, %c0_12], %18 {strides = array<i32>} : memref<2x1xf32, #tpu.memory_space<vmem>>, vector<2x1xf32>,
    return
  }
}

module attributes {stable_mosaic.version = 11 : i64} {
  func.func @kernel(%arg0: i32, %arg1: memref<40x8xf32, #tpu.memory_space<vmem>>, %arg2: memref<40x1xf32, #tpu.memory_space<vmem>>, %arg3: memref<1x8xf32, #tpu.memory_space<vmem>>, %arg4: memref<1x8xf32, #tpu.memory_space<vmem>>, %arg5: memref<8x8xf32, #tpu.memory_space<vmem>>, %arg6: memref<9x4x16xbf16, #tpu.memory_space<vmem>>, %arg7: memref<1x16xf32, #tpu.memory_space<vmem>>, %arg8: memref<1x16xf32, #tpu.memory_space<vmem>>, %arg9: memref<16x16xbf16, #tpu.memory_space<vmem>>, %arg10: memref<1x16xf32, #tpu.memory_space<vmem>>, %arg11: memref<1x16xf32, #tpu.memory_space<vmem>>, %arg12: memref<9x16x4xbf16, #tpu.memory_space<vmem>>, %arg13: memref<1x4xf32, #tpu.memory_space<vmem>>, %arg14: memref<1x4xf32, #tpu.memory_space<vmem>>, %arg15: memref<40x8xf32, #tpu.memory_space<vmem>>, %arg16: memref<56x4xf32, #tpu.memory_space<vmem>>, %arg17: memref<56x16xf32, #tpu.memory_space<vmem>>) attributes {dimension_semantics = [#tpu.dimension_semantics<parallel>], iteration_bounds = array<i64: 2>, scalar_prefetch = 0 : i64, scratch_operands = 2 : i64, tpu.core_type = #tpu.core_type<tc>, window_params = [{transform_indices = @transform_0, window_bounds = array<i64: 40, 8>}, {transform_indices = @transform_1, window_bounds = array<i64: 40, 1>}, {pipeline_mode = #tpu.pipeline_mode<synchronous>, transform_indices = @transform_2, window_bounds = array<i64: 1, 8>}, {pipeline_mode = #tpu.pipeline_mode<synchronous>, transform_indices = @transform_3, window_bounds = array<i64: 1, 8>}, {pipeline_mode = #tpu.pipeline_mode<synchronous>, transform_indices = @transform_4, window_bounds = array<i64: 8, 8>}, {pipeline_mode = #tpu.pipeline_mode<synchronous>, transform_indices = @transform_5, window_bounds = array<i64: 9, 4, 16>}, {pipeline_mode = #tpu.pipeline_mode<synchronous>, transform_indices = @transform_6, window_bounds = array<i64: 1, 16>}, {pipeline_mode = #tpu.pipeline_mode<synchronous>, transform_indices = @transform_7, window_bounds = array<i64: 1, 16>}, {pipeline_mode = #tpu.pipeline_mode<synchronous>, transform_indices = @transform_8, window_bounds = array<i64: 16, 16>}, {pipeline_mode = #tpu.pipeline_mode<synchronous>, transform_indices = @transform_9, window_bounds = array<i64: 1, 16>}, {pipeline_mode = #tpu.pipeline_mode<synchronous>, transform_indices = @transform_10, window_bounds = array<i64: 1, 16>}, {pipeline_mode = #tpu.pipeline_mode<synchronous>, transform_indices = @transform_11, window_bounds = array<i64: 9, 16, 4>}, {pipeline_mode = #tpu.pipeline_mode<synchronous>, transform_indices = @transform_12, window_bounds = array<i64: 1, 4>}, {pipeline_mode = #tpu.pipeline_mode<synchronous>, transform_indices = @transform_13, window_bounds = array<i64: 1, 4>}, {transform_indices = @transform_14, window_bounds = array<i64: 40, 8>}]} {
    %c0 = arith.constant 0 : index
    %c0_0 = arith.constant 0 : index
    %0 = vector.load %arg1[%c0, %c0_0] : memref<40x8xf32, #tpu.memory_space<vmem>>, vector<40x8xf32>
    %c0_1 = arith.constant 0 : index
    %c0_2 = arith.constant 0 : index
    %1 = vector.load %arg3[%c0_1, %c0_2] : memref<1x8xf32, #tpu.memory_space<vmem>>, vector<1x8xf32>
    %2 = vector.broadcast %1 : vector<1x8xf32> to vector<40x8xf32>
    %3 = arith.addf %0, %2 : vector<40x8xf32>
    %c0_3 = arith.constant 0 : index
    %c0_4 = arith.constant 0 : index
    %4 = vector.load %arg4[%c0_3, %c0_4] : memref<1x8xf32, #tpu.memory_space<vmem>>, vector<1x8xf32>
    %5 = vector.broadcast %4 : vector<1x8xf32> to vector<40x8xf32>
    %6 = arith.mulf %3, %5 : vector<40x8xf32>
    %c0_5 = arith.constant 0 : index
    %c0_6 = arith.constant 0 : index
    %7 = vector.load %arg5[%c0_5, %c0_6] : memref<8x8xf32, #tpu.memory_space<vmem>>, vector<8x8xf32>
    %cst = arith.constant dense<0.000000e+00> : vector<40x8xf32>
    %8 = tpu.matmul %6, %7, %cst {dimension_numbers = #tpu.dot_dimension_numbers<[1], [0], [0], [1], [0, 0, 1, 1], [], []>} : vector<40x8xf32>, vector<8x8xf32>, vector<40x8xf32> -> vector<40x8xf32>
    %c0_7 = arith.constant 0 : index
    %c0_8 = arith.constant 0 : index
    %9 = vector.load %arg2[%c0_7, %c0_8] : memref<40x1xf32, #tpu.memory_space<vmem>>, vector<40x1xf32>
    %10 = vector.broadcast %9 : vector<40x1xf32> to vector<40x8xf32>
    %11 = arith.mulf %8, %10 : vector<40x8xf32>
    %12 = vector.extract_strided_slice %11 {offsets = [0, 0], sizes = [40, 4], strides = [1, 1]} : vector<40x8xf32> to vector<40x4xf32>
    %13 = vector.extract_strided_slice %11 {offsets = [0, 4], sizes = [40, 4], strides = [1, 1]} : vector<40x8xf32> to vector<40x4xf32>
    %cst_9 = arith.constant 0.000000e+00 : f32
    %14 = vector.broadcast %cst_9 : f32 to vector<56x4xf32>
    %c0_10 = arith.constant 0 : index
    %c0_11 = arith.constant 0 : index
    %15 = vector.load %arg16[%c0_10, %c0_11] : memref<56x4xf32, #tpu.memory_space<vmem>>, vector<56x4xf32>
    tpu.vector_store %arg16[%c0_10, %c0_11], %14 {strides = array<i32>} : memref<56x4xf32, #tpu.memory_space<vmem>>, vector<56x4xf32>,
    %c8 = arith.constant 8 : index
    %c0_12 = arith.constant 0 : index
    %16 = vector.load %arg16[%c8, %c0_12] : memref<56x4xf32, #tpu.memory_space<vmem>>, vector<40x4xf32>
    tpu.vector_store %arg16[%c8, %c0_12], %12 {strides = array<i32>} : memref<56x4xf32, #tpu.memory_space<vmem>>, vector<40x4xf32>,
    %cst_13 = arith.constant 0.000000e+00 : f32
    %17 = vector.broadcast %cst_13 : f32 to vector<40x16xf32>
    %c1 = arith.constant 1 : index
    %c0_14 = arith.constant 0 : index
    %18 = vector.load %arg16[%c1, %c0_14] : memref<56x4xf32, #tpu.memory_space<vmem>>, vector<40x4xf32>
    %19 = arith.truncf %18 : vector<40x4xf32> to vector<40x4xbf16>
    %c0_15 = arith.constant 0 : index
    %c0_16 = arith.constant 0 : index
    %c0_17 = arith.constant 0 : index
    %20 = vector.load %arg6[%c0_15, %c0_16, %c0_17] : memref<9x4x16xbf16, #tpu.memory_space<vmem>>, vector<1x4x16xbf16>
    %21 = vector.shape_cast %20 : vector<1x4x16xbf16> to vector<4x16xbf16>
    %cst_18 = arith.constant dense<0.000000e+00> : vector<40x16xf32>
    %22 = tpu.matmul %19, %21, %cst_18 {dimension_numbers = #tpu.dot_dimension_numbers<[1], [0], [0], [1], [0, 0, 1, 1], [], []>} : vector<40x4xbf16>, vector<4x16xbf16>, vector<40x16xf32> -> vector<40x16xf32>
    %23 = arith.addf %17, %22 : vector<40x16xf32>
    %c2 = arith.constant 2 : index
    %c0_19 = arith.constant 0 : index
    %24 = vector.load %arg16[%c2, %c0_19] : memref<56x4xf32, #tpu.memory_space<vmem>>, vector<40x4xf32>
    %25 = arith.truncf %24 : vector<40x4xf32> to vector<40x4xbf16>
    %c1_20 = arith.constant 1 : index
    %c0_21 = arith.constant 0 : index
    %c0_22 = arith.constant 0 : index
    %26 = vector.load %arg6[%c1_20, %c0_21, %c0_22] : memref<9x4x16xbf16, #tpu.memory_space<vmem>>, vector<1x4x16xbf16>
    %27 = vector.shape_cast %26 : vector<1x4x16xbf16> to vector<4x16xbf16>
    %cst_23 = arith.constant dense<0.000000e+00> : vector<40x16xf32>
    %28 = tpu.matmul %25, %27, %cst_23 {dimension_numbers = #tpu.dot_dimension_numbers<[1], [0], [0], [1], [0, 0, 1, 1], [], []>} : vector<40x4xbf16>, vector<4x16xbf16>, vector<40x16xf32> -> vector<40x16xf32>
    %29 = arith.addf %23, %28 : vector<40x16xf32>
    %c3 = arith.constant 3 : index
    %c0_24 = arith.constant 0 : index
    %30 = vector.load %arg16[%c3, %c0_24] : memref<56x4xf32, #tpu.memory_space<vmem>>, vector<40x4xf32>
    %31 = arith.truncf %30 : vector<40x4xf32> to vector<40x4xbf16>
    %c2_25 = arith.constant 2 : index
    %c0_26 = arith.constant 0 : index
    %c0_27 = arith.constant 0 : index
    %32 = vector.load %arg6[%c2_25, %c0_26, %c0_27] : memref<9x4x16xbf16, #tpu.memory_space<vmem>>, vector<1x4x16xbf16>
    %33 = vector.shape_cast %32 : vector<1x4x16xbf16> to vector<4x16xbf16>
    %cst_28 = arith.constant dense<0.000000e+00> : vector<40x16xf32>
    %34 = tpu.matmul %31, %33, %cst_28 {dimension_numbers = #tpu.dot_dimension_numbers<[1], [0], [0], [1], [0, 0, 1, 1], [], []>} : vector<40x4xbf16>, vector<4x16xbf16>, vector<40x16xf32> -> vector<40x16xf32>
    %35 = arith.addf %29, %34 : vector<40x16xf32>
    %c7 = arith.constant 7 : index
    %c0_29 = arith.constant 0 : index
    %36 = vector.load %arg16[%c7, %c0_29] : memref<56x4xf32, #tpu.memory_space<vmem>>, vector<40x4xf32>
    %37 = arith.truncf %36 : vector<40x4xf32> to vector<40x4xbf16>
    %c3_30 = arith.constant 3 : index
    %c0_31 = arith.constant 0 : index
    %c0_32 = arith.constant 0 : index
    %38 = vector.load %arg6[%c3_30, %c0_31, %c0_32] : memref<9x4x16xbf16, #tpu.memory_space<vmem>>, vector<1x4x16xbf16>
    %39 = vector.shape_cast %38 : vector<1x4x16xbf16> to vector<4x16xbf16>
    %cst_33 = arith.constant dense<0.000000e+00> : vector<40x16xf32>
    %40 = tpu.matmul %37, %39, %cst_33 {dimension_numbers = #tpu.dot_dimension_numbers<[1], [0], [0], [1], [0, 0, 1, 1], [], []>} : vector<40x4xbf16>, vector<4x16xbf16>, vector<40x16xf32> -> vector<40x16xf32>
    %41 = arith.addf %35, %40 : vector<40x16xf32>
    %c8_34 = arith.constant 8 : index
    %c0_35 = arith.constant 0 : index
    %42 = vector.load %arg16[%c8_34, %c0_35] : memref<56x4xf32, #tpu.memory_space<vmem>>, vector<40x4xf32>
    %43 = arith.truncf %42 : vector<40x4xf32> to vector<40x4xbf16>
    %c4 = arith.constant 4 : index
    %c0_36 = arith.constant 0 : index
    %c0_37 = arith.constant 0 : index
    %44 = vector.load %arg6[%c4, %c0_36, %c0_37] : memref<9x4x16xbf16, #tpu.memory_space<vmem>>, vector<1x4x16xbf16>
    %45 = vector.shape_cast %44 : vector<1x4x16xbf16> to vector<4x16xbf16>
    %cst_38 = arith.constant dense<0.000000e+00> : vector<40x16xf32>
    %46 = tpu.matmul %43, %45, %cst_38 {dimension_numbers = #tpu.dot_dimension_numbers<[1], [0], [0], [1], [0, 0, 1, 1], [], []>} : vector<40x4xbf16>, vector<4x16xbf16>, vector<40x16xf32> -> vector<40x16xf32>
    %47 = arith.addf %41, %46 : vector<40x16xf32>
    %c9 = arith.constant 9 : index
    %c0_39 = arith.constant 0 : index
    %48 = vector.load %arg16[%c9, %c0_39] : memref<56x4xf32, #tpu.memory_space<vmem>>, vector<40x4xf32>
    %49 = arith.truncf %48 : vector<40x4xf32> to vector<40x4xbf16>
    %c5 = arith.constant 5 : index
    %c0_40 = arith.constant 0 : index
    %c0_41 = arith.constant 0 : index
    %50 = vector.load %arg6[%c5, %c0_40, %c0_41] : memref<9x4x16xbf16, #tpu.memory_space<vmem>>, vector<1x4x16xbf16>
    %51 = vector.shape_cast %50 : vector<1x4x16xbf16> to vector<4x16xbf16>
    %cst_42 = arith.constant dense<0.000000e+00> : vector<40x16xf32>
    %52 = tpu.matmul %49, %51, %cst_42 {dimension_numbers = #tpu.dot_dimension_numbers<[1], [0], [0], [1], [0, 0, 1, 1], [], []>} : vector<40x4xbf16>, vector<4x16xbf16>, vector<40x16xf32> -> vector<40x16xf32>
    %53 = arith.addf %47, %52 : vector<40x16xf32>
    %c13 = arith.constant 13 : index
    %c0_43 = arith.constant 0 : index
    %54 = vector.load %arg16[%c13, %c0_43] : memref<56x4xf32, #tpu.memory_space<vmem>>, vector<40x4xf32>
    %55 = arith.truncf %54 : vector<40x4xf32> to vector<40x4xbf16>
    %c6 = arith.constant 6 : index
    %c0_44 = arith.constant 0 : index
    %c0_45 = arith.constant 0 : index
    %56 = vector.load %arg6[%c6, %c0_44, %c0_45] : memref<9x4x16xbf16, #tpu.memory_space<vmem>>, vector<1x4x16xbf16>
    %57 = vector.shape_cast %56 : vector<1x4x16xbf16> to vector<4x16xbf16>
    %cst_46 = arith.constant dense<0.000000e+00> : vector<40x16xf32>
    %58 = tpu.matmul %55, %57, %cst_46 {dimension_numbers = #tpu.dot_dimension_numbers<[1], [0], [0], [1], [0, 0, 1, 1], [], []>} : vector<40x4xbf16>, vector<4x16xbf16>, vector<40x16xf32> -> vector<40x16xf32>
    %59 = arith.addf %53, %58 : vector<40x16xf32>
    %c14 = arith.constant 14 : index
    %c0_47 = arith.constant 0 : index
    %60 = vector.load %arg16[%c14, %c0_47] : memref<56x4xf32, #tpu.memory_space<vmem>>, vector<40x4xf32>
    %61 = arith.truncf %60 : vector<40x4xf32> to vector<40x4xbf16>
    %c7_48 = arith.constant 7 : index
    %c0_49 = arith.constant 0 : index
    %c0_50 = arith.constant 0 : index
    %62 = vector.load %arg6[%c7_48, %c0_49, %c0_50] : memref<9x4x16xbf16, #tpu.memory_space<vmem>>, vector<1x4x16xbf16>
    %63 = vector.shape_cast %62 : vector<1x4x16xbf16> to vector<4x16xbf16>
    %cst_51 = arith.constant dense<0.000000e+00> : vector<40x16xf32>
    %64 = tpu.matmul %61, %63, %cst_51 {dimension_numbers = #tpu.dot_dimension_numbers<[1], [0], [0], [1], [0, 0, 1, 1], [], []>} : vector<40x4xbf16>, vector<4x16xbf16>, vector<40x16xf32> -> vector<40x16xf32>
    %65 = arith.addf %59, %64 : vector<40x16xf32>
    %c15 = arith.constant 15 : index
    %c0_52 = arith.constant 0 : index
    %66 = vector.load %arg16[%c15, %c0_52] : memref<56x4xf32, #tpu.memory_space<vmem>>, vector<40x4xf32>
    %67 = arith.truncf %66 : vector<40x4xf32> to vector<40x4xbf16>
    %c8_53 = arith.constant 8 : index
    %c0_54 = arith.constant 0 : index
    %c0_55 = arith.constant 0 : index
    %68 = vector.load %arg6[%c8_53, %c0_54, %c0_55] : memref<9x4x16xbf16, #tpu.memory_space<vmem>>, vector<1x4x16xbf16>
    %69 = vector.shape_cast %68 : vector<1x4x16xbf16> to vector<4x16xbf16>
    %cst_56 = arith.constant dense<0.000000e+00> : vector<40x16xf32>
    %70 = tpu.matmul %67, %69, %cst_56 {dimension_numbers = #tpu.dot_dimension_numbers<[1], [0], [0], [1], [0, 0, 1, 1], [], []>} : vector<40x4xbf16>, vector<4x16xbf16>, vector<40x16xf32> -> vector<40x16xf32>
    %71 = arith.addf %65, %70 : vector<40x16xf32>
    %c0_57 = arith.constant 0 : index
    %c0_58 = arith.constant 0 : index
    %72 = vector.load %arg7[%c0_57, %c0_58] : memref<1x16xf32, #tpu.memory_space<vmem>>, vector<1x16xf32>
    %73 = vector.broadcast %72 : vector<1x16xf32> to vector<40x16xf32>
    %74 = arith.addf %71, %73 : vector<40x16xf32>
    %c0_59 = arith.constant 0 : index
    %c0_60 = arith.constant 0 : index
    %75 = vector.load %arg8[%c0_59, %c0_60] : memref<1x16xf32, #tpu.memory_space<vmem>>, vector<1x16xf32>
    %76 = vector.broadcast %75 : vector<1x16xf32> to vector<40x16xf32>
    %77 = arith.mulf %74, %76 : vector<40x16xf32>
    %cst_61 = arith.constant 0.000000e+00 : f32
    %78 = vector.broadcast %cst_61 : f32 to vector<40x16xf32>
    %79 = arith.maximumf %77, %78 : vector<40x16xf32>
    %80 = arith.truncf %79 : vector<40x16xf32> to vector<40x16xbf16>
    %c0_62 = arith.constant 0 : index
    %c0_63 = arith.constant 0 : index
    %81 = vector.load %arg9[%c0_62, %c0_63] : memref<16x16xbf16, #tpu.memory_space<vmem>>, vector<16x16xbf16>
    %cst_64 = arith.constant dense<0.000000e+00> : vector<40x16xf32>
    %82 = tpu.matmul %80, %81, %cst_64 {dimension_numbers = #tpu.dot_dimension_numbers<[1], [0], [0], [1], [0, 0, 1, 1], [], []>} : vector<40x16xbf16>, vector<16x16xbf16>, vector<40x16xf32> -> vector<40x16xf32>
    %c0_65 = arith.constant 0 : index
    %c0_66 = arith.constant 0 : index
    %83 = vector.load %arg10[%c0_65, %c0_66] : memref<1x16xf32, #tpu.memory_space<vmem>>, vector<1x16xf32>
    %84 = vector.broadcast %83 : vector<1x16xf32> to vector<40x16xf32>
    %85 = arith.addf %82, %84 : vector<40x16xf32>
    %c0_67 = arith.constant 0 : index
    %c0_68 = arith.constant 0 : index
    %86 = vector.load %arg11[%c0_67, %c0_68] : memref<1x16xf32, #tpu.memory_space<vmem>>, vector<1x16xf32>
    %87 = vector.broadcast %86 : vector<1x16xf32> to vector<40x16xf32>
    %88 = arith.mulf %85, %87 : vector<40x16xf32>
    %cst_69 = arith.constant 0.000000e+00 : f32
    %89 = vector.broadcast %cst_69 : f32 to vector<40x16xf32>
    %90 = arith.maximumf %88, %89 : vector<40x16xf32>
    %c0_70 = arith.constant 0 : index
    %c0_71 = arith.constant 0 : index
    %91 = vector.load %arg2[%c0_70, %c0_71] : memref<40x1xf32, #tpu.memory_space<vmem>>, vector<40x1xf32>
    %92 = vector.broadcast %91 : vector<40x1xf32> to vector<40x16xf32>
    %93 = arith.mulf %90, %92 : vector<40x16xf32>
    %cst_72 = arith.constant 0.000000e+00 : f32
    %94 = vector.broadcast %cst_72 : f32 to vector<56x16xf32>
    %c0_73 = arith.constant 0 : index
    %c0_74 = arith.constant 0 : index
    %95 = vector.load %arg17[%c0_73, %c0_74] : memref<56x16xf32, #tpu.memory_space<vmem>>, vector<56x16xf32>
    tpu.vector_store %arg17[%c0_73, %c0_74], %94 {strides = array<i32>} : memref<56x16xf32, #tpu.memory_space<vmem>>, vector<56x16xf32>,
    %c8_75 = arith.constant 8 : index
    %c0_76 = arith.constant 0 : index
    %96 = vector.load %arg17[%c8_75, %c0_76] : memref<56x16xf32, #tpu.memory_space<vmem>>, vector<40x16xf32>
    tpu.vector_store %arg17[%c8_75, %c0_76], %93 {strides = array<i32>} : memref<56x16xf32, #tpu.memory_space<vmem>>, vector<40x16xf32>,
    %cst_77 = arith.constant 0.000000e+00 : f32
    %97 = vector.broadcast %cst_77 : f32 to vector<40x4xf32>
    %c1_78 = arith.constant 1 : index
    %c0_79 = arith.constant 0 : index
    %98 = vector.load %arg17[%c1_78, %c0_79] : memref<56x16xf32, #tpu.memory_space<vmem>>, vector<40x16xf32>
    %99 = arith.truncf %98 : vector<40x16xf32> to vector<40x16xbf16>
    %c0_80 = arith.constant 0 : index
    %c0_81 = arith.constant 0 : index
    %c0_82 = arith.constant 0 : index
    %100 = vector.load %arg12[%c0_80, %c0_81, %c0_82] : memref<9x16x4xbf16, #tpu.memory_space<vmem>>, vector<1x16x4xbf16>
    %101 = vector.shape_cast %100 : vector<1x16x4xbf16> to vector<16x4xbf16>
    %cst_83 = arith.constant dense<0.000000e+00> : vector<40x4xf32>
    %102 = tpu.matmul %99, %101, %cst_83 {dimension_numbers = #tpu.dot_dimension_numbers<[1], [0], [0], [1], [0, 0, 1, 1], [], []>} : vector<40x16xbf16>, vector<16x4xbf16>, vector<40x4xf32> -> vector<40x4xf32>
    %103 = arith.addf %97, %102 : vector<40x4xf32>
    %c2_84 = arith.constant 2 : index
    %c0_85 = arith.constant 0 : index
    %104 = vector.load %arg17[%c2_84, %c0_85] : memref<56x16xf32, #tpu.memory_space<vmem>>, vector<40x16xf32>
    %105 = arith.truncf %104 : vector<40x16xf32> to vector<40x16xbf16>
    %c1_86 = arith.constant 1 : index
    %c0_87 = arith.constant 0 : index
    %c0_88 = arith.constant 0 : index
    %106 = vector.load %arg12[%c1_86, %c0_87, %c0_88] : memref<9x16x4xbf16, #tpu.memory_space<vmem>>, vector<1x16x4xbf16>
    %107 = vector.shape_cast %106 : vector<1x16x4xbf16> to vector<16x4xbf16>
    %cst_89 = arith.constant dense<0.000000e+00> : vector<40x4xf32>
    %108 = tpu.matmul %105, %107, %cst_89 {dimension_numbers = #tpu.dot_dimension_numbers<[1], [0], [0], [1], [0, 0, 1, 1], [], []>} : vector<40x16xbf16>, vector<16x4xbf16>, vector<40x4xf32> -> vector<40x4xf32>
    %109 = arith.addf %103, %108 : vector<40x4xf32>
    %c3_90 = arith.constant 3 : index
    %c0_91 = arith.constant 0 : index
    %110 = vector.load %arg17[%c3_90, %c0_91] : memref<56x16xf32, #tpu.memory_space<vmem>>, vector<40x16xf32>
    %111 = arith.truncf %110 : vector<40x16xf32> to vector<40x16xbf16>
    %c2_92 = arith.constant 2 : index
    %c0_93 = arith.constant 0 : index
    %c0_94 = arith.constant 0 : index
    %112 = vector.load %arg12[%c2_92, %c0_93, %c0_94] : memref<9x16x4xbf16, #tpu.memory_space<vmem>>, vector<1x16x4xbf16>
    %113 = vector.shape_cast %112 : vector<1x16x4xbf16> to vector<16x4xbf16>
    %cst_95 = arith.constant dense<0.000000e+00> : vector<40x4xf32>
    %114 = tpu.matmul %111, %113, %cst_95 {dimension_numbers = #tpu.dot_dimension_numbers<[1], [0], [0], [1], [0, 0, 1, 1], [], []>} : vector<40x16xbf16>, vector<16x4xbf16>, vector<40x4xf32> -> vector<40x4xf32>
    %115 = arith.addf %109, %114 : vector<40x4xf32>
    %c7_96 = arith.constant 7 : index
    %c0_97 = arith.constant 0 : index
    %116 = vector.load %arg17[%c7_96, %c0_97] : memref<56x16xf32, #tpu.memory_space<vmem>>, vector<40x16xf32>
    %117 = arith.truncf %116 : vector<40x16xf32> to vector<40x16xbf16>
    %c3_98 = arith.constant 3 : index
    %c0_99 = arith.constant 0 : index
    %c0_100 = arith.constant 0 : index
    %118 = vector.load %arg12[%c3_98, %c0_99, %c0_100] : memref<9x16x4xbf16, #tpu.memory_space<vmem>>, vector<1x16x4xbf16>
    %119 = vector.shape_cast %118 : vector<1x16x4xbf16> to vector<16x4xbf16>
    %cst_101 = arith.constant dense<0.000000e+00> : vector<40x4xf32>
    %120 = tpu.matmul %117, %119, %cst_101 {dimension_numbers = #tpu.dot_dimension_numbers<[1], [0], [0], [1], [0, 0, 1, 1], [], []>} : vector<40x16xbf16>, vector<16x4xbf16>, vector<40x4xf32> -> vector<40x4xf32>
    %121 = arith.addf %115, %120 : vector<40x4xf32>
    %c8_102 = arith.constant 8 : index
    %c0_103 = arith.constant 0 : index
    %122 = vector.load %arg17[%c8_102, %c0_103] : memref<56x16xf32, #tpu.memory_space<vmem>>, vector<40x16xf32>
    %123 = arith.truncf %122 : vector<40x16xf32> to vector<40x16xbf16>
    %c4_104 = arith.constant 4 : index
    %c0_105 = arith.constant 0 : index
    %c0_106 = arith.constant 0 : index
    %124 = vector.load %arg12[%c4_104, %c0_105, %c0_106] : memref<9x16x4xbf16, #tpu.memory_space<vmem>>, vector<1x16x4xbf16>
    %125 = vector.shape_cast %124 : vector<1x16x4xbf16> to vector<16x4xbf16>
    %cst_107 = arith.constant dense<0.000000e+00> : vector<40x4xf32>
    %126 = tpu.matmul %123, %125, %cst_107 {dimension_numbers = #tpu.dot_dimension_numbers<[1], [0], [0], [1], [0, 0, 1, 1], [], []>} : vector<40x16xbf16>, vector<16x4xbf16>, vector<40x4xf32> -> vector<40x4xf32>
    %127 = arith.addf %121, %126 : vector<40x4xf32>
    %c9_108 = arith.constant 9 : index
    %c0_109 = arith.constant 0 : index
    %128 = vector.load %arg17[%c9_108, %c0_109] : memref<56x16xf32, #tpu.memory_space<vmem>>, vector<40x16xf32>
    %129 = arith.truncf %128 : vector<40x16xf32> to vector<40x16xbf16>
    %c5_110 = arith.constant 5 : index
    %c0_111 = arith.constant 0 : index
    %c0_112 = arith.constant 0 : index
    %130 = vector.load %arg12[%c5_110, %c0_111, %c0_112] : memref<9x16x4xbf16, #tpu.memory_space<vmem>>, vector<1x16x4xbf16>
    %131 = vector.shape_cast %130 : vector<1x16x4xbf16> to vector<16x4xbf16>
    %cst_113 = arith.constant dense<0.000000e+00> : vector<40x4xf32>
    %132 = tpu.matmul %129, %131, %cst_113 {dimension_numbers = #tpu.dot_dimension_numbers<[1], [0], [0], [1], [0, 0, 1, 1], [], []>} : vector<40x16xbf16>, vector<16x4xbf16>, vector<40x4xf32> -> vector<40x4xf32>
    %133 = arith.addf %127, %132 : vector<40x4xf32>
    %c13_114 = arith.constant 13 : index
    %c0_115 = arith.constant 0 : index
    %134 = vector.load %arg17[%c13_114, %c0_115] : memref<56x16xf32, #tpu.memory_space<vmem>>, vector<40x16xf32>
    %135 = arith.truncf %134 : vector<40x16xf32> to vector<40x16xbf16>
    %c6_116 = arith.constant 6 : index
    %c0_117 = arith.constant 0 : index
    %c0_118 = arith.constant 0 : index
    %136 = vector.load %arg12[%c6_116, %c0_117, %c0_118] : memref<9x16x4xbf16, #tpu.memory_space<vmem>>, vector<1x16x4xbf16>
    %137 = vector.shape_cast %136 : vector<1x16x4xbf16> to vector<16x4xbf16>
    %cst_119 = arith.constant dense<0.000000e+00> : vector<40x4xf32>
    %138 = tpu.matmul %135, %137, %cst_119 {dimension_numbers = #tpu.dot_dimension_numbers<[1], [0], [0], [1], [0, 0, 1, 1], [], []>} : vector<40x16xbf16>, vector<16x4xbf16>, vector<40x4xf32> -> vector<40x4xf32>
    %139 = arith.addf %133, %138 : vector<40x4xf32>
    %c14_120 = arith.constant 14 : index
    %c0_121 = arith.constant 0 : index
    %140 = vector.load %arg17[%c14_120, %c0_121] : memref<56x16xf32, #tpu.memory_space<vmem>>, vector<40x16xf32>
    %141 = arith.truncf %140 : vector<40x16xf32> to vector<40x16xbf16>
    %c7_122 = arith.constant 7 : index
    %c0_123 = arith.constant 0 : index
    %c0_124 = arith.constant 0 : index
    %142 = vector.load %arg12[%c7_122, %c0_123, %c0_124] : memref<9x16x4xbf16, #tpu.memory_space<vmem>>, vector<1x16x4xbf16>
    %143 = vector.shape_cast %142 : vector<1x16x4xbf16> to vector<16x4xbf16>
    %cst_125 = arith.constant dense<0.000000e+00> : vector<40x4xf32>
    %144 = tpu.matmul %141, %143, %cst_125 {dimension_numbers = #tpu.dot_dimension_numbers<[1], [0], [0], [1], [0, 0, 1, 1], [], []>} : vector<40x16xbf16>, vector<16x4xbf16>, vector<40x4xf32> -> vector<40x4xf32>
    %145 = arith.addf %139, %144 : vector<40x4xf32>
    %c15_126 = arith.constant 15 : index
    %c0_127 = arith.constant 0 : index
    %146 = vector.load %arg17[%c15_126, %c0_127] : memref<56x16xf32, #tpu.memory_space<vmem>>, vector<40x16xf32>
    %147 = arith.truncf %146 : vector<40x16xf32> to vector<40x16xbf16>
    %c8_128 = arith.constant 8 : index
    %c0_129 = arith.constant 0 : index
    %c0_130 = arith.constant 0 : index
    %148 = vector.load %arg12[%c8_128, %c0_129, %c0_130] : memref<9x16x4xbf16, #tpu.memory_space<vmem>>, vector<1x16x4xbf16>
    %149 = vector.shape_cast %148 : vector<1x16x4xbf16> to vector<16x4xbf16>
    %cst_131 = arith.constant dense<0.000000e+00> : vector<40x4xf32>
    %150 = tpu.matmul %147, %149, %cst_131 {dimension_numbers = #tpu.dot_dimension_numbers<[1], [0], [0], [1], [0, 0, 1, 1], [], []>} : vector<40x16xbf16>, vector<16x4xbf16>, vector<40x4xf32> -> vector<40x4xf32>
    %151 = arith.addf %145, %150 : vector<40x4xf32>
    %c0_132 = arith.constant 0 : index
    %c0_133 = arith.constant 0 : index
    %152 = vector.load %arg13[%c0_132, %c0_133] : memref<1x4xf32, #tpu.memory_space<vmem>>, vector<1x4xf32>
    %153 = vector.broadcast %152 : vector<1x4xf32> to vector<40x4xf32>
    %154 = arith.addf %151, %153 : vector<40x4xf32>
    %c0_134 = arith.constant 0 : index
    %c0_135 = arith.constant 0 : index
    %155 = vector.load %arg14[%c0_134, %c0_135] : memref<1x4xf32, #tpu.memory_space<vmem>>, vector<1x4xf32>
    %156 = vector.broadcast %155 : vector<1x4xf32> to vector<40x4xf32>
    %157 = arith.mulf %154, %156 : vector<40x4xf32>
    %158 = arith.addf %13, %157 : vector<40x4xf32>
    %159 = tpu.concatenate %12, %158 in 1 : vector<40x4xf32>, vector<40x4xf32> -> vector<40x8xf32>
    %c0_136 = arith.constant 0 : index
    %c0_137 = arith.constant 0 : index
    %160 = vector.load %arg15[%c0_136, %c0_137] : memref<40x8xf32, #tpu.memory_space<vmem>>, vector<40x8xf32>
    tpu.vector_store %arg15[%c0_136, %c0_137], %159 {strides = array<i32>} : memref<40x8xf32, #tpu.memory_space<vmem>>, vector<40x8xf32>,
    return
  }
  func.func @transform_0(%arg0: i32) -> (i32, i32) {
    %c0_i32 = arith.constant 0 : i32
    %c0_i32_0 = arith.constant 0 : i32
    return %arg0, %c0_i32 : i32, i32
  }
  func.func @transform_1(%arg0: i32) -> (i32, i32) {
    %c0_i32 = arith.constant 0 : i32
    %c0_i32_0 = arith.constant 0 : i32
    return %arg0, %c0_i32 : i32, i32
  }
  func.func @transform_2(%arg0: i32) -> (i32, i32) {
    %c0_i32 = arith.constant 0 : i32
    %c0_i32_0 = arith.constant 0 : i32
    %c0_i32_1 = arith.constant 0 : i32
    return %c0_i32, %c0_i32_0 : i32, i32
  }
  func.func @transform_3(%arg0: i32) -> (i32, i32) {
    %c0_i32 = arith.constant 0 : i32
    %c0_i32_0 = arith.constant 0 : i32
    %c0_i32_1 = arith.constant 0 : i32
    return %c0_i32, %c0_i32_0 : i32, i32
  }
  func.func @transform_4(%arg0: i32) -> (i32, i32) {
    %c0_i32 = arith.constant 0 : i32
    %c0_i32_0 = arith.constant 0 : i32
    %c0_i32_1 = arith.constant 0 : i32
    return %c0_i32, %c0_i32_0 : i32, i32
  }
  func.func @transform_5(%arg0: i32) -> (i32, i32, i32) {
    %c0_i32 = arith.constant 0 : i32
    %c0_i32_0 = arith.constant 0 : i32
    %c0_i32_1 = arith.constant 0 : i32
    %c0_i32_2 = arith.constant 0 : i32
    return %c0_i32, %c0_i32_0, %c0_i32_1 : i32, i32, i32
  }
  func.func @transform_6(%arg0: i32) -> (i32, i32) {
    %c0_i32 = arith.constant 0 : i32
    %c0_i32_0 = arith.constant 0 : i32
    %c0_i32_1 = arith.constant 0 : i32
    return %c0_i32, %c0_i32_0 : i32, i32
  }
  func.func @transform_7(%arg0: i32) -> (i32, i32) {
    %c0_i32 = arith.constant 0 : i32
    %c0_i32_0 = arith.constant 0 : i32
    %c0_i32_1 = arith.constant 0 : i32
    return %c0_i32, %c0_i32_0 : i32, i32
  }
  func.func @transform_8(%arg0: i32) -> (i32, i32) {
    %c0_i32 = arith.constant 0 : i32
    %c0_i32_0 = arith.constant 0 : i32
    %c0_i32_1 = arith.constant 0 : i32
    return %c0_i32, %c0_i32_0 : i32, i32
  }
  func.func @transform_9(%arg0: i32) -> (i32, i32) {
    %c0_i32 = arith.constant 0 : i32
    %c0_i32_0 = arith.constant 0 : i32
    %c0_i32_1 = arith.constant 0 : i32
    return %c0_i32, %c0_i32_0 : i32, i32
  }
  func.func @transform_10(%arg0: i32) -> (i32, i32) {
    %c0_i32 = arith.constant 0 : i32
    %c0_i32_0 = arith.constant 0 : i32
    %c0_i32_1 = arith.constant 0 : i32
    return %c0_i32, %c0_i32_0 : i32, i32
  }
  func.func @transform_11(%arg0: i32) -> (i32, i32, i32) {
    %c0_i32 = arith.constant 0 : i32
    %c0_i32_0 = arith.constant 0 : i32
    %c0_i32_1 = arith.constant 0 : i32
    %c0_i32_2 = arith.constant 0 : i32
    return %c0_i32, %c0_i32_0, %c0_i32_1 : i32, i32, i32
  }
  func.func @transform_12(%arg0: i32) -> (i32, i32) {
    %c0_i32 = arith.constant 0 : i32
    %c0_i32_0 = arith.constant 0 : i32
    %c0_i32_1 = arith.constant 0 : i32
    return %c0_i32, %c0_i32_0 : i32, i32
  }
  func.func @transform_13(%arg0: i32) -> (i32, i32) {
    %c0_i32 = arith.constant 0 : i32
    %c0_i32_0 = arith.constant 0 : i32
    %c0_i32_1 = arith.constant 0 : i32
    return %c0_i32, %c0_i32_0 : i32, i32
  }
  func.func @transform_14(%arg0: i32) -> (i32, i32) {
    %c0_i32 = arith.constant 0 : i32
    %c0_i32_0 = arith.constant 0 : i32
    return %arg0, %c0_i32 : i32, i32
  }
}

</mosaic_0001>

<bundles_post_ra>
// kernel: flownet_encode.9
= control target key start
LH: loop header
LB: loop body
LE: loop exit
PB: predicated region body
PF: predicated region fallthrough
CT: control target
= control target key end

     0   :  { %vm27_vm0 = vcmask 1041408   ;;  %vm31_vm1 = vcmask 1024   ;;  %s71_s1 = inlined_call_operand.vmem [shape: f32[2,128], index: 1, kind: input, shape index: {}]   ;;  %s72_s0 = inlined_call_operand.vmem [shape: f32[2,128], index: 0, kind: input, shape index: {}]   ;;  %s73_s2 = inlined_call_operand.vmem [shape: f32[2,128], index: 2, kind: input, shape index: {}]   ;;  %s74_s3 = inlined_call_operand.vmem [shape: f32[2,1], index: 3, kind: output, shape index: {}]  }
   0x1   :  { %v17_v0 = vld [vmem:[%s71_s1] sm:$0x3] }
   0x2   :  { %v21_v1 = vmul.f32 -2.0, %v17_v0  ;;  %v14_v3 = vld [vmem:[%s73_s2] sm:$0x3]  ;;  %v18_v6 = vmul.f32 2.0, %v17_v0 }
   0x3   :  { %v15_v4 = vld [vmem:[%s72_s0] sm:$0x3] }
   0x4   :  { %v22_v2 = vmul.f32 1.442695, %v21_v1  ;;  %v16_v5 = vsub.f32 %v14_v3, %v15_v4  ;;  %v19_v8 = vadd.f32 1.837877, %v18_v6 }
   0x6   :  { %37 = vpow2.f32 %v22_v2  ;;  %v20_v7 = vmul.f32 %v16_v5, %v16_v5 }
  0x10   :  { %v38_v9 = vpop.eup %37 }
  0x11   :  { %v24_v10 = vmul.f32 %v38_v9, %v20_v7 }
  0x13   :  { %v25_v11 = vadd.f32 %v24_v10, %v19_v8 }
  0x15   :  { %v26_v12 = vmul.f32 -0.5, %v25_v11 }
  0x17   :  { %v28_v13 = vsel %vm27_vm0, %v26_v12, 0.0 }
  0x18   :  { %29 = vadd.xlane.f32.xlu0 %v28_v13 }
  0xa5   :  { %v30_v14 = vpop.xlane.xlu0 %29 }
  0xa6   :  { %32 = vst.msk [vmem:[%s74_s3] sm:$0x3] %vm31_vm1, %v30_v14 }

// kernel: flownet_encode.8
= control target key start
LH: loop header
LB: loop body
LE: loop exit
PB: predicated region body
PF: predicated region fallthrough
CT: control target
= control target key end

     0   :  { %vm216_vm0 = vcmask 1040384   ;;  %vm18_vm1 = vcmask 15360   ;;  %v3072_v0 = vmov 0.0   ;;  %vm3073_vm2 = vmmov 0   ;;  %s4235_s1 = inlined_call_operand.vmem [shape: bf16[9,2,4], index: 1, kind: input, shape index: {}]   ;;  %s4236_s0 = inlined_call_operand.vmem [shape: f32[200,2], index: 0, kind: input, shape index: {}]   ;;  %s4237_s2 = inlined_call_operand.vmem [shape: f32[1,4], index: 2, kind: input, shape index: {}]   ;;  %s4238_s3 = inlined_call_operand.vmem [shape: f32[1,4], index: 3, kind: input, shape index: {}]   ;;  %s4239_s4 = inlined_call_operand.vmem [shape: f32[200,4], index: 4, kind: output, shape index: {}]  }
   0x1   :  { %2582 = vmatprep.subr.bf16.mxu0 %v3072_v0  ;;  %3068 = vmatprep.subr.bf16.mxu1 %v3072_v0  ;;  %v2329_v1 = vld [vmem:[%s4235_s1 + $0x1] sm:$0x1]  ;;  %19 = vst.msk [vmem:[#allocation2] sm:$0xff] %vm18_vm1, %v3072_v0  ;;  %20 = vst.msk [vmem:[#allocation2 + $0x8] sm:$0xff] %vm18_vm1, %v3072_v0  ;;  %v61_v5 = vld [vmem:[%s4236_s0 + $0x68] sm:$0xff]  ;;  %vm2299_vm3 = vcmask 31744  }
   0x2   :  { %21 = vst.msk [vmem:[#allocation2 + $0x10] sm:$0xff] %vm18_vm1, %v3072_v0  ;;  %v48_v2 = vld [vmem:[%s4236_s0] sm:$0xff]  ;;  %22 = vst.msk [vmem:[#allocation2 + $0x18] sm:$0xff] %vm18_vm1, %v3072_v0  ;;  %v218_v4 = vsel %vm216_vm0, %v2329_v1, 0  ;;  %2584 = vmatprep.mubr.msk.bf16.mxu0 %vm3073_vm2, %v3072_v0  ;;  %2612 = vmatprep.mubr.msk.bf16.mxu1 %vm3073_vm2, %v3072_v0  ;;  %v62_v6 = vld [vmem:[%s4236_s0 + $0x70] sm:$0xff] }
   0x3   :  { %23 = vst.msk [vmem:[#allocation2 + $0x20] sm:$0xff] %vm18_vm1, %v3072_v0  ;;  %24 = vst.msk [vmem:[#allocation2 + $0x28] sm:$0xff] %vm18_vm1, %v3072_v0  ;;  %v60_v3 = vld [vmem:[%s4236_s0 + $0x60] sm:$0xff]  ;;  %2583 = vmatpush3.bf16.msra.mxu0 %v218_v4  ;;  %3069 = vmatpush3.bf16.msra.mxu1 %v218_v4  ;;  %v49_v7 = vld [vmem:[%s4236_s0 + $0x8] sm:$0xff] }
   0x4   :  { %25 = vst.msk [vmem:[#allocation2 + $0x30] sm:$0xff] %vm18_vm1, %v3072_v0  ;;  %26 = vst.msk [vmem:[#allocation2 + $0x38] sm:$0xff] %vm18_vm1, %v3072_v0  ;;  %v50_v8 = vld [vmem:[%s4236_s0 + $0x10] sm:$0xff]  ;;  %2690 = vmatprep.subr.bf16.mxu0 %v3072_v0  ;;  %2636 = vmatprep.subr.bf16.mxu1 %v3072_v0  ;;  %v63_v9 = vld [vmem:[%s4236_s0 + $0x78] sm:$0xff] }
   0x5   :  { %27 = vst.msk [vmem:[#allocation2 + $0x40] sm:$0xff] %vm18_vm1, %v3072_v0  ;;  %28 = vst.msk [vmem:[#allocation2 + $0x48] sm:$0xff] %vm18_vm1, %v3072_v0  ;;  %v64_v10 = vld [vmem:[%s4236_s0 + $0x80] sm:$0xff]  ;;  %v51_v11 = vld [vmem:[%s4236_s0 + $0x18] sm:$0xff] }
   0x6   :  { %29 = vst.msk [vmem:[#allocation2 + $0x50] sm:$0xff] %vm18_vm1, %v3072_v0  ;;  %30 = vst.msk [vmem:[#allocation2 + $0x58] sm:$0xff] %vm18_vm1, %v3072_v0  ;;  %v2356_v12 = vld [vmem:[%s4235_s1 + $0x2] sm:$0x1]  ;;  %v65_v14 = vld [vmem:[%s4236_s0 + $0x88] sm:$0xff] }
   0x7   :  { %31 = vst.msk [vmem:[#allocation2 + $0x60] sm:$0xff] %vm18_vm1, %v3072_v0  ;;  %32 = vst.msk [vmem:[#allocation2 + $0x68] sm:$0xff] %vm18_vm1, %v3072_v0  ;;  %v52_v13 = vld [vmem:[%s4236_s0 + $0x20] sm:$0xff]  ;;  %v66_v15 = vld [vmem:[%s4236_s0 + $0x90] sm:$0xff]  ;;  %v614_v32 = vsel %vm216_vm0, %v2356_v12, 0 }
   0x8   :  { %33 = vst.msk [vmem:[#allocation2 + $0x70] sm:$0xff] %vm18_vm1, %v3072_v0  ;;  %34 = vst.msk [vmem:[#allocation2 + $0x78] sm:$0xff] %vm18_vm1, %v3072_v0  ;;  %v136_v16 = vld [vmem:[%s4235_s1] sm:$0x1]  ;;  %v53_v17 = vld [vmem:[%s4236_s0 + $0x28] sm:$0xff] }
   0x9   :  { %35 = vst.msk [vmem:[#allocation2 + $0x80] sm:$0xff] %vm18_vm1, %v3072_v0  ;;  %36 = vst.msk [vmem:[#allocation2 + $0x88] sm:$0xff] %vm18_vm1, %v3072_v0  ;;  %v54_v18 = vld [vmem:[%s4236_s0 + $0x30] sm:$0xff]  ;;  %v67_v19 = vld [vmem:[%s4236_s0 + $0x98] sm:$0xff]  ;;  %v396_v35 = vsel %vm216_vm0, %v136_v16, 0 }
   0xa   :  { %37 = vst.msk [vmem:[#allocation2 + $0x90] sm:$0xff] %vm18_vm1, %v3072_v0  ;;  %38 = vst.msk [vmem:[#allocation2 + $0x98] sm:$0xff] %vm18_vm1, %v3072_v0  ;;  %v68_v20 = vld [vmem:[%s4236_s0 + $0xa0] sm:$0xff]  ;;  %v55_v21 = vld [vmem:[%s4236_s0 + $0x38] sm:$0xff] }
   0xb   :  { %39 = vst.msk [vmem:[#allocation2 + $0xa0] sm:$0xff] %vm18_vm1, %v3072_v0  ;;  %40 = vst.msk [vmem:[#allocation2 + $0xa8] sm:$0xff] %vm18_vm1, %v3072_v0  ;;  %v56_v22 = vld [vmem:[%s4236_s0 + $0x40] sm:$0xff]  ;;  %v69_v24 = vld [vmem:[%s4236_s0 + $0xa8] sm:$0xff] }
   0xc   :  { %41 = vst.msk [vmem:[#allocation2 + $0xb0] sm:$0xff] %vm18_vm1, %v3072_v0  ;;  %42 = vst.msk [vmem:[#allocation2 + $0xb8] sm:$0xff] %vm18_vm1, %v3072_v0  ;;  %v137_v23 = vld [vmem:[#allocation2 + $0x6] sm:$0xff]  ;;  %v70_v25 = vld [vmem:[%s4236_s0 + $0xb0] sm:$0xff] }
   0xd   :  { %43 = vst.msk [vmem:[#allocation2 + $0xc0] sm:$0xff] %vm18_vm1, %v3072_v0  ;;  %44 = vst.msk [vmem:[#allocation2 + $0xc8] sm:$0xff] %vm18_vm1, %v3072_v0  ;;  %v57_v27 = vld [vmem:[%s4236_s0 + $0x48] sm:$0xff]  ;;  %v58_v28 = vld [vmem:[%s4236_s0 + $0x50] sm:$0xff] }
   0xe   :  { %45 = vst.msk [vmem:[#allocation2 + $0xd0] sm:$0xff] %vm18_vm1, %v3072_v0  ;;  %46 = vst.msk [vmem:[#allocation2 + $0xd8] sm:$0xff] %vm18_vm1, %v3072_v0  ;;  %v71_v33 = vld [vmem:[%s4236_s0 + $0xb8] sm:$0xff]  ;;  %v98_v16 = vld [vmem:[#allocation2 + $0x5] sm:$0xff] }
   0xf   :  { %47 = vst.msk [vmem:[#allocation2 + $0xe0] sm:$0xff] %vm18_vm1, %v3072_v0  ;;  %73 = vst.msk [vmem:[#allocation2 + $0x10] sm:$0xff] %vm18_vm1, %v48_v2  ;;  %v59_v36 = vld [vmem:[%s4236_s0 + $0x58] sm:$0xff] }
  0x10   :  { %85 = vst.msk [vmem:[#allocation2 + $0x70] sm:$0xff] %vm18_vm1, %v60_v3  ;;  %86 = vst.msk [vmem:[#allocation2 + $0x78] sm:$0xff] %vm18_vm1, %v61_v5 }
  0x11   :  { %87 = vst.msk [vmem:[#allocation2 + $0x80] sm:$0xff] %vm18_vm1, %v62_v6  ;;  %74 = vst.msk [vmem:[#allocation2 + $0x18] sm:$0xff] %vm18_vm1, %v49_v7 }
  0x12   :  { %75 = vst.msk [vmem:[#allocation2 + $0x20] sm:$0xff] %vm18_vm1, %v50_v8  ;;  %88 = vst.msk [vmem:[#allocation2 + $0x88] sm:$0xff] %vm18_vm1, %v63_v9 }
  0x13   :  { %89 = vst.msk [vmem:[#allocation2 + $0x90] sm:$0xff] %vm18_vm1, %v64_v10  ;;  %76 = vst.msk [vmem:[#allocation2 + $0x28] sm:$0xff] %vm18_vm1, %v51_v11 }
  0x14   :  { %77 = vst.msk [vmem:[#allocation2 + $0x30] sm:$0xff] %vm18_vm1, %v52_v13  ;;  %90 = vst.msk [vmem:[#allocation2 + $0x98] sm:$0xff] %vm18_vm1, %v65_v14 }
  0x15   :  { %91 = vst.msk [vmem:[#allocation2 + $0xa0] sm:$0xff] %vm18_vm1, %v66_v15  ;;  %78 = vst.msk [vmem:[#allocation2 + $0x38] sm:$0xff] %vm18_vm1, %v53_v17 }
  0x16   :  { %79 = vst.msk [vmem:[#allocation2 + $0x40] sm:$0xff] %vm18_vm1, %v54_v18  ;;  %92 = vst.msk [vmem:[#allocation2 + $0xa8] sm:$0xff] %vm18_vm1, %v67_v19  ;;  %v138_v26 = vld [vmem:[#allocation2 + $0xe] sm:$0xff] }
  0x17   :  { %93 = vst.msk [vmem:[#allocation2 + $0xb0] sm:$0xff] %vm18_vm1, %v68_v20  ;;  %80 = vst.msk [vmem:[#allocation2 + $0x48] sm:$0xff] %vm18_vm1, %v55_v21  ;;  %v162_v29 = vpack.c.bf16 %v138_v26, %v137_v23  ;;  %v151_v30 = vld [vmem:[#allocation2 + $0x76] sm:$0xff]  ;;  %v99_v17 = vld [vmem:[#allocation2 + $0xd] sm:$0xff] }
  0x18   :  { %81 = vst.msk [vmem:[#allocation2 + $0x50] sm:$0xff] %vm18_vm1, %v56_v22  ;;  %94 = vst.msk [vmem:[#allocation2 + $0xb8] sm:$0xff] %vm18_vm1, %v69_v24  ;;  %v152_v31 = vld [vmem:[#allocation2 + $0x7e] sm:$0xff]  ;;  %v139_v37 = vld [vmem:[#allocation2 + $0x16] sm:$0xff]  ;;  %v123_v21 = vpack.c.bf16 %v99_v17, %v98_v16 }
  0x19   :  { %95 = vst.msk [vmem:[#allocation2 + $0xc0] sm:$0xff] %vm18_vm1, %v70_v25  ;;  %82 = vst.msk [vmem:[#allocation2 + $0x58] sm:$0xff] %vm18_vm1, %v57_v27  ;;  %v169_v34 = vpack.c.bf16 %v152_v31, %v151_v30  ;;  %2585 = vmatmul.mubr.msk.bf16.vlgmr.msra.gmra.mrb[0].mxu0 %vm18_vm1, %v162_v29  ;;  %v140_v38 = vld [vmem:[#allocation2 + $0x1e] sm:$0xff]  ;;  %v153_v39 = vld [vmem:[#allocation2 + $0x86] sm:$0xff] }
  0x1a   :  { %83 = vst.msk [vmem:[#allocation2 + $0x60] sm:$0xff] %vm18_vm1, %v58_v28  ;;  %96 = vst.msk [vmem:[#allocation2 + $0xc8] sm:$0xff] %vm18_vm1, %v71_v33  ;;  %2691 = vmatpush3.bf16.msra.mxu0 %v614_v32  ;;  %2588 = vmatprep.mubr.msk.bf16.mxu0 %vm3073_vm2, %v3072_v0  ;;  %v154_v40 = vld [vmem:[#allocation2 + $0x8e] sm:$0xff]  ;;  %v163_v41 = vpack.c.bf16 %v140_v38, %v139_v37  ;;  %v141_v43 = vld [vmem:[#allocation2 + $0x26] sm:$0xff] }
  0x1b   :  { %84 = vst.msk [vmem:[#allocation2 + $0x68] sm:$0xff] %vm18_vm1, %v59_v36  ;;  %2613 = vmatmul.mubr.msk.bf16.vlgmr.msra.gmra.mrb[0].mxu1 %vm18_vm1, %v169_v34  ;;  %2798 = vmatprep.subr.bf16.mxu0 %v3072_v0  ;;  %v170_v42 = vpack.c.bf16 %v154_v40, %v153_v39  ;;  %v142_v44 = vld [vmem:[#allocation2 + $0x2e] sm:$0xff]  ;;  %v155_v45 = vld [vmem:[#allocation2 + $0x96] sm:$0xff]  ;;  %v3303_v60 = vld [vmem:[#allocation2 + $0x1f] sm:$0xff] }
  0x1c   :  { %2637 = vmatpush3.bf16.msra.mxu1 %v396_v35  ;;  %2616 = vmatprep.mubr.msk.bf16.mxu1 %vm3073_vm2, %v3072_v0  ;;  %v156_v46 = vld [vmem:[#allocation2 + $0x9e] sm:$0xff]  ;;  %v164_v47 = vpack.c.bf16 %v142_v44, %v141_v43  ;;  %v143_v49 = vld [vmem:[#allocation2 + $0x36] sm:$0xff]  ;;  %v3305_v61 = vld [vmem:[#allocation2 + $0x27] sm:$0xff] }
  0x1d   :  { %2744 = vmatprep.subr.bf16.mxu1 %v3072_v0  ;;  %v171_v48 = vpack.c.bf16 %v156_v46, %v155_v45  ;;  %v144_v50 = vld [vmem:[#allocation2 + $0x3e] sm:$0xff]  ;;  %v157_v51 = vld [vmem:[#allocation2 + $0xa6] sm:$0xff]  ;;  %v3293_v55 = vld [vmem:[#allocation2 + $0xf] sm:$0xff]  ;;  %v803_v1 = vpack.c.bf16 %v3305_v61, %v3303_v60 }
  0x1e   :  { %v158_v52 = vld [vmem:[#allocation2 + $0xae] sm:$0xff]  ;;  %v165_v53 = vpack.c.bf16 %v144_v50, %v143_v49  ;;  %v3295_v56 = vld [vmem:[#allocation2 + $0x17] sm:$0xff]  ;;  %v145_v58 = vld [vmem:[#allocation2 + $0x46] sm:$0xff] }
  0x1f   :  { %v172_v54 = vpack.c.bf16 %v158_v52, %v157_v51  ;;  %v802_v57 = vpack.c.bf16 %v3295_v56, %v3293_v55  ;;  %v146_v59 = vld [vmem:[#allocation2 + $0x4e] sm:$0xff]  ;;  %v159_v62 = vld [vmem:[#allocation2 + $0xb6] sm:$0xff]  ;;  %v3327_v14 = vld [vmem:[#allocation2 + $0x3f] sm:$0xff]  ;;  %v560_v38 = vpack.c.bf16 %v3303_v60, %v3295_v56 }
  0x20   :  { %v160_v63 = vld [vmem:[#allocation2 + $0xbe] sm:$0xff]  ;;  %v166_v2 = vpack.c.bf16 %v146_v59, %v145_v58  ;;  %v147_v4 = vld [vmem:[#allocation2 + $0x56] sm:$0xff]  ;;  %v3329_v15 = vld [vmem:[#allocation2 + $0x47] sm:$0xff] }
  0x21   :  { %2589 = vmatmul.mubr.msk.bf16.gmra.mrb[4].mxu0 %vm18_vm1, %v163_v41  ;;  %v173_v3 = vpack.c.bf16 %v160_v63, %v159_v62  ;;  %v148_v5 = vld [vmem:[#allocation2 + $0x5e] sm:$0xff]  ;;  %v3315_v6 = vld [vmem:[#allocation2 + $0x2f] sm:$0xff]  ;;  %v161_v8 = vld [vmem:[#allocation2 + $0xc6] sm:$0xff]  ;;  %v805_v18 = vpack.c.bf16 %v3329_v15, %v3327_v14 }
  0x22   :  { %2592 = vmatprep.mubr.msk.bf16.mxu0 %vm3073_vm2, %v3072_v0  ;;  %v3317_v7 = vld [vmem:[#allocation2 + $0x37] sm:$0xff]  ;;  %v167_v10 = vpack.c.bf16 %v148_v5, %v147_v4  ;;  %v174_v11 = vpack.c.bf16 %v161_v8, %v161_v8  ;;  %v149_v12 = vld [vmem:[#allocation2 + $0x66] sm:$0xff]  ;;  %v150_v13 = vld [vmem:[#allocation2 + $0x6e] sm:$0xff]  ;;  %v561_v45 = vpack.c.bf16 %v3315_v6, %v3305_v61 }
  0x23   :  { %2617 = vmatmul.mubr.msk.bf16.gmra.mrb[4].mxu1 %vm18_vm1, %v170_v42  ;;  %v804_v9 = vpack.c.bf16 %v3317_v7, %v3315_v6  ;;  %v168_v19 = vpack.c.bf16 %v150_v13, %v149_v12  ;;  %v2370_v20 = vld [vmem:[%s4235_s1 + $0x3] sm:$0x1]  ;;  %v534_v23 = vld [vmem:[#allocation2 + $0x7] sm:$0xff]  ;;  %v3343_v24 = vld [vmem:[#allocation2 + $0x4f] sm:$0xff]  ;;  %v562_v52 = vpack.c.bf16 %v3327_v14, %v3317_v7 }
  0x24   :  { %2620 = vmatprep.mubr.msk.bf16.mxu1 %vm3073_vm2, %v3072_v0  ;;  %v857_v22 = vsel %vm216_vm0, %v2370_v20, 0  ;;  %v3345_v25 = vld [vmem:[#allocation2 + $0x57] sm:$0xff]  ;;  %v2384_v29 = vld [vmem:[%s4235_s1 + $0x4] sm:$0x1]  ;;  %v559_v30 = vpack.c.bf16 %v3293_v55, %v534_v23  ;;  %v3361_v34 = vld [vmem:[#allocation2 + $0x67] sm:$0xff]  ;;  %v563_v59 = vpack.c.bf16 %v3343_v24, %v3329_v15 }
  0x25   :  { %v100_v26 = vld [vmem:[#allocation2 + $0x15] sm:$0xff]  ;;  %v101_v27 = vld [vmem:[#allocation2 + $0x1d] sm:$0xff]  ;;  %v806_v28 = vpack.c.bf16 %v3345_v25, %v3343_v24  ;;  %v1100_v32 = vsel %vm216_vm0, %v2384_v29, 0  ;;  %v102_v35 = vld [vmem:[#allocation2 + $0x25] sm:$0xff] }
  0x26   :  { %v124_v31 = vpack.c.bf16 %v101_v27, %v100_v26  ;;  %v3359_v33 = vld [vmem:[#allocation2 + $0x5f] sm:$0xff]  ;;  %v103_v36 = vld [vmem:[#allocation2 + $0x2d] sm:$0xff]  ;;  %v3378_v41 = vld [vmem:[#allocation2 + $0x77] sm:$0xff] }
  0x27   :  { %v807_v37 = vpack.c.bf16 %v3361_v34, %v3359_v33  ;;  %v125_v39 = vpack.c.bf16 %v103_v36, %v102_v35  ;;  %v3376_v40 = vld [vmem:[#allocation2 + $0x6f] sm:$0xff]  ;;  %v105_v43 = vld [vmem:[#allocation2 + $0x3d] sm:$0xff]  ;;  %v106_v49 = vld [vmem:[#allocation2 + $0x45] sm:$0xff] }
  0x28   :  { %v104_v42 = vld [vmem:[#allocation2 + $0x35] sm:$0xff]  ;;  %v808_v44 = vpack.c.bf16 %v3378_v41, %v3376_v40  ;;  %v107_v50 = vld [vmem:[#allocation2 + $0x4d] sm:$0xff]  ;;  %v109_v58 = vld [vmem:[#allocation2 + $0x5d] sm:$0xff] }
  0x29   :  { %2593 = vmatmul.mubr.msk.bf16.gmra.mrb[8].mxu0 %vm18_vm1, %v164_v47  ;;  %v126_v46 = vpack.c.bf16 %v105_v43, %v104_v42  ;;  %v3390_v47 = vld [vmem:[#allocation2 + $0x7f] sm:$0xff]  ;;  %v112_v5 = vld [vmem:[#allocation2 + $0x75] sm:$0xff]  ;;  %v115_v13 = vld [vmem:[#allocation2 + $0x8d] sm:$0xff] }
  0x2a   :  { %2596 = vmatprep.mubr.msk.bf16.mxu0 %vm3073_vm2, %v3072_v0  ;;  %v110_v63 = vld [vmem:[#allocation2 + $0x65] sm:$0xff]  ;;  %v113_v8 = vld [vmem:[#allocation2 + $0x7d] sm:$0xff]  ;;  %v566_v16 = vpack.c.bf16 %v3390_v47, %v3378_v41  ;;  %v3440_v20 = vld [vmem:[#allocation2 + $0x8f] sm:$0xff] }
  0x2b   :  { %2621 = vmatmul.mubr.msk.bf16.gmra.mrb[8].mxu1 %vm18_vm1, %v171_v48  ;;  %v3392_v48 = vld [vmem:[#allocation2 + $0x87] sm:$0xff]  ;;  %v3450_v27 = vld [vmem:[#allocation2 + $0x97] sm:$0xff]  ;;  %v3452_v29 = vld [vmem:[#allocation2 + $0x9f] sm:$0xff] }
  0x2c   :  { %2624 = vmatprep.mubr.msk.bf16.mxu1 %vm3073_vm2, %v3072_v0  ;;  %v809_v51 = vpack.c.bf16 %v3392_v48, %v3390_v47  ;;  %v114_v12 = vld [vmem:[#allocation2 + $0x85] sm:$0xff]  ;;  %v567_v23 = vpack.c.bf16 %v3440_v20, %v3392_v48  ;;  %v121_v42 = vld [vmem:[#allocation2 + $0xbd] sm:$0xff]  ;;  %v1024_v60 = vld [vmem:[#allocation2 + $0x30] sm:$0xff]  ;;  %v810_v47 = vpack.c.bf16 %v3450_v27, %v3440_v20 }
  0x2d   :  { %v131_v17 = vpack.c.bf16 %v115_v13, %v114_v12  ;;  %v3462_v36 = vld [vmem:[#allocation2 + $0xa7] sm:$0xff]  ;;  %v1025_v61 = vld [vmem:[#allocation2 + $0x38] sm:$0xff]  ;;  %v1028_v14 = vld [vmem:[#allocation2 + $0x50] sm:$0xff] }
  0x2e   :  { %v1022_v56 = vld [vmem:[#allocation2 + $0x20] sm:$0xff]  ;;  %v1027_v7 = vld [vmem:[#allocation2 + $0x48] sm:$0xff]  ;;  %v1029_v15 = vld [vmem:[#allocation2 + $0x58] sm:$0xff] }
  0x2f   :  { %v1026_v6 = vld [vmem:[#allocation2 + $0x40] sm:$0xff]  ;;  %v1035_v41 = vld [vmem:[#allocation2 + $0x88] sm:$0xff] }
  0x30   :  { %v1030_v24 = vld [vmem:[#allocation2 + $0x60] sm:$0xff] }
  0x31   :  { %2597 = vmatmul.mubr.msk.bf16.gmra.mrb[12].mxu0 %vm18_vm1, %v165_v53  ;;  %v127_v53 = vpack.c.bf16 %v107_v50, %v106_v49  ;;  %v3476_v49 = vld [vmem:[#allocation2 + $0xbf] sm:$0xff] }
  0x32   :  { %2600 = vmatprep.mubr.msk.bf16.mxu0 %vm3073_vm2, %v3072_v0  ;;  %v122_v50 = vld [vmem:[#allocation2 + $0xc5] sm:$0xff] }
  0x33   :  { %2625 = vmatmul.mubr.msk.bf16.gmra.mrb[12].mxu1 %vm18_vm1, %v172_v54  ;;  %v108_v54 = vld [vmem:[#allocation2 + $0x55] sm:$0xff] }
  0x34   :  { %2628 = vmatprep.mubr.msk.bf16.mxu1 %vm3073_vm2, %v3072_v0  ;;  %v128_v62 = vpack.c.bf16 %v109_v58, %v108_v54  ;;  %v3486_v54 = vld [vmem:[#allocation2 + $0xc7] sm:$0xff] }
  0x35   :  { %v571_v58 = vpack.c.bf16 %v3486_v54, %v3486_v54 }
  0x39   :  { %2601 = vmatmul.mubr.msk.bf16.gmra.mrb[16].mxu0 %vm18_vm1, %v166_v2  ;;  %v111_v2 = vld [vmem:[#allocation2 + $0x6d] sm:$0xff] }
  0x3a   :  { %2604 = vmatprep.mubr.msk.bf16.mxu0 %vm3073_vm2, %v3072_v0  ;;  %v129_v4 = vpack.c.bf16 %v111_v2, %v110_v63  ;;  %v1020_v63 = vld [vmem:[#allocation2 + $0x10] sm:$0xff]  ;;  %v1021_v2 = vld [vmem:[#allocation2 + $0x18] sm:$0xff] }
  0x3b   :  { %2629 = vmatmul.mubr.msk.bf16.gmra.mrb[16].mxu1 %vm18_vm1, %v173_v3  ;;  %v564_v3 = vpack.c.bf16 %v3359_v33, %v3345_v25  ;;  %v1031_v25 = vld [vmem:[#allocation2 + $0x68] sm:$0xff]  ;;  %v1032_v33 = vld [vmem:[#allocation2 + $0x70] sm:$0xff] }
  0x3c   :  { %2632 = vmatprep.mubr.msk.bf16.mxu1 %vm3073_vm2, %v3072_v0 }
  0x41   :  { %2605 = vmatmul.mubr.msk.bf16.gmra.mrb[20].mxu0 %vm18_vm1, %v167_v10  ;;  %v565_v10 = vpack.c.bf16 %v3376_v40, %v3361_v34  ;;  %v1033_v34 = vld [vmem:[#allocation2 + $0x78] sm:$0xff]  ;;  %v1034_v40 = vld [vmem:[#allocation2 + $0x80] sm:$0xff] }
  0x42   :  { %2608 = vmatprep.mubr.msk.bf16.mxu0 %vm3073_vm2, %v3072_v0 }
  0x43   :  { %2633 = vmatmul.mubr.msk.bf16.gmra.mrb[20].mxu1 %vm18_vm1, %v174_v11  ;;  %v130_v11 = vpack.c.bf16 %v113_v8, %v112_v5 }
  0x44   :  { %2638 = vmatprep.mubr.msk.bf16.mxu1 %vm3073_vm2, %v3072_v0 }
  0x49   :  { %2609 = vmatmul.mubr.msk.bf16.gmra.mrb[24].mxu0 %vm18_vm1, %v168_v19  ;;  %v72_v19 = vld [vmem:[%s4236_s0 + $0xc0] sm:$0xff] }
  0x4a   :  { %2692 = vmatprep.mubr.msk.bf16.mxu0 %vm3073_vm2, %v3072_v0  ;;  %97 = vst.msk [vmem:[#allocation2 + $0xd0] sm:$0xff] %vm18_vm1, %v72_v19  ;;  %v1037_v19 = vld [vmem:[#allocation2 + $0x98] sm:$0xff] }
  0x4b   :  { %2639 = vmatmul.mubr.msk.bf16.vlgmr.msra.gmra.mrb[24].mxu1 %vm18_vm1, %v123_v21  ;;  %v116_v21 = vld [vmem:[#allocation2 + $0x95] sm:$0xff] }
  0x4c   :  { %2745 = vmatpush3.bf16.msra.mxu1 %v857_v22  ;;  %2642 = vmatprep.mubr.msk.bf16.mxu1 %vm3073_vm2, %v3072_v0  ;;  %v117_v22 = vld [vmem:[#allocation2 + $0x9d] sm:$0xff] }
  0x4d   :  { %2852 = vmatprep.subr.bf16.mxu1 %v3072_v0  ;;  %v132_v26 = vpack.c.bf16 %v117_v22, %v116_v21 }
  0x51   :  { %2693 = vmatmul.mubr.msk.bf16.vlgmr.msra.gmra.mrb[28].mxu0 %vm18_vm1, %v559_v30  ;;  %v118_v30 = vld [vmem:[#allocation2 + $0xa5] sm:$0xff] }
  0x52   :  { %2799 = vmatpush3.bf16.msra.mxu0 %v1100_v32  ;;  %2696 = vmatprep.mubr.msk.bf16.mxu0 %vm3073_vm2, %v3072_v0  ;;  %v568_v32 = vpack.c.bf16 %v3452_v29, %v3450_v27 }
  0x53   :  { %2643 = vmatmul.mubr.msk.bf16.gmra.mrb[28].mxu1 %vm18_vm1, %v124_v31  ;;  %2906 = vmatprep.subr.bf16.mxu0 %v3072_v0  ;;  %v119_v31 = vld [vmem:[#allocation2 + $0xad] sm:$0xff] }
  0x54   :  { %2646 = vmatprep.mubr.msk.bf16.mxu1 %vm3073_vm2, %v3072_v0  ;;  %v133_v35 = vpack.c.bf16 %v119_v31, %v118_v30  ;;  %v811_v30 = vpack.c.bf16 %v3462_v36, %v3452_v29 }
  0x59   :  { %2697 = vmatmul.mubr.msk.bf16.gmra.mrb[32].mxu0 %vm18_vm1, %v560_v38  ;;  %v3464_v38 = vld [vmem:[#allocation2 + $0xaf] sm:$0xff] }
  0x5a   :  { %2700 = vmatprep.mubr.msk.bf16.mxu0 %vm3073_vm2, %v3072_v0  ;;  %v569_v43 = vpack.c.bf16 %v3464_v38, %v3462_v36 }
  0x5b   :  { %2647 = vmatmul.mubr.msk.bf16.gmra.mrb[32].mxu1 %vm18_vm1, %v125_v39  ;;  %v120_v39 = vld [vmem:[#allocation2 + $0xb5] sm:$0xff] }
  0x5c   :  { %2650 = vmatprep.mubr.msk.bf16.mxu1 %vm3073_vm2, %v3072_v0 }
  0x61   :  { %2701 = vmatmul.mubr.msk.bf16.gmra.mrb[36].mxu0 %vm18_vm1, %v561_v45  ;;  %v134_v45 = vpack.c.bf16 %v121_v42, %v120_v39  ;;  %v1038_v39 = vld [vmem:[#allocation2 + $0xa0] sm:$0xff]  ;;  %v1039_v42 = vld [vmem:[#allocation2 + $0xa8] sm:$0xff] }
  0x62   :  { %2704 = vmatprep.mubr.msk.bf16.mxu0 %vm3073_vm2, %v3072_v0  ;;  %v1054_v36 = vpack.c.bf16 %v1039_v42, %v1038_v39  ;;  %v2440_v39 = vld [vmem:[%s4235_s1 + $0x8] sm:$0x1] }
  0x63   :  { %2651 = vmatmul.mubr.msk.bf16.gmra.mrb[36].mxu1 %vm18_vm1, %v126_v46  ;;  %v3474_v46 = vld [vmem:[#allocation2 + $0xb7] sm:$0xff] }
  0x64   :  { %2654 = vmatprep.mubr.msk.bf16.mxu1 %vm3073_vm2, %v3072_v0 }
  0x69   :  { %2705 = vmatmul.mubr.msk.bf16.gmra.mrb[40].mxu0 %vm18_vm1, %v562_v52  ;;  %v570_v52 = vpack.c.bf16 %v3476_v49, %v3474_v46 }
  0x6a   :  { %2708 = vmatprep.mubr.msk.bf16.mxu0 %vm3073_vm2, %v3072_v0 }
  0x6b   :  { %2655 = vmatmul.mubr.msk.bf16.gmra.mrb[40].mxu1 %vm18_vm1, %v127_v53  ;;  %v135_v53 = vpack.c.bf16 %v122_v50, %v122_v50 }
  0x6c   :  { %2658 = vmatprep.mubr.msk.bf16.mxu1 %vm3073_vm2, %v3072_v0 }
  0x71   :  { %2709 = vmatmul.mubr.msk.bf16.gmra.mrb[44].mxu0 %vm18_vm1, %v563_v59  ;;  %v2398_v59 = vld [vmem:[%s4235_s1 + $0x5] sm:$0x1] }
  0x72   :  { %2712 = vmatprep.mubr.msk.bf16.mxu0 %vm3073_vm2, %v3072_v0 }
  0x73   :  { %2659 = vmatmul.mubr.msk.bf16.gmra.mrb[44].mxu1 %vm18_vm1, %v128_v62  ;;  %v1343_v62 = vsel %vm216_vm0, %v2398_v59, 0 }
  0x74   :  { %2662 = vmatprep.mubr.msk.bf16.mxu1 %vm3073_vm2, %v3072_v0 }
  0x79   :  { %2713 = vmatmul.mubr.msk.bf16.gmra.mrb[48].mxu0 %vm18_vm1, %v564_v3  ;;  %v2412_v3 = vld [vmem:[%s4235_s1 + $0x6] sm:$0x1] }
  0x7a   :  { %2716 = vmatprep.mubr.msk.bf16.mxu0 %vm3073_vm2, %v3072_v0  ;;  %v1586_v55 = vsel %vm216_vm0, %v2412_v3, 0 }
  0x7b   :  { %2663 = vmatmul.mubr.msk.bf16.gmra.mrb[48].mxu1 %vm18_vm1, %v129_v4  ;;  %v1045_v4 = vpack.c.bf16 %v1021_v2, %v1020_v63  ;;  %v1040_v63 = vld [vmem:[#allocation2 + $0xb0] sm:$0xff]  ;;  %v1041_v2 = vld [vmem:[#allocation2 + $0xb8] sm:$0xff] }
  0x7c   :  { %2666 = vmatprep.mubr.msk.bf16.mxu1 %vm3073_vm2, %v3072_v0 }
  0x81   :  { %2717 = vmatmul.mubr.msk.bf16.gmra.mrb[52].mxu0 %vm18_vm1, %v565_v10 }
  0x82   :  { %2720 = vmatprep.mubr.msk.bf16.mxu0 %vm3073_vm2, %v3072_v0 }
  0x83   :  { %2667 = vmatmul.mubr.msk.bf16.gmra.mrb[52].mxu1 %vm18_vm1, %v130_v11  ;;  %v1052_v11 = vpack.c.bf16 %v1035_v41, %v1034_v40  ;;  %v1264_v40 = vld [vmem:[#allocation2 + $0x19] sm:$0xff] }
  0x84   :  { %2670 = vmatprep.mubr.msk.bf16.mxu1 %vm3073_vm2, %v3072_v0 }
  0x89   :  { %2721 = vmatmul.mubr.msk.bf16.gmra.mrb[56].mxu0 %vm18_vm1, %v566_v16 }
  0x8a   :  { %2724 = vmatprep.mubr.msk.bf16.mxu0 %vm3073_vm2, %v3072_v0 }
  0x8b   :  { %2671 = vmatmul.mubr.msk.bf16.gmra.mrb[56].mxu1 %vm18_vm1, %v131_v17  ;;  %v1036_v17 = vld [vmem:[#allocation2 + $0x90] sm:$0xff] }
  0x8c   :  { %2674 = vmatprep.mubr.msk.bf16.mxu1 %vm3073_vm2, %v3072_v0 }
  0x91   :  { %2725 = vmatmul.mubr.msk.bf16.gmra.mrb[60].mxu0 %vm18_vm1, %v567_v23  ;;  %v1053_v23 = vpack.c.bf16 %v1037_v19, %v1036_v17 }
  0x92   :  { %2728 = vmatprep.mubr.msk.bf16.mxu0 %vm3073_vm2, %v3072_v0 }
  0x93   :  { %2675 = vmatmul.mubr.msk.bf16.gmra.mrb[60].mxu1 %vm18_vm1, %v132_v26 }
  0x94   :  { %2678 = vmatprep.mubr.msk.bf16.mxu1 %vm3073_vm2, %v3072_v0 }
  0x99   :  { %2729 = vmatmul.mubr.msk.bf16.gmra.mrb[64].mxu0 %vm18_vm1, %v568_v32 }
  0x9a   :  { %2732 = vmatprep.mubr.msk.bf16.mxu0 %vm3073_vm2, %v3072_v0 }
  0x9b   :  { %2679 = vmatmul.mubr.msk.bf16.gmra.mrb[64].mxu1 %vm18_vm1, %v133_v35 }
  0x9c   :  { %2682 = vmatprep.mubr.msk.bf16.mxu1 %vm3073_vm2, %v3072_v0 }
  0xa1   :  { %2733 = vmatmul.mubr.msk.bf16.gmra.mrb[68].mxu0 %vm18_vm1, %v569_v43 }
  0xa2   :  { %2736 = vmatprep.mubr.msk.bf16.mxu0 %vm3073_vm2, %v3072_v0 }
  0xa3   :  { %2683 = vmatmul.mubr.msk.bf16.gmra.mrb[68].mxu1 %vm18_vm1, %v134_v45 }
  0xa4   :  { %2686 = vmatprep.mubr.msk.bf16.mxu1 %vm3073_vm2, %v3072_v0 }
  0xa9   :  { %2737 = vmatmul.mubr.msk.bf16.gmra.mrb[72].mxu0 %vm18_vm1, %v570_v52 }
  0xaa   :  { %2740 = vmatprep.mubr.msk.bf16.mxu0 %vm3073_vm2, %v3072_v0 }
  0xab   :  { %2687 = vmatmul.mubr.msk.bf16.gmra.mrb[72].mxu1 %vm18_vm1, %v135_v53  ;;  %v812_v53 = vpack.c.bf16 %v3474_v46, %v3464_v38  ;;  %v1055_v46 = vpack.c.bf16 %v1041_v2, %v1040_v63 }
  0xac   :  { %2746 = vmatprep.mubr.msk.bf16.mxu1 %vm3073_vm2, %v3072_v0 }
  0xb1   :  { %2741 = vmatmul.mubr.msk.bf16.gmra.mrb[76].mxu0 %vm18_vm1, %v571_v58 }
  0xb2   :  { %2800 = vmatprep.mubr.msk.bf16.mxu0 %vm3073_vm2, %v3072_v0 }
  0xb3   :  { %2747 = vmatmul.mubr.msk.bf16.vlgmr.msra.gmra.mrb[76].mxu1 %vm18_vm1, %v802_v57  ;;  %v1023_v57 = vld [vmem:[#allocation2 + $0x28] sm:$0xff] }
  0xb4   :  { %2853 = vmatpush3.bf16.msra.mxu1 %v1343_v62  ;;  %2750 = vmatprep.mubr.msk.bf16.mxu1 %vm3073_vm2, %v3072_v0  ;;  %v1046_v5 = vpack.c.bf16 %v1023_v57, %v1022_v56  ;;  %v813_v57 = vpack.c.bf16 %v3486_v54, %v3476_v49 }
  0xb5   :  { %2960 = vmatprep.subr.bf16.mxu1 %v3072_v0 }
  0xb9   :  { %2801 = vmatmul.mubr.msk.bf16.vlgmr.msra.gmra.mrb[80].mxu0 %vm18_vm1, %v1045_v4 }
  0xba   :  { %2907 = vmatpush3.bf16.msra.mxu0 %v1586_v55  ;;  %2804 = vmatprep.mubr.msk.bf16.mxu0 %vm3073_vm2, %v3072_v0 }
  0xbb   :  { %2751 = vmatmul.mubr.msk.bf16.gmra.mrb[80].mxu1 %vm18_vm1, %v803_v1  ;;  %3014 = vmatprep.subr.bf16.mxu0 %v3072_v0  ;;  %v1047_v1 = vpack.c.bf16 %v1025_v61, %v1024_v60 }
  0xbc   :  { %2754 = vmatprep.mubr.msk.bf16.mxu1 %vm3073_vm2, %v3072_v0 }
  0xc1   :  { %2805 = vmatmul.mubr.msk.bf16.gmra.mrb[84].mxu0 %vm18_vm1, %v1046_v5 }
  0xc2   :  { %2808 = vmatprep.mubr.msk.bf16.mxu0 %vm3073_vm2, %v3072_v0 }
  0xc3   :  { %2755 = vmatmul.mubr.msk.bf16.gmra.mrb[84].mxu1 %vm18_vm1, %v804_v9  ;;  %v1048_v9 = vpack.c.bf16 %v1027_v7, %v1026_v6  ;;  %v1043_v6 = vld [vmem:[#allocation2 + $0xc8] sm:$0xff] }
  0xc4   :  { %2758 = vmatprep.mubr.msk.bf16.mxu1 %vm3073_vm2, %v3072_v0  ;;  %v801_v7 = vld [vmem:[#allocation2 + $0xcf] sm:$0xff] }
  0xc9   :  { %2809 = vmatmul.mubr.msk.bf16.gmra.mrb[88].mxu0 %vm18_vm1, %v1047_v1  ;;  %v1042_v1 = vld [vmem:[#allocation2 + $0xc0] sm:$0xff] }
  0xca   :  { %2812 = vmatprep.mubr.msk.bf16.mxu0 %vm3073_vm2, %v3072_v0 }
  0xcb   :  { %2759 = vmatmul.mubr.msk.bf16.gmra.mrb[88].mxu1 %vm18_vm1, %v805_v18  ;;  %v1049_v18 = vpack.c.bf16 %v1029_v15, %v1028_v14  ;;  %v1056_v14 = vpack.c.bf16 %v1043_v6, %v1042_v1 }
  0xcc   :  { %2762 = vmatprep.mubr.msk.bf16.mxu1 %vm3073_vm2, %v3072_v0 }
  0xd1   :  { %2813 = vmatmul.mubr.msk.bf16.gmra.mrb[92].mxu0 %vm18_vm1, %v1048_v9 }
  0xd2   :  { %2816 = vmatprep.mubr.msk.bf16.mxu0 %vm3073_vm2, %v3072_v0 }
  0xd3   :  { %2763 = vmatmul.mubr.msk.bf16.gmra.mrb[92].mxu1 %vm18_vm1, %v806_v28  ;;  %v1050_v28 = vpack.c.bf16 %v1031_v25, %v1030_v24  ;;  %v814_v24 = vpack.c.bf16 %v801_v7, %v801_v7 }
  0xd4   :  { %2766 = vmatprep.mubr.msk.bf16.mxu1 %vm3073_vm2, %v3072_v0 }
  0xd9   :  { %2817 = vmatmul.mubr.msk.bf16.gmra.mrb[96].mxu0 %vm18_vm1, %v1049_v18 }
  0xda   :  { %2820 = vmatprep.mubr.msk.bf16.mxu0 %vm3073_vm2, %v3072_v0 }
  0xdb   :  { %2767 = vmatmul.mubr.msk.bf16.gmra.mrb[96].mxu1 %vm18_vm1, %v807_v37  ;;  %v1051_v37 = vpack.c.bf16 %v1033_v34, %v1032_v33  ;;  %v1044_v34 = vld [vmem:[#allocation2 + $0xd0] sm:$0xff] }
  0xdc   :  { %2770 = vmatprep.mubr.msk.bf16.mxu1 %vm3073_vm2, %v3072_v0 }
  0xe1   :  { %2821 = vmatmul.mubr.msk.bf16.gmra.mrb[100].mxu0 %vm18_vm1, %v1050_v28 }
  0xe2   :  { %2824 = vmatprep.mubr.msk.bf16.mxu0 %vm3073_vm2, %v3072_v0 }
  0xe3   :  { %2771 = vmatmul.mubr.msk.bf16.gmra.mrb[100].mxu1 %vm18_vm1, %v808_v44 }
  0xe4   :  { %2774 = vmatprep.mubr.msk.bf16.mxu1 %vm3073_vm2, %v3072_v0 }
  0xe9   :  { %2825 = vmatmul.mubr.msk.bf16.gmra.mrb[104].mxu0 %vm18_vm1, %v1051_v37  ;;  %v1263_v37 = vld [vmem:[#allocation2 + $0x11] sm:$0xff] }
  0xea   :  { %2828 = vmatprep.mubr.msk.bf16.mxu0 %vm3073_vm2, %v3072_v0  ;;  %v1288_v17 = vpack.c.bf16 %v1264_v40, %v1263_v37 }
  0xeb   :  { %2775 = vmatmul.mubr.msk.bf16.gmra.mrb[104].mxu1 %vm18_vm1, %v809_v51 }
  0xec   :  { %2778 = vmatprep.mubr.msk.bf16.mxu1 %vm3073_vm2, %v3072_v0  ;;  %v3574_v44 = vpop.f32.mrb[0].mxu0 }
  0xed   :  { %v2586_v8 = vpop.f32.mrb[1].mxu0 }
  0xee   :  { %v3576_v10 = vpop.f32.mrb[0].mxu1  ;;  %v3578_v12 = vpop.f32.mrb[2].mxu0 }
  0xef   :  { %v2614_v13 = vpop.f32.mrb[1].mxu1  ;;  %v2587_v48 = vpop.f32.mrb[3].mxu0 }
  0xf0   :  { %v3582_v51 = vpop.f32.mrb[2].mxu1  ;;  %v1057_v13 = vpack.c.bf16 %v1044_v34, %v1044_v34 }
  0xf1   :  { %v2615_v16 = vpop.f32.mrb[3].mxu1  ;;  %2829 = vmatmul.mubr.msk.bf16.gmra.mrb[108].mxu0 %vm18_vm1, %v1052_v11 }
  0xf2   :  { %2832 = vmatprep.mubr.msk.bf16.mxu0 %vm3073_vm2, %v3072_v0 }
  0xf3   :  { %2779 = vmatmul.mubr.msk.bf16.gmra.mrb[108].mxu1 %vm18_vm1, %v810_v47  ;;  %v2426_v47 = vld [vmem:[%s4235_s1 + $0x7] sm:$0x1] }
  0xf4   :  { %2782 = vmatprep.mubr.msk.bf16.mxu1 %vm3073_vm2, %v3072_v0  ;;  %v3590_v21 = vpop.f32.mrb[4].mxu0 }
  0xf5   :  { %v2590_v22 = vpop.f32.mrb[5].mxu0 }
  0xf6   :  { %v3592_v20 = vpop.f32.mrb[4].mxu1  ;;  %v3594_v26 = vpop.f32.mrb[6].mxu0 }
  0xf7   :  { %v2618_v27 = vpop.f32.mrb[5].mxu1  ;;  %v2591_v31 = vpop.f32.mrb[7].mxu0 }
  0xf8   :  { %v3598_v32 = vpop.f32.mrb[6].mxu1  ;;  %v1829_v27 = vsel %vm216_vm0, %v2426_v47, 0  ;;  %v1266_v31 = vld [vmem:[#allocation2 + $0x29] sm:$0xff] }
  0xf9   :  { %v2619_v35 = vpop.f32.mrb[7].mxu1  ;;  %2833 = vmatmul.mubr.msk.bf16.gmra.mrb[112].mxu0 %vm18_vm1, %v1053_v23 }
  0xfa   :  { %2836 = vmatprep.mubr.msk.bf16.mxu0 %vm3073_vm2, %v3072_v0 }
  0xfb   :  { %2783 = vmatmul.mubr.msk.bf16.gmra.mrb[112].mxu1 %vm18_vm1, %v811_v30  ;;  %v1265_v30 = vld [vmem:[#allocation2 + $0x21] sm:$0xff] }
  0xfc   :  { %2786 = vmatprep.mubr.msk.bf16.mxu1 %vm3073_vm2, %v3072_v0  ;;  %v3606_v43 = vpop.f32.mrb[8].mxu0 }
  0xfd   :  { %v2594_v45 = vpop.f32.mrb[9].mxu0 }
  0xfe   :  { %v3608_v29 = vpop.f32.mrb[8].mxu1  ;;  %v3610_v50 = vpop.f32.mrb[10].mxu0 }
  0xff   :  { %v2622_v52 = vpop.f32.mrb[9].mxu1  ;;  %v2595_v58 = vpop.f32.mrb[11].mxu0 }
 0x100   :  { %v3614_v59 = vpop.f32.mrb[10].mxu1 }
 0x101   :  { %v2623_v62 = vpop.f32.mrb[11].mxu1  ;;  %2837 = vmatmul.mubr.msk.bf16.gmra.mrb[116].mxu0 %vm18_vm1, %v1054_v36  ;;  %v1531_v36 = vpack.c.bf16 %v1265_v30, %v1264_v40  ;;  %v1269_v40 = vld [vmem:[#allocation2 + $0x41] sm:$0xff] }
 0x102   :  { %2840 = vmatprep.mubr.msk.bf16.mxu0 %vm3073_vm2, %v3072_v0  ;;  %v1289_v62 = vpack.c.bf16 %v1266_v31, %v1265_v30 }
 0x103   :  { %2787 = vmatmul.mubr.msk.bf16.gmra.mrb[116].mxu1 %vm18_vm1, %v812_v53 }
 0x104   :  { %2790 = vmatprep.mubr.msk.bf16.mxu1 %vm3073_vm2, %v3072_v0  ;;  %v3622_v3 = vpop.f32.mrb[12].mxu0 }
 0x105   :  { %v2598_v4 = vpop.f32.mrb[13].mxu0 }
 0x106   :  { %v3624_v38 = vpop.f32.mrb[12].mxu1  ;;  %v3626_v55 = vpop.f32.mrb[14].mxu0  ;;  %v2072_v4 = vsel %vm216_vm0, %v2440_v39, 0 }
 0x107   :  { %v2626_v56 = vpop.f32.mrb[13].mxu1  ;;  %v2599_v5 = vpop.f32.mrb[15].mxu0 }
 0x108   :  { %v3630_v60 = vpop.f32.mrb[14].mxu1 }
 0x109   :  { %v2627_v61 = vpop.f32.mrb[15].mxu1  ;;  %2841 = vmatmul.mubr.msk.bf16.gmra.mrb[120].mxu0 %vm18_vm1, %v1055_v46 }
 0x10a   :  { %2844 = vmatprep.mubr.msk.bf16.mxu0 %vm3073_vm2, %v3072_v0 }
 0x10b   :  { %2791 = vmatmul.mubr.msk.bf16.gmra.mrb[120].mxu1 %vm18_vm1, %v813_v57  ;;  %v1267_v57 = vld [vmem:[#allocation2 + $0x31] sm:$0xff] }
 0x10c   :  { %2794 = vmatprep.mubr.msk.bf16.mxu1 %vm3073_vm2, %v3072_v0  ;;  %v3638_v9 = vpop.f32.mrb[16].mxu0 }
 0x10d   :  { %v2602_v49 = vpop.f32.mrb[17].mxu0 }
 0x10e   :  { %v3640_v54 = vpop.f32.mrb[16].mxu1  ;;  %v3642_v15 = vpop.f32.mrb[18].mxu0 }
 0x10f   :  { %v2630_v18 = vpop.f32.mrb[17].mxu1  ;;  %v2603_v25 = vpop.f32.mrb[19].mxu0 }
 0x110   :  { %v3644_v28 = vpop.f32.mrb[18].mxu1 }
 0x111   :  { %v2631_v33 = vpop.f32.mrb[19].mxu1  ;;  %2845 = vmatmul.mubr.msk.bf16.gmra.mrb[124].mxu0 %vm18_vm1, %v1056_v14 }
 0x112   :  { %2848 = vmatprep.mubr.msk.bf16.mxu0 %vm3073_vm2, %v3072_v0 }
 0x113   :  { %2795 = vmatmul.mubr.msk.bf16.gmra.mrb[124].mxu1 %vm18_vm1, %v814_v24 }
 0x114   :  { %2854 = vmatprep.mubr.msk.bf16.mxu1 %vm3073_vm2, %v3072_v0  ;;  %v3652_v41 = vpop.f32.mrb[20].mxu0 }
 0x115   :  { %v2606_v8 = vpop.f32.mrb[21].mxu0 }
 0x116   :  { %v3654_v11 = vpop.f32.mrb[20].mxu1  ;;  %v3659_v48 = vpop.f32.mrb[22].mxu0 }
 0x117   :  { %v2634_v16 = vpop.f32.mrb[21].mxu1  ;;  %v2607_v19 = vpop.f32.mrb[23].mxu0 }
 0x118   :  { %v353_v22 = vpop.f32.mrb[22].mxu1 }
 0x119   :  { %v2635_v23 = vpop.f32.mrb[23].mxu1  ;;  %2849 = vmatmul.mubr.msk.bf16.gmra.mrb[128].mxu0 %vm18_vm1, %v1057_v13 }
 0x11a   :  { %2908 = vmatprep.mubr.msk.bf16.mxu0 %vm3073_vm2, %v3072_v0 }
 0x11b   :  { %2855 = vmatmul.mubr.msk.bf16.vlgmr.msra.gmra.mrb[128].mxu1 %vm18_vm1, %v1288_v17 }
 0x11c   :  { %2961 = vmatpush3.bf16.msra.mxu1 %v1829_v27  ;;  %2858 = vmatprep.mubr.msk.bf16.mxu1 %vm3073_vm2, %v3072_v0  ;;  %v3668_v35 = vpop.f32.mrb[24].mxu0 }
 0x11d   :  { %v2610_v45 = vpop.f32.mrb[25].mxu0 }
 0x11e   :  { %v432_v42 = vpop.f32.mrb[24].mxu1  ;;  %v3674_v58 = vpop.f32.mrb[26].mxu0  ;;  %v1271_v45 = vld [vmem:[#allocation2 + $0x51] sm:$0xff] }
 0x11f   :  { %v433_v52 = vadd.f32 %v432_v42, %v3574_v44  ;;  %v2640_v53 = vpop.f32.mrb[25].mxu1  ;;  %v2611_v2 = vpop.f32.mrb[27].mxu0  ;;  %v1268_v44 = vld [vmem:[#allocation2 + $0x39] sm:$0xff] }
 0x120   :  { %v435_v63 = vpop.f32.mrb[26].mxu1  ;;  %v1290_v18 = vpack.c.bf16 %v1268_v44, %v1267_v57  ;;  %v1533_v17 = vpack.c.bf16 %v1269_v40, %v1268_v44 }
 0x121   :  { %v436_v46 = vadd.f32 %v435_v63, %v3578_v12  ;;  %v2641_v56 = vpop.f32.mrb[27].mxu1  ;;  %2909 = vmatmul.mubr.msk.bf16.vlgmr.msra.gmra.mrb[132].mxu0 %vm18_vm1, %v1531_v36  ;;  %v1532_v12 = vpack.c.bf16 %v1267_v57, %v1266_v31 }
 0x122   :  { %3015 = vmatpush3.bf16.msra.mxu0 %v2072_v4  ;;  %2912 = vmatprep.mubr.msk.bf16.mxu0 %vm3073_vm2, %v3072_v0 }
 0x123   :  { %2859 = vmatmul.mubr.msk.bf16.gmra.mrb[132].mxu1 %vm18_vm1, %v1289_v62 }
 0x124   :  { %2862 = vmatprep.mubr.msk.bf16.mxu1 %vm3073_vm2, %v3072_v0  ;;  %v650_v5 = vpop.f32.mrb[28].mxu0 }
 0x125   :  { %v3684_v1 = vadd.f32 %v650_v5, %v433_v52  ;;  %v2694_v6 = vpop.f32.mrb[29].mxu0 }
 0x126   :  { %v440_v61 = vpop.f32.mrb[28].mxu1  ;;  %v653_v14 = vpop.f32.mrb[30].mxu0  ;;  %v1273_v6 = vld [vmem:[#allocation2 + $0x61] sm:$0xff] }
 0x127   :  { %v441_v7 = vadd.f32 %v440_v61, %v3590_v21  ;;  %v2644_v49 = vpop.f32.mrb[29].mxu1  ;;  %v3687_v25 = vadd.f32 %v653_v14, %v436_v46  ;;  %v2695_v33 = vpop.f32.mrb[31].mxu0  ;;  %v1270_v21 = vld [vmem:[#allocation2 + $0x49] sm:$0xff] }
 0x128   :  { %v443_v24 = vpop.f32.mrb[30].mxu1  ;;  %v1291_v23 = vpack.c.bf16 %v1270_v21, %v1269_v40  ;;  %v1534_v63 = vpack.c.bf16 %v1271_v45, %v1270_v21 }
 0x129   :  { %v444_v34 = vadd.f32 %v443_v24, %v3594_v26  ;;  %v2645_v37 = vpop.f32.mrb[31].mxu1  ;;  %2913 = vmatmul.mubr.msk.bf16.gmra.mrb[136].mxu0 %vm18_vm1, %v1532_v12 }
 0x12a   :  { %2916 = vmatprep.mubr.msk.bf16.mxu0 %vm3073_vm2, %v3072_v0 }
 0x12b   :  { %2863 = vmatmul.mubr.msk.bf16.gmra.mrb[136].mxu1 %vm18_vm1, %v1290_v18 }
 0x12c   :  { %2866 = vmatprep.mubr.msk.bf16.mxu1 %vm3073_vm2, %v3072_v0  ;;  %v658_v8 = vpop.f32.mrb[32].mxu0 }
 0x12d   :  { %v3696_v47 = vadd.f32 %v658_v8, %v441_v7  ;;  %v2698_v16 = vpop.f32.mrb[33].mxu0 }
 0x12e   :  { %v448_v13 = vpop.f32.mrb[32].mxu1  ;;  %v661_v22 = vpop.f32.mrb[34].mxu0  ;;  %v1275_v16 = vld [vmem:[#allocation2 + $0x71] sm:$0xff] }
 0x12f   :  { %v449_v26 = vadd.f32 %v448_v13, %v3606_v43  ;;  %v2648_v19 = vpop.f32.mrb[33].mxu1  ;;  %v3699_v30 = vadd.f32 %v661_v22, %v444_v34  ;;  %v2699_v31 = vpop.f32.mrb[35].mxu0  ;;  %v1272_v43 = vld [vmem:[#allocation2 + $0x59] sm:$0xff] }
 0x130   :  { %v451_v27 = vpop.f32.mrb[34].mxu1  ;;  %v1292_v46 = vpack.c.bf16 %v1272_v43, %v1271_v45  ;;  %v1535_v18 = vpack.c.bf16 %v1273_v6, %v1272_v43 }
 0x131   :  { %v452_v39 = vadd.f32 %v451_v27, %v3610_v50  ;;  %v2649_v42 = vpop.f32.mrb[35].mxu1  ;;  %2917 = vmatmul.mubr.msk.bf16.gmra.mrb[140].mxu0 %vm18_vm1, %v1533_v17 }
 0x132   :  { %2920 = vmatprep.mubr.msk.bf16.mxu0 %vm3073_vm2, %v3072_v0 }
 0x133   :  { %2867 = vmatmul.mubr.msk.bf16.gmra.mrb[140].mxu1 %vm18_vm1, %v1291_v23 }
 0x134   :  { %2870 = vmatprep.mubr.msk.bf16.mxu1 %vm3073_vm2, %v3072_v0  ;;  %v666_v36 = vpop.f32.mrb[36].mxu0 }
 0x135   :  { %v3708_v53 = vadd.f32 %v666_v36, %v449_v26  ;;  %v2702_v62 = vpop.f32.mrb[37].mxu0 }
 0x136   :  { %v456_v52 = vpop.f32.mrb[36].mxu1  ;;  %v669_v4 = vpop.f32.mrb[38].mxu0  ;;  %v1277_v62 = vld [vmem:[#allocation2 + $0x81] sm:$0xff] }
 0x137   :  { %v457_v50 = vadd.f32 %v456_v52, %v3622_v3  ;;  %v2652_v2 = vpop.f32.mrb[37].mxu1  ;;  %v3711_v57 = vadd.f32 %v669_v4, %v452_v39  ;;  %v2703_v44 = vpop.f32.mrb[39].mxu0  ;;  %v1274_v3 = vld [vmem:[#allocation2 + $0x69] sm:$0xff] }
 0x138   :  { %v459_v56 = vpop.f32.mrb[38].mxu1  ;;  %v1293_v34 = vpack.c.bf16 %v1274_v3, %v1273_v6  ;;  %v1536_v23 = vpack.c.bf16 %v1275_v16, %v1274_v3 }
 0x139   :  { %v460_v5 = vadd.f32 %v459_v56, %v3626_v55  ;;  %v2653_v61 = vpop.f32.mrb[39].mxu1  ;;  %2921 = vmatmul.mubr.msk.bf16.gmra.mrb[144].mxu0 %vm18_vm1, %v1534_v63 }
 0x13a   :  { %2924 = vmatprep.mubr.msk.bf16.mxu0 %vm3073_vm2, %v3072_v0 }
 0x13b   :  { %2871 = vmatmul.mubr.msk.bf16.gmra.mrb[144].mxu1 %vm18_vm1, %v1292_v46 }
 0x13c   :  { %2874 = vmatprep.mubr.msk.bf16.mxu1 %vm3073_vm2, %v3072_v0  ;;  %v674_v12 = vpop.f32.mrb[40].mxu0 }
 0x13d   :  { %v3720_v49 = vadd.f32 %v674_v12, %v457_v50  ;;  %v2706_v14 = vpop.f32.mrb[41].mxu0 }
 0x13e   :  { %v464_v7 = vpop.f32.mrb[40].mxu1  ;;  %v677_v33 = vpop.f32.mrb[42].mxu0  ;;  %v1279_v14 = vld [vmem:[#allocation2 + $0x91] sm:$0xff] }
 0x13f   :  { %v465_v55 = vadd.f32 %v464_v7, %v3638_v9  ;;  %v2656_v24 = vpop.f32.mrb[41].mxu1  ;;  %v3723_v40 = vadd.f32 %v677_v33, %v460_v5  ;;  %v2707_v21 = vpop.f32.mrb[43].mxu0  ;;  %v1276_v9 = vld [vmem:[#allocation2 + $0x79] sm:$0xff] }
 0x140   :  { %v467_v37 = vpop.f32.mrb[42].mxu1  ;;  %v1294_v39 = vpack.c.bf16 %v1276_v9, %v1275_v16  ;;  %v1537_v46 = vpack.c.bf16 %v1277_v62, %v1276_v9 }
 0x141   :  { %v468_v8 = vadd.f32 %v467_v37, %v3642_v15  ;;  %v2657_v13 = vpop.f32.mrb[43].mxu1  ;;  %2925 = vmatmul.mubr.msk.bf16.gmra.mrb[148].mxu0 %vm18_vm1, %v1535_v18 }
 0x142   :  { %2928 = vmatprep.mubr.msk.bf16.mxu0 %vm3073_vm2, %v3072_v0 }
 0x143   :  { %2875 = vmatmul.mubr.msk.bf16.gmra.mrb[148].mxu1 %vm18_vm1, %v1293_v34 }
 0x144   :  { %2878 = vmatprep.mubr.msk.bf16.mxu1 %vm3073_vm2, %v3072_v0  ;;  %v682_v17 = vpop.f32.mrb[44].mxu0 }
 0x145   :  { %v3732_v19 = vadd.f32 %v682_v17, %v465_v55  ;;  %v2710_v22 = vpop.f32.mrb[45].mxu0 }
 0x146   :  { %v472_v26 = vpop.f32.mrb[44].mxu1  ;;  %v685_v31 = vpop.f32.mrb[46].mxu0  ;;  %v1281_v22 = vld [vmem:[#allocation2 + $0xa1] sm:$0xff] }
 0x147   :  { %v473_v15 = vadd.f32 %v472_v26, %v3652_v41  ;;  %v2660_v27 = vpop.f32.mrb[45].mxu1  ;;  %v3735_v45 = vadd.f32 %v685_v31, %v468_v8  ;;  %v2711_v43 = vpop.f32.mrb[47].mxu0  ;;  %v1278_v41 = vld [vmem:[#allocation2 + $0x89] sm:$0xff] }
 0x148   :  { %v475_v42 = vpop.f32.mrb[46].mxu1  ;;  %v1295_v5 = vpack.c.bf16 %v1278_v41, %v1277_v62  ;;  %v1538_v34 = vpack.c.bf16 %v1279_v14, %v1278_v41 }
 0x149   :  { %v476_v36 = vadd.f32 %v475_v42, %v3659_v48  ;;  %v2661_v52 = vpop.f32.mrb[47].mxu1  ;;  %2929 = vmatmul.mubr.msk.bf16.gmra.mrb[152].mxu0 %vm18_vm1, %v1536_v23 }
 0x14a   :  { %2932 = vmatprep.mubr.msk.bf16.mxu0 %vm3073_vm2, %v3072_v0 }
 0x14b   :  { %2879 = vmatmul.mubr.msk.bf16.gmra.mrb[152].mxu1 %vm18_vm1, %v1294_v39 }
 0x14c   :  { %2882 = vmatprep.mubr.msk.bf16.mxu1 %vm3073_vm2, %v3072_v0  ;;  %v690_v63 = vpop.f32.mrb[48].mxu0 }
 0x14d   :  { %v3744_v2 = vadd.f32 %v690_v63, %v473_v15  ;;  %v2714_v4 = vpop.f32.mrb[49].mxu0 }
 0x14e   :  { %v480_v50 = vpop.f32.mrb[48].mxu1  ;;  %v693_v44 = vpop.f32.mrb[50].mxu0  ;;  %v1283_v4 = vld [vmem:[#allocation2 + $0xb1] sm:$0xff] }
 0x14f   :  { %v481_v48 = vadd.f32 %v480_v50, %v3668_v35  ;;  %v2664_v56 = vpop.f32.mrb[49].mxu1  ;;  %v3747_v6 = vadd.f32 %v693_v44, %v476_v36  ;;  %v2715_v3 = vpop.f32.mrb[51].mxu0  ;;  %v1280_v35 = vld [vmem:[#allocation2 + $0x99] sm:$0xff] }
 0x150   :  { %v483_v61 = vpop.f32.mrb[50].mxu1  ;;  %v1296_v8 = vpack.c.bf16 %v1280_v35, %v1279_v14  ;;  %v1539_v39 = vpack.c.bf16 %v1281_v22, %v1280_v35 }
 0x151   :  { %v484_v12 = vadd.f32 %v483_v61, %v3674_v58  ;;  %v2665_v7 = vpop.f32.mrb[51].mxu1  ;;  %2933 = vmatmul.mubr.msk.bf16.gmra.mrb[156].mxu0 %vm18_vm1, %v1537_v46 }
 0x152   :  { %2936 = vmatprep.mubr.msk.bf16.mxu0 %vm3073_vm2, %v3072_v0 }
 0x153   :  { %2883 = vmatmul.mubr.msk.bf16.gmra.mrb[156].mxu1 %vm18_vm1, %v1295_v5 }
 0x154   :  { %2886 = vmatprep.mubr.msk.bf16.mxu1 %vm3073_vm2, %v3072_v0  ;;  %v698_v18 = vpop.f32.mrb[52].mxu0 }
 0x155   :  { %v3756_v24 = vadd.f32 %v698_v18, %v481_v48  ;;  %v2718_v33 = vpop.f32.mrb[53].mxu0 }
 0x156   :  { %v488_v55 = vpop.f32.mrb[52].mxu1  ;;  %v701_v21 = vpop.f32.mrb[54].mxu0  ;;  %v1285_v33 = vld [vmem:[#allocation2 + $0xc1] sm:$0xff] }
 0x157   :  { %v489_v58 = vadd.f32 %v488_v55, %v3576_v10  ;;  %v2668_v37 = vpop.f32.mrb[53].mxu1  ;;  %v3759_v16 = vadd.f32 %v701_v21, %v484_v12  ;;  %v2719_v9 = vpop.f32.mrb[55].mxu0  ;;  %v1282_v10 = vld [vmem:[#allocation2 + $0xa9] sm:$0xff] }
 0x158   :  { %v491_v13 = vpop.f32.mrb[54].mxu1  ;;  %v1297_v36 = vpack.c.bf16 %v1282_v10, %v1281_v22  ;;  %v1540_v5 = vpack.c.bf16 %v1283_v4, %v1282_v10 }
 0x159   :  { %v492_v17 = vadd.f32 %v491_v13, %v3582_v51  ;;  %v2669_v26 = vpop.f32.mrb[55].mxu1  ;;  %2937 = vmatmul.mubr.msk.bf16.gmra.mrb[160].mxu0 %vm18_vm1, %v1538_v34 }
 0x15a   :  { %2940 = vmatprep.mubr.msk.bf16.mxu0 %vm3073_vm2, %v3072_v0 }
 0x15b   :  { %2887 = vmatmul.mubr.msk.bf16.gmra.mrb[160].mxu1 %vm18_vm1, %v1296_v8 }
 0x15c   :  { %2890 = vmatprep.mubr.msk.bf16.mxu1 %vm3073_vm2, %v3072_v0  ;;  %v706_v23 = vpop.f32.mrb[56].mxu0 }
 0x15d   :  { %v3768_v27 = vadd.f32 %v706_v23, %v489_v58  ;;  %v2722_v31 = vpop.f32.mrb[57].mxu0 }
 0x15e   :  { %v496_v15 = vpop.f32.mrb[56].mxu1  ;;  %v709_v43 = vpop.f32.mrb[58].mxu0  ;;  %v1287_v31 = vld [vmem:[#allocation2 + $0xd1] sm:$0xff] }
 0x15f   :  { %v497_v51 = vadd.f32 %v496_v15, %v3592_v20  ;;  %v2672_v42 = vpop.f32.mrb[57].mxu1  ;;  %v3771_v62 = vadd.f32 %v709_v43, %v492_v17  ;;  %v2723_v41 = vpop.f32.mrb[59].mxu0  ;;  %v1284_v20 = vld [vmem:[#allocation2 + $0xb9] sm:$0xff] }
 0x160   :  { %v499_v52 = vpop.f32.mrb[58].mxu1  ;;  %v1298_v12 = vpack.c.bf16 %v1284_v20, %v1283_v4  ;;  %v1541_v8 = vpack.c.bf16 %v1285_v33, %v1284_v20  ;;  %v1300_v41 = vpack.c.bf16 %v1287_v31, %v1287_v31 }
 0x161   :  { %v500_v63 = vadd.f32 %v499_v52, %v3598_v32  ;;  %v2673_v50 = vpop.f32.mrb[59].mxu1  ;;  %2941 = vmatmul.mubr.msk.bf16.gmra.mrb[164].mxu0 %vm18_vm1, %v1539_v39 }
 0x162   :  { %2944 = vmatprep.mubr.msk.bf16.mxu0 %vm3073_vm2, %v3072_v0 }
 0x163   :  { %2891 = vmatmul.mubr.msk.bf16.gmra.mrb[164].mxu1 %vm18_vm1, %v1297_v36 }
 0x164   :  { %2894 = vmatprep.mubr.msk.bf16.mxu1 %vm3073_vm2, %v3072_v0  ;;  %v714_v46 = vpop.f32.mrb[60].mxu0 }
 0x165   :  { %v3780_v56 = vadd.f32 %v714_v46, %v497_v51  ;;  %v2726_v44 = vpop.f32.mrb[61].mxu0 }
 0x166   :  { %v504_v48 = vpop.f32.mrb[60].mxu1  ;;  %v717_v3 = vpop.f32.mrb[62].mxu0  ;;  %v1750_v44 = vld [vmem:[#allocation2 + $0x22] sm:$0xff] }
 0x167   :  { %v505_v32 = vadd.f32 %v504_v48, %v3608_v29  ;;  %v2676_v61 = vpop.f32.mrb[61].mxu1  ;;  %v3783_v14 = vadd.f32 %v717_v3, %v500_v63  ;;  %v2727_v35 = vpop.f32.mrb[63].mxu0  ;;  %v1286_v29 = vld [vmem:[#allocation2 + $0xc9] sm:$0xff]  ;;  %v1530_v48 = vld [vmem:[#allocation2 + $0xd9] sm:$0xff] }
 0x168   :  { %v507_v7 = vpop.f32.mrb[62].mxu1  ;;  %v1299_v17 = vpack.c.bf16 %v1286_v29, %v1285_v33  ;;  %v1542_v43 = vpack.c.bf16 %v1287_v31, %v1286_v29 }
 0x169   :  { %v508_v18 = vadd.f32 %v507_v7, %v3614_v59  ;;  %v2677_v55 = vpop.f32.mrb[63].mxu1  ;;  %2945 = vmatmul.mubr.msk.bf16.gmra.mrb[168].mxu0 %vm18_vm1, %v1540_v5 }
 0x16a   :  { %2948 = vmatprep.mubr.msk.bf16.mxu0 %vm3073_vm2, %v3072_v0 }
 0x16b   :  { %2895 = vmatmul.mubr.msk.bf16.gmra.mrb[168].mxu1 %vm18_vm1, %v1298_v12 }
 0x16c   :  { %2898 = vmatprep.mubr.msk.bf16.mxu1 %vm3073_vm2, %v3072_v0  ;;  %v722_v34 = vpop.f32.mrb[64].mxu0 }
 0x16d   :  { %v3792_v37 = vadd.f32 %v722_v34, %v505_v32  ;;  %v2730_v21 = vpop.f32.mrb[65].mxu0 }
 0x16e   :  { %v512_v58 = vpop.f32.mrb[64].mxu1  ;;  %v725_v9 = vpop.f32.mrb[66].mxu0  ;;  %v1993_v21 = vld [vmem:[#allocation2 + $0x23] sm:$0xff] }
 0x16f   :  { %v513_v59 = vadd.f32 %v512_v58, %v3624_v38  ;;  %v2680_v13 = vpop.f32.mrb[65].mxu1  ;;  %v3795_v22 = vadd.f32 %v725_v9, %v508_v18  ;;  %v2731_v10 = vpop.f32.mrb[67].mxu0  ;;  %v1992_v58 = vld [vmem:[#allocation2 + $0x1b] sm:$0xff] }
 0x170   :  { %v515_v26 = vpop.f32.mrb[66].mxu1 }
 0x171   :  { %v516_v23 = vadd.f32 %v515_v26, %v3630_v60  ;;  %v2681_v15 = vpop.f32.mrb[67].mxu1  ;;  %2949 = vmatmul.mubr.msk.bf16.gmra.mrb[172].mxu0 %vm18_vm1, %v1541_v8  ;;  %v1752_v8 = vld [vmem:[#allocation2 + $0x32] sm:$0xff]  ;;  %v2017_v26 = vpack.c.bf16 %v1993_v21, %v1992_v58 }
 0x172   :  { %2952 = vmatprep.mubr.msk.bf16.mxu0 %vm3073_vm2, %v3072_v0 }
 0x173   :  { %2899 = vmatmul.mubr.msk.bf16.gmra.mrb[172].mxu1 %vm18_vm1, %v1299_v17 }
 0x174   :  { %2902 = vmatprep.mubr.msk.bf16.mxu1 %vm3073_vm2, %v3072_v0  ;;  %v730_v38 = vpop.f32.mrb[68].mxu0 }
 0x175   :  { %v3804_v51 = vadd.f32 %v730_v38, %v513_v59  ;;  %v2734_v42 = vpop.f32.mrb[69].mxu0 }
 0x176   :  { %v520_v39 = vpop.f32.mrb[68].mxu1  ;;  %v733_v52 = vpop.f32.mrb[70].mxu0 }
 0x177   :  { %v521_v60 = vadd.f32 %v520_v39, %v3640_v54  ;;  %v2684_v36 = vpop.f32.mrb[69].mxu1  ;;  %v3807_v50 = vadd.f32 %v733_v52, %v516_v23  ;;  %v2735_v4 = vpop.f32.mrb[71].mxu0  ;;  %v1749_v54 = vld [vmem:[#allocation2 + $0x1a] sm:$0xff]  ;;  %v1754_v52 = vld [vmem:[#allocation2 + $0x42] sm:$0xff] }
 0x178   :  { %v523_v63 = vpop.f32.mrb[70].mxu1  ;;  %v1774_v18 = vpack.c.bf16 %v1750_v44, %v1749_v54  ;;  %v1995_v36 = vld [vmem:[#allocation2 + $0x33] sm:$0xff] }
 0x179   :  { %v524_v20 = vadd.f32 %v523_v63, %v3644_v28  ;;  %v2685_v46 = vpop.f32.mrb[71].mxu1  ;;  %2953 = vmatmul.mubr.msk.bf16.gmra.mrb[176].mxu0 %vm18_vm1, %v1542_v43  ;;  %v1543_v28 = vpack.c.bf16 %v1530_v48, %v1530_v48 }
 0x17a   :  { %2956 = vmatprep.mubr.msk.bf16.mxu0 %vm3073_vm2, %v3072_v0 }
 0x17b   :  { %2903 = vmatmul.mubr.msk.bf16.gmra.mrb[176].mxu1 %vm18_vm1, %v1300_v41 }
 0x17c   :  { %2962 = vmatprep.mubr.msk.bf16.mxu1 %vm3073_vm2, %v3072_v0  ;;  %v738_v5 = vpop.f32.mrb[72].mxu0 }
 0x17d   :  { %v3816_v61 = vadd.f32 %v738_v5, %v521_v60  ;;  %v2738_v3 = vpop.f32.mrb[73].mxu0  ;;  %v1994_v60 = vld [vmem:[#allocation2 + $0x2b] sm:$0xff] }
 0x17e   :  { %v528_v32 = vpop.f32.mrb[72].mxu1  ;;  %v741_v7 = vpop.f32.mrb[74].mxu0 }
 0x17f   :  { %v529_v12 = vadd.f32 %v528_v32, %v3654_v11  ;;  %v2688_v35 = vpop.f32.mrb[73].mxu1  ;;  %v3819_v55 = vadd.f32 %v741_v7, %v524_v20  ;;  %v2739_v33 = vpop.f32.mrb[75].mxu0  ;;  %v1751_v11 = vld [vmem:[#allocation2 + $0x2a] sm:$0xff]  ;;  %v2018_v20 = vpack.c.bf16 %v1995_v36, %v1994_v60  ;;  %v1996_v7 = vld [vmem:[#allocation2 + $0x3b] sm:$0xff] }
 0x180   :  { %v531_v29 = vpop.f32.mrb[74].mxu1  ;;  %v1775_v31 = vpack.c.bf16 %v1752_v8, %v1751_v11  ;;  %v1997_v35 = vld [vmem:[#allocation2 + $0x43] sm:$0xff] }
 0x181   :  { %v2689_v34 = vpop.f32.mrb[75].mxu1  ;;  %2957 = vmatmul.mubr.msk.bf16.gmra.mrb[180].mxu0 %vm18_vm1, %v1543_v28  ;;  %v2019_v58 = vpack.c.bf16 %v1997_v35, %v1996_v7 }
 0x182   :  { %3016 = vmatprep.mubr.msk.bf16.mxu0 %vm3073_vm2, %v3072_v0 }
 0x183   :  { %2963 = vmatmul.mubr.msk.bf16.vlgmr.msra.gmra.mrb[180].mxu1 %vm18_vm1, %v1774_v18  ;;  %v1756_v18 = vld [vmem:[#allocation2 + $0x52] sm:$0xff] }
 0x184   :  { %2966 = vmatprep.mubr.msk.bf16.mxu1 %vm3073_vm2, %v3072_v0  ;;  %v746_v59 = vpop.f32.mrb[76].mxu0 }
 0x185   :  { %v3827_v13 = vadd.f32 %v746_v59, %v529_v12  ;;  %v2742_v17 = vpop.f32.mrb[77].mxu0 }
 0x186   :  { %v893_v9 = vpop.f32.mrb[76].mxu1  ;;  %v749_v15 = vpop.f32.mrb[78].mxu0 }
 0x187   :  { %v995_v10 = vadd.f32 %v893_v9, %v3684_v1  ;;  %v2748_v23 = vpop.f32.mrb[77].mxu1  ;;  %v2743_v39 = vpop.f32.mrb[79].mxu0  ;;  %v1753_v1 = vld [vmem:[#allocation2 + $0x3a] sm:$0xff]  ;;  %v1998_v15 = vld [vmem:[#allocation2 + $0x4b] sm:$0xff] }
 0x188   :  { %v896_v38 = vpop.f32.mrb[78].mxu1  ;;  %v1776_v44 = vpack.c.bf16 %v1754_v52, %v1753_v1 }
 0x189   :  { %v996_v42 = vadd.f32 %v896_v38, %v3687_v25  ;;  %v2749_v43 = vpop.f32.mrb[79].mxu1  ;;  %3017 = vmatmul.mubr.msk.bf16.vlgmr.msra.gmra.mrb[184].mxu0 %vm18_vm1, %v2017_v26  ;;  %v1758_v38 = vld [vmem:[#allocation2 + $0x62] sm:$0xff] }
 0x18a   :  { %3020 = vmatprep.mubr.msk.bf16.mxu0 %vm3073_vm2, %v3072_v0 }
 0x18b   :  { %2967 = vmatmul.mubr.msk.bf16.gmra.mrb[184].mxu1 %vm18_vm1, %v1775_v31  ;;  %v1999_v31 = vld [vmem:[#allocation2 + $0x53] sm:$0xff] }
 0x18c   :  { %2970 = vmatprep.mubr.msk.bf16.mxu1 %vm3073_vm2, %v3072_v0  ;;  %v1136_v41 = vpop.f32.mrb[80].mxu0  ;;  %v2020_v60 = vpack.c.bf16 %v1999_v31, %v1998_v15 }
 0x18d   :  { %v3837_v4 = vadd.f32 %v1136_v41, %v995_v10  ;;  %v2802_v25 = vpop.f32.mrb[81].mxu0 }
 0x18e   :  { %v901_v63 = vpop.f32.mrb[80].mxu1  ;;  %v1139_v54 = vpop.f32.mrb[82].mxu0 }
 0x18f   :  { %v997_v46 = vadd.f32 %v901_v63, %v3696_v47  ;;  %v2752_v48 = vpop.f32.mrb[81].mxu1  ;;  %v3840_v32 = vadd.f32 %v1139_v54, %v996_v42  ;;  %v2803_v3 = vpop.f32.mrb[83].mxu0  ;;  %v1755_v47 = vld [vmem:[#allocation2 + $0x4a] sm:$0xff]  ;;  %v2000_v54 = vld [vmem:[#allocation2 + $0x5b] sm:$0xff] }
 0x190   :  { %v904_v5 = vpop.f32.mrb[82].mxu1  ;;  %v1777_v59 = vpack.c.bf16 %v1756_v18, %v1755_v47 }
 0x191   :  { %v998_v28 = vadd.f32 %v904_v5, %v3699_v30  ;;  %v2753_v12 = vpop.f32.mrb[83].mxu1  ;;  %3021 = vmatmul.mubr.msk.bf16.gmra.mrb[188].mxu0 %vm18_vm1, %v2018_v20  ;;  %v1760_v5 = vld [vmem:[#allocation2 + $0x72] sm:$0xff] }
 0x192   :  { %3024 = vmatprep.mubr.msk.bf16.mxu0 %vm3073_vm2, %v3072_v0 }
 0x193   :  { %2971 = vmatmul.mubr.msk.bf16.gmra.mrb[188].mxu1 %vm18_vm1, %v1776_v44  ;;  %v2001_v44 = vld [vmem:[#allocation2 + $0x63] sm:$0xff] }
 0x194   :  { %2974 = vmatprep.mubr.msk.bf16.mxu1 %vm3073_vm2, %v3072_v0  ;;  %v1144_v33 = vpop.f32.mrb[84].mxu0  ;;  %v2021_v7 = vpack.c.bf16 %v2001_v44, %v2000_v54 }
 0x195   :  { %v3849_v34 = vadd.f32 %v1144_v33, %v997_v46  ;;  %v2806_v30 = vpop.f32.mrb[85].mxu0 }
 0x196   :  { %v909_v29 = vpop.f32.mrb[84].mxu1  ;;  %v1147_v8 = vpop.f32.mrb[86].mxu0 }
 0x197   :  { %v999_v21 = vadd.f32 %v909_v29, %v3708_v53  ;;  %v2756_v11 = vpop.f32.mrb[85].mxu1  ;;  %v3852_v17 = vadd.f32 %v1147_v8, %v998_v28  ;;  %v2807_v26 = vpop.f32.mrb[87].mxu0  ;;  %v1757_v53 = vld [vmem:[#allocation2 + $0x5a] sm:$0xff]  ;;  %v2002_v8 = vld [vmem:[#allocation2 + $0x6b] sm:$0xff] }
 0x198   :  { %v912_v9 = vpop.f32.mrb[86].mxu1  ;;  %v1778_v41 = vpack.c.bf16 %v1758_v38, %v1757_v53 }
 0x199   :  { %v1000_v10 = vadd.f32 %v912_v9, %v3711_v57  ;;  %v2757_v23 = vpop.f32.mrb[87].mxu1  ;;  %3025 = vmatmul.mubr.msk.bf16.gmra.mrb[192].mxu0 %vm18_vm1, %v2019_v58  ;;  %v1762_v9 = vld [vmem:[#allocation2 + $0x82] sm:$0xff] }
 0x19a   :  { %3028 = vmatprep.mubr.msk.bf16.mxu0 %vm3073_vm2, %v3072_v0 }
 0x19b   :  { %2975 = vmatmul.mubr.msk.bf16.gmra.mrb[192].mxu1 %vm18_vm1, %v1777_v59  ;;  %v2003_v59 = vld [vmem:[#allocation2 + $0x73] sm:$0xff] }
 0x19c   :  { %2978 = vmatprep.mubr.msk.bf16.mxu1 %vm3073_vm2, %v3072_v0  ;;  %v1152_v39 = vpop.f32.mrb[88].mxu0  ;;  %v2022_v15 = vpack.c.bf16 %v2003_v59, %v2002_v8 }
 0x19d   :  { %v3861_v43 = vadd.f32 %v1152_v39, %v999_v21  ;;  %v2810_v57 = vpop.f32.mrb[89].mxu0 }
 0x19e   :  { %v917_v42 = vpop.f32.mrb[88].mxu1  ;;  %v1155_v52 = vpop.f32.mrb[90].mxu0 }
 0x19f   :  { %v1001_v36 = vadd.f32 %v917_v42, %v3720_v49  ;;  %v2760_v1 = vpop.f32.mrb[89].mxu1  ;;  %v3864_v25 = vadd.f32 %v1155_v52, %v1000_v10  ;;  %v2811_v20 = vpop.f32.mrb[91].mxu0  ;;  %v1759_v49 = vld [vmem:[#allocation2 + $0x6a] sm:$0xff]  ;;  %v2004_v52 = vld [vmem:[#allocation2 + $0x7b] sm:$0xff] }
 0x1a0   :  { %v920_v63 = vpop.f32.mrb[90].mxu1  ;;  %v1779_v33 = vpack.c.bf16 %v1760_v5, %v1759_v49 }
 0x1a1   :  { %v1002_v46 = vadd.f32 %v920_v63, %v3723_v40  ;;  %v2761_v48 = vpop.f32.mrb[91].mxu1  ;;  %3029 = vmatmul.mubr.msk.bf16.gmra.mrb[196].mxu0 %vm18_vm1, %v2020_v60  ;;  %v1764_v63 = vld [vmem:[#allocation2 + $0x92] sm:$0xff] }
 0x1a2   :  { %3032 = vmatprep.mubr.msk.bf16.mxu0 %vm3073_vm2, %v3072_v0 }
 0x1a3   :  { %2979 = vmatmul.mubr.msk.bf16.gmra.mrb[196].mxu1 %vm18_vm1, %v1778_v41  ;;  %v2005_v41 = vld [vmem:[#allocation2 + $0x83] sm:$0xff] }
 0x1a4   :  { %2982 = vmatprep.mubr.msk.bf16.mxu1 %vm3073_vm2, %v3072_v0  ;;  %v1160_v3 = vpop.f32.mrb[92].mxu0  ;;  %v2023_v54 = vpack.c.bf16 %v2005_v41, %v2004_v52 }
 0x1a5   :  { %v3873_v12 = vadd.f32 %v1160_v3, %v1001_v36  ;;  %v2814_v40 = vpop.f32.mrb[93].mxu0 }
 0x1a6   :  { %v925_v28 = vpop.f32.mrb[92].mxu1  ;;  %v1163_v18 = vpop.f32.mrb[94].mxu0 }
 0x1a7   :  { %v1003_v35 = vadd.f32 %v925_v28, %v3732_v19  ;;  %v2764_v47 = vpop.f32.mrb[93].mxu1  ;;  %v3876_v30 = vadd.f32 %v1163_v18, %v1002_v46  ;;  %v2815_v58 = vpop.f32.mrb[95].mxu0  ;;  %v1761_v19 = vld [vmem:[#allocation2 + $0x7a] sm:$0xff]  ;;  %v2006_v18 = vld [vmem:[#allocation2 + $0x8b] sm:$0xff] }
 0x1a8   :  { %v928_v29 = vpop.f32.mrb[94].mxu1  ;;  %v1780_v39 = vpack.c.bf16 %v1762_v9, %v1761_v19 }
 0x1a9   :  { %v1004_v21 = vadd.f32 %v928_v29, %v3735_v45  ;;  %v2765_v11 = vpop.f32.mrb[95].mxu1  ;;  %3033 = vmatmul.mubr.msk.bf16.gmra.mrb[200].mxu0 %vm18_vm1, %v2021_v7  ;;  %v1766_v29 = vld [vmem:[#allocation2 + $0xa2] sm:$0xff] }
 0x1aa   :  { %3036 = vmatprep.mubr.msk.bf16.mxu0 %vm3073_vm2, %v3072_v0 }
 0x1ab   :  { %2983 = vmatmul.mubr.msk.bf16.gmra.mrb[200].mxu1 %vm18_vm1, %v1779_v33  ;;  %v2007_v33 = vld [vmem:[#allocation2 + $0x93] sm:$0xff] }
 0x1ac   :  { %2986 = vmatprep.mubr.msk.bf16.mxu1 %vm3073_vm2, %v3072_v0  ;;  %v1168_v26 = vpop.f32.mrb[96].mxu0  ;;  %v2024_v8 = vpack.c.bf16 %v2007_v33, %v2006_v18 }
 0x1ad   :  { %v3885_v23 = vadd.f32 %v1168_v26, %v1003_v35  ;;  %v2818_v45 = vpop.f32.mrb[97].mxu0 }
 0x1ae   :  { %v933_v10 = vpop.f32.mrb[96].mxu1  ;;  %v1171_v38 = vpop.f32.mrb[98].mxu0 }
 0x1af   :  { %v1005_v31 = vadd.f32 %v933_v10, %v3744_v2  ;;  %v2768_v53 = vpop.f32.mrb[97].mxu1  ;;  %v3888_v57 = vadd.f32 %v1171_v38, %v1004_v21  ;;  %v2819_v60 = vpop.f32.mrb[99].mxu0  ;;  %v1763_v2 = vld [vmem:[#allocation2 + $0x8a] sm:$0xff]  ;;  %v2008_v38 = vld [vmem:[#allocation2 + $0x9b] sm:$0xff] }
 0x1b0   :  { %v936_v42 = vpop.f32.mrb[98].mxu1  ;;  %v1781_v3 = vpack.c.bf16 %v1764_v63, %v1763_v2 }
 0x1b1   :  { %v1006_v36 = vadd.f32 %v936_v42, %v3747_v6  ;;  %v2769_v1 = vpop.f32.mrb[99].mxu1  ;;  %3037 = vmatmul.mubr.msk.bf16.gmra.mrb[204].mxu0 %vm18_vm1, %v2022_v15  ;;  %v1768_v42 = vld [vmem:[#allocation2 + $0xb2] sm:$0xff] }
 0x1b2   :  { %3040 = vmatprep.mubr.msk.bf16.mxu0 %vm3073_vm2, %v3072_v0 }
 0x1b3   :  { %2987 = vmatmul.mubr.msk.bf16.gmra.mrb[204].mxu1 %vm18_vm1, %v1780_v39  ;;  %v2009_v39 = vld [vmem:[#allocation2 + $0xa3] sm:$0xff] }
 0x1b4   :  { %2990 = vmatprep.mubr.msk.bf16.mxu1 %vm3073_vm2, %v3072_v0  ;;  %v1176_v20 = vpop.f32.mrb[100].mxu0  ;;  %v2025_v52 = vpack.c.bf16 %v2009_v39, %v2008_v38 }
 0x1b5   :  { %v3897_v48 = vadd.f32 %v1176_v20, %v1005_v31  ;;  %v2822_v6 = vpop.f32.mrb[101].mxu0 }
 0x1b6   :  { %v941_v46 = vpop.f32.mrb[100].mxu1  ;;  %v1179_v5 = vpop.f32.mrb[102].mxu0 }
 0x1b7   :  { %v1007_v44 = vadd.f32 %v941_v46, %v3756_v24  ;;  %v2772_v49 = vpop.f32.mrb[101].mxu1  ;;  %v3900_v40 = vadd.f32 %v1179_v5, %v1006_v36  ;;  %v2823_v7 = vpop.f32.mrb[103].mxu0  ;;  %v1765_v24 = vld [vmem:[#allocation2 + $0x9a] sm:$0xff]  ;;  %v2010_v5 = vld [vmem:[#allocation2 + $0xab] sm:$0xff] }
 0x1b8   :  { %v944_v28 = vpop.f32.mrb[102].mxu1  ;;  %v1782_v26 = vpack.c.bf16 %v1766_v29, %v1765_v24 }
 0x1b9   :  { %v1008_v35 = vadd.f32 %v944_v28, %v3759_v16  ;;  %v2773_v47 = vpop.f32.mrb[103].mxu1  ;;  %3041 = vmatmul.mubr.msk.bf16.gmra.mrb[208].mxu0 %vm18_vm1, %v2023_v54  ;;  %v1770_v28 = vld [vmem:[#allocation2 + $0xc2] sm:$0xff] }
 0x1ba   :  { %3044 = vmatprep.mubr.msk.bf16.mxu0 %vm3073_vm2, %v3072_v0 }
 0x1bb   :  { %2991 = vmatmul.mubr.msk.bf16.gmra.mrb[208].mxu1 %vm18_vm1, %v1781_v3  ;;  %v2011_v3 = vld [vmem:[#allocation2 + $0xb3] sm:$0xff] }
 0x1bc   :  { %2994 = vmatprep.mubr.msk.bf16.mxu1 %vm3073_vm2, %v3072_v0  ;;  %v1184_v58 = vpop.f32.mrb[104].mxu0  ;;  %v2026_v18 = vpack.c.bf16 %v2011_v3, %v2010_v5 }
 0x1bd   :  { %v3909_v11 = vadd.f32 %v1184_v58, %v1007_v44  ;;  %v2826_v16 = vpop.f32.mrb[105].mxu0 }
 0x1be   :  { %v949_v21 = vpop.f32.mrb[104].mxu1  ;;  %v1187_v9 = vpop.f32.mrb[106].mxu0 }
 0x1bf   :  { %v1009_v59 = vadd.f32 %v949_v21, %v3768_v27  ;;  %v2776_v19 = vpop.f32.mrb[105].mxu1  ;;  %v3912_v45 = vadd.f32 %v1187_v9, %v1008_v35  ;;  %v2827_v15 = vpop.f32.mrb[107].mxu0  ;;  %v1767_v27 = vld [vmem:[#allocation2 + $0xaa] sm:$0xff]  ;;  %v2012_v9 = vld [vmem:[#allocation2 + $0xbb] sm:$0xff] }
 0x1c0   :  { %v952_v10 = vpop.f32.mrb[106].mxu1  ;;  %v1783_v20 = vpack.c.bf16 %v1768_v42, %v1767_v27 }
 0x1c1   :  { %v1010_v31 = vadd.f32 %v952_v10, %v3771_v62  ;;  %v2777_v53 = vpop.f32.mrb[107].mxu1  ;;  %3045 = vmatmul.mubr.msk.bf16.gmra.mrb[212].mxu0 %vm18_vm1, %v2024_v8  ;;  %v1772_v10 = vld [vmem:[#allocation2 + $0xd2] sm:$0xff] }
 0x1c2   :  { %3048 = vmatprep.mubr.msk.bf16.mxu0 %vm3073_vm2, %v3072_v0 }
 0x1c3   :  { %2995 = vmatmul.mubr.msk.bf16.gmra.mrb[212].mxu1 %vm18_vm1, %v1782_v26  ;;  %v2013_v26 = vld [vmem:[#allocation2 + $0xc3] sm:$0xff] }
 0x1c4   :  { %2998 = vmatprep.mubr.msk.bf16.mxu1 %vm3073_vm2, %v3072_v0  ;;  %v1192_v60 = vpop.f32.mrb[108].mxu0  ;;  %v2027_v38 = vpack.c.bf16 %v2013_v26, %v2012_v9 }
 0x1c5   :  { %v3921_v1 = vadd.f32 %v1192_v60, %v1009_v59  ;;  %v2830_v62 = vpop.f32.mrb[109].mxu0 }
 0x1c6   :  { %v957_v36 = vpop.f32.mrb[108].mxu1  ;;  %v1195_v63 = vpop.f32.mrb[110].mxu0 }
 0x1c7   :  { %v1011_v41 = vadd.f32 %v957_v36, %v3780_v56  ;;  %v2780_v2 = vpop.f32.mrb[109].mxu1  ;;  %v3924_v6 = vadd.f32 %v1195_v63, %v1010_v31  ;;  %v2831_v54 = vpop.f32.mrb[111].mxu0  ;;  %v1769_v56 = vld [vmem:[#allocation2 + $0xba] sm:$0xff]  ;;  %v2014_v63 = vld [vmem:[#allocation2 + $0xcb] sm:$0xff] }
 0x1c8   :  { %v960_v46 = vpop.f32.mrb[110].mxu1  ;;  %v1784_v58 = vpack.c.bf16 %v1770_v28, %v1769_v56 }
 0x1c9   :  { %v1012_v44 = vadd.f32 %v960_v46, %v3783_v14  ;;  %v2781_v49 = vpop.f32.mrb[111].mxu1  ;;  %3049 = vmatmul.mubr.msk.bf16.gmra.mrb[216].mxu0 %vm18_vm1, %v2025_v52 }
 0x1ca   :  { %3052 = vmatprep.mubr.msk.bf16.mxu0 %vm3073_vm2, %v3072_v0 }
 0x1cb   :  { %2999 = vmatmul.mubr.msk.bf16.gmra.mrb[216].mxu1 %vm18_vm1, %v1783_v20  ;;  %v2015_v20 = vld [vmem:[#allocation2 + $0xd3] sm:$0xff] }
 0x1cc   :  { %3002 = vmatprep.mubr.msk.bf16.mxu1 %vm3073_vm2, %v3072_v0  ;;  %v1200_v7 = vpop.f32.mrb[112].mxu0 }
 0x1cd   :  { %v3933_v47 = vadd.f32 %v1200_v7, %v1011_v41  ;;  %v2834_v14 = vpop.f32.mrb[113].mxu0 }
 0x1ce   :  { %v965_v35 = vpop.f32.mrb[112].mxu1  ;;  %v1203_v29 = vpop.f32.mrb[114].mxu0 }
 0x1cf   :  { %v1013_v33 = vadd.f32 %v965_v35, %v3792_v37  ;;  %v2784_v24 = vpop.f32.mrb[113].mxu1  ;;  %v3936_v16 = vadd.f32 %v1203_v29, %v1012_v44  ;;  %v2835_v8 = vpop.f32.mrb[115].mxu0  ;;  %v1771_v37 = vld [vmem:[#allocation2 + $0xca] sm:$0xff] }
 0x1d0   :  { %v968_v21 = vpop.f32.mrb[114].mxu1  ;;  %v1785_v60 = vpack.c.bf16 %v1772_v10, %v1771_v37  ;;  %v2016_v24 = vld [vmem:[#allocation2 + $0xdb] sm:$0xff] }
 0x1d1   :  { %v1014_v59 = vadd.f32 %v968_v21, %v3795_v22  ;;  %v2785_v19 = vpop.f32.mrb[115].mxu1  ;;  %3053 = vmatmul.mubr.msk.bf16.gmra.mrb[220].mxu0 %vm18_vm1, %v2026_v18  ;;  %v2029_v8 = vpack.c.bf16 %v2016_v24, %v2016_v24 }
 0x1d2   :  { %3056 = vmatprep.mubr.msk.bf16.mxu0 %vm3073_vm2, %v3072_v0 }
 0x1d3   :  { %3003 = vmatmul.mubr.msk.bf16.gmra.mrb[220].mxu1 %vm18_vm1, %v1784_v58 }
 0x1d4   :  { %3006 = vmatprep.mubr.msk.bf16.mxu1 %vm3073_vm2, %v3072_v0  ;;  %v1208_v15 = vpop.f32.mrb[116].mxu0 }
 0x1d5   :  { %v3945_v53 = vadd.f32 %v1208_v15, %v1013_v33  ;;  %v2838_v22 = vpop.f32.mrb[117].mxu0 }
 0x1d6   :  { %v973_v31 = vpop.f32.mrb[116].mxu1  ;;  %v1211_v42 = vpop.f32.mrb[118].mxu0 }
 0x1d7   :  { %v1015_v39 = vadd.f32 %v973_v31, %v3804_v51  ;;  %v2788_v27 = vpop.f32.mrb[117].mxu1  ;;  %v3948_v62 = vadd.f32 %v1211_v42, %v1014_v59  ;;  %v2839_v52 = vpop.f32.mrb[119].mxu0  ;;  %v1773_v51 = vld [vmem:[#allocation2 + $0xda] sm:$0xff] }
 0x1d8   :  { %v976_v36 = vpop.f32.mrb[118].mxu1  ;;  %v1786_v28 = vpack.c.bf16 %v1773_v51, %v1773_v51 }
 0x1d9   :  { %v1016_v41 = vadd.f32 %v976_v36, %v3807_v50  ;;  %v2789_v2 = vpop.f32.mrb[119].mxu1  ;;  %3057 = vmatmul.mubr.msk.bf16.gmra.mrb[224].mxu0 %vm18_vm1, %v2027_v38  ;;  %v2028_v50 = vpack.c.bf16 %v2015_v20, %v2014_v63 }
 0x1da   :  { %3060 = vmatprep.mubr.msk.bf16.mxu0 %vm3073_vm2, %v3072_v0 }
 0x1db   :  { %3007 = vmatmul.mubr.msk.bf16.gmra.mrb[224].mxu1 %vm18_vm1, %v1785_v60 }
 0x1dc   :  { %3010 = vmatprep.mubr.msk.bf16.mxu1 %vm3073_vm2, %v3072_v0  ;;  %v1216_v46 = vpop.f32.mrb[120].mxu0 }
 0x1dd   :  { %v3957_v44 = vadd.f32 %v1216_v46, %v1015_v39  ;;  %v2842_v49 = vpop.f32.mrb[121].mxu0 }
 0x1de   :  { %v981_v54 = vpop.f32.mrb[120].mxu1  ;;  %v1219_v56 = vpop.f32.mrb[122].mxu0 }
 0x1df   :  { %v1017_v5 = vadd.f32 %v981_v54, %v3816_v61  ;;  %v2792_v3 = vpop.f32.mrb[121].mxu1  ;;  %v3960_v35 = vadd.f32 %v1219_v56, %v1016_v41  ;;  %v2843_v14 = vpop.f32.mrb[123].mxu0 }
 0x1e0   :  { %v984_v7 = vpop.f32.mrb[122].mxu1 }
 0x1e1   :  { %v1018_v18 = vadd.f32 %v984_v7, %v3819_v55  ;;  %v2793_v33 = vpop.f32.mrb[123].mxu1  ;;  %3061 = vmatmul.mubr.msk.bf16.gmra.mrb[228].mxu0 %vm18_vm1, %v2028_v50 }
 0x1e2   :  { %3064 = vmatprep.mubr.msk.bf16.mxu0 %vm3073_vm2, %v3072_v0 }
 0x1e3   :  { %3011 = vmatmul.mubr.msk.bf16.gmra.mrb[228].mxu1 %vm18_vm1, %v1786_v28 }
 0x1e4   :  { %v1224_v29 = vpop.f32.mrb[124].mxu0 }
 0x1e5   :  { %v3967_v58 = vadd.f32 %v1224_v29, %v1017_v5  ;;  %v2846_v21 = vpop.f32.mrb[125].mxu0 }
 0x1e6   :  { %v989_v61 = vpop.f32.mrb[124].mxu1  ;;  %v1227_v19 = vpop.f32.mrb[126].mxu0 }
 0x1e7   :  { %v1019_v59 = vadd.f32 %v989_v61, %v3827_v13  ;;  %v2796_v9 = vpop.f32.mrb[125].mxu1  ;;  %v3970_v55 = vadd.f32 %v1227_v19, %v1018_v18  ;;  %v2847_v26 = vpop.f32.mrb[127].mxu0 }
 0x1e8   :  { %v992_v37 = vpop.f32.mrb[126].mxu1 }
 0x1e9   :  { %v2797_v10 = vpop.f32.mrb[127].mxu1  ;;  %3065 = vmatmul.mubr.msk.bf16.gmra.mrb[232].mxu0 %vm18_vm1, %v2029_v8 }
 0x1ec   :  { %v1232_v15 = vpop.f32.mrb[128].mxu0 }
 0x1ed   :  { %v3973_v0 = vadd.f32 %v1232_v15, %v1019_v59  ;;  %v2850_v22 = vpop.f32.mrb[129].mxu0 }
 0x1ee   :  { %v1379_v31 = vpop.f32.mrb[128].mxu1  ;;  %v1235_v27 = vpop.f32.mrb[130].mxu0 }
 0x1ef   :  { %v1481_v38 = vadd.f32 %v1379_v31, %v3837_v4  ;;  %v2856_v39 = vpop.f32.mrb[129].mxu1  ;;  %v2851_v13 = vpop.f32.mrb[131].mxu0 }
 0x1f0   :  { %v1382_v42 = vpop.f32.mrb[130].mxu1 }
 0x1f1   :  { %v1482_v60 = vadd.f32 %v1382_v42, %v3840_v32  ;;  %v2857_v36 = vpop.f32.mrb[131].mxu1 }
 0x1f4   :  { %v1622_v52 = vpop.f32.mrb[132].mxu0 }
 0x1f5   :  { %v3977_v2 = vadd.f32 %v1622_v52, %v1481_v38  ;;  %v2910_v63 = vpop.f32.mrb[133].mxu0 }
 0x1f6   :  { %v1387_v41 = vpop.f32.mrb[132].mxu1  ;;  %v1625_v46 = vpop.f32.mrb[134].mxu0 }
 0x1f7   :  { %v1483_v20 = vadd.f32 %v1387_v41, %v3849_v34  ;;  %v2860_v51 = vpop.f32.mrb[133].mxu1  ;;  %v3980_v49 = vadd.f32 %v1625_v46, %v1482_v60  ;;  %v2911_v4 = vpop.f32.mrb[135].mxu0 }
 0x1f8   :  { %v1390_v54 = vpop.f32.mrb[134].mxu1 }
 0x1f9   :  { %v1484_v50 = vadd.f32 %v1390_v54, %v3852_v17  ;;  %v2861_v5 = vpop.f32.mrb[135].mxu1 }
 0x1fc   :  { %v1630_v3 = vpop.f32.mrb[136].mxu0 }
 0x1fd   :  { %v3983_v32 = vadd.f32 %v1630_v3, %v1483_v20  ;;  %v2914_v28 = vpop.f32.mrb[137].mxu0 }
 0x1fe   :  { %v1395_v56 = vpop.f32.mrb[136].mxu1  ;;  %v1633_v18 = vpop.f32.mrb[138].mxu0 }
 0x1ff   :  { %v1485_v7 = vadd.f32 %v1395_v56, %v3861_v43  ;;  %v2864_v14 = vpop.f32.mrb[137].mxu1  ;;  %v3986_v34 = vadd.f32 %v1633_v18, %v1484_v50  ;;  %v2915_v24 = vpop.f32.mrb[139].mxu0 }
 0x200   :  { %v1398_v33 = vpop.f32.mrb[138].mxu1 }
 0x201   :  { %v1486_v29 = vadd.f32 %v1398_v33, %v3864_v25  ;;  %v2865_v61 = vpop.f32.mrb[139].mxu1 }
 0x204   :  { %v1638_v21 = vpop.f32.mrb[140].mxu0 }
 0x205   :  { %v3989_v17 = vadd.f32 %v1638_v21, %v1485_v7  ;;  %v2918_v59 = vpop.f32.mrb[141].mxu0 }
 0x206   :  { %v1403_v8 = vpop.f32.mrb[140].mxu1  ;;  %v1641_v26 = vpop.f32.mrb[142].mxu0 }
 0x207   :  { %v1487_v19 = vadd.f32 %v1403_v8, %v3873_v12  ;;  %v2868_v9 = vpop.f32.mrb[141].mxu1  ;;  %v3992_v43 = vadd.f32 %v1641_v26, %v1486_v29  ;;  %v2919_v10 = vpop.f32.mrb[143].mxu0 }
 0x208   :  { %v1406_v37 = vpop.f32.mrb[142].mxu1 }
 0x209   :  { %v1488_v15 = vadd.f32 %v1406_v37, %v3876_v30  ;;  %v2869_v31 = vpop.f32.mrb[143].mxu1 }
 0x20c   :  { %v1646_v22 = vpop.f32.mrb[144].mxu0 }
 0x20d   :  { %v3995_v25 = vadd.f32 %v1646_v22, %v1487_v19  ;;  %v2922_v39 = vpop.f32.mrb[145].mxu0 }
 0x20e   :  { %v1411_v38 = vpop.f32.mrb[144].mxu1  ;;  %v1649_v13 = vpop.f32.mrb[146].mxu0 }
 0x20f   :  { %v1489_v27 = vadd.f32 %v1411_v38, %v3885_v23  ;;  %v2872_v42 = vpop.f32.mrb[145].mxu1  ;;  %v3998_v12 = vadd.f32 %v1649_v13, %v1488_v15  ;;  %v2923_v36 = vpop.f32.mrb[147].mxu0 }
 0x210   :  { %v1414_v60 = vpop.f32.mrb[146].mxu1 }
 0x211   :  { %v1490_v52 = vadd.f32 %v1414_v60, %v3888_v57  ;;  %v2873_v41 = vpop.f32.mrb[147].mxu1 }
 0x214   :  { %v1654_v63 = vpop.f32.mrb[148].mxu0 }
 0x215   :  { %v4001_v30 = vadd.f32 %v1654_v63, %v1489_v27  ;;  %v2926_v51 = vpop.f32.mrb[149].mxu0 }
 0x216   :  { %v1419_v20 = vpop.f32.mrb[148].mxu1  ;;  %v1657_v4 = vpop.f32.mrb[150].mxu0 }
 0x217   :  { %v1491_v46 = vadd.f32 %v1419_v20, %v3897_v48  ;;  %v2876_v54 = vpop.f32.mrb[149].mxu1  ;;  %v4004_v23 = vadd.f32 %v1657_v4, %v1490_v52  ;;  %v2927_v5 = vpop.f32.mrb[151].mxu0 }
 0x218   :  { %v1422_v50 = vpop.f32.mrb[150].mxu1 }
 0x219   :  { %v1492_v3 = vadd.f32 %v1422_v50, %v3900_v40  ;;  %v2877_v56 = vpop.f32.mrb[151].mxu1 }
 0x21c   :  { %v1662_v28 = vpop.f32.mrb[152].mxu0 }
 0x21d   :  { %v4007_v57 = vadd.f32 %v1662_v28, %v1491_v46  ;;  %v2930_v14 = vpop.f32.mrb[153].mxu0 }
 0x21e   :  { %v1427_v7 = vpop.f32.mrb[152].mxu1  ;;  %v1665_v24 = vpop.f32.mrb[154].mxu0 }
 0x21f   :  { %v1493_v18 = vadd.f32 %v1427_v7, %v3909_v11  ;;  %v2880_v33 = vpop.f32.mrb[153].mxu1  ;;  %v4010_v48 = vadd.f32 %v1665_v24, %v1492_v3  ;;  %v2931_v61 = vpop.f32.mrb[155].mxu0 }
 0x220   :  { %v1430_v29 = vpop.f32.mrb[154].mxu1 }
 0x221   :  { %v1494_v21 = vadd.f32 %v1430_v29, %v3912_v45  ;;  %v2881_v8 = vpop.f32.mrb[155].mxu1 }
 0x224   :  { %v1670_v59 = vpop.f32.mrb[156].mxu0 }
 0x225   :  { %v4013_v40 = vadd.f32 %v1670_v59, %v1493_v18  ;;  %v2934_v9 = vpop.f32.mrb[157].mxu0 }
 0x226   :  { %v1435_v19 = vpop.f32.mrb[156].mxu1  ;;  %v1673_v10 = vpop.f32.mrb[158].mxu0 }
 0x227   :  { %v1495_v26 = vadd.f32 %v1435_v19, %v3921_v1  ;;  %v2884_v37 = vpop.f32.mrb[157].mxu1  ;;  %v4016_v11 = vadd.f32 %v1673_v10, %v1494_v21  ;;  %v2935_v31 = vpop.f32.mrb[159].mxu0 }
 0x228   :  { %v1438_v15 = vpop.f32.mrb[158].mxu1 }
 0x229   :  { %v1496_v22 = vadd.f32 %v1438_v15, %v3924_v6  ;;  %v2885_v38 = vpop.f32.mrb[159].mxu1 }
 0x22c   :  { %v1678_v39 = vpop.f32.mrb[160].mxu0 }
 0x22d   :  { %v4019_v45 = vadd.f32 %v1678_v39, %v1495_v26  ;;  %v2938_v42 = vpop.f32.mrb[161].mxu0 }
 0x22e   :  { %v1443_v27 = vpop.f32.mrb[160].mxu1  ;;  %v1681_v36 = vpop.f32.mrb[162].mxu0 }
 0x22f   :  { %v1497_v13 = vadd.f32 %v1443_v27, %v3933_v47  ;;  %v2888_v60 = vpop.f32.mrb[161].mxu1  ;;  %v4022_v1 = vadd.f32 %v1681_v36, %v1496_v22  ;;  %v2939_v41 = vpop.f32.mrb[163].mxu0 }
 0x230   :  { %v1446_v52 = vpop.f32.mrb[162].mxu1 }
 0x231   :  { %v1498_v63 = vadd.f32 %v1446_v52, %v3936_v16  ;;  %v2889_v20 = vpop.f32.mrb[163].mxu1 }
 0x234   :  { %v1686_v51 = vpop.f32.mrb[164].mxu0 }
 0x235   :  { %v4025_v6 = vadd.f32 %v1686_v51, %v1497_v13  ;;  %v2942_v54 = vpop.f32.mrb[165].mxu0 }
 0x236   :  { %v1451_v46 = vpop.f32.mrb[164].mxu1  ;;  %v1689_v5 = vpop.f32.mrb[166].mxu0 }
 0x237   :  { %v1499_v4 = vadd.f32 %v1451_v46, %v3945_v53  ;;  %v2892_v50 = vpop.f32.mrb[165].mxu1  ;;  %v4028_v47 = vadd.f32 %v1689_v5, %v1498_v63  ;;  %v2943_v56 = vpop.f32.mrb[167].mxu0 }
 0x238   :  { %v1454_v3 = vpop.f32.mrb[166].mxu1 }
 0x239   :  { %v1500_v28 = vadd.f32 %v1454_v3, %v3948_v62  ;;  %v2893_v7 = vpop.f32.mrb[167].mxu1 }
 0x23c   :  { %v1694_v14 = vpop.f32.mrb[168].mxu0 }
 0x23d   :  { %v4031_v16 = vadd.f32 %v1694_v14, %v1499_v4  ;;  %v2946_v33 = vpop.f32.mrb[169].mxu0 }
 0x23e   :  { %v1459_v18 = vpop.f32.mrb[168].mxu1  ;;  %v1697_v61 = vpop.f32.mrb[170].mxu0 }
 0x23f   :  { %v1501_v24 = vadd.f32 %v1459_v18, %v3957_v44  ;;  %v2896_v29 = vpop.f32.mrb[169].mxu1  ;;  %v4034_v53 = vadd.f32 %v1697_v61, %v1500_v28  ;;  %v2947_v8 = vpop.f32.mrb[171].mxu0  ;;  %v4055_v18 = vld [vmem:[%s4237_s2] ss:$0 sm:$0xff] }
 0x240   :  { %v1462_v21 = vpop.f32.mrb[170].mxu1 }
 0x241   :  { %v1502_v59 = vadd.f32 %v1462_v21, %v3960_v35  ;;  %v2897_v19 = vpop.f32.mrb[171].mxu1 }
 0x244   :  { %v1702_v9 = vpop.f32.mrb[172].mxu0 }
 0x245   :  { %v4037_v62 = vadd.f32 %v1702_v9, %v1501_v24  ;;  %v2950_v37 = vpop.f32.mrb[173].mxu0 }
 0x246   :  { %v1467_v26 = vpop.f32.mrb[172].mxu1  ;;  %v1705_v31 = vpop.f32.mrb[174].mxu0 }
 0x247   :  { %v1503_v10 = vadd.f32 %v1467_v26, %v3967_v58  ;;  %v2900_v15 = vpop.f32.mrb[173].mxu1  ;;  %v4040_v44 = vadd.f32 %v1705_v31, %v1502_v59  ;;  %v2951_v38 = vpop.f32.mrb[175].mxu0 }
 0x248   :  { %v1470_v22 = vpop.f32.mrb[174].mxu1 }
 0x249   :  { %v1504_v39 = vadd.f32 %v1470_v22, %v3970_v55  ;;  %v2901_v27 = vpop.f32.mrb[175].mxu1 }
 0x24c   :  { %v1710_v42 = vpop.f32.mrb[176].mxu0 }
 0x24d   :  { %v4043_v35 = vadd.f32 %v1710_v42, %v1503_v10  ;;  %v2954_v60 = vpop.f32.mrb[177].mxu0 }
 0x24e   :  { %v1475_v13 = vpop.f32.mrb[176].mxu1  ;;  %v1713_v52 = vpop.f32.mrb[178].mxu0 }
 0x24f   :  { %v1505_v36 = vadd.f32 %v1475_v13, %v3973_v0  ;;  %v2904_v41 = vpop.f32.mrb[177].mxu1  ;;  %v4046_v63 = vadd.f32 %v1713_v52, %v1504_v39  ;;  %v2955_v58 = vpop.f32.mrb[179].mxu0 }
 0x250   :  { %v1478_v20 = vpop.f32.mrb[178].mxu1 }
 0x251   :  { %v2905_v51 = vpop.f32.mrb[179].mxu1 }
 0x254   :  { %v1718_v46 = vpop.f32.mrb[180].mxu0 }
 0x255   :  { %v4048_v54 = vadd.f32 %v1718_v46, %v1505_v36  ;;  %v2958_v55 = vpop.f32.mrb[181].mxu0 }
 0x256   :  { %v1865_v4 = vpop.f32.mrb[180].mxu1  ;;  %v1721_v3 = vpop.f32.mrb[182].mxu0 }
 0x257   :  { %v1967_v50 = vadd.f32 %v1865_v4, %v3977_v2  ;;  %v2964_v5 = vpop.f32.mrb[181].mxu1  ;;  %v2959_v28 = vpop.f32.mrb[183].mxu0  ;;  %v4061_v2 = vld [vmem:[%s4238_s3] ss:$0 sm:$0xff] }
 0x258   :  { %v1868_v56 = vpop.f32.mrb[182].mxu1 }
 0x259   :  { %v1968_v0 = vadd.f32 %v1868_v56, %v3980_v49  ;;  %v2965_v7 = vpop.f32.mrb[183].mxu1 }
 0x25c   :  { %v2108_v14 = vpop.f32.mrb[184].mxu0 }
 0x25d   :  { %v2210_v24 = vadd.f32 %v2108_v14, %v1967_v50  ;;  %v3018_v29 = vpop.f32.mrb[185].mxu0 }
 0x25e   :  { %v1873_v33 = vpop.f32.mrb[184].mxu1  ;;  %v2111_v8 = vpop.f32.mrb[186].mxu0 }
 0x25f   :  { %v1969_v61 = vadd.f32 %v1873_v33, %v3983_v32  ;;  %v2968_v21 = vpop.f32.mrb[185].mxu1  ;;  %v2242_v49 = vadd.f32 %v4055_v18, %v2210_v24  ;;  %v2211_v19 = vadd.f32 %v2111_v8, %v1968_v0  ;;  %v3019_v9 = vpop.f32.mrb[187].mxu0 }
 0x260   :  { %v1876_v59 = vpop.f32.mrb[186].mxu1 }
 0x261   :  { %v1970_v26 = vadd.f32 %v1876_v59, %v3986_v34  ;;  %v2969_v37 = vpop.f32.mrb[187].mxu1  ;;  %v2274_v10 = vmul.f32 %v4061_v2, %v2242_v49  ;;  %v2243_v32 = vadd.f32 %v4055_v18, %v2211_v19 }
 0x263   :  { %2300 = vst.msk [vmem:[%s4239_s4] sm:$0xff] %vm2299_vm3, %v2274_v10  ;;  %v2275_v15 = vmul.f32 %v4061_v2, %v2243_v32 }
 0x264   :  { %v2116_v31 = vpop.f32.mrb[188].mxu0 }
 0x265   :  { %2301 = vst.msk [vmem:[%s4239_s4 + $0x8] sm:$0xff] %vm2299_vm3, %v2275_v15  ;;  %v2212_v34 = vadd.f32 %v2116_v31, %v1969_v61  ;;  %v3022_v38 = vpop.f32.mrb[189].mxu0 }
 0x266   :  { %v1881_v22 = vpop.f32.mrb[188].mxu1  ;;  %v2119_v42 = vpop.f32.mrb[190].mxu0 }
 0x267   :  { %v1971_v39 = vadd.f32 %v1881_v22, %v3989_v17  ;;  %v2972_v27 = vpop.f32.mrb[189].mxu1  ;;  %v2244_v13 = vadd.f32 %v4055_v18, %v2212_v34  ;;  %v2213_v36 = vadd.f32 %v2119_v42, %v1970_v26  ;;  %v3023_v52 = vpop.f32.mrb[191].mxu0 }
 0x268   :  { %v1884_v60 = vpop.f32.mrb[190].mxu1 }
 0x269   :  { %v1972_v41 = vadd.f32 %v1884_v60, %v3992_v43  ;;  %v2973_v58 = vpop.f32.mrb[191].mxu1  ;;  %v2276_v20 = vmul.f32 %v4061_v2, %v2244_v13  ;;  %v2245_v51 = vadd.f32 %v4055_v18, %v2213_v36 }
 0x26b   :  { %2302 = vst.msk [vmem:[%s4239_s4 + $0x10] sm:$0xff] %vm2299_vm3, %v2276_v20  ;;  %v2277_v17 = vmul.f32 %v4061_v2, %v2245_v51 }
 0x26c   :  { %v2124_v46 = vpop.f32.mrb[192].mxu0 }
 0x26d   :  { %2303 = vst.msk [vmem:[%s4239_s4 + $0x18] sm:$0xff] %vm2299_vm3, %v2277_v17  ;;  %v2214_v43 = vadd.f32 %v2124_v46, %v1971_v39  ;;  %v3026_v55 = vpop.f32.mrb[193].mxu0 }
 0x26e   :  { %v1889_v4 = vpop.f32.mrb[192].mxu1  ;;  %v2127_v3 = vpop.f32.mrb[194].mxu0 }
 0x26f   :  { %v1973_v50 = vadd.f32 %v1889_v4, %v3995_v25  ;;  %v2976_v5 = vpop.f32.mrb[193].mxu1  ;;  %v2246_v56 = vadd.f32 %v4055_v18, %v2214_v43  ;;  %v2215_v0 = vadd.f32 %v2127_v3, %v1972_v41  ;;  %v3027_v7 = vpop.f32.mrb[195].mxu0 }
 0x270   :  { %v1892_v28 = vpop.f32.mrb[194].mxu1 }
 0x271   :  { %v1974_v14 = vadd.f32 %v1892_v28, %v3998_v12  ;;  %v2977_v33 = vpop.f32.mrb[195].mxu1  ;;  %v2278_v24 = vmul.f32 %v4061_v2, %v2246_v56  ;;  %v2247_v29 = vadd.f32 %v4055_v18, %v2215_v0 }
 0x273   :  { %2304 = vst.msk [vmem:[%s4239_s4 + $0x20] sm:$0xff] %vm2299_vm3, %v2278_v24  ;;  %v2279_v25 = vmul.f32 %v4061_v2, %v2247_v29 }
 0x274   :  { %v2132_v61 = vpop.f32.mrb[196].mxu0 }
 0x275   :  { %2305 = vst.msk [vmem:[%s4239_s4 + $0x28] sm:$0xff] %vm2299_vm3, %v2279_v25  ;;  %v2216_v12 = vadd.f32 %v2132_v61, %v1973_v50  ;;  %v3030_v8 = vpop.f32.mrb[197].mxu0 }
 0x276   :  { %v1897_v21 = vpop.f32.mrb[196].mxu1  ;;  %v2135_v19 = vpop.f32.mrb[198].mxu0 }
 0x277   :  { %v1975_v49 = vadd.f32 %v1897_v21, %v4001_v30  ;;  %v2980_v59 = vpop.f32.mrb[197].mxu1  ;;  %v2248_v9 = vadd.f32 %v4055_v18, %v2216_v12  ;;  %v2217_v37 = vadd.f32 %v2135_v19, %v1974_v14  ;;  %v3031_v10 = vpop.f32.mrb[199].mxu0 }
 0x278   :  { %v1900_v26 = vpop.f32.mrb[198].mxu1 }
 0x279   :  { %v1976_v32 = vadd.f32 %v1900_v26, %v4004_v23  ;;  %v2981_v15 = vpop.f32.mrb[199].mxu1  ;;  %v2280_v31 = vmul.f32 %v4061_v2, %v2248_v9  ;;  %v2249_v22 = vadd.f32 %v4055_v18, %v2217_v37 }
 0x27b   :  { %2306 = vst.msk [vmem:[%s4239_s4 + $0x30] sm:$0xff] %vm2299_vm3, %v2280_v31  ;;  %v2281_v30 = vmul.f32 %v4061_v2, %v2249_v22 }
 0x27c   :  { %v2140_v34 = vpop.f32.mrb[200].mxu0 }
 0x27d   :  { %2307 = vst.msk [vmem:[%s4239_s4 + $0x38] sm:$0xff] %vm2299_vm3, %v2281_v30  ;;  %v2218_v23 = vadd.f32 %v2140_v34, %v1975_v49  ;;  %v3034_v39 = vpop.f32.mrb[201].mxu0 }
 0x27e   :  { %v1905_v38 = vpop.f32.mrb[200].mxu1  ;;  %v2143_v13 = vpop.f32.mrb[202].mxu0 }
 0x27f   :  { %v1977_v27 = vadd.f32 %v1905_v38, %v4007_v57  ;;  %v2984_v42 = vpop.f32.mrb[201].mxu1  ;;  %v2250_v60 = vadd.f32 %v4055_v18, %v2218_v23  ;;  %v2219_v52 = vadd.f32 %v2143_v13, %v1976_v32  ;;  %v3035_v41 = vpop.f32.mrb[203].mxu0 }
 0x280   :  { %v1908_v36 = vpop.f32.mrb[202].mxu1 }
 0x281   :  { %v1978_v58 = vadd.f32 %v1908_v36, %v4010_v48  ;;  %v2985_v20 = vpop.f32.mrb[203].mxu1  ;;  %v2282_v51 = vmul.f32 %v4061_v2, %v2250_v60  ;;  %v2251_v17 = vadd.f32 %v4055_v18, %v2219_v52 }
 0x283   :  { %2308 = vst.msk [vmem:[%s4239_s4 + $0x40] sm:$0xff] %vm2299_vm3, %v2282_v51  ;;  %v2283_v57 = vmul.f32 %v4061_v2, %v2251_v17 }
 0x284   :  { %v2148_v46 = vpop.f32.mrb[204].mxu0 }
 0x285   :  { %2309 = vst.msk [vmem:[%s4239_s4 + $0x48] sm:$0xff] %vm2299_vm3, %v2283_v57  ;;  %v2220_v48 = vadd.f32 %v2148_v46, %v1977_v27  ;;  %v3038_v43 = vpop.f32.mrb[205].mxu0 }
 0x286   :  { %v1913_v4 = vpop.f32.mrb[204].mxu1  ;;  %v2151_v5 = vpop.f32.mrb[206].mxu0 }
 0x287   :  { %v1979_v55 = vadd.f32 %v1913_v4, %v4013_v40  ;;  %v2988_v50 = vpop.f32.mrb[205].mxu1  ;;  %v2252_v3 = vadd.f32 %v4055_v18, %v2220_v48  ;;  %v2221_v28 = vadd.f32 %v2151_v5, %v1978_v58  ;;  %v3039_v0 = vpop.f32.mrb[207].mxu0 }
 0x288   :  { %v1916_v56 = vpop.f32.mrb[206].mxu1 }
 0x289   :  { %v1980_v7 = vadd.f32 %v1916_v56, %v4016_v11  ;;  %v2989_v14 = vpop.f32.mrb[207].mxu1  ;;  %v2284_v33 = vmul.f32 %v4061_v2, %v2252_v3  ;;  %v2253_v24 = vadd.f32 %v4055_v18, %v2221_v28 }
 0x28b   :  { %2310 = vst.msk [vmem:[%s4239_s4 + $0x50] sm:$0xff] %vm2299_vm3, %v2284_v33  ;;  %v2285_v40 = vmul.f32 %v4061_v2, %v2253_v24 }
 0x28c   :  { %v2156_v29 = vpop.f32.mrb[208].mxu0 }
 0x28d   :  { %2311 = vst.msk [vmem:[%s4239_s4 + $0x58] sm:$0xff] %vm2299_vm3, %v2285_v40  ;;  %v2222_v11 = vadd.f32 %v2156_v29, %v1979_v55  ;;  %v3042_v61 = vpop.f32.mrb[209].mxu0 }
 0x28e   :  { %v1921_v25 = vpop.f32.mrb[208].mxu1  ;;  %v2159_v8 = vpop.f32.mrb[210].mxu0 }
 0x28f   :  { %v1981_v21 = vadd.f32 %v1921_v25, %v4019_v45  ;;  %v2992_v12 = vpop.f32.mrb[209].mxu1  ;;  %v2254_v49 = vadd.f32 %v4055_v18, %v2222_v11  ;;  %v2223_v19 = vadd.f32 %v2159_v8, %v1980_v7  ;;  %v3043_v9 = vpop.f32.mrb[211].mxu0 }
 0x290   :  { %v1924_v59 = vpop.f32.mrb[210].mxu1 }
 0x291   :  { %v1982_v26 = vadd.f32 %v1924_v59, %v4022_v1  ;;  %v2993_v37 = vpop.f32.mrb[211].mxu1  ;;  %v2286_v10 = vmul.f32 %v4061_v2, %v2254_v49  ;;  %v2255_v32 = vadd.f32 %v4055_v18, %v2223_v19 }
 0x293   :  { %2312 = vst.msk [vmem:[%s4239_s4 + $0x60] sm:$0xff] %vm2299_vm3, %v2286_v10  ;;  %v2287_v45 = vmul.f32 %v4061_v2, %v2255_v32 }
 0x294   :  { %v2164_v15 = vpop.f32.mrb[212].mxu0 }
 0x295   :  { %2313 = vst.msk [vmem:[%s4239_s4 + $0x68] sm:$0xff] %vm2299_vm3, %v2287_v45  ;;  %v2224_v1 = vadd.f32 %v2164_v15, %v1981_v21  ;;  %v3046_v22 = vpop.f32.mrb[213].mxu0 }
 0x296   :  { %v1929_v31 = vpop.f32.mrb[212].mxu1  ;;  %v2167_v38 = vpop.f32.mrb[214].mxu0 }
 0x297   :  { %v1983_v30 = vadd.f32 %v1929_v31, %v4025_v6  ;;  %v2996_v34 = vpop.f32.mrb[213].mxu1  ;;  %v2256_v23 = vadd.f32 %v4055_v18, %v2224_v1  ;;  %v2225_v27 = vadd.f32 %v2167_v38, %v1982_v26  ;;  %v3047_v42 = vpop.f32.mrb[215].mxu0 }
 0x298   :  { %v1932_v39 = vpop.f32.mrb[214].mxu1 }
 0x299   :  { %v1984_v13 = vadd.f32 %v1932_v39, %v4028_v47  ;;  %v2997_v60 = vpop.f32.mrb[215].mxu1  ;;  %v2288_v36 = vmul.f32 %v4061_v2, %v2256_v23  ;;  %v2257_v52 = vadd.f32 %v4055_v18, %v2225_v27 }
 0x29b   :  { %2314 = vst.msk [vmem:[%s4239_s4 + $0x70] sm:$0xff] %vm2299_vm3, %v2288_v36  ;;  %v2289_v6 = vmul.f32 %v4061_v2, %v2257_v52 }
 0x29c   :  { %v2172_v41 = vpop.f32.mrb[216].mxu0 }
 0x29d   :  { %2315 = vst.msk [vmem:[%s4239_s4 + $0x78] sm:$0xff] %vm2299_vm3, %v2289_v6  ;;  %v2226_v47 = vadd.f32 %v2172_v41, %v1983_v30  ;;  %v3050_v20 = vpop.f32.mrb[217].mxu0 }
 0x29e   :  { %v1937_v58 = vpop.f32.mrb[216].mxu1  ;;  %v2175_v57 = vpop.f32.mrb[218].mxu0 }
 0x29f   :  { %v1985_v51 = vadd.f32 %v1937_v58, %v4031_v16  ;;  %v3000_v17 = vpop.f32.mrb[217].mxu1  ;;  %v2258_v46 = vadd.f32 %v4055_v18, %v2226_v47  ;;  %v2227_v48 = vadd.f32 %v2175_v57, %v1984_v13  ;;  %v3051_v43 = vpop.f32.mrb[219].mxu0 }
 0x2a0   :  { %v1940_v4 = vpop.f32.mrb[218].mxu1 }
 0x2a1   :  { %v1986_v55 = vadd.f32 %v1940_v4, %v4034_v53  ;;  %v3001_v50 = vpop.f32.mrb[219].mxu1  ;;  %v2290_v5 = vmul.f32 %v4061_v2, %v2258_v46  ;;  %v2259_v3 = vadd.f32 %v4055_v18, %v2227_v48 }
 0x2a3   :  { %2316 = vst.msk [vmem:[%s4239_s4 + $0x80] sm:$0xff] %vm2299_vm3, %v2290_v5  ;;  %v2291_v16 = vmul.f32 %v4061_v2, %v2259_v3 }
 0x2a4   :  { %v2180_v56 = vpop.f32.mrb[220].mxu0 }
 0x2a5   :  { %2317 = vst.msk [vmem:[%s4239_s4 + $0x88] sm:$0xff] %vm2299_vm3, %v2291_v16  ;;  %v2228_v53 = vadd.f32 %v2180_v56, %v1985_v51  ;;  %v3054_v0 = vpop.f32.mrb[221].mxu0 }
 0x2a6   :  { %v1945_v28 = vpop.f32.mrb[220].mxu1  ;;  %v2183_v33 = vpop.f32.mrb[222].mxu0 }
 0x2a7   :  { %v1987_v7 = vadd.f32 %v1945_v28, %v4037_v62  ;;  %v3004_v14 = vpop.f32.mrb[221].mxu1  ;;  %v2260_v24 = vadd.f32 %v4055_v18, %v2228_v53  ;;  %v2229_v29 = vadd.f32 %v2183_v33, %v1986_v55  ;;  %v3055_v25 = vpop.f32.mrb[223].mxu0 }
 0x2a8   :  { %v1948_v40 = vpop.f32.mrb[222].mxu1 }
 0x2a9   :  { %v1988_v11 = vadd.f32 %v1948_v40, %v4040_v44  ;;  %v3005_v61 = vpop.f32.mrb[223].mxu1  ;;  %v2292_v21 = vmul.f32 %v4061_v2, %v2260_v24  ;;  %v2261_v12 = vadd.f32 %v4055_v18, %v2229_v29 }
 0x2ab   :  { %2318 = vst.msk [vmem:[%s4239_s4 + $0x90] sm:$0xff] %vm2299_vm3, %v2292_v21  ;;  %v2293_v62 = vmul.f32 %v4061_v2, %v2261_v12 }
 0x2ac   :  { %v2188_v8 = vpop.f32.mrb[224].mxu0 }
 0x2ad   :  { %2319 = vst.msk [vmem:[%s4239_s4 + $0x98] sm:$0xff] %vm2299_vm3, %v2293_v62  ;;  %v2230_v44 = vadd.f32 %v2188_v8, %v1987_v7  ;;  %v3058_v59 = vpop.f32.mrb[225].mxu0 }
 0x2ae   :  { %v1953_v49 = vpop.f32.mrb[224].mxu1  ;;  %v2191_v26 = vpop.f32.mrb[226].mxu0 }
 0x2af   :  { %v1989_v19 = vadd.f32 %v1953_v49, %v4043_v35  ;;  %v3008_v9 = vpop.f32.mrb[225].mxu1  ;;  %v2262_v37 = vadd.f32 %v4055_v18, %v2230_v44  ;;  %v2231_v32 = vadd.f32 %v2191_v26, %v1988_v11  ;;  %v3059_v45 = vpop.f32.mrb[227].mxu0 }
 0x2b0   :  { %v1956_v10 = vpop.f32.mrb[226].mxu1 }
 0x2b1   :  { %v1990_v15 = vadd.f32 %v1956_v10, %v4046_v63  ;;  %v3009_v31 = vpop.f32.mrb[227].mxu1  ;;  %v2294_v1 = vmul.f32 %v4061_v2, %v2262_v37  ;;  %v2263_v22 = vadd.f32 %v4055_v18, %v2231_v32 }
 0x2b3   :  { %2320 = vst.msk [vmem:[%s4239_s4 + $0xa0] sm:$0xff] %vm2299_vm3, %v2294_v1  ;;  %v2295_v35 = vmul.f32 %v4061_v2, %v2263_v22 }
 0x2b4   :  { %v2196_v30 = vpop.f32.mrb[228].mxu0 }
 0x2b5   :  { %2321 = vst.msk [vmem:[%s4239_s4 + $0xa8] sm:$0xff] %vm2299_vm3, %v2295_v35  ;;  %v2232_v63 = vadd.f32 %v2196_v30, %v1989_v19  ;;  %v3062_v38 = vpop.f32.mrb[229].mxu0 }
 0x2b6   :  { %v1961_v34 = vpop.f32.mrb[228].mxu1  ;;  %v2199_v39 = vpop.f32.mrb[230].mxu0 }
 0x2b7   :  { %v1991_v23 = vadd.f32 %v1961_v34, %v4048_v54  ;;  %v3012_v27 = vpop.f32.mrb[229].mxu1  ;;  %v2264_v42 = vadd.f32 %v4055_v18, %v2232_v63  ;;  %v2233_v13 = vadd.f32 %v2199_v39, %v1990_v15  ;;  %v3063_v60 = vpop.f32.mrb[231].mxu0 }
 0x2b8   :  { %v1964_v36 = vpop.f32.mrb[230].mxu1 }
 0x2b9   :  { %v3013_v52 = vpop.f32.mrb[231].mxu1  ;;  %v2296_v6 = vmul.f32 %v4061_v2, %v2264_v42  ;;  %v2265_v41 = vadd.f32 %v4055_v18, %v2233_v13 }
 0x2bb   :  { %2322 = vst.msk [vmem:[%s4239_s4 + $0xb0] sm:$0xff] %vm2299_vm3, %v2296_v6  ;;  %v2297_v58 = vmul.f32 %v4061_v2, %v2265_v41 }
 0x2bc   :  { %v2204_v54 = vpop.f32.mrb[232].mxu0 }
 0x2bd   :  { %2323 = vst.msk [vmem:[%s4239_s4 + $0xb8] sm:$0xff] %vm2299_vm3, %v2297_v58  ;;  %v2234_v47 = vadd.f32 %v2204_v54, %v1991_v23  ;;  %v3066_v20 = vpop.f32.mrb[233].mxu0 }
 0x2be   :  { %v2207_v51 = vpop.f32.mrb[234].mxu0 }
 0x2bf   :  { %v2266_v17 = vadd.f32 %v4055_v18, %v2234_v47  ;;  %v3067_v57 = vpop.f32.mrb[235].mxu0 }
 0x2c1   :  { %v2298_v46 = vmul.f32 %v4061_v2, %v2266_v17 }
 0x2c3   :  { %2324 = vst.msk [vmem:[%s4239_s4 + $0xc0] sm:$0xff] %vm2299_vm3, %v2298_v46 }

// kernel: flownet_encode.6
= control target key start
LH: loop header
LB: loop body
LE: loop exit
PB: predicated region body
PF: predicated region fallthrough
CT: control target
= control target key end

     0   :  { %s5098_s29 = smov 0   ;;  %s6401_s0 = inlined_call_operand.vmem [shape: f32[208,4], index: 0, kind: input, shape index: {}, may-alias: {0,14}]   ;;  %s6402_s1 = inlined_call_operand.vmem [shape: f32[208,1], index: 1, kind: input, shape index: {}]   ;;  %s6403_s2 = inlined_call_operand.vmem [shape: f32[1,4], index: 2, kind: input, shape index: {}]   ;;  %s6404_s3 = inlined_call_operand.vmem [shape: f32[1,4], index: 3, kind: input, shape index: {}]   ;;  %s6405_s4 = inlined_call_operand.vmem [shape: f32[4,4], index: 4, kind: input, shape index: {}]   ;;  %s6406_s5 = inlined_call_operand.vmem [shape: bf16[9,2,16], index: 5, kind: input, shape index: {}]   ;;  %s6407_s6 = inlined_call_operand.vmem [shape: f32[1,16], index: 6, kind: input, shape index: {}]   ;;  %s6408_s7 = inlined_call_operand.vmem [shape: f32[1,16], index: 7, kind: input, shape index: {}]   ;;  %s6409_s8 = inlined_call_operand.vmem [shape: bf16[16,16], index: 8, kind: input, shape index: {}]   ;;  %s6410_s9 = inlined_call_operand.vmem [shape: f32[1,16], index: 9, kind: input, shape index: {}]   ;;  %s6411_s10 = inlined_call_operand.vmem [shape: f32[1,16], index: 10, kind: input, shape index: {}]   ;;  %s6412_s11 = inlined_call_operand.vmem [shape: bf16[9,16,2], index: 11, kind: input, shape index: {}]   ;;  %s6413_s12 = inlined_call_operand.vmem [shape: f32[1,2], index: 12, kind: input, shape index: {}]   ;;  %s6414_s13 = inlined_call_operand.vmem [shape: f32[1,2], index: 13, kind: input, shape index: {}]   ;;  %s6415_s14 = inlined_call_operand.vmem [shape: f32[208,4], index: 14, kind: output, shape index: {}, may-alias: {0,14}]  }
   0x1 LB: > { %s4011_s30 = sadd.s32 4294967295, %s5017_s29   ;;  %p4015_p0 = scmp.ge.s32.totalorder %s5017_s29, 1  ;;  %s5017_s29 = sphi %s5098_s29, %s24_s29  }
   0x2   : > { %p424_p1 = scmp.lt.s32.totalorder %s5017_s29, 3 }
   0x4   : > { %p425_p2 = pnand %p4015_p0, %p424_p1 }
   0x5   : > { %v547_v0 = vld [vmem:[%s6405_s4] sm:$0xf] (!%p425_p2)  ;;  %vm588_vm0 = vcmask (!%p425_p2), 1043456   ;;  %s475_s17 = smul.u32 (!%p425_p2), 13, %s4011_s30  ;;  %v5019_v1 = vmov (!%p425_p2), 0.0   ;;  %vm5020_vm1 = vmmov (!%p425_p2), 0  }
   0x6   : > { %428 = sbr.rel (%p425_p2) target bundleno = 1532 (0x5fc), region = 76  ;;  %4376 = vmatprep.subr.mxu0 (!%p425_p2), %v5019_v1  ;;  %4378 = vmatprep.mubr.msk.f32.mxu0 (!%p425_p2), %vm5020_vm1, %v5019_v1  ;;  %v5021_v2 = vmov (!%p425_p2), 0   ;;  %v5116_v3 = vld [vmem:[%s6403_s2] ss:$0 sm:$0xff] (!%p425_p2)  ;;  %vm548_vm2 = vcmask (!%p425_p2), 31744   ;;  %vm813_vm3 = vcmask (!%p425_p2), 15360  }
   0x7   : > { %4377 = vmatpush3.msk.msra.mxu0 (!%p425_p2), %vm588_vm0, %v547_v0  ;;  %p476_p3 = scmp.lt.s32.totalorder (!%p425_p2), %s475_s17, 25  ;;  %4999 = vset.pattern.permute.xlu0 (!%p425_p2), %v5021_v2  ;;  %v5139_v5 = vld [vmem:[%s6404_s3] ss:$0 sm:$0xff] (!%p425_p2)  ;;  %816 = vst.msk [vmem:[#allocation2 + $0x10] sm:$0xff] (!%p425_p2), %vm813_vm3, %v5019_v1  ;;  %814 = vst.msk [vmem:[#allocation2] sm:$0xff] (!%p425_p2), %vm813_vm3, %v5019_v1  ;;  %vm908_vm4 = vcmask (!%p425_p2), 1040384  }
   0x8   : > { %5000 = vset.pattern.permute.xlu1 (!%p425_p2), %v5021_v2  ;;  %4417 = vmatprep.subr.bf16.mxu1 (!%p425_p2), %v5019_v1  ;;  %815 = vst.msk [vmem:[#allocation2 + $0x8] sm:$0xff] (!%p425_p2), %vm813_vm3, %v5019_v1  ;;  %817 = vst.msk [vmem:[#allocation2 + $0x18] sm:$0xff] (!%p425_p2), %vm813_vm3, %v5019_v1  ;;  %v4035_v57 = vld [vmem:[%s6406_s5 + $0x1] sm:$0x1] (!%p425_p2)  ;;  %v864_v58 = vld [vmem:[%s6406_s5] sm:$0x1] (!%p425_p2) }
   0x9   : > { %4447 = vmatprep.subr.bf16.mxu0 (!%p425_p2), %v5019_v1  ;;  %4419 = vmatprep.mubr.msk.bf16.mxu1 (!%p425_p2), %vm5020_vm1, %v5019_v1  ;;  %818 = vst.msk [vmem:[#allocation2 + $0x20] sm:$0xff] (!%p425_p2), %vm813_vm3, %v5019_v1  ;;  %819 = vst.msk [vmem:[#allocation2 + $0x28] sm:$0xff] (!%p425_p2), %vm813_vm3, %v5019_v1  ;;  %v910_v59 = vsel (!%p425_p2), %vm908_vm4, %v4035_v57, 0  ;;  %v1022_v60 = vsel (!%p425_p2), %vm908_vm4, %v864_v58, 0  ;;  %vm2216_vm5 = vcmask (!%p425_p2), 130048  }
   0xa   : > { %820 = vst.msk [vmem:[#allocation2 + $0x30] sm:$0xff] (!%p425_p2), %vm813_vm3, %v5019_v1  ;;  %821 = vst.msk [vmem:[#allocation2 + $0x38] sm:$0xff] (!%p425_p2), %vm813_vm3, %v5019_v1  ;;  %4418 = vmatpush3.bf16.msra.mxu1 (!%p425_p2), %v910_v59 }
   0xb   : > { %822 = vst.msk [vmem:[#allocation2 + $0x40] sm:$0xff] (!%p425_p2), %vm813_vm3, %v5019_v1  ;;  %823 = vst.msk [vmem:[#allocation2 + $0x48] sm:$0xff] (!%p425_p2), %vm813_vm3, %v5019_v1  ;;  %4477 = vmatprep.subr.bf16.mxu1 (!%p425_p2), %v5019_v1 }
   0xc   : > { %824 = vst.msk [vmem:[#allocation2 + $0x50] sm:$0xff] (!%p425_p2), %vm813_vm3, %v5019_v1  ;;  %825 = vst.msk [vmem:[#allocation2 + $0x58] sm:$0xff] (!%p425_p2), %vm813_vm3, %v5019_v1 }
   0xd   : > { %s6417_s17 = smov (!%p476_p3, %s475_s17), 25  ;;  %826 = vst.msk [vmem:[#allocation2 + $0x60] sm:$0xff] %vm813_vm3, %v5019_v1  ;;  %827 = vst.msk [vmem:[#allocation2 + $0x68] sm:$0xff] %vm813_vm3, %v5019_v1 }
   0xe   : > { %s5121_s20 = sshll.u32 %s6417_s17, 3  ;;  %828 = vst.msk [vmem:[#allocation2 + $0x70] sm:$0xff] %vm813_vm3, %v5019_v1  ;;  %829 = vst.msk [vmem:[#allocation2 + $0x78] sm:$0xff] %vm813_vm3, %v5019_v1 }
   0xf   : > { %s5127_s23 = scalar_lea.vmem %s6401_s0, %s5121_s20  ;;  %s5133_s26 = scalar_lea.vmem %s6402_s1, %s5121_s20  ;;  %830 = vst.msk [vmem:[#allocation2 + $0x80] sm:$0xff] %vm813_vm3, %v5019_v1 }
  0x10   : > { %v494_v4 = vld [vmem:[%s5127_s23] sm:$0xff]  ;;  %v495_v6 = vld [vmem:[%s5127_s23 + $0x8] sm:$0xff]  ;;  %v496_v9 = vld [vmem:[%s5127_s23 + $0x10] sm:$0xff]  ;;  %2450 = vst.msk [vmem:[#allocation3] sm:$0xff] %vm2216_vm5, %v5019_v1 }
  0x11   : > { %v514_v7 = vadd.f32 %v5116_v3, %v494_v4  ;;  %v515_v8 = vadd.f32 %v5116_v3, %v495_v6  ;;  %v722_v11 = vld [vmem:[%s5133_s26] sm:$0xff]  ;;  %v5148_v12 = vld [vmem:[%s5133_s26 + $0x10] sm:$0xff]  ;;  %v516_v14 = vadd.f32 %v5116_v3, %v496_v9  ;;  %v723_v15 = vld [vmem:[%s5133_s26 + $0x8] sm:$0xff]  ;;  %2451 = vst.msk [vmem:[#allocation3 + $0x8] sm:$0xff] %vm2216_vm5, %v5019_v1 }
  0x12   : > { %737 = vperm.xlu0 %4999, %v722_v11   ;;  %v497_v16 = vld [vmem:[%s5127_s23 + $0x18] sm:$0xff]  ;;  %747 = vperm.xlu1 %5000, %v5148_v12   ;;  %v726_v18 = vld [vmem:[%s5133_s26 + $0x20] sm:$0xff]  ;;  %v727_v22 = vld [vmem:[%s5133_s26 + $0x28] sm:$0xff]  ;;  %2452 = vst.msk [vmem:[#allocation3 + $0x10] sm:$0xff] %vm2216_vm5, %v5019_v1 }
  0x13   : > { %v534_v10 = vmul.f32 %v5139_v5, %v514_v7  ;;  %v535_v13 = vmul.f32 %v5139_v5, %v515_v8  ;;  %v725_v17 = vld [vmem:[%s5133_s26 + $0x18] sm:$0xff]  ;;  %v536_v19 = vmul.f32 %v5139_v5, %v516_v14  ;;  %v517_v20 = vadd.f32 %v5116_v3, %v497_v16  ;;  %v498_v21 = vld [vmem:[%s5127_s23 + $0x20] sm:$0xff]  ;;  %v728_v25 = vld [vmem:[%s5133_s26 + $0x30] sm:$0xff]  ;;  %2453 = vst.msk [vmem:[#allocation3 + $0x18] sm:$0xff] %vm2216_vm5, %v5019_v1 }
  0x14   : > { %v518_v24 = vadd.f32 %v5116_v3, %v498_v21  ;;  %v499_v26 = vld [vmem:[%s5127_s23 + $0x28] sm:$0xff]  ;;  %v729_v27 = vld [vmem:[%s5133_s26 + $0x38] sm:$0xff]  ;;  %v730_v30 = vld [vmem:[%s5133_s26 + $0x40] sm:$0xff]  ;;  %2454 = vst.msk [vmem:[#allocation3 + $0x20] sm:$0xff] %vm2216_vm5, %v5019_v1 }
  0x15   : > { %4379 = vmatmul.mubr.msk.f32.vlgmr.msra.gmra.mrb[0].mxu0 %vm548_vm2, %v534_v10  ;;  %v537_v23 = vmul.f32 %v5139_v5, %v517_v20  ;;  %v519_v29 = vadd.f32 %v5116_v3, %v499_v26  ;;  %v500_v31 = vld [vmem:[%s5127_s23 + $0x30] sm:$0xff]  ;;  %v731_v32 = vld [vmem:[%s5133_s26 + $0x48] sm:$0xff]  ;;  %v501_v36 = vld [vmem:[%s5127_s23 + $0x38] sm:$0xff]  ;;  %2455 = vst.msk [vmem:[#allocation3 + $0x28] sm:$0xff] %vm2216_vm5, %v5019_v1 }
  0x16   : > { %4381 = vmatprep.mubr.msk.f32.mxu0 %vm5020_vm1, %v5019_v1  ;;  %742 = vperm.xlu0 %4999, %v723_v15   ;;  %v538_v28 = vmul.f32 %v5139_v5, %v518_v24  ;;  %v520_v34 = vadd.f32 %v5116_v3, %v500_v31  ;;  %v732_v35 = vld [vmem:[%s5133_s26 + $0x50] sm:$0xff]  ;;  %v733_v37 = vld [vmem:[%s5133_s26 + $0x58] sm:$0xff]  ;;  %v521_v39 = vadd.f32 %v5116_v3, %v501_v36  ;;  %v734_v40 = vld [vmem:[%s5133_s26 + $0x60] sm:$0xff]  ;;  %s6331_s26 = scalar_lea.vmem %s6415_s14, %s5121_s20 }
  0x17   : > { %752 = vperm.xlu1 %5000, %v725_v17   ;;  %v539_v33 = vmul.f32 %v5139_v5, %v519_v29  ;;  %v502_v41 = vld [vmem:[%s5127_s23 + $0x40] sm:$0xff]  ;;  %v503_v44 = vld [vmem:[%s5127_s23 + $0x48] sm:$0xff]  ;;  %v504_v47 = vld [vmem:[%s5127_s23 + $0x50] sm:$0xff]  ;;  %4448 = vmatpush3.bf16.msra.mxu0 %v1022_v60  ;;  %2456 = vst.msk [vmem:[#allocation3 + $0x30] sm:$0xff] %vm2216_vm5, %v5019_v1 }
  0x18   : > { %v540_v38 = vmul.f32 %v5139_v5, %v520_v34  ;;  %v541_v42 = vmul.f32 %v5139_v5, %v521_v39  ;;  %v522_v43 = vadd.f32 %v5116_v3, %v502_v41  ;;  %v523_v46 = vadd.f32 %v5116_v3, %v503_v44  ;;  %v505_v50 = vld [vmem:[%s5127_s23 + $0x58] sm:$0xff]  ;;  %v506_v53 = vld [vmem:[%s5127_s23 + $0x60] sm:$0xff]  ;;  %4507 = vmatprep.subr.bf16.mxu0 %v5019_v1  ;;  %s5022_s23 = smov 2  }
  0x19   : > { %4382 = vmatmul.mubr.msk.f32.gmra.mrb[2].mxu0 %vm548_vm2, %v535_v13  ;;  %v524_v49 = vadd.f32 %v5116_v3, %v504_v47  ;;  %v525_v52 = vadd.f32 %v5116_v3, %v505_v50  ;;  %v526_v55 = vadd.f32 %v5116_v3, %v506_v53  ;;  %v865_v8 = vld [vmem:[#allocation2 + $0x6] sm:$0xff]  ;;  %v4050_v10 = vld [vmem:[%s6406_s5 + $0x2] sm:$0x1]  ;;  %v4058_v13 = vld [vmem:[%s6406_s5 + $0x3] sm:$0x1]  ;;  %2457 = vst.msk [vmem:[#allocation3 + $0x38] sm:$0xff] %vm2216_vm5, %v5019_v1 }
  0x1a   : > { %4384 = vmatprep.mubr.msk.f32.mxu0 %vm5020_vm1, %v5019_v1  ;;  %757 = vperm.xlu0 %4999, %v726_v18   ;;  %v542_v45 = vmul.f32 %v5139_v5, %v522_v43  ;;  %v543_v48 = vmul.f32 %v5139_v5, %v523_v46  ;;  %v844_v9 = vld [vmem:[#allocation2 + $0x5] sm:$0xff]  ;;  %v1303_v21 = vsel %vm908_vm4, %v4058_v13, 0  ;;  %2458 = vst.msk [vmem:[#allocation3 + $0x40] sm:$0xff] %vm2216_vm5, %v5019_v1  ;;  %2459 = vst.msk [vmem:[#allocation3 + $0x48] sm:$0xff] %vm2216_vm5, %v5019_v1 }
  0x1b   : > { %762 = vperm.xlu1 %5000, %v727_v22   ;;  %v544_v51 = vmul.f32 %v5139_v5, %v524_v49  ;;  %v545_v54 = vmul.f32 %v5139_v5, %v525_v52  ;;  %v546_v56 = vmul.f32 %v5139_v5, %v526_v55  ;;  %2460 = vst.msk [vmem:[#allocation3 + $0x50] sm:$0xff] %vm2216_vm5, %v5019_v1  ;;  %2461 = vst.msk [vmem:[#allocation3 + $0x58] sm:$0xff] %vm2216_vm5, %v5019_v1 }
  0x1c   : > { %2462 = vst.msk [vmem:[#allocation3 + $0x60] sm:$0xff] %vm2216_vm5, %v5019_v1  ;;  %2463 = vst.msk [vmem:[#allocation3 + $0x68] sm:$0xff] %vm2216_vm5, %v5019_v1 }
  0x1d   : > { %4385 = vmatmul.mubr.msk.f32.gmra.mrb[4].mxu0 %vm548_vm2, %v536_v19  ;;  %2464 = vst.msk [vmem:[#allocation3 + $0x70] sm:$0xff] %vm2216_vm5, %v5019_v1  ;;  %2465 = vst.msk [vmem:[#allocation3 + $0x78] sm:$0xff] %vm2216_vm5, %v5019_v1 }
  0x1e   : > { %4387 = vmatprep.mubr.msk.f32.mxu0 %vm5020_vm1, %v5019_v1  ;;  %767 = vperm.xlu0 %4999, %v728_v25   ;;  %2466 = vst.msk [vmem:[#allocation3 + $0x80] sm:$0xff] %vm2216_vm5, %v5019_v1 }
  0x1f   : > { %772 = vperm.xlu1 %5000, %v729_v27  }
  0x21   : > { %4388 = vmatmul.mubr.msk.f32.gmra.mrb[6].mxu0 %vm548_vm2, %v537_v23 }
  0x22   : > { %4390 = vmatprep.mubr.msk.f32.mxu0 %vm5020_vm1, %v5019_v1  ;;  %777 = vperm.xlu0 %4999, %v730_v30  }
  0x23   : > { %782 = vperm.xlu1 %5000, %v731_v32  }
  0x25   : > { %4391 = vmatmul.mubr.msk.f32.gmra.mrb[8].mxu0 %vm548_vm2, %v538_v28 }
  0x26   : > { %4393 = vmatprep.mubr.msk.f32.mxu0 %vm5020_vm1, %v5019_v1  ;;  %787 = vperm.xlu0 %4999, %v732_v35  }
  0x27   : > { %792 = vperm.xlu1 %5000, %v733_v37  }
  0x29   : > { %4394 = vmatmul.mubr.msk.f32.gmra.mrb[10].mxu0 %vm548_vm2, %v539_v33 }
  0x2a   : > { %4396 = vmatprep.mubr.msk.f32.mxu0 %vm5020_vm1, %v5019_v1  ;;  %797 = vperm.xlu0 %4999, %v734_v40  }
  0x2b   : > { %2374 = vperm.xlu1 %5000, %v722_v11  }
  0x2d   : > { %4397 = vmatmul.mubr.msk.f32.gmra.mrb[12].mxu0 %vm548_vm2, %v540_v38 }
  0x2e   : > { %4399 = vmatprep.mubr.msk.f32.mxu0 %vm5020_vm1, %v5019_v1  ;;  %2379 = vperm.xlu0 %4999, %v723_v15  }
  0x2f   : > { %2384 = vperm.xlu1 %5000, %v5148_v12  }
  0x31   : > { %4400 = vmatmul.mubr.msk.f32.gmra.mrb[14].mxu0 %vm548_vm2, %v541_v42 }
  0x32   : > { %4402 = vmatprep.mubr.msk.f32.mxu0 %vm5020_vm1, %v5019_v1  ;;  %2389 = vperm.xlu0 %4999, %v725_v17  }
  0x33   : > { %2394 = vperm.xlu1 %5000, %v726_v18   ;;  %v1156_v18 = vsel %vm908_vm4, %v4050_v10, 0 }
  0x35   : > { %4403 = vmatmul.mubr.msk.f32.gmra.mrb[16].mxu0 %vm548_vm2, %v542_v45 }
  0x36   : > { %4405 = vmatprep.mubr.msk.f32.mxu0 %vm5020_vm1, %v5019_v1  ;;  %2399 = vperm.xlu0 %4999, %v727_v22  }
  0x37   : > { %2404 = vperm.xlu1 %5000, %v728_v25  }
  0x39   : > { %4406 = vmatmul.mubr.msk.f32.gmra.mrb[18].mxu0 %vm548_vm2, %v543_v48 }
  0x3a   : > { %4408 = vmatprep.mubr.msk.f32.mxu0 %vm5020_vm1, %v5019_v1  ;;  %2409 = vperm.xlu0 %4999, %v729_v27  }
  0x3b   : > { %2414 = vperm.xlu1 %5000, %v730_v30  }
  0x3d   : > { %4409 = vmatmul.mubr.msk.f32.gmra.mrb[20].mxu0 %vm548_vm2, %v544_v51 }
  0x3e   : > { %4411 = vmatprep.mubr.msk.f32.mxu0 %vm5020_vm1, %v5019_v1  ;;  %2419 = vperm.xlu0 %4999, %v731_v32  }
  0x3f   : > { %2424 = vperm.xlu1 %5000, %v732_v35  }
  0x41   : > { %4412 = vmatmul.mubr.msk.f32.gmra.mrb[22].mxu0 %vm548_vm2, %v545_v54 }
  0x42   : > { %4414 = vmatprep.mubr.msk.f32.mxu0 %vm5020_vm1, %v5019_v1  ;;  %2429 = vperm.xlu0 %4999, %v733_v37  }
  0x43   : > { %2434 = vperm.xlu1 %5000, %v734_v40  }
  0x45   : > { %4415 = vmatmul.mubr.msk.f32.gmra.mrb[24].mxu0 %vm548_vm2, %v546_v56 }
  0x46   : > { %4449 = vmatprep.mubr.msk.bf16.mxu0 %vm5020_vm1, %v5019_v1 }
  0x91   : > { %v738_v61 = vpop.permute.xlu0 %737  ;;  %v748_v6 = vpop.permute.xlu1 %747 }
  0x95   : > { %v743_v2 = vpop.permute.xlu0 %742 }
  0x96   : > { %v753_v19 = vpop.permute.xlu1 %752 }
  0x99   : > { %v758_v24 = vpop.permute.xlu0 %757 }
  0x9a   : > { %v763_v34 = vpop.permute.xlu1 %762 }
  0x9d   : > { %v768_v38 = vpop.permute.xlu0 %767 }
  0x9e   : > { %v773_v48 = vpop.permute.xlu1 %772 }
  0xa1   : > { %v778_v52 = vpop.permute.xlu0 %777 }
  0xe8   : > { %v658_v62 = vpop.f32.mrb[0].mxu0 }
  0xe9   : > { %v5279_v63 = vmul.f32 %v738_v61, %v658_v62  ;;  %v4380_v0 = vpop.f32.mrb[1].mxu0  ;;  %v783_v62 = vpop.permute.xlu1 %782 }
  0xeb   : > { %831 = vst.msk [vmem:[#allocation2 + $0x10] sm:$0xff] %vm813_vm3, %v5279_v63 }
  0xec   : > { %v663_v3 = vpop.f32.mrb[2].mxu0 }
  0xed   : > { %v5283_v4 = vmul.f32 %v743_v2, %v663_v3  ;;  %v4383_v5 = vpop.f32.mrb[3].mxu0 }
  0xee   : > { %v788_v5 = vpop.permute.xlu0 %787 }
  0xef   : > { %832 = vst.msk [vmem:[#allocation2 + $0x18] sm:$0xff] %vm813_vm3, %v5283_v4 }
  0xf0   : > { %v668_v7 = vpop.f32.mrb[4].mxu0 }
  0xf1   : > { %v5290_v11 = vmul.f32 %v748_v6, %v668_v7  ;;  %v4386_v12 = vpop.f32.mrb[5].mxu0 }
  0xf2   : > { %v866_v14 = vld [vmem:[#allocation2 + $0xe] sm:$0xff] }
  0xf3   : > { %v845_v15 = vld [vmem:[#allocation2 + $0xd] sm:$0xff]  ;;  %833 = vst.msk [vmem:[#allocation2 + $0x20] sm:$0xff] %vm813_vm3, %v5290_v11  ;;  %v878_v16 = vpack.c.bf16 %v866_v14, %v865_v8 }
  0xf4   : > { %v857_v17 = vpack.c.bf16 %v845_v15, %v844_v9  ;;  %v673_v20 = vpop.f32.mrb[6].mxu0 }
  0xf5   : > { %v5299_v22 = vmul.f32 %v753_v19, %v673_v20  ;;  %v4389_v23 = vpop.f32.mrb[7].mxu0  ;;  %4420 = vmatmul.mubr.msk.bf16.vlgmr.msra.gmra.mrb[0].mxu1 %vm813_vm3, %v878_v16  ;;  %v793_v16 = vpop.permute.xlu1 %792 }
  0xf6   : > { %4450 = vmatmul.mubr.msk.bf16.vlgmr.msra.gmra.mrb[28].mxu0 %vm813_vm3, %v857_v17  ;;  %4478 = vmatpush3.bf16.msra.mxu1 %v1156_v18  ;;  %v867_v28 = vld [vmem:[#allocation2 + $0x16] sm:$0xff]  ;;  %v798_v20 = vpop.permute.xlu0 %797 }
  0xf7   : > { %4423 = vmatprep.mubr.msk.bf16.mxu1 %vm5020_vm1, %v5019_v1  ;;  %834 = vst.msk [vmem:[#allocation2 + $0x28] sm:$0xff] %vm813_vm3, %v5299_v22  ;;  %4453 = vmatprep.mubr.msk.bf16.mxu0 %vm5020_vm1, %v5019_v1  ;;  %v846_v30 = vld [vmem:[#allocation2 + $0x15] sm:$0xff] }
  0xf8   : > { %4508 = vmatpush3.bf16.msra.mxu0 %v1303_v21  ;;  %v678_v25 = vpop.f32.mrb[8].mxu0  ;;  %4537 = vmatprep.subr.bf16.mxu1 %v5019_v1 }
  0xf9   : > { %4567 = vmatprep.subr.bf16.mxu0 %v5019_v1  ;;  %v5311_v26 = vmul.f32 %v758_v24, %v678_v25  ;;  %v4392_v27 = vpop.f32.mrb[9].mxu0 }
  0xfa   : > { %v868_v29 = vld [vmem:[#allocation2 + $0x1e] sm:$0xff] }
  0xfb   : > { %v847_v31 = vld [vmem:[#allocation2 + $0x1d] sm:$0xff]  ;;  %835 = vst.msk [vmem:[#allocation2 + $0x30] sm:$0xff] %vm813_vm3, %v5311_v26  ;;  %v879_v32 = vpack.c.bf16 %v868_v29, %v867_v28 }
  0xfc   : > { %v858_v33 = vpack.c.bf16 %v847_v31, %v846_v30  ;;  %v683_v35 = vpop.f32.mrb[10].mxu0 }
  0xfd   : > { %v5315_v36 = vmul.f32 %v763_v34, %v683_v35  ;;  %v4395_v37 = vpop.f32.mrb[11].mxu0  ;;  %4424 = vmatmul.mubr.msk.bf16.gmra.mrb[4].mxu1 %vm813_vm3, %v879_v32 }
  0xfe   : > { %4454 = vmatmul.mubr.msk.bf16.gmra.mrb[32].mxu0 %vm813_vm3, %v858_v33  ;;  %4427 = vmatprep.mubr.msk.bf16.mxu1 %vm5020_vm1, %v5019_v1  ;;  %v869_v42 = vld [vmem:[#allocation2 + $0x26] sm:$0xff] }
  0xff   : > { %4457 = vmatprep.mubr.msk.bf16.mxu0 %vm5020_vm1, %v5019_v1  ;;  %836 = vst.msk [vmem:[#allocation2 + $0x38] sm:$0xff] %vm813_vm3, %v5315_v36  ;;  %v848_v44 = vld [vmem:[#allocation2 + $0x25] sm:$0xff] }
 0x100   : > { %v688_v39 = vpop.f32.mrb[12].mxu0  ;;  %v1112_v37 = vld [vmem:[#allocation2 + $0x7] sm:$0xff] }
 0x101   : > { %v5325_v40 = vmul.f32 %v768_v38, %v688_v39  ;;  %v4398_v41 = vpop.f32.mrb[13].mxu0  ;;  %v1113_v38 = vld [vmem:[#allocation2 + $0xf] sm:$0xff]  ;;  %v1260_v39 = vld [vmem:[#allocation2 + $0x17] sm:$0xff] }
 0x102   : > { %v870_v43 = vld [vmem:[#allocation2 + $0x2e] sm:$0xff]  ;;  %v4066_v41 = vld [vmem:[%s6406_s5 + $0x4] sm:$0x1] }
 0x103   : > { %v849_v45 = vld [vmem:[#allocation2 + $0x2d] sm:$0xff]  ;;  %837 = vst.msk [vmem:[#allocation2 + $0x40] sm:$0xff] %vm813_vm3, %v5325_v40  ;;  %v880_v46 = vpack.c.bf16 %v870_v43, %v869_v42  ;;  %v4074_v42 = vld [vmem:[%s6406_s5 + $0x5] sm:$0x1]  ;;  %v1125_v43 = vpack.c.bf16 %v1113_v38, %v1112_v37 }
 0x104   : > { %v859_v47 = vpack.c.bf16 %v849_v45, %v848_v44  ;;  %v693_v49 = vpop.f32.mrb[14].mxu0  ;;  %v1272_v44 = vpack.c.bf16 %v1260_v39, %v1113_v38  ;;  %v1450_v45 = vsel %vm908_vm4, %v4066_v41, 0  ;;  %v1410_v37 = vld [vmem:[#allocation2 + $0x30] sm:$0xff] }
 0x105   : > { %v5329_v50 = vmul.f32 %v773_v48, %v693_v49  ;;  %v4401_v51 = vpop.f32.mrb[15].mxu0  ;;  %4428 = vmatmul.mubr.msk.bf16.gmra.mrb[8].mxu1 %vm813_vm3, %v880_v46  ;;  %v1597_v46 = vsel %vm908_vm4, %v4074_v42, 0  ;;  %v1262_v48 = vld [vmem:[#allocation2 + $0x27] sm:$0xff] }
 0x106   : > { %4458 = vmatmul.mubr.msk.bf16.gmra.mrb[36].mxu0 %vm813_vm3, %v859_v47  ;;  %4431 = vmatprep.mubr.msk.bf16.mxu1 %vm5020_vm1, %v5019_v1  ;;  %v871_v56 = vld [vmem:[#allocation2 + $0x36] sm:$0xff]  ;;  %v1115_v47 = vld [vmem:[#allocation2 + $0x1f] sm:$0xff] }
 0x107   : > { %4461 = vmatprep.mubr.msk.bf16.mxu0 %vm5020_vm1, %v5019_v1  ;;  %838 = vst.msk [vmem:[#allocation2 + $0x48] sm:$0xff] %vm813_vm3, %v5329_v50  ;;  %v850_v58 = vld [vmem:[#allocation2 + $0x35] sm:$0xff]  ;;  %v1126_v49 = vpack.c.bf16 %v1115_v47, %v1260_v39  ;;  %v1273_v51 = vpack.c.bf16 %v1262_v48, %v1115_v47 }
 0x108   : > { %v698_v53 = vpop.f32.mrb[16].mxu0  ;;  %v1557_v38 = vld [vmem:[#allocation2 + $0x31] sm:$0xff] }
 0x109   : > { %v5339_v54 = vmul.f32 %v778_v52, %v698_v53  ;;  %v4404_v55 = vpop.f32.mrb[17].mxu0  ;;  %v1117_v52 = vld [vmem:[#allocation2 + $0x2f] sm:$0xff]  ;;  %v1264_v53 = vld [vmem:[#allocation2 + $0x37] sm:$0xff] }
 0x10a   : > { %v872_v57 = vld [vmem:[#allocation2 + $0x3e] sm:$0xff]  ;;  %v1127_v55 = vpack.c.bf16 %v1117_v52, %v1262_v48 }
 0x10b   : > { %v851_v59 = vld [vmem:[#allocation2 + $0x3d] sm:$0xff]  ;;  %839 = vst.msk [vmem:[#allocation2 + $0x50] sm:$0xff] %vm813_vm3, %v5339_v54  ;;  %v881_v60 = vpack.c.bf16 %v872_v57, %v871_v56  ;;  %v1274_v56 = vpack.c.bf16 %v1264_v53, %v1117_v52 }
 0x10c   : > { %v860_v61 = vpack.c.bf16 %v851_v59, %v850_v58  ;;  %v703_v0 = vpop.f32.mrb[18].mxu0  ;;  %v1119_v57 = vld [vmem:[#allocation2 + $0x3f] sm:$0xff] }
 0x10d   : > { %v5343_v2 = vmul.f32 %v783_v62, %v703_v0  ;;  %v4407_v3 = vpop.f32.mrb[19].mxu0  ;;  %4432 = vmatmul.mubr.msk.bf16.gmra.mrb[12].mxu1 %vm813_vm3, %v881_v60  ;;  %v1128_v59 = vpack.c.bf16 %v1119_v57, %v1264_v53 }
 0x10e   : > { %4462 = vmatmul.mubr.msk.bf16.gmra.mrb[40].mxu0 %vm813_vm3, %v860_v61  ;;  %4435 = vmatprep.mubr.msk.bf16.mxu1 %vm5020_vm1, %v5019_v1  ;;  %v873_v9 = vld [vmem:[#allocation2 + $0x46] sm:$0xff] }
 0x10f   : > { %4465 = vmatprep.mubr.msk.bf16.mxu0 %vm5020_vm1, %v5019_v1  ;;  %840 = vst.msk [vmem:[#allocation2 + $0x58] sm:$0xff] %vm813_vm3, %v5343_v2  ;;  %v852_v12 = vld [vmem:[#allocation2 + $0x45] sm:$0xff] }
 0x110   : > { %v708_v6 = vpop.f32.mrb[20].mxu0  ;;  %v1266_v58 = vld [vmem:[#allocation2 + $0x47] sm:$0xff] }
 0x111   : > { %v5353_v7 = vmul.f32 %v788_v5, %v708_v6  ;;  %v4410_v8 = vpop.f32.mrb[21].mxu0  ;;  %v1275_v60 = vpack.c.bf16 %v1266_v58, %v1119_v57  ;;  %v1413_v42 = vld [vmem:[#allocation2 + $0x48] sm:$0xff] }
 0x112   : > { %v874_v10 = vld [vmem:[#allocation2 + $0x4e] sm:$0xff] }
 0x113   : > { %v853_v13 = vld [vmem:[#allocation2 + $0x4d] sm:$0xff]  ;;  %841 = vst.msk [vmem:[#allocation2 + $0x60] sm:$0xff] %vm813_vm3, %v5353_v7  ;;  %v882_v14 = vpack.c.bf16 %v874_v10, %v873_v9 }
 0x114   : > { %v861_v15 = vpack.c.bf16 %v853_v13, %v852_v12  ;;  %v713_v17 = vpop.f32.mrb[22].mxu0  ;;  %v1121_v61 = vld [vmem:[#allocation2 + $0x4f] sm:$0xff] }
 0x115   : > { %v5357_v18 = vmul.f32 %v793_v16, %v713_v17  ;;  %4436 = vmatmul.mubr.msk.bf16.gmra.mrb[16].mxu1 %vm813_vm3, %v882_v14  ;;  %v4413_v19 = vpop.f32.mrb[23].mxu0  ;;  %v1129_v0 = vpack.c.bf16 %v1121_v61, %v1266_v58  ;;  %v1407_v14 = vld [vmem:[#allocation2 + $0x18] sm:$0xff]  ;;  %v4082_v16 = vld [vmem:[%s6406_s5 + $0x6] sm:$0x1]  ;;  %v4090_v17 = vld [vmem:[%s6406_s5 + $0x7] sm:$0x1] }
 0x116   : > { %4466 = vmatmul.mubr.msk.bf16.gmra.mrb[44].mxu0 %vm813_vm3, %v861_v15  ;;  %4439 = vmatprep.mubr.msk.bf16.mxu1 %vm5020_vm1, %v5019_v1  ;;  %v875_v24 = vld [vmem:[#allocation2 + $0x56] sm:$0xff] }
 0x117   : > { %4469 = vmatprep.mubr.msk.bf16.mxu0 %vm5020_vm1, %v5019_v1  ;;  %842 = vst.msk [vmem:[#allocation2 + $0x68] sm:$0xff] %vm813_vm3, %v5357_v18  ;;  %v854_v28 = vld [vmem:[#allocation2 + $0x55] sm:$0xff] }
 0x118   : > { %v718_v21 = vpop.f32.mrb[24].mxu0  ;;  %v1268_v62 = vld [vmem:[#allocation2 + $0x57] sm:$0xff] }
 0x119   : > { %v5367_v23 = vmul.f32 %v798_v20, %v718_v21  ;;  %v4416_v25 = vpop.f32.mrb[25].mxu0  ;;  %v1276_v3 = vpack.c.bf16 %v1268_v62, %v1121_v61  ;;  %v5435_v15 = vld [vmem:[#allocation2 + $0x19] sm:$0xff]  ;;  %v1406_v19 = vld [vmem:[#allocation2 + $0x10] sm:$0xff] }
 0x11a   : > { %v876_v27 = vld [vmem:[#allocation2 + $0x5e] sm:$0xff]  ;;  %v1553_v20 = vld [vmem:[#allocation2 + $0x11] sm:$0xff]  ;;  %v1419_v21 = vpack.c.bf16 %v1407_v14, %v1406_v19  ;;  %v1744_v25 = vsel %vm908_vm4, %v4082_v16, 0 }
 0x11b   : > { %v855_v29 = vld [vmem:[#allocation2 + $0x5d] sm:$0xff]  ;;  %843 = vst.msk [vmem:[#allocation2 + $0x70] sm:$0xff] %vm813_vm3, %v5367_v23  ;;  %v883_v30 = vpack.c.bf16 %v876_v27, %v875_v24  ;;  %v1566_v24 = vpack.c.bf16 %v5435_v15, %v1553_v20  ;;  %v1891_v27 = vsel %vm908_vm4, %v4090_v17, 0  ;;  %v1561_v52 = vld [vmem:[#allocation2 + $0x51] sm:$0xff] }
 0x11c   : > { %v862_v31 = vpack.c.bf16 %v855_v29, %v854_v28  ;;  %v1123_v5 = vld [vmem:[#allocation2 + $0x5f] sm:$0xff]  ;;  %v1409_v28 = vld [vmem:[#allocation2 + $0x28] sm:$0xff]  ;;  %v1850_v14 = vld [vmem:[#allocation2 + $0x32] sm:$0xff] }
 0x11d   : > { %4440 = vmatmul.mubr.msk.bf16.gmra.mrb[20].mxu1 %vm813_vm3, %v883_v30  ;;  %v1130_v8 = vpack.c.bf16 %v1123_v5, %v1268_v62  ;;  %v5452_v29 = vld [vmem:[#allocation2 + $0x29] sm:$0xff]  ;;  %v1408_v30 = vld [vmem:[#allocation2 + $0x20] sm:$0xff]  ;;  %v1415_v48 = vld [vmem:[#allocation2 + $0x58] sm:$0xff] }
 0x11e   : > { %4470 = vmatmul.mubr.msk.bf16.gmra.mrb[48].mxu0 %vm813_vm3, %v862_v31  ;;  %4443 = vmatprep.mubr.msk.bf16.mxu1 %vm5020_vm1, %v5019_v1  ;;  %v877_v32 = vld [vmem:[#allocation2 + $0x66] sm:$0xff]  ;;  %v1851_v20 = vld [vmem:[#allocation2 + $0x3a] sm:$0xff] }
 0x11f   : > { %4473 = vmatprep.mubr.msk.bf16.mxu0 %vm5020_vm1, %v5019_v1  ;;  %v856_v33 = vld [vmem:[#allocation2 + $0x65] sm:$0xff]  ;;  %v884_v34 = vpack.c.bf16 %v877_v32, %v877_v32  ;;  %v1420_v32 = vpack.c.bf16 %v1409_v28, %v1408_v30 }
 0x120   : > { %v863_v35 = vpack.c.bf16 %v856_v33, %v856_v33  ;;  %v1270_v6 = vld [vmem:[#allocation2 + $0x67] sm:$0xff] }
 0x121   : > { %v1277_v9 = vpack.c.bf16 %v1270_v6, %v1123_v5  ;;  %v1131_v12 = vpack.c.bf16 %v1270_v6, %v1270_v6  ;;  %v1555_v31 = vld [vmem:[#allocation2 + $0x21] sm:$0xff]  ;;  %v1849_v16 = vld [vmem:[#allocation2 + $0x2a] sm:$0xff] }
 0x122   : > { %v1271_v10 = vld [vmem:[#allocation2 + $0x6f] sm:$0xff]  ;;  %v1567_v33 = vpack.c.bf16 %v5452_v29, %v1555_v31  ;;  %v1416_v58 = vld [vmem:[#allocation2 + $0x60] sm:$0xff]  ;;  %v1861_v17 = vpack.c.bf16 %v1850_v14, %v1849_v16 }
 0x123   : > { %v1278_v13 = vpack.c.bf16 %v1271_v10, %v1271_v10  ;;  %v5490_v57 = vld [vmem:[#allocation2 + $0x69] sm:$0xff]  ;;  %v1713_v10 = vpack.c.bf16 %v1555_v31, %v5435_v15  ;;  %v1714_v15 = vpack.c.bf16 %v1557_v38, %v5452_v29  ;;  %v1855_v31 = vld [vmem:[#allocation2 + $0x5a] sm:$0xff] }
 0x124   : > { %v1418_v62 = vld [vmem:[#allocation2 + $0x70] sm:$0xff]  ;;  %v1848_v6 = vld [vmem:[#allocation2 + $0x22] sm:$0xff] }
 0x125   : > { %4444 = vmatmul.mubr.msk.bf16.gmra.mrb[24].mxu1 %vm813_vm3, %v884_v34  ;;  %v1411_v34 = vld [vmem:[#allocation2 + $0x38] sm:$0xff]  ;;  %v1852_v19 = vld [vmem:[#allocation2 + $0x42] sm:$0xff] }
 0x126   : > { %4474 = vmatmul.mubr.msk.bf16.gmra.mrb[52].mxu0 %vm813_vm3, %v863_v35  ;;  %4479 = vmatprep.mubr.msk.bf16.mxu1 %vm5020_vm1, %v5019_v1  ;;  %v5463_v35 = vld [vmem:[#allocation2 + $0x39] sm:$0xff]  ;;  %v1421_v39 = vpack.c.bf16 %v1411_v34, %v1410_v37  ;;  %v1856_v30 = vld [vmem:[#allocation2 + $0x62] sm:$0xff]  ;;  %v1857_v34 = vld [vmem:[#allocation2 + $0x6a] sm:$0xff] }
 0x127   : > { %4509 = vmatprep.mubr.msk.bf16.mxu0 %vm5020_vm1, %v5019_v1  ;;  %v1568_v41 = vpack.c.bf16 %v5463_v35, %v1557_v38 }
 0x12d   : > { %4480 = vmatmul.mubr.msk.bf16.vlgmr.msra.gmra.mrb[28].mxu1 %vm813_vm3, %v1125_v43  ;;  %v5472_v43 = vld [vmem:[#allocation2 + $0x49] sm:$0xff] }
 0x12e   : > { %4510 = vmatmul.mubr.msk.bf16.vlgmr.msra.gmra.mrb[56].mxu0 %vm813_vm3, %v1272_v44  ;;  %4538 = vmatpush3.bf16.msra.mxu1 %v1450_v45  ;;  %v1412_v44 = vld [vmem:[#allocation2 + $0x40] sm:$0xff]  ;;  %v1716_v28 = vpack.c.bf16 %v1561_v52, %v5472_v43 }
 0x12f   : > { %4483 = vmatprep.mubr.msk.bf16.mxu1 %vm5020_vm1, %v5019_v1  ;;  %4513 = vmatprep.mubr.msk.bf16.mxu0 %vm5020_vm1, %v5019_v1  ;;  %v1559_v45 = vld [vmem:[#allocation2 + $0x41] sm:$0xff] }
 0x130   : > { %4568 = vmatpush3.bf16.msra.mxu0 %v1597_v46  ;;  %4597 = vmatprep.subr.bf16.mxu1 %v5019_v1  ;;  %v1422_v46 = vpack.c.bf16 %v1413_v42, %v1412_v44  ;;  %v1569_v47 = vpack.c.bf16 %v5472_v43, %v1559_v45 }
 0x131   : > { %4627 = vmatprep.subr.bf16.mxu0 %v5019_v1 }
 0x135   : > { %4484 = vmatmul.mubr.msk.bf16.gmra.mrb[32].mxu1 %vm813_vm3, %v1126_v49  ;;  %v5481_v49 = vld [vmem:[#allocation2 + $0x59] sm:$0xff] }
 0x136   : > { %4514 = vmatmul.mubr.msk.bf16.gmra.mrb[60].mxu0 %vm813_vm3, %v1273_v51  ;;  %4487 = vmatprep.mubr.msk.bf16.mxu1 %vm5020_vm1, %v5019_v1  ;;  %v1414_v51 = vld [vmem:[#allocation2 + $0x50] sm:$0xff] }
 0x137   : > { %4517 = vmatprep.mubr.msk.bf16.mxu0 %vm5020_vm1, %v5019_v1  ;;  %v1423_v53 = vpack.c.bf16 %v1415_v48, %v1414_v51 }
 0x13d   : > { %4488 = vmatmul.mubr.msk.bf16.gmra.mrb[36].mxu1 %vm813_vm3, %v1127_v55  ;;  %v1570_v55 = vpack.c.bf16 %v5481_v49, %v1561_v52 }
 0x13e   : > { %4518 = vmatmul.mubr.msk.bf16.gmra.mrb[64].mxu0 %vm813_vm3, %v1274_v56  ;;  %4491 = vmatprep.mubr.msk.bf16.mxu1 %vm5020_vm1, %v5019_v1  ;;  %v1417_v56 = vld [vmem:[#allocation2 + $0x68] sm:$0xff] }
 0x13f   : > { %4521 = vmatprep.mubr.msk.bf16.mxu0 %vm5020_vm1, %v5019_v1 }
 0x145   : > { %4492 = vmatmul.mubr.msk.bf16.gmra.mrb[40].mxu1 %vm813_vm3, %v1128_v59  ;;  %v1563_v59 = vld [vmem:[#allocation2 + $0x61] sm:$0xff] }
 0x146   : > { %4522 = vmatmul.mubr.msk.bf16.gmra.mrb[68].mxu0 %vm813_vm3, %v1275_v60  ;;  %4495 = vmatprep.mubr.msk.bf16.mxu1 %vm5020_vm1, %v5019_v1  ;;  %v1424_v60 = vpack.c.bf16 %v1417_v56, %v1416_v58  ;;  %v1571_v61 = vpack.c.bf16 %v5490_v57, %v1563_v59  ;;  %v1995_v58 = vld [vmem:[#allocation2 + $0x23] sm:$0xff] }
 0x147   : > { %4525 = vmatprep.mubr.msk.bf16.mxu0 %vm5020_vm1, %v5019_v1 }
 0x14d   : > { %4496 = vmatmul.mubr.msk.bf16.gmra.mrb[44].mxu1 %vm813_vm3, %v1129_v0  ;;  %v1565_v0 = vld [vmem:[#allocation2 + $0x71] sm:$0xff] }
 0x14e   : > { %4526 = vmatmul.mubr.msk.bf16.gmra.mrb[72].mxu0 %vm813_vm3, %v1276_v3  ;;  %4499 = vmatprep.mubr.msk.bf16.mxu1 %vm5020_vm1, %v5019_v1  ;;  %v1425_v3 = vpack.c.bf16 %v1418_v62, %v1418_v62  ;;  %v1572_v5 = vpack.c.bf16 %v1565_v0, %v1565_v0  ;;  %v1718_v37 = vpack.c.bf16 %v1565_v0, %v5490_v57 }
 0x14f   : > { %4529 = vmatprep.mubr.msk.bf16.mxu0 %vm5020_vm1, %v5019_v1 }
 0x155   : > { %4500 = vmatmul.mubr.msk.bf16.gmra.mrb[48].mxu1 %vm813_vm3, %v1130_v8  ;;  %v4098_v8 = vld [vmem:[%s6406_s5 + $0x8] sm:$0x1] }
 0x156   : > { %4530 = vmatmul.mubr.msk.bf16.gmra.mrb[76].mxu0 %vm813_vm3, %v1277_v9  ;;  %4503 = vmatprep.mubr.msk.bf16.mxu1 %vm5020_vm1, %v5019_v1  ;;  %v1847_v9 = vld [vmem:[#allocation2 + $0x1a] sm:$0xff] }
 0x157   : > { %4533 = vmatprep.mubr.msk.bf16.mxu0 %vm5020_vm1, %v5019_v1 }
 0x15d   : > { %4504 = vmatmul.mubr.msk.bf16.gmra.mrb[52].mxu1 %vm813_vm3, %v1131_v12  ;;  %v1860_v12 = vpack.c.bf16 %v1848_v6, %v1847_v9 }
 0x15e   : > { %4534 = vmatmul.mubr.msk.bf16.gmra.mrb[80].mxu0 %vm813_vm3, %v1278_v13  ;;  %4539 = vmatprep.mubr.msk.bf16.mxu1 %vm5020_vm1, %v5019_v1  ;;  %v2038_v13 = vsel %vm908_vm4, %v4098_v8, 0 }
 0x15f   : > { %4569 = vmatprep.mubr.msk.bf16.mxu0 %vm5020_vm1, %v5019_v1 }
 0x165   : > { %4540 = vmatmul.mubr.msk.bf16.vlgmr.msra.gmra.mrb[56].mxu1 %vm813_vm3, %v1419_v21  ;;  %v1715_v21 = vpack.c.bf16 %v1559_v45, %v5463_v35  ;;  %v1858_v35 = vld [vmem:[#allocation2 + $0x72] sm:$0xff] }
 0x166   : > { %4570 = vmatmul.mubr.msk.bf16.vlgmr.msra.gmra.mrb[84].mxu0 %vm813_vm3, %v1566_v24  ;;  %4598 = vmatpush3.bf16.msra.mxu1 %v1744_v25  ;;  %v1862_v24 = vpack.c.bf16 %v1852_v19, %v1851_v20  ;;  %v1854_v25 = vld [vmem:[#allocation2 + $0x52] sm:$0xff]  ;;  %v1865_v38 = vpack.c.bf16 %v1858_v35, %v1857_v34 }
 0x167   : > { %4543 = vmatprep.mubr.msk.bf16.mxu1 %vm5020_vm1, %v5019_v1  ;;  %4573 = vmatprep.mubr.msk.bf16.mxu0 %vm5020_vm1, %v5019_v1  ;;  %v1996_v20 = vld [vmem:[#allocation2 + $0x2b] sm:$0xff] }
 0x168   : > { %4628 = vmatpush3.bf16.msra.mxu0 %v1891_v27  ;;  %4657 = vmatprep.subr.bf16.mxu1 %v5019_v1  ;;  %v1853_v27 = vld [vmem:[#allocation2 + $0x4a] sm:$0xff] }
 0x169   : > { %4687 = vmatprep.subr.bf16.mxu0 %v5019_v1  ;;  %v1863_v29 = vpack.c.bf16 %v1854_v25, %v1853_v27 }
 0x16d   : > { %4544 = vmatmul.mubr.msk.bf16.gmra.mrb[60].mxu1 %vm813_vm3, %v1420_v32  ;;  %v1717_v32 = vpack.c.bf16 %v1563_v59, %v5481_v49 }
 0x16e   : > { %4574 = vmatmul.mubr.msk.bf16.gmra.mrb[88].mxu0 %vm813_vm3, %v1567_v33  ;;  %4547 = vmatprep.mubr.msk.bf16.mxu1 %vm5020_vm1, %v5019_v1  ;;  %v1864_v33 = vpack.c.bf16 %v1856_v30, %v1855_v31  ;;  %v1999_v30 = vld [vmem:[#allocation2 + $0x43] sm:$0xff] }
 0x16f   : > { %4577 = vmatprep.mubr.msk.bf16.mxu0 %vm5020_vm1, %v5019_v1 }
 0x175   : > { %4548 = vmatmul.mubr.msk.bf16.gmra.mrb[64].mxu1 %vm813_vm3, %v1421_v39  ;;  %v1712_v39 = vld [vmem:[#allocation2 + $0x79] sm:$0xff] }
 0x176   : > { %4578 = vmatmul.mubr.msk.bf16.gmra.mrb[92].mxu0 %vm813_vm3, %v1568_v41  ;;  %4551 = vmatprep.mubr.msk.bf16.mxu1 %vm5020_vm1, %v5019_v1  ;;  %v1859_v41 = vld [vmem:[#allocation2 + $0x7a] sm:$0xff] }
 0x177   : > { %4581 = vmatprep.mubr.msk.bf16.mxu0 %vm5020_vm1, %v5019_v1  ;;  %v1866_v48 = vpack.c.bf16 %v1859_v41, %v1859_v41 }
 0x17d   : > { %4552 = vmatmul.mubr.msk.bf16.gmra.mrb[68].mxu1 %vm813_vm3, %v1422_v46 }
 0x17e   : > { %4582 = vmatmul.mubr.msk.bf16.gmra.mrb[96].mxu0 %vm813_vm3, %v1569_v47  ;;  %4555 = vmatprep.mubr.msk.bf16.mxu1 %vm5020_vm1, %v5019_v1  ;;  %v1719_v47 = vpack.c.bf16 %v1712_v39, %v1712_v39 }
 0x17f   : > { %4585 = vmatprep.mubr.msk.bf16.mxu0 %vm5020_vm1, %v5019_v1 }
 0x185   : > { %4556 = vmatmul.mubr.msk.bf16.gmra.mrb[72].mxu1 %vm813_vm3, %v1423_v53 }
 0x186   : > { %4586 = vmatmul.mubr.msk.bf16.gmra.mrb[100].mxu0 %vm813_vm3, %v1570_v55  ;;  %4559 = vmatprep.mubr.msk.bf16.mxu1 %vm5020_vm1, %v5019_v1 }
 0x187   : > { %4589 = vmatprep.mubr.msk.bf16.mxu0 %vm5020_vm1, %v5019_v1 }
 0x18d   : > { %4560 = vmatmul.mubr.msk.bf16.gmra.mrb[76].mxu1 %vm813_vm3, %v1424_v60 }
 0x18e   : > { %4590 = vmatmul.mubr.msk.bf16.gmra.mrb[104].mxu0 %vm813_vm3, %v1571_v61  ;;  %4563 = vmatprep.mubr.msk.bf16.mxu1 %vm5020_vm1, %v5019_v1 }
 0x18f   : > { %4593 = vmatprep.mubr.msk.bf16.mxu0 %vm5020_vm1, %v5019_v1 }
 0x195   : > { %4564 = vmatmul.mubr.msk.bf16.gmra.mrb[80].mxu1 %vm813_vm3, %v1425_v3  ;;  %v1994_v3 = vld [vmem:[#allocation2 + $0x1b] sm:$0xff] }
 0x196   : > { %4594 = vmatmul.mubr.msk.bf16.gmra.mrb[108].mxu0 %vm813_vm3, %v1572_v5  ;;  %4599 = vmatprep.mubr.msk.bf16.mxu1 %vm5020_vm1, %v5019_v1  ;;  %v2007_v9 = vpack.c.bf16 %v1995_v58, %v1994_v3 }
 0x197   : > { %4629 = vmatprep.mubr.msk.bf16.mxu0 %vm5020_vm1, %v5019_v1 }
 0x19d   : > { %4600 = vmatmul.mubr.msk.bf16.vlgmr.msra.gmra.mrb[84].mxu1 %vm813_vm3, %v1713_v10 }
 0x19e   : > { %4630 = vmatmul.mubr.msk.bf16.vlgmr.msra.gmra.mrb[112].mxu0 %vm813_vm3, %v1860_v12  ;;  %4658 = vmatpush3.bf16.msra.mxu1 %v2038_v13  ;;  %v1997_v13 = vld [vmem:[#allocation2 + $0x33] sm:$0xff] }
 0x19f   : > { %4603 = vmatprep.mubr.msk.bf16.mxu1 %vm5020_vm1, %v5019_v1  ;;  %4633 = vmatprep.mubr.msk.bf16.mxu0 %vm5020_vm1, %v5019_v1  ;;  %v2008_v27 = vpack.c.bf16 %v1997_v13, %v1996_v20 }
 0x1a0   : > { %4717 = vmatprep.subr.bf16.mxu1 %v5019_v1 }
 0x1a5   : > { %4604 = vmatmul.mubr.msk.bf16.gmra.mrb[88].mxu1 %vm813_vm3, %v1714_v15 }
 0x1a6   : > { %4634 = vmatmul.mubr.msk.bf16.gmra.mrb[116].mxu0 %vm813_vm3, %v1861_v17  ;;  %4607 = vmatprep.mubr.msk.bf16.mxu1 %vm5020_vm1, %v5019_v1 }
 0x1a7   : > { %4637 = vmatprep.mubr.msk.bf16.mxu0 %vm5020_vm1, %v5019_v1 }
 0x1ad   : > { %4608 = vmatmul.mubr.msk.bf16.gmra.mrb[92].mxu1 %vm813_vm3, %v1715_v21 }
 0x1ae   : > { %4638 = vmatmul.mubr.msk.bf16.gmra.mrb[120].mxu0 %vm813_vm3, %v1862_v24  ;;  %4611 = vmatprep.mubr.msk.bf16.mxu1 %vm5020_vm1, %v5019_v1 }
 0x1af   : > { %4641 = vmatprep.mubr.msk.bf16.mxu0 %vm5020_vm1, %v5019_v1 }
 0x1b5   : > { %4612 = vmatmul.mubr.msk.bf16.gmra.mrb[96].mxu1 %vm813_vm3, %v1716_v28 }
 0x1b6   : > { %4642 = vmatmul.mubr.msk.bf16.gmra.mrb[124].mxu0 %vm813_vm3, %v1863_v29  ;;  %4615 = vmatprep.mubr.msk.bf16.mxu1 %vm5020_vm1, %v5019_v1 }
 0x1b7   : > { %4645 = vmatprep.mubr.msk.bf16.mxu0 %vm5020_vm1, %v5019_v1 }
 0x1bd   : > { %4616 = vmatmul.mubr.msk.bf16.gmra.mrb[100].mxu1 %vm813_vm3, %v1717_v32 }
 0x1be   : > { %4646 = vmatmul.mubr.msk.bf16.gmra.mrb[128].mxu0 %vm813_vm3, %v1864_v33  ;;  %4619 = vmatprep.mubr.msk.bf16.mxu1 %vm5020_vm1, %v5019_v1 }
 0x1bf   : > { %4649 = vmatprep.mubr.msk.bf16.mxu0 %vm5020_vm1, %v5019_v1 }
 0x1c5   : > { %4620 = vmatmul.mubr.msk.bf16.gmra.mrb[104].mxu1 %vm813_vm3, %v1718_v37  ;;  %v1998_v37 = vld [vmem:[#allocation2 + $0x3b] sm:$0xff] }
 0x1c6   : > { %4650 = vmatmul.mubr.msk.bf16.gmra.mrb[132].mxu0 %vm813_vm3, %v1865_v38  ;;  %4623 = vmatprep.mubr.msk.bf16.mxu1 %vm5020_vm1, %v5019_v1 }
 0x1c7   : > { %4653 = vmatprep.mubr.msk.bf16.mxu0 %vm5020_vm1, %v5019_v1 }
 0x1c8   : > { %v946_v42 = vpop.f32.mrb[0].mxu1 }
 0x1c9   : > { %v1058_v43 = vpop.f32.mrb[28].mxu0  ;;  %v4421_v45 = vpop.f32.mrb[1].mxu1 }
 0x1ca   : > { %v5552_v44 = vadd.f32 %v1058_v43, %v946_v42  ;;  %v4451_v46 = vpop.f32.mrb[29].mxu0  ;;  %v949_v49 = vpop.f32.mrb[2].mxu1  ;;  %v2009_v42 = vpack.c.bf16 %v1999_v30, %v1998_v37  ;;  %v5001_v37 = vld [vmem:[%s6409_s8] sm:$0xff]  }
 0x1cb   : > { %v1061_v51 = vpop.f32.mrb[30].mxu0  ;;  %v4422_v53 = vpop.f32.mrb[3].mxu1  ;;  %v2001_v46 = vld [vmem:[#allocation2 + $0x53] sm:$0xff]  ;;  %4688 = vmatpush3.bf16.msra.mxu0 %v5001_v37 }
 0x1cc   : > { %v5554_v52 = vadd.f32 %v1061_v51, %v949_v49  ;;  %v4452_v55 = vpop.f32.mrb[31].mxu0  ;;  %4747 = vmatprep.subr.bf16.mxu0 %v5019_v1 }
 0x1cd   : > { %4624 = vmatmul.mubr.msk.bf16.gmra.mrb[108].mxu1 %vm813_vm3, %v1719_v47  ;;  %v2000_v55 = vld [vmem:[#allocation2 + $0x4b] sm:$0xff] }
 0x1ce   : > { %4654 = vmatmul.mubr.msk.bf16.gmra.mrb[136].mxu0 %vm813_vm3, %v1866_v48  ;;  %4659 = vmatprep.mubr.msk.bf16.mxu1 %vm5020_vm1, %v5019_v1 }
 0x1cf   : > { %4689 = vmatprep.mubr.msk.bf16.mxu0 %vm5020_vm1, %v5019_v1 }
 0x1d0   : > { %v954_v56 = vpop.f32.mrb[4].mxu1 }
 0x1d1   : > { %v1066_v57 = vpop.f32.mrb[32].mxu0  ;;  %v4425_v60 = vpop.f32.mrb[5].mxu1 }
 0x1d2   : > { %v5562_v59 = vadd.f32 %v1066_v57, %v954_v56  ;;  %v4455_v61 = vpop.f32.mrb[33].mxu0  ;;  %v957_v62 = vpop.f32.mrb[6].mxu1  ;;  %v2010_v60 = vpack.c.bf16 %v2001_v46, %v2000_v55 }
 0x1d3   : > { %v1069_v0 = vpop.f32.mrb[34].mxu0  ;;  %v4426_v6 = vpop.f32.mrb[7].mxu1 }
 0x1d4   : > { %v5564_v5 = vadd.f32 %v1069_v0, %v957_v62  ;;  %v4456_v8 = vpop.f32.mrb[35].mxu0  ;;  %v2003_v0 = vld [vmem:[#allocation2 + $0x63] sm:$0xff] }
 0x1d5   : > { %4660 = vmatmul.mubr.msk.bf16.vlgmr.msra.gmra.mrb[112].mxu1 %vm813_vm3, %v2007_v9 }
 0x1d6   : > { %4663 = vmatprep.mubr.msk.bf16.mxu1 %vm5020_vm1, %v5019_v1 }
 0x1d8   : > { %v962_v10 = vpop.f32.mrb[8].mxu1 }
 0x1d9   : > { %v1074_v12 = vpop.f32.mrb[36].mxu0  ;;  %v4429_v16 = vpop.f32.mrb[9].mxu1 }
 0x1da   : > { %v5569_v14 = vadd.f32 %v1074_v12, %v962_v10  ;;  %v4459_v15 = vpop.f32.mrb[37].mxu0  ;;  %v965_v17 = vpop.f32.mrb[10].mxu1  ;;  %v2002_v12 = vld [vmem:[#allocation2 + $0x5b] sm:$0xff] }
 0x1db   : > { %v1077_v19 = vpop.f32.mrb[38].mxu0  ;;  %v4430_v24 = vpop.f32.mrb[11].mxu1 }
 0x1dc   : > { %v5571_v21 = vadd.f32 %v1077_v19, %v965_v17  ;;  %v4460_v25 = vpop.f32.mrb[39].mxu0  ;;  %v2011_v17 = vpack.c.bf16 %v2003_v0, %v2002_v12  ;;  %v2004_v24 = vld [vmem:[#allocation2 + $0x6b] sm:$0xff] }
 0x1dd   : > { %4664 = vmatmul.mubr.msk.bf16.gmra.mrb[116].mxu1 %vm813_vm3, %v2008_v27  ;;  %v2005_v25 = vld [vmem:[#allocation2 + $0x73] sm:$0xff] }
 0x1de   : > { %4667 = vmatprep.mubr.msk.bf16.mxu1 %vm5020_vm1, %v5019_v1 }
 0x1e0   : > { %v970_v28 = vpop.f32.mrb[12].mxu1 }
 0x1e1   : > { %v1082_v29 = vpop.f32.mrb[40].mxu0  ;;  %v4433_v32 = vpop.f32.mrb[13].mxu1 }
 0x1e2   : > { %v5576_v31 = vadd.f32 %v1082_v29, %v970_v28  ;;  %v4463_v33 = vpop.f32.mrb[41].mxu0  ;;  %v973_v34 = vpop.f32.mrb[14].mxu1 }
 0x1e3   : > { %v1085_v35 = vpop.f32.mrb[42].mxu0  ;;  %v4434_v39 = vpop.f32.mrb[15].mxu1 }
 0x1e4   : > { %v5578_v38 = vadd.f32 %v1085_v35, %v973_v34  ;;  %v4464_v41 = vpop.f32.mrb[43].mxu0  ;;  %v2012_v35 = vpack.c.bf16 %v2005_v25, %v2004_v24  ;;  %v2006_v39 = vld [vmem:[#allocation2 + $0x7b] sm:$0xff] }
 0x1e5   : > { %4668 = vmatmul.mubr.msk.bf16.gmra.mrb[120].mxu1 %vm813_vm3, %v2009_v42 }
 0x1e6   : > { %4671 = vmatprep.mubr.msk.bf16.mxu1 %vm5020_vm1, %v5019_v1 }
 0x1e8   : > { %v978_v43 = vpop.f32.mrb[16].mxu1 }
 0x1e9   : > { %v1090_v45 = vpop.f32.mrb[44].mxu0  ;;  %v4437_v48 = vpop.f32.mrb[17].mxu1 }
 0x1ea   : > { %v5583_v47 = vadd.f32 %v1090_v45, %v978_v43  ;;  %v4467_v49 = vpop.f32.mrb[45].mxu0  ;;  %v981_v51 = vpop.f32.mrb[18].mxu1  ;;  %v2013_v48 = vpack.c.bf16 %v2006_v39, %v2006_v39 }
 0x1eb   : > { %v1093_v53 = vpop.f32.mrb[46].mxu0  ;;  %v4438_v57 = vpop.f32.mrb[19].mxu1 }
 0x1ec   : > { %v5585_v56 = vadd.f32 %v1093_v53, %v981_v51  ;;  %v4468_v58 = vpop.f32.mrb[47].mxu0 }
 0x1ed   : > { %4672 = vmatmul.mubr.msk.bf16.gmra.mrb[124].mxu1 %vm813_vm3, %v2010_v60 }
 0x1ee   : > { %4675 = vmatprep.mubr.msk.bf16.mxu1 %vm5020_vm1, %v5019_v1 }
 0x1f0   : > { %v986_v61 = vpop.f32.mrb[20].mxu1 }
 0x1f1   : > { %v1098_v62 = vpop.f32.mrb[48].mxu0  ;;  %v4441_v6 = vpop.f32.mrb[21].mxu1 }
 0x1f2   : > { %v5590_v3 = vadd.f32 %v1098_v62, %v986_v61  ;;  %v4471_v8 = vpop.f32.mrb[49].mxu0  ;;  %v989_v9 = vpop.f32.mrb[22].mxu1 }
 0x1f3   : > { %v1101_v10 = vpop.f32.mrb[50].mxu0  ;;  %v4442_v16 = vpop.f32.mrb[23].mxu1 }
 0x1f4   : > { %v5592_v13 = vadd.f32 %v1101_v10, %v989_v9  ;;  %v4472_v15 = vpop.f32.mrb[51].mxu0 }
 0x1f5   : > { %4676 = vmatmul.mubr.msk.bf16.gmra.mrb[128].mxu1 %vm813_vm3, %v2011_v17 }
 0x1f6   : > { %4679 = vmatprep.mubr.msk.bf16.mxu1 %vm5020_vm1, %v5019_v1 }
 0x1f8   : > { %v994_v19 = vpop.f32.mrb[24].mxu1 }
 0x1f9   : > { %v1106_v20 = vpop.f32.mrb[52].mxu0  ;;  %v4445_v28 = vpop.f32.mrb[25].mxu1 }
 0x1fa   : > { %v5597_v27 = vadd.f32 %v1106_v20, %v994_v19  ;;  %v4475_v29 = vpop.f32.mrb[53].mxu0  ;;  %v997_v30 = vpop.f32.mrb[26].mxu1 }
 0x1fb   : > { %v1109_v32 = vpop.f32.mrb[54].mxu0  ;;  %v4446_v33 = vpop.f32.mrb[27].mxu1 }
 0x1fc   : > { %v4476_v34 = vpop.f32.mrb[55].mxu0 }
 0x1fd   : > { %4680 = vmatmul.mubr.msk.bf16.gmra.mrb[132].mxu1 %vm813_vm3, %v2012_v35 }
 0x1fe   : > { %4683 = vmatprep.mubr.msk.bf16.mxu1 %vm5020_vm1, %v5019_v1 }
 0x200   : > { %v1192_v41 = vpop.f32.mrb[28].mxu1 }
 0x201   : > { %v1339_v42 = vpop.f32.mrb[56].mxu0  ;;  %v1246_v43 = vadd.f32 %v1192_v41, %v5552_v44  ;;  %v4481_v45 = vpop.f32.mrb[29].mxu1 }
 0x202   : > { %v4511_v46 = vpop.f32.mrb[57].mxu0  ;;  %v1195_v49 = vpop.f32.mrb[30].mxu1 }
 0x203   : > { %v1342_v51 = vpop.f32.mrb[58].mxu0  ;;  %v5607_v53 = vadd.f32 %v1339_v42, %v1246_v43  ;;  %v1247_v55 = vadd.f32 %v1195_v49, %v5554_v52  ;;  %v4482_v57 = vpop.f32.mrb[31].mxu1 }
 0x204   : > { %v4512_v58 = vpop.f32.mrb[59].mxu0 }
 0x205   : > { %v5610_v60 = vadd.f32 %v1342_v51, %v1247_v55  ;;  %4684 = vmatmul.mubr.msk.bf16.gmra.mrb[136].mxu1 %vm813_vm3, %v2013_v48 }
 0x206   : > { %4719 = vmatprep.mubr.msk.bf16.mxu1 %vm5020_vm1, %v5019_v1 }
 0x208   : > { %v1200_v61 = vpop.f32.mrb[32].mxu1 }
 0x209   : > { %v1347_v44 = vpop.f32.mrb[60].mxu0  ;;  %v1248_v62 = vadd.f32 %v1200_v61, %v5562_v59  ;;  %v4485_v0 = vpop.f32.mrb[33].mxu1 }
 0x20a   : > { %v4515_v6 = vpop.f32.mrb[61].mxu0  ;;  %v1203_v8 = vpop.f32.mrb[34].mxu1 }
 0x20b   : > { %v1350_v9 = vpop.f32.mrb[62].mxu0  ;;  %v5616_v10 = vadd.f32 %v1347_v44, %v1248_v62  ;;  %v1249_v52 = vadd.f32 %v1203_v8, %v5564_v5  ;;  %v4486_v12 = vpop.f32.mrb[35].mxu1 }
 0x20c   : > { %v4516_v16 = vpop.f32.mrb[63].mxu0 }
 0x20d   : > { %v5619_v15 = vadd.f32 %v1350_v9, %v1249_v52 }
 0x210   : > { %v1208_v17 = vpop.f32.mrb[36].mxu1 }
 0x211   : > { %v1355_v19 = vpop.f32.mrb[64].mxu0  ;;  %v1250_v20 = vadd.f32 %v1208_v17, %v5569_v14  ;;  %v4489_v24 = vpop.f32.mrb[37].mxu1 }
 0x212   : > { %v4519_v25 = vpop.f32.mrb[65].mxu0  ;;  %v1211_v28 = vpop.f32.mrb[38].mxu1 }
 0x213   : > { %v1358_v59 = vpop.f32.mrb[66].mxu0  ;;  %v5622_v29 = vadd.f32 %v1355_v19, %v1250_v20  ;;  %v1251_v30 = vadd.f32 %v1211_v28, %v5571_v21  ;;  %v4490_v32 = vpop.f32.mrb[39].mxu1 }
 0x214   : > { %v4520_v33 = vpop.f32.mrb[67].mxu0 }
 0x215   : > { %v5625_v34 = vadd.f32 %v1358_v59, %v1251_v30 }
 0x218   : > { %v1216_v5 = vpop.f32.mrb[40].mxu1 }
 0x219   : > { %v1363_v35 = vpop.f32.mrb[68].mxu0  ;;  %v1252_v37 = vadd.f32 %v1216_v5, %v5576_v31  ;;  %v4493_v39 = vpop.f32.mrb[41].mxu1 }
 0x21a   : > { %v4523_v41 = vpop.f32.mrb[69].mxu0  ;;  %v1219_v42 = vpop.f32.mrb[42].mxu1 }
 0x21b   : > { %v1366_v14 = vpop.f32.mrb[70].mxu0  ;;  %v5628_v43 = vadd.f32 %v1363_v35, %v1252_v37  ;;  %v1253_v45 = vadd.f32 %v1219_v42, %v5578_v38  ;;  %v4494_v46 = vpop.f32.mrb[43].mxu1 }
 0x21c   : > { %v4524_v48 = vpop.f32.mrb[71].mxu0 }
 0x21d   : > { %v5631_v49 = vadd.f32 %v1366_v14, %v1253_v45 }
 0x220   : > { %v1224_v21 = vpop.f32.mrb[44].mxu1 }
 0x221   : > { %v1371_v51 = vpop.f32.mrb[72].mxu0  ;;  %v1254_v55 = vadd.f32 %v1224_v21, %v5583_v47  ;;  %v4497_v57 = vpop.f32.mrb[45].mxu1 }
 0x222   : > { %v4527_v58 = vpop.f32.mrb[73].mxu0  ;;  %v1227_v61 = vpop.f32.mrb[46].mxu1 }
 0x223   : > { %v1374_v31 = vpop.f32.mrb[74].mxu0  ;;  %v5634_v44 = vadd.f32 %v1371_v51, %v1254_v55  ;;  %v1255_v62 = vadd.f32 %v1227_v61, %v5585_v56  ;;  %v4498_v0 = vpop.f32.mrb[47].mxu1 }
 0x224   : > { %v4528_v6 = vpop.f32.mrb[75].mxu0 }
 0x225   : > { %v5637_v8 = vadd.f32 %v1374_v31, %v1255_v62 }
 0x228   : > { %v1232_v38 = vpop.f32.mrb[48].mxu1 }
 0x229   : > { %v1379_v9 = vpop.f32.mrb[76].mxu0  ;;  %v1256_v52 = vadd.f32 %v1232_v38, %v5590_v3  ;;  %v4501_v12 = vpop.f32.mrb[49].mxu1 }
 0x22a   : > { %v4531_v16 = vpop.f32.mrb[77].mxu0  ;;  %v1235_v17 = vpop.f32.mrb[50].mxu1 }
 0x22b   : > { %v1382_v47 = vpop.f32.mrb[78].mxu0  ;;  %v5640_v19 = vadd.f32 %v1379_v9, %v1256_v52  ;;  %v1257_v20 = vadd.f32 %v1235_v17, %v5592_v13  ;;  %v4502_v24 = vpop.f32.mrb[51].mxu1 }
 0x22c   : > { %v4532_v25 = vpop.f32.mrb[79].mxu0 }
 0x22d   : > { %v5643_v28 = vadd.f32 %v1382_v47, %v1257_v20 }
 0x230   : > { %v1240_v56 = vpop.f32.mrb[52].mxu1 }
 0x231   : > { %v1387_v59 = vpop.f32.mrb[80].mxu0  ;;  %v1258_v30 = vadd.f32 %v1240_v56, %v5597_v27  ;;  %v4505_v32 = vpop.f32.mrb[53].mxu1 }
 0x232   : > { %v4535_v33 = vpop.f32.mrb[81].mxu0  ;;  %v1243_v5 = vpop.f32.mrb[54].mxu1 }
 0x233   : > { %v1390_v3 = vpop.f32.mrb[82].mxu0  ;;  %v5646_v35 = vadd.f32 %v1387_v59, %v1258_v30  ;;  %v4506_v37 = vpop.f32.mrb[55].mxu1 }
 0x234   : > { %v4536_v39 = vpop.f32.mrb[83].mxu0 }
 0x238   : > { %v1486_v13 = vpop.f32.mrb[56].mxu1 }
 0x239   : > { %v1633_v27 = vpop.f32.mrb[84].mxu0  ;;  %v1540_v41 = vadd.f32 %v1486_v13, %v5607_v53  ;;  %v4541_v42 = vpop.f32.mrb[57].mxu1 }
 0x23a   : > { %v4571_v14 = vpop.f32.mrb[85].mxu0  ;;  %v1489_v45 = vpop.f32.mrb[58].mxu1 }
 0x23b   : > { %v1636_v46 = vpop.f32.mrb[86].mxu0  ;;  %v5683_v48 = vadd.f32 %v1633_v27, %v1540_v41  ;;  %v1541_v21 = vadd.f32 %v1489_v45, %v5610_v60  ;;  %v4542_v51 = vpop.f32.mrb[59].mxu1 }
 0x23c   : > { %v4572_v55 = vpop.f32.mrb[87].mxu0 }
 0x23d   : > { %v5686_v57 = vadd.f32 %v1636_v46, %v1541_v21 }
 0x240   : > { %v1494_v58 = vpop.f32.mrb[60].mxu1 }
 0x241   : > { %v1641_v61 = vpop.f32.mrb[88].mxu0  ;;  %v1542_v31 = vadd.f32 %v1494_v58, %v5616_v10  ;;  %v4545_v62 = vpop.f32.mrb[61].mxu1 }
 0x242   : > { %v4575_v0 = vpop.f32.mrb[89].mxu0  ;;  %v1497_v6 = vpop.f32.mrb[62].mxu1 }
 0x243   : > { %v1644_v53 = vpop.f32.mrb[90].mxu0  ;;  %v5689_v38 = vadd.f32 %v1641_v61, %v1542_v31  ;;  %v1543_v9 = vadd.f32 %v1497_v6, %v5619_v15  ;;  %v4546_v52 = vpop.f32.mrb[63].mxu1 }
 0x244   : > { %v4576_v12 = vpop.f32.mrb[91].mxu0 }
 0x245   : > { %v5692_v16 = vadd.f32 %v1644_v53, %v1543_v9 }
 0x248   : > { %v1502_v60 = vpop.f32.mrb[64].mxu1 }
 0x249   : > { %v1649_v17 = vpop.f32.mrb[92].mxu0  ;;  %v1544_v47 = vadd.f32 %v1502_v60, %v5622_v29  ;;  %v4549_v20 = vpop.f32.mrb[65].mxu1 }
 0x24a   : > { %v4579_v24 = vpop.f32.mrb[93].mxu0  ;;  %v1505_v25 = vpop.f32.mrb[66].mxu1 }
 0x24b   : > { %v1652_v10 = vpop.f32.mrb[94].mxu0  ;;  %v5695_v56 = vadd.f32 %v1649_v17, %v1544_v47  ;;  %v1545_v59 = vadd.f32 %v1505_v25, %v5625_v34  ;;  %v4550_v30 = vpop.f32.mrb[67].mxu1 }
 0x24c   : > { %v4580_v32 = vpop.f32.mrb[95].mxu0 }
 0x24d   : > { %v5698_v33 = vadd.f32 %v1652_v10, %v1545_v59 }
 0x250   : > { %v1510_v15 = vpop.f32.mrb[68].mxu1 }
 0x251   : > { %v1657_v5 = vpop.f32.mrb[96].mxu0  ;;  %v1546_v3 = vadd.f32 %v1510_v15, %v5628_v43  ;;  %v4553_v37 = vpop.f32.mrb[69].mxu1 }
 0x252   : > { %v4583_v39 = vpop.f32.mrb[97].mxu0  ;;  %v1513_v13 = vpop.f32.mrb[70].mxu1 }
 0x253   : > { %v1660_v29 = vpop.f32.mrb[98].mxu0  ;;  %v5701_v27 = vadd.f32 %v1657_v5, %v1546_v3  ;;  %v1547_v41 = vadd.f32 %v1513_v13, %v5631_v49  ;;  %v4554_v42 = vpop.f32.mrb[71].mxu1 }
 0x254   : > { %v4584_v14 = vpop.f32.mrb[99].mxu0 }
 0x255   : > { %v5704_v45 = vadd.f32 %v1660_v29, %v1547_v41 }
 0x258   : > { %v1518_v34 = vpop.f32.mrb[72].mxu1 }
 0x259   : > { %v1665_v46 = vpop.f32.mrb[100].mxu0  ;;  %v1548_v21 = vadd.f32 %v1518_v34, %v5634_v44  ;;  %v4557_v51 = vpop.f32.mrb[73].mxu1 }
 0x25a   : > { %v4587_v55 = vpop.f32.mrb[101].mxu0  ;;  %v1521_v58 = vpop.f32.mrb[74].mxu1 }
 0x25b   : > { %v1668_v43 = vpop.f32.mrb[102].mxu0  ;;  %v5707_v61 = vadd.f32 %v1665_v46, %v1548_v21  ;;  %v1549_v31 = vadd.f32 %v1521_v58, %v5637_v8  ;;  %v4558_v62 = vpop.f32.mrb[75].mxu1  ;;  %v5002_v8 = vld [vmem:[%s6412_s11 + $0x8] sm:$0xff]  }
 0x25c   : > { %v4588_v0 = vpop.f32.mrb[103].mxu0  ;;  %4718 = vmatpush3.bf16.msra.mxu1 %v5002_v8 }
 0x25d   : > { %v5710_v6 = vadd.f32 %v1668_v43, %v1549_v31  ;;  %4777 = vmatprep.subr.bf16.mxu1 %v5019_v1 }
 0x260   : > { %v1526_v49 = vpop.f32.mrb[76].mxu1 }
 0x261   : > { %v1673_v53 = vpop.f32.mrb[104].mxu0  ;;  %v1550_v9 = vadd.f32 %v1526_v49, %v5640_v19  ;;  %v4561_v52 = vpop.f32.mrb[77].mxu1 }
 0x262   : > { %v4591_v12 = vpop.f32.mrb[105].mxu0  ;;  %v1529_v60 = vpop.f32.mrb[78].mxu1 }
 0x263   : > { %v1676_v44 = vpop.f32.mrb[106].mxu0  ;;  %v5713_v17 = vadd.f32 %v1673_v53, %v1550_v9  ;;  %v1551_v47 = vadd.f32 %v1529_v60, %v5643_v28  ;;  %v4562_v20 = vpop.f32.mrb[79].mxu1 }
 0x264   : > { %v4592_v24 = vpop.f32.mrb[107].mxu0 }
 0x265   : > { %v5716_v25 = vadd.f32 %v1676_v44, %v1551_v47 }
 0x268   : > { %v1534_v10 = vpop.f32.mrb[80].mxu1 }
 0x269   : > { %v1681_v59 = vpop.f32.mrb[108].mxu0  ;;  %v1552_v19 = vadd.f32 %v1534_v10, %v5646_v35  ;;  %v4565_v30 = vpop.f32.mrb[81].mxu1 }
 0x26a   : > { %v4595_v32 = vpop.f32.mrb[109].mxu0  ;;  %v1537_v15 = vpop.f32.mrb[82].mxu1 }
 0x26b   : > { %v1684_v5 = vpop.f32.mrb[110].mxu0  ;;  %v5723_v28 = vadd.f32 %v1681_v59, %v1552_v19  ;;  %v4566_v3 = vpop.f32.mrb[83].mxu1 }
 0x26c   : > { %v4596_v37 = vpop.f32.mrb[111].mxu0 }
 0x270   : > { %v1780_v39 = vpop.f32.mrb[84].mxu1 }
 0x271   : > { %v1927_v13 = vpop.f32.mrb[112].mxu0  ;;  %v1834_v29 = vadd.f32 %v1780_v39, %v5683_v48  ;;  %v4601_v41 = vpop.f32.mrb[85].mxu1 }
 0x272   : > { %v4631_v42 = vpop.f32.mrb[113].mxu0  ;;  %v1783_v14 = vpop.f32.mrb[86].mxu1 }
 0x273   : > { %v1930_v34 = vpop.f32.mrb[114].mxu0  ;;  %v5726_v46 = vadd.f32 %v1927_v13, %v1834_v29  ;;  %v1835_v35 = vadd.f32 %v1783_v14, %v5686_v57  ;;  %v4602_v21 = vpop.f32.mrb[87].mxu1 }
 0x274   : > { %v4632_v51 = vpop.f32.mrb[115].mxu0 }
 0x275   : > { %v5729_v55 = vadd.f32 %v1930_v34, %v1835_v35 }
 0x278   : > { %v1788_v58 = vpop.f32.mrb[88].mxu1 }
 0x279   : > { %v1935_v43 = vpop.f32.mrb[116].mxu0  ;;  %v1836_v31 = vadd.f32 %v1788_v58, %v5689_v38  ;;  %v4605_v62 = vpop.f32.mrb[89].mxu1 }
 0x27a   : > { %v4635_v0 = vpop.f32.mrb[117].mxu0  ;;  %v1791_v49 = vpop.f32.mrb[90].mxu1 }
 0x27b   : > { %v1938_v48 = vpop.f32.mrb[118].mxu0  ;;  %v5732_v53 = vadd.f32 %v1935_v43, %v1836_v31  ;;  %v1837_v9 = vadd.f32 %v1791_v49, %v5692_v16  ;;  %v4606_v52 = vpop.f32.mrb[91].mxu1 }
 0x27c   : > { %v4636_v12 = vpop.f32.mrb[119].mxu0 }
 0x27d   : > { %v5735_v60 = vadd.f32 %v1938_v48, %v1837_v9 }
 0x280   : > { %v1796_v57 = vpop.f32.mrb[92].mxu1 }
 0x281   : > { %v1943_v44 = vpop.f32.mrb[120].mxu0  ;;  %v1838_v47 = vadd.f32 %v1796_v57, %v5695_v56  ;;  %v4609_v20 = vpop.f32.mrb[93].mxu1 }
 0x282   : > { %v4639_v24 = vpop.f32.mrb[121].mxu0  ;;  %v1799_v8 = vpop.f32.mrb[94].mxu1 }
 0x283   : > { %v1946_v38 = vpop.f32.mrb[122].mxu0  ;;  %v5738_v10 = vadd.f32 %v1943_v44, %v1838_v47  ;;  %v1839_v59 = vadd.f32 %v1799_v8, %v5698_v33  ;;  %v4610_v19 = vpop.f32.mrb[95].mxu1 }
 0x284   : > { %v4640_v30 = vpop.f32.mrb[123].mxu0 }
 0x285   : > { %v5741_v32 = vadd.f32 %v1946_v38, %v1839_v59 }
 0x288   : > { %v1804_v16 = vpop.f32.mrb[96].mxu1 }
 0x289   : > { %v1951_v15 = vpop.f32.mrb[124].mxu0  ;;  %v1840_v5 = vadd.f32 %v1804_v16, %v5701_v27  ;;  %v4613_v3 = vpop.f32.mrb[97].mxu1 }
 0x28a   : > { %v4643_v37 = vpop.f32.mrb[125].mxu0  ;;  %v1807_v39 = vpop.f32.mrb[98].mxu1 }
 0x28b   : > { %v1954_v56 = vpop.f32.mrb[126].mxu0  ;;  %v5744_v13 = vadd.f32 %v1951_v15, %v1840_v5  ;;  %v1841_v29 = vadd.f32 %v1807_v39, %v5704_v45  ;;  %v4614_v41 = vpop.f32.mrb[99].mxu1 }
 0x28c   : > { %v4644_v42 = vpop.f32.mrb[127].mxu0 }
 0x28d   : > { %v5747_v14 = vadd.f32 %v1954_v56, %v1841_v29 }
 0x290   : > { %v1812_v33 = vpop.f32.mrb[100].mxu1 }
 0x291   : > { %v1959_v34 = vpop.f32.mrb[128].mxu0  ;;  %v1842_v35 = vadd.f32 %v1812_v33, %v5707_v61  ;;  %v4617_v21 = vpop.f32.mrb[101].mxu1 }
 0x292   : > { %v4647_v51 = vpop.f32.mrb[129].mxu0  ;;  %v1815_v58 = vpop.f32.mrb[102].mxu1 }
 0x293   : > { %v1962_v27 = vpop.f32.mrb[130].mxu0  ;;  %v5750_v43 = vadd.f32 %v1959_v34, %v1842_v35  ;;  %v1843_v31 = vadd.f32 %v1815_v58, %v5710_v6  ;;  %v4618_v62 = vpop.f32.mrb[103].mxu1 }
 0x294   : > { %v4648_v0 = vpop.f32.mrb[131].mxu0 }
 0x295   : > { %v5753_v49 = vadd.f32 %v1962_v27, %v1843_v31 }
 0x298   : > { %v1820_v45 = vpop.f32.mrb[104].mxu1 }
 0x299   : > { %v1967_v48 = vpop.f32.mrb[132].mxu0  ;;  %v1844_v9 = vadd.f32 %v1820_v45, %v5713_v17  ;;  %v4621_v52 = vpop.f32.mrb[105].mxu1 }
 0x29a   : > { %v4651_v12 = vpop.f32.mrb[133].mxu0  ;;  %v1823_v57 = vpop.f32.mrb[106].mxu1 }
 0x29b   : > { %v1970_v61 = vpop.f32.mrb[134].mxu0  ;;  %v5756_v44 = vadd.f32 %v1967_v48, %v1844_v9  ;;  %v1845_v47 = vadd.f32 %v1823_v57, %v5716_v25  ;;  %v4622_v20 = vpop.f32.mrb[107].mxu1  ;;  %v5767_v25 = vld [vmem:[%s6407_s6] ss:$0 sm:$0xff] }
 0x29c   : > { %v4652_v24 = vpop.f32.mrb[135].mxu0 }
 0x29d   : > { %v5759_v8 = vadd.f32 %v1970_v61, %v1845_v47 }
 0x2a0   : > { %v1828_v6 = vpop.f32.mrb[108].mxu1 }
 0x2a1   : > { %v1975_v38 = vpop.f32.mrb[136].mxu0  ;;  %v1846_v59 = vadd.f32 %v1828_v6, %v5723_v28  ;;  %v4625_v19 = vpop.f32.mrb[109].mxu1  ;;  %v5773_v28 = vld [vmem:[%s6408_s7] ss:$0 sm:$0xff] }
 0x2a2   : > { %v4655_v30 = vpop.f32.mrb[137].mxu0  ;;  %v1831_v16 = vpop.f32.mrb[110].mxu1 }
 0x2a3   : > { %v1978_v17 = vpop.f32.mrb[138].mxu0  ;;  %v5762_v15 = vadd.f32 %v1975_v38, %v1846_v59  ;;  %v4626_v5 = vpop.f32.mrb[111].mxu1 }
 0x2a4   : > { %v4656_v3 = vpop.f32.mrb[139].mxu0 }
 0x2a8   : > { %v2074_v37 = vpop.f32.mrb[112].mxu1 }
 0x2a9   : > { %v2128_v39 = vadd.f32 %v2074_v37, %v5726_v46  ;;  %v4661_v56 = vpop.f32.mrb[113].mxu1 }
 0x2aa   : > { %v2077_v29 = vpop.f32.mrb[114].mxu1 }
 0x2ab   : > { %v2148_v41 = vadd.f32 %v5767_v25, %v2128_v39  ;;  %v2129_v42 = vadd.f32 %v2077_v29, %v5729_v55  ;;  %v4662_v33 = vpop.f32.mrb[115].mxu1 }
 0x2ad   : > { %v2168_v34 = vmul.f32 %v5773_v28, %v2148_v41  ;;  %v2149_v35 = vadd.f32 %v5767_v25, %v2129_v42 }
 0x2af   : > { %v2169_v21 = vmul.f32 %v5773_v28, %v2149_v35  ;;  %v2181_v46 = vmax.f32 %v2168_v34, 0.0 }
 0x2b0   : > { %v2082_v51 = vpop.f32.mrb[116].mxu1 }
 0x2b1   : > { %v2182_v58 = vmax.f32 %v2169_v21, 0.0  ;;  %v2130_v27 = vadd.f32 %v2082_v51, %v5732_v53  ;;  %v4665_v31 = vpop.f32.mrb[117].mxu1 }
 0x2b2   : > { %v2085_v62 = vpop.f32.mrb[118].mxu1 }
 0x2b3   : > { %v2194_v0 = vpack.c.bf16 %v2182_v58, %v2181_v46  ;;  %v2150_v45 = vadd.f32 %v5767_v25, %v2130_v27  ;;  %v2131_v48 = vadd.f32 %v2085_v62, %v5735_v60  ;;  %v4666_v55 = vpop.f32.mrb[119].mxu1 }
 0x2b5   : > { %v2170_v9 = vmul.f32 %v5773_v28, %v2150_v45  ;;  %v2151_v52 = vadd.f32 %v5767_v25, %v2131_v48  ;;  %4690 = vmatmul.mubr.msk.bf16.vlgmr.msra.gmra.mrb[140].mxu0 %vm2216_vm5, %v2194_v0 }
 0x2b6   : > { %4693 = vmatprep.mubr.msk.bf16.mxu0 %vm5020_vm1, %v5019_v1 }
 0x2b7   : > { %v2171_v12 = vmul.f32 %v5773_v28, %v2151_v52  ;;  %v2183_v57 = vmax.f32 %v2170_v9, 0.0 }
 0x2b8   : > { %v2090_v53 = vpop.f32.mrb[120].mxu1 }
 0x2b9   : > { %v2184_v61 = vmax.f32 %v2171_v12, 0.0  ;;  %v2132_v47 = vadd.f32 %v2090_v53, %v5738_v10  ;;  %v4669_v20 = vpop.f32.mrb[121].mxu1 }
 0x2ba   : > { %v2093_v24 = vpop.f32.mrb[122].mxu1 }
 0x2bb   : > { %v2195_v60 = vpack.c.bf16 %v2184_v61, %v2183_v57  ;;  %v2152_v6 = vadd.f32 %v5767_v25, %v2132_v47  ;;  %v2133_v38 = vadd.f32 %v2093_v24, %v5741_v32  ;;  %v4670_v59 = vpop.f32.mrb[123].mxu1 }
 0x2bd   : > { %v2172_v19 = vmul.f32 %v5773_v28, %v2152_v6  ;;  %v2153_v30 = vadd.f32 %v5767_v25, %v2133_v38  ;;  %4694 = vmatmul.mubr.msk.bf16.gmra.mrb[144].mxu0 %vm2216_vm5, %v2195_v60 }
 0x2be   : > { %4697 = vmatprep.mubr.msk.bf16.mxu0 %vm5020_vm1, %v5019_v1 }
 0x2bf   : > { %v2173_v16 = vmul.f32 %v5773_v28, %v2153_v30  ;;  %v2185_v17 = vmax.f32 %v2172_v19, 0.0 }
 0x2c0   : > { %v2098_v10 = vpop.f32.mrb[124].mxu1 }
 0x2c1   : > { %v2186_v5 = vmax.f32 %v2173_v16, 0.0  ;;  %v2134_v3 = vadd.f32 %v2098_v10, %v5744_v13  ;;  %v4673_v37 = vpop.f32.mrb[125].mxu1 }
 0x2c2   : > { %v2101_v39 = vpop.f32.mrb[126].mxu1  ;;  %v5846_v37 = vld [vmem:[%s6411_s10] ss:$0 sm:$0xff] }
 0x2c3   : > { %v2196_v32 = vpack.c.bf16 %v2186_v5, %v2185_v17  ;;  %v2154_v56 = vadd.f32 %v5767_v25, %v2134_v3  ;;  %v2135_v29 = vadd.f32 %v2101_v39, %v5747_v14  ;;  %v4674_v41 = vpop.f32.mrb[127].mxu1 }
 0x2c5   : > { %v2174_v42 = vmul.f32 %v5773_v28, %v2154_v56  ;;  %v2155_v33 = vadd.f32 %v5767_v25, %v2135_v29  ;;  %4698 = vmatmul.mubr.msk.bf16.gmra.mrb[148].mxu0 %vm2216_vm5, %v2196_v32 }
 0x2c6   : > { %4701 = vmatprep.mubr.msk.bf16.mxu0 %vm5020_vm1, %v5019_v1 }
 0x2c7   : > { %v2175_v34 = vmul.f32 %v5773_v28, %v2155_v33  ;;  %v2187_v35 = vmax.f32 %v2174_v42, 0.0 }
 0x2c8   : > { %v2106_v13 = vpop.f32.mrb[128].mxu1 }
 0x2c9   : > { %v2188_v21 = vmax.f32 %v2175_v34, 0.0  ;;  %v2136_v51 = vadd.f32 %v2106_v13, %v5750_v43  ;;  %v4677_v46 = vpop.f32.mrb[129].mxu1  ;;  %v2375_v13 = vpop.permute.xlu1 %2374 }
 0x2ca   : > { %v2109_v58 = vpop.f32.mrb[130].mxu1 }
 0x2cb   : > { %v2197_v14 = vpack.c.bf16 %v2188_v21, %v2187_v35  ;;  %v2156_v27 = vadd.f32 %v5767_v25, %v2136_v51  ;;  %v2137_v31 = vadd.f32 %v2109_v58, %v5753_v49  ;;  %v4678_v62 = vpop.f32.mrb[131].mxu1  ;;  %v2380_v51 = vpop.permute.xlu0 %2379 }
 0x2cd   : > { %v2176_v0 = vmul.f32 %v5773_v28, %v2156_v27  ;;  %v2157_v45 = vadd.f32 %v5767_v25, %v2137_v31  ;;  %4702 = vmatmul.mubr.msk.bf16.gmra.mrb[152].mxu0 %vm2216_vm5, %v2197_v14 }
 0x2ce   : > { %4705 = vmatprep.mubr.msk.bf16.mxu0 %vm5020_vm1, %v5019_v1 }
 0x2cf   : > { %v2177_v48 = vmul.f32 %v5773_v28, %v2157_v45  ;;  %v2189_v55 = vmax.f32 %v2176_v0, 0.0 }
 0x2d0   : > { %v2114_v43 = vpop.f32.mrb[132].mxu1 }
 0x2d1   : > { %v2190_v9 = vmax.f32 %v2177_v48, 0.0  ;;  %v2138_v52 = vadd.f32 %v2114_v43, %v5756_v44  ;;  %v4681_v12 = vpop.f32.mrb[133].mxu1 }
 0x2d2   : > { %v2117_v53 = vpop.f32.mrb[134].mxu1 }
 0x2d3   : > { %v2198_v49 = vpack.c.bf16 %v2190_v9, %v2189_v55  ;;  %v2158_v57 = vadd.f32 %v5767_v25, %v2138_v52  ;;  %v2139_v61 = vadd.f32 %v2117_v53, %v5759_v8  ;;  %v4682_v47 = vpop.f32.mrb[135].mxu1  ;;  %v2385_v55 = vpop.permute.xlu1 %2384  ;;  %v2502_v9 = vld [vmem:[#allocation3 + $0x6] sm:$0xff] }
 0x2d4   : > { %v2480_v52 = vld [vmem:[#allocation3 + $0x5] sm:$0xff] }
 0x2d5   : > { %v2178_v20 = vmul.f32 %v5773_v28, %v2158_v57  ;;  %v2159_v24 = vadd.f32 %v5767_v25, %v2139_v61  ;;  %4706 = vmatmul.mubr.msk.bf16.gmra.mrb[156].mxu0 %vm2216_vm5, %v2198_v49  ;;  %v2390_v49 = vpop.permute.xlu0 %2389 }
 0x2d6   : > { %4709 = vmatprep.mubr.msk.bf16.mxu0 %vm5020_vm1, %v5019_v1 }
 0x2d7   : > { %v2179_v60 = vmul.f32 %v5773_v28, %v2159_v24  ;;  %v2191_v6 = vmax.f32 %v2178_v20, 0.0  ;;  %v5004_v20 = vld [vmem:[%s6412_s11 + $0x10] sm:$0xff]  }
 0x2d8   : > { %v2122_v44 = vpop.f32.mrb[136].mxu1 }
 0x2d9   : > { %v2192_v38 = vmax.f32 %v2179_v60, 0.0  ;;  %v2140_v59 = vadd.f32 %v2122_v44, %v5762_v15  ;;  %v4685_v19 = vpop.f32.mrb[137].mxu1  ;;  %v5003_v15 = vld [vmem:[%s6412_s11] sm:$0xff]  }
 0x2da   : > { %v2125_v30 = vpop.f32.mrb[138].mxu1  ;;  %4748 = vmatpush3.bf16.msra.mxu0 %v5003_v15 }
 0x2db   : > { %v2199_v8 = vpack.c.bf16 %v2192_v38, %v2191_v6  ;;  %v2160_v16 = vadd.f32 %v5767_v25, %v2140_v59  ;;  %v4686_v10 = vpop.f32.mrb[139].mxu1  ;;  %4807 = vmatprep.subr.bf16.mxu0 %v5019_v1  ;;  %v5841_v25 = vld [vmem:[%s6410_s9] ss:$0 sm:$0xff]  ;;  %v5005_v59 = vld [vmem:[%s6412_s11 + $0x18] sm:$0xff]  }
 0x2dd   : > { %v2180_v17 = vmul.f32 %v5773_v28, %v2160_v16  ;;  %4710 = vmatmul.mubr.msk.bf16.gmra.mrb[160].mxu0 %vm2216_vm5, %v2199_v8 }
 0x2de   : > { %4713 = vmatprep.mubr.msk.bf16.mxu0 %vm5020_vm1, %v5019_v1 }
 0x2df   : > { %v2193_v5 = vmax.f32 %v2180_v17, 0.0 }
 0x2e1   : > { %v2200_v3 = vpack.c.bf16 %v2193_v5, %v2193_v5  ;;  %v2395_v5 = vpop.permute.xlu1 %2394 }
 0x2e5   : > { %4714 = vmatmul.mubr.msk.bf16.gmra.mrb[164].mxu0 %vm2216_vm5, %v2200_v3 }
 0x2e6   : > { %4749 = vmatprep.mubr.msk.bf16.mxu0 %vm5020_vm1, %v5019_v1 }
 0x388   : > { %v2272_v28 = vpop.f32.mrb[140].mxu0 }
 0x389   : > { %v2273_v39 = vadd.f32 %v5841_v25, %v2272_v28  ;;  %v4691_v32 = vpop.f32.mrb[141].mxu0 }
 0x38a   : > { %v2275_v56 = vpop.f32.mrb[142].mxu0 }
 0x38b   : > { %v2333_v29 = vmul.f32 %v5846_v37, %v2273_v39  ;;  %v2276_v41 = vadd.f32 %v5841_v25, %v2275_v56  ;;  %v4692_v42 = vpop.f32.mrb[143].mxu0  ;;  %v2400_v39 = vpop.permute.xlu0 %2399 }
 0x38d   : > { %v2346_v33 = vmax.f32 %v2333_v29, 0.0  ;;  %v2334_v34 = vmul.f32 %v5846_v37, %v2276_v41 }
 0x38f   : > { %v2437_v35 = vmul.f32 %v2375_v13, %v2346_v33  ;;  %v2347_v21 = vmax.f32 %v2334_v34, 0.0 }
 0x390   : > { %v2280_v46 = vpop.f32.mrb[144].mxu0 }
 0x391   : > { %2467 = vst.msk [vmem:[#allocation3 + $0x10] sm:$0xff] %vm2216_vm5, %v2437_v35  ;;  %v2438_v58 = vmul.f32 %v2380_v51, %v2347_v21  ;;  %v2281_v14 = vadd.f32 %v5841_v25, %v2280_v46  ;;  %v4695_v27 = vpop.f32.mrb[145].mxu0 }
 0x392   : > { %v2283_v31 = vpop.f32.mrb[146].mxu0 }
 0x393   : > { %2468 = vst.msk [vmem:[#allocation3 + $0x18] sm:$0xff] %vm2216_vm5, %v2438_v58  ;;  %v2335_v62 = vmul.f32 %v5846_v37, %v2281_v14  ;;  %v2284_v0 = vadd.f32 %v5841_v25, %v2283_v31  ;;  %v4696_v45 = vpop.f32.mrb[147].mxu0  ;;  %v2405_v31 = vpop.permute.xlu1 %2404 }
 0x395   : > { %v2348_v48 = vmax.f32 %v2335_v62, 0.0  ;;  %v2336_v43 = vmul.f32 %v5846_v37, %v2284_v0 }
 0x397   : > { %v2439_v12 = vmul.f32 %v2385_v55, %v2348_v48  ;;  %v2349_v53 = vmax.f32 %v2336_v43, 0.0  ;;  %v2410_v48 = vpop.permute.xlu0 %2409 }
 0x398   : > { %v2288_v57 = vpop.f32.mrb[148].mxu0  ;;  %v2503_v61 = vld [vmem:[#allocation3 + $0xe] sm:$0xff] }
 0x399   : > { %v2481_v47 = vld [vmem:[#allocation3 + $0xd] sm:$0xff]  ;;  %2469 = vst.msk [vmem:[#allocation3 + $0x20] sm:$0xff] %vm2216_vm5, %v2439_v12  ;;  %v2440_v24 = vmul.f32 %v2390_v49, %v2349_v53  ;;  %v2289_v60 = vadd.f32 %v5841_v25, %v2288_v57  ;;  %v4699_v44 = vpop.f32.mrb[149].mxu0  ;;  %v2515_v6 = vpack.c.bf16 %v2503_v61, %v2502_v9 }
 0x39a   : > { %v2493_v38 = vpack.c.bf16 %v2481_v47, %v2480_v52  ;;  %v2291_v19 = vpop.f32.mrb[150].mxu0  ;;  %v2504_v28 = vld [vmem:[#allocation3 + $0x16] sm:$0xff] }
 0x39b   : > { %2470 = vst.msk [vmem:[#allocation3 + $0x28] sm:$0xff] %vm2216_vm5, %v2440_v24  ;;  %v2337_v30 = vmul.f32 %v5846_v37, %v2289_v60  ;;  %v2292_v8 = vadd.f32 %v5841_v25, %v2291_v19  ;;  %v4700_v16 = vpop.f32.mrb[151].mxu0  ;;  %4720 = vmatmul.mubr.msk.bf16.vlgmr.msra.gmra.mrb[140].mxu1 %vm2216_vm5, %v2515_v6  ;;  %v2482_v29 = vld [vmem:[#allocation3 + $0x15] sm:$0xff] }
 0x39c   : > { %4750 = vmatmul.mubr.msk.bf16.vlgmr.msra.gmra.mrb[168].mxu0 %vm2216_vm5, %v2493_v38  ;;  %4778 = vmatpush3.bf16.msra.mxu1 %v5004_v20  ;;  %v2415_v38 = vpop.permute.xlu1 %2414 }
 0x39d   : > { %4723 = vmatprep.mubr.msk.bf16.mxu1 %vm5020_vm1, %v5019_v1  ;;  %v2350_v10 = vmax.f32 %v2337_v30, 0.0  ;;  %v2338_v17 = vmul.f32 %v5846_v37, %v2292_v8  ;;  %4753 = vmatprep.mubr.msk.bf16.mxu0 %vm5020_vm1, %v5019_v1  ;;  %v2420_v8 = vpop.permute.xlu0 %2419 }
 0x39e   : > { %4808 = vmatpush3.bf16.msra.mxu0 %v5005_v59  ;;  %4837 = vmatprep.subr.bf16.mxu1 %v5019_v1 }
 0x39f   : > { %4867 = vmatprep.subr.bf16.mxu0 %v5019_v1  ;;  %v2441_v3 = vmul.f32 %v2395_v5, %v2350_v10  ;;  %v2351_v15 = vmax.f32 %v2338_v17, 0.0 }
 0x3a0   : > { %v2296_v32 = vpop.f32.mrb[152].mxu0  ;;  %v2505_v56 = vld [vmem:[#allocation3 + $0x1e] sm:$0xff] }
 0x3a1   : > { %v2483_v41 = vld [vmem:[#allocation3 + $0x1d] sm:$0xff]  ;;  %2471 = vst.msk [vmem:[#allocation3 + $0x30] sm:$0xff] %vm2216_vm5, %v2441_v3  ;;  %v2442_v42 = vmul.f32 %v2400_v39, %v2351_v15  ;;  %v2297_v33 = vadd.f32 %v5841_v25, %v2296_v32  ;;  %v4703_v34 = vpop.f32.mrb[153].mxu0  ;;  %v2516_v13 = vpack.c.bf16 %v2505_v56, %v2504_v28 }
 0x3a2   : > { %v2494_v35 = vpack.c.bf16 %v2483_v41, %v2482_v29  ;;  %v2299_v21 = vpop.f32.mrb[154].mxu0  ;;  %v2506_v45 = vld [vmem:[#allocation3 + $0x26] sm:$0xff] }
 0x3a3   : > { %2472 = vst.msk [vmem:[#allocation3 + $0x38] sm:$0xff] %vm2216_vm5, %v2442_v42  ;;  %v2339_v51 = vmul.f32 %v5846_v37, %v2297_v33  ;;  %v2300_v46 = vadd.f32 %v5841_v25, %v2299_v21  ;;  %v4704_v58 = vpop.f32.mrb[155].mxu0  ;;  %4724 = vmatmul.mubr.msk.bf16.gmra.mrb[144].mxu1 %vm2216_vm5, %v2516_v13  ;;  %v2484_v9 = vld [vmem:[#allocation3 + $0x25] sm:$0xff]  ;;  %v2425_v13 = vpop.permute.xlu1 %2424 }
 0x3a4   : > { %4754 = vmatmul.mubr.msk.bf16.gmra.mrb[172].mxu0 %vm2216_vm5, %v2494_v35  ;;  %4727 = vmatprep.mubr.msk.bf16.mxu1 %vm5020_vm1, %v5019_v1 }
 0x3a5   : > { %4757 = vmatprep.mubr.msk.bf16.mxu0 %vm5020_vm1, %v5019_v1  ;;  %v2352_v14 = vmax.f32 %v2339_v51, 0.0  ;;  %v2340_v27 = vmul.f32 %v5846_v37, %v2300_v46  ;;  %v2430_v46 = vpop.permute.xlu0 %2429 }
 0x3a7   : > { %v2443_v62 = vmul.f32 %v2405_v31, %v2352_v14  ;;  %v2353_v0 = vmax.f32 %v2340_v27, 0.0 }
 0x3a8   : > { %v2304_v43 = vpop.f32.mrb[156].mxu0  ;;  %v2507_v55 = vld [vmem:[#allocation3 + $0x2e] sm:$0xff] }
 0x3a9   : > { %v2485_v52 = vld [vmem:[#allocation3 + $0x2d] sm:$0xff]  ;;  %2473 = vst.msk [vmem:[#allocation3 + $0x40] sm:$0xff] %vm2216_vm5, %v2443_v62  ;;  %v2444_v12 = vmul.f32 %v2410_v48, %v2353_v0  ;;  %v2305_v53 = vadd.f32 %v5841_v25, %v2304_v43  ;;  %v4707_v49 = vpop.f32.mrb[157].mxu0  ;;  %v2517_v57 = vpack.c.bf16 %v2507_v55, %v2506_v45 }
 0x3aa   : > { %v2495_v61 = vpack.c.bf16 %v2485_v52, %v2484_v9  ;;  %v2307_v47 = vpop.f32.mrb[158].mxu0  ;;  %v2508_v30 = vld [vmem:[#allocation3 + $0x36] sm:$0xff] }
 0x3ab   : > { %2474 = vst.msk [vmem:[#allocation3 + $0x48] sm:$0xff] %vm2216_vm5, %v2444_v12  ;;  %v2341_v20 = vmul.f32 %v5846_v37, %v2305_v53  ;;  %v2308_v24 = vadd.f32 %v5841_v25, %v2307_v47  ;;  %v4708_v60 = vpop.f32.mrb[159].mxu0  ;;  %4728 = vmatmul.mubr.msk.bf16.gmra.mrb[148].mxu1 %vm2216_vm5, %v2517_v57  ;;  %v2486_v17 = vld [vmem:[#allocation3 + $0x35] sm:$0xff]  ;;  %v2435_v12 = vpop.permute.xlu1 %2434 }
 0x3ac   : > { %4758 = vmatmul.mubr.msk.bf16.gmra.mrb[176].mxu0 %vm2216_vm5, %v2495_v61  ;;  %4731 = vmatprep.mubr.msk.bf16.mxu1 %vm5020_vm1, %v5019_v1 }
 0x3ad   : > { %4761 = vmatprep.mubr.msk.bf16.mxu0 %vm5020_vm1, %v5019_v1  ;;  %v2354_v44 = vmax.f32 %v2341_v20, 0.0  ;;  %v2342_v6 = vmul.f32 %v5846_v37, %v2308_v24 }
 0x3af   : > { %v2445_v59 = vmul.f32 %v2415_v38, %v2354_v44  ;;  %v2355_v19 = vmax.f32 %v2342_v6, 0.0  ;;  %v2755_v38 = vld [vmem:[#allocation3 + $0x7] sm:$0xff] }
 0x3b0   : > { %v2312_v16 = vpop.f32.mrb[160].mxu0  ;;  %v2509_v10 = vld [vmem:[#allocation3 + $0x3e] sm:$0xff] }
 0x3b1   : > { %v2487_v5 = vld [vmem:[#allocation3 + $0x3d] sm:$0xff]  ;;  %2475 = vst.msk [vmem:[#allocation3 + $0x50] sm:$0xff] %vm2216_vm5, %v2445_v59  ;;  %v2446_v3 = vmul.f32 %v2420_v8, %v2355_v19  ;;  %v2313_v15 = vadd.f32 %v5841_v25, %v2312_v16  ;;  %v4711_v28 = vpop.f32.mrb[161].mxu0  ;;  %v2518_v39 = vpack.c.bf16 %v2509_v10, %v2508_v30  ;;  %v2756_v59 = vld [vmem:[#allocation3 + $0xf] sm:$0xff] }
 0x3b2   : > { %v2496_v32 = vpack.c.bf16 %v2487_v5, %v2486_v17  ;;  %v2315_v56 = vpop.f32.mrb[162].mxu0  ;;  %v2510_v51 = vld [vmem:[#allocation3 + $0x46] sm:$0xff]  ;;  %v2907_v19 = vld [vmem:[#allocation3 + $0x17] sm:$0xff]  ;;  %v2768_v8 = vpack.c.bf16 %v2756_v59, %v2755_v38  ;;  %v2760_v28 = vld [vmem:[#allocation3 + $0x2f] sm:$0xff] }
 0x3b3   : > { %2476 = vst.msk [vmem:[#allocation3 + $0x58] sm:$0xff] %vm2216_vm5, %v2446_v3  ;;  %v2343_v29 = vmul.f32 %v5846_v37, %v2313_v15  ;;  %v2316_v41 = vadd.f32 %v5841_v25, %v2315_v56  ;;  %v4712_v42 = vpop.f32.mrb[163].mxu0  ;;  %4732 = vmatmul.mubr.msk.bf16.gmra.mrb[152].mxu1 %vm2216_vm5, %v2518_v39  ;;  %v2488_v27 = vld [vmem:[#allocation3 + $0x45] sm:$0xff]  ;;  %v5006_v30 = vld [vmem:[%s6412_s11 + $0x20] sm:$0xff]   ;;  %v2919_v16 = vpack.c.bf16 %v2907_v19, %v2756_v59 }
 0x3b4   : > { %4762 = vmatmul.mubr.msk.bf16.gmra.mrb[180].mxu0 %vm2216_vm5, %v2496_v32  ;;  %4735 = vmatprep.mubr.msk.bf16.mxu1 %vm5020_vm1, %v5019_v1  ;;  %v5007_v10 = vld [vmem:[%s6412_s11 + $0x28] sm:$0xff]   ;;  %v2911_v39 = vld [vmem:[#allocation3 + $0x37] sm:$0xff]  ;;  %v3064_v38 = vld [vmem:[#allocation3 + $0x48] sm:$0xff] }
 0x3b5   : > { %4765 = vmatprep.mubr.msk.bf16.mxu0 %vm5020_vm1, %v5019_v1  ;;  %v2356_v33 = vmax.f32 %v2343_v29, 0.0  ;;  %v2344_v34 = vmul.f32 %v5846_v37, %v2316_v41  ;;  %v2758_v17 = vld [vmem:[#allocation3 + $0x1f] sm:$0xff]  ;;  %v2909_v5 = vld [vmem:[#allocation3 + $0x27] sm:$0xff]  ;;  %v2921_v56 = vpack.c.bf16 %v2911_v39, %v2760_v28 }
 0x3b6   : > { %v2769_v3 = vpack.c.bf16 %v2758_v17, %v2907_v19  ;;  %v2920_v15 = vpack.c.bf16 %v2909_v5, %v2758_v17  ;;  %v2770_v32 = vpack.c.bf16 %v2760_v28, %v2909_v5  ;;  %v2762_v29 = vld [vmem:[#allocation3 + $0x3f] sm:$0xff]  ;;  %v2913_v41 = vld [vmem:[#allocation3 + $0x47] sm:$0xff] }
 0x3b7   : > { %v2447_v35 = vmul.f32 %v2425_v13, %v2356_v33  ;;  %v2357_v21 = vmax.f32 %v2344_v34, 0.0  ;;  %v2771_v42 = vpack.c.bf16 %v2762_v29, %v2911_v39  ;;  %v2922_v33 = vpack.c.bf16 %v2913_v41, %v2762_v29  ;;  %v3063_v19 = vld [vmem:[#allocation3 + $0x40] sm:$0xff] }
 0x3b8   : > { %v2320_v58 = vpop.f32.mrb[164].mxu0  ;;  %v2511_v14 = vld [vmem:[#allocation3 + $0x4e] sm:$0xff] }
 0x3b9   : > { %v2489_v31 = vld [vmem:[#allocation3 + $0x4d] sm:$0xff]  ;;  %2477 = vst.msk [vmem:[#allocation3 + $0x60] sm:$0xff] %vm2216_vm5, %v2447_v35  ;;  %v2448_v62 = vmul.f32 %v2430_v46, %v2357_v21  ;;  %v2321_v0 = vadd.f32 %v5841_v25, %v2320_v58  ;;  %v4715_v45 = vpop.f32.mrb[165].mxu0  ;;  %v2519_v48 = vpack.c.bf16 %v2511_v14, %v2510_v51 }
 0x3ba   : > { %v2497_v43 = vpack.c.bf16 %v2489_v31, %v2488_v27  ;;  %v2323_v55 = vpop.f32.mrb[166].mxu0  ;;  %v2512_v49 = vld [vmem:[#allocation3 + $0x56] sm:$0xff]  ;;  %v6021_v59 = vld [vmem:[#allocation3 + $0x49] sm:$0xff] }
 0x3bb   : > { %2478 = vst.msk [vmem:[#allocation3 + $0x68] sm:$0xff] %vm2216_vm5, %v2448_v62  ;;  %v2345_v9 = vmul.f32 %v5846_v37, %v2321_v0  ;;  %v4716_v52 = vpop.f32.mrb[167].mxu0  ;;  %4736 = vmatmul.mubr.msk.bf16.gmra.mrb[156].mxu1 %vm2216_vm5, %v2519_v48  ;;  %v2490_v61 = vld [vmem:[#allocation3 + $0x55] sm:$0xff]  ;;  %v5008_v55 = vld [vmem:[%s6412_s11 + $0x30] sm:$0xff]  }
 0x3bc   : > { %4766 = vmatmul.mubr.msk.bf16.gmra.mrb[184].mxu0 %vm2216_vm5, %v2497_v43  ;;  %4739 = vmatprep.mubr.msk.bf16.mxu1 %vm5020_vm1, %v5019_v1  ;;  %v2764_v34 = vld [vmem:[#allocation3 + $0x4f] sm:$0xff]  ;;  %v2915_v13 = vld [vmem:[#allocation3 + $0x57] sm:$0xff] }
 0x3bd   : > { %4769 = vmatprep.mubr.msk.bf16.mxu0 %vm5020_vm1, %v5019_v1  ;;  %v2358_v25 = vmax.f32 %v2345_v9, 0.0  ;;  %v2772_v35 = vpack.c.bf16 %v2764_v34, %v2913_v41  ;;  %v2923_v21 = vpack.c.bf16 %v2915_v13, %v2764_v34  ;;  %v3058_v0 = vld [vmem:[#allocation3 + $0x18] sm:$0xff]  ;;  %v3057_v48 = vld [vmem:[#allocation3 + $0x10] sm:$0xff] }
 0x3be   : > { %v5987_v45 = vld [vmem:[#allocation3 + $0x19] sm:$0xff]  ;;  %v3208_v43 = vld [vmem:[#allocation3 + $0x11] sm:$0xff]  ;;  %v3070_v9 = vpack.c.bf16 %v3058_v0, %v3057_v48 }
 0x3bf   : > { %v2449_v53 = vmul.f32 %v2435_v12, %v2358_v25  ;;  %v3221_v52 = vpack.c.bf16 %v5987_v45, %v3208_v43  ;;  %v5009_v25 = vld [vmem:[%s6412_s11 + $0x38] sm:$0xff]   ;;  %v3060_v12 = vld [vmem:[#allocation3 + $0x28] sm:$0xff]  ;;  %v3514_v48 = vld [vmem:[#allocation3 + $0x3a] sm:$0xff] }
 0x3c0   : > { %v2513_v57 = vld [vmem:[#allocation3 + $0x5e] sm:$0xff]  ;;  %v3065_v5 = vld [vmem:[#allocation3 + $0x50] sm:$0xff] }
 0x3c1   : > { %v2491_v47 = vld [vmem:[#allocation3 + $0x5d] sm:$0xff]  ;;  %2479 = vst.msk [vmem:[#allocation3 + $0x70] sm:$0xff] %vm2216_vm5, %v2449_v53  ;;  %v2520_v37 = vpack.c.bf16 %v2513_v57, %v2512_v49  ;;  %v6002_v53 = vld [vmem:[#allocation3 + $0x29] sm:$0xff] }
 0x3c2   : > { %v2498_v20 = vpack.c.bf16 %v2491_v47, %v2490_v61  ;;  %v2514_v24 = vld [vmem:[#allocation3 + $0x66] sm:$0xff]  ;;  %v6030_v17 = vld [vmem:[#allocation3 + $0x59] sm:$0xff] }
 0x3c3   : > { %4740 = vmatmul.mubr.msk.bf16.gmra.mrb[160].mxu1 %vm2216_vm5, %v2520_v37  ;;  %v2492_v60 = vld [vmem:[#allocation3 + $0x65] sm:$0xff]  ;;  %v2521_v44 = vpack.c.bf16 %v2514_v24, %v2514_v24  ;;  %v3062_v37 = vld [vmem:[#allocation3 + $0x38] sm:$0xff]  ;;  %v3061_v24 = vld [vmem:[#allocation3 + $0x30] sm:$0xff] }
 0x3c4   : > { %4770 = vmatmul.mubr.msk.bf16.gmra.mrb[188].mxu0 %vm2216_vm5, %v2498_v20  ;;  %4743 = vmatprep.mubr.msk.bf16.mxu1 %vm5020_vm1, %v5019_v1  ;;  %v2499_v6 = vpack.c.bf16 %v2492_v60, %v2492_v60  ;;  %v2766_v51 = vld [vmem:[#allocation3 + $0x5f] sm:$0xff]  ;;  %v2917_v46 = vld [vmem:[#allocation3 + $0x67] sm:$0xff]  ;;  %v3212_v60 = vld [vmem:[#allocation3 + $0x31] sm:$0xff] }
 0x3c5   : > { %4773 = vmatprep.mubr.msk.bf16.mxu0 %vm5020_vm1, %v5019_v1  ;;  %v2773_v58 = vpack.c.bf16 %v2766_v51, %v2915_v13  ;;  %v2924_v14 = vpack.c.bf16 %v2917_v46, %v2766_v51  ;;  %v2774_v31 = vpack.c.bf16 %v2917_v46, %v2917_v46  ;;  %v3059_v49 = vld [vmem:[#allocation3 + $0x20] sm:$0xff]  ;;  %v3068_v39 = vld [vmem:[#allocation3 + $0x68] sm:$0xff]  ;;  %v5010_v46 = vld [vmem:[%s6412_s11 + $0x40] sm:$0xff]  }
 0x3c6   : > { %v3210_v57 = vld [vmem:[#allocation3 + $0x21] sm:$0xff]  ;;  %v3071_v61 = vpack.c.bf16 %v3060_v12, %v3059_v49  ;;  %v6012_v20 = vld [vmem:[#allocation3 + $0x39] sm:$0xff] }
 0x3c7   : > { %v3222_v47 = vpack.c.bf16 %v6002_v53, %v3210_v57  ;;  %v3218_v29 = vld [vmem:[#allocation3 + $0x61] sm:$0xff] }
 0x3c8   : > { %v2918_v27 = vld [vmem:[#allocation3 + $0x6f] sm:$0xff]  ;;  %v3510_v51 = vld [vmem:[#allocation3 + $0x1a] sm:$0xff] }
 0x3c9   : > { %v2925_v62 = vpack.c.bf16 %v2918_v27, %v2918_v27  ;;  %v3220_v34 = vld [vmem:[#allocation3 + $0x71] sm:$0xff]  ;;  %v3518_v49 = vld [vmem:[#allocation3 + $0x5a] sm:$0xff] }
 0x3ca   : > { %v3513_v27 = vld [vmem:[#allocation3 + $0x32] sm:$0xff] }
 0x3cb   : > { %4744 = vmatmul.mubr.msk.bf16.gmra.mrb[164].mxu1 %vm2216_vm5, %v2521_v44  ;;  %v3072_v44 = vpack.c.bf16 %v3062_v37, %v3061_v24  ;;  %v3521_v37 = vld [vmem:[#allocation3 + $0x72] sm:$0xff] }
 0x3cc   : > { %4774 = vmatmul.mubr.msk.bf16.gmra.mrb[192].mxu0 %vm2216_vm5, %v2499_v6  ;;  %4779 = vmatprep.mubr.msk.bf16.mxu1 %vm5020_vm1, %v5019_v1  ;;  %v3223_v6 = vpack.c.bf16 %v6012_v20, %v3212_v60 }
 0x3cd   : > { %4809 = vmatprep.mubr.msk.bf16.mxu0 %vm5020_vm1, %v5019_v1 }
 0x3d3   : > { %4780 = vmatmul.mubr.msk.bf16.vlgmr.msra.gmra.mrb[168].mxu1 %vm2216_vm5, %v2768_v8  ;;  %v3073_v8 = vpack.c.bf16 %v3064_v38, %v3063_v19 }
 0x3d4   : > { %4810 = vmatmul.mubr.msk.bf16.vlgmr.msra.gmra.mrb[196].mxu0 %vm2216_vm5, %v2919_v16  ;;  %4838 = vmatpush3.bf16.msra.mxu1 %v5006_v30  ;;  %v3214_v30 = vld [vmem:[#allocation3 + $0x41] sm:$0xff] }
 0x3d5   : > { %4783 = vmatprep.mubr.msk.bf16.mxu1 %vm5020_vm1, %v5019_v1  ;;  %4813 = vmatprep.mubr.msk.bf16.mxu0 %vm5020_vm1, %v5019_v1  ;;  %v3224_v16 = vpack.c.bf16 %v6021_v59, %v3214_v30  ;;  %v3374_v43 = vpack.c.bf16 %v3214_v30, %v6012_v20 }
 0x3d6   : > { %4868 = vmatpush3.bf16.msra.mxu0 %v5007_v10  ;;  %4897 = vmatprep.subr.bf16.mxu1 %v5019_v1  ;;  %v3066_v10 = vld [vmem:[#allocation3 + $0x58] sm:$0xff] }
 0x3d7   : > { %4927 = vmatprep.subr.bf16.mxu0 %v5019_v1 }
 0x3db   : > { %4784 = vmatmul.mubr.msk.bf16.gmra.mrb[172].mxu1 %vm2216_vm5, %v2769_v3  ;;  %v3216_v3 = vld [vmem:[#allocation3 + $0x51] sm:$0xff] }
 0x3dc   : > { %4814 = vmatmul.mubr.msk.bf16.gmra.mrb[200].mxu0 %vm2216_vm5, %v2920_v15  ;;  %4787 = vmatprep.mubr.msk.bf16.mxu1 %vm5020_vm1, %v5019_v1  ;;  %v3074_v15 = vpack.c.bf16 %v3066_v10, %v3065_v5  ;;  %v3225_v28 = vpack.c.bf16 %v6030_v17, %v3216_v3 }
 0x3dd   : > { %4817 = vmatprep.mubr.msk.bf16.mxu0 %vm5020_vm1, %v5019_v1 }
 0x3e3   : > { %4788 = vmatmul.mubr.msk.bf16.gmra.mrb[176].mxu1 %vm2216_vm5, %v2770_v32  ;;  %v6039_v32 = vld [vmem:[#allocation3 + $0x69] sm:$0xff] }
 0x3e4   : > { %4818 = vmatmul.mubr.msk.bf16.gmra.mrb[204].mxu0 %vm2216_vm5, %v2921_v56  ;;  %4791 = vmatprep.mubr.msk.bf16.mxu1 %vm5020_vm1, %v5019_v1  ;;  %v3067_v56 = vld [vmem:[#allocation3 + $0x60] sm:$0xff]  ;;  %v3377_v20 = vpack.c.bf16 %v3220_v34, %v6039_v32 }
 0x3e5   : > { %4821 = vmatprep.mubr.msk.bf16.mxu0 %vm5020_vm1, %v5019_v1  ;;  %v3075_v41 = vpack.c.bf16 %v3068_v39, %v3067_v56 }
 0x3eb   : > { %4792 = vmatmul.mubr.msk.bf16.gmra.mrb[180].mxu1 %vm2216_vm5, %v2771_v42  ;;  %v3226_v42 = vpack.c.bf16 %v6039_v32, %v3218_v29  ;;  %v3662_v32 = vld [vmem:[#allocation3 + $0x23] sm:$0xff] }
 0x3ec   : > { %4822 = vmatmul.mubr.msk.bf16.gmra.mrb[208].mxu0 %vm2216_vm5, %v2922_v33  ;;  %4795 = vmatprep.mubr.msk.bf16.mxu1 %vm5020_vm1, %v5019_v1  ;;  %v3069_v33 = vld [vmem:[#allocation3 + $0x70] sm:$0xff] }
 0x3ed   : > { %4825 = vmatprep.mubr.msk.bf16.mxu0 %vm5020_vm1, %v5019_v1  ;;  %v3076_v13 = vpack.c.bf16 %v3069_v33, %v3069_v33 }
 0x3f3   : > { %4796 = vmatmul.mubr.msk.bf16.gmra.mrb[184].mxu1 %vm2216_vm5, %v2772_v35  ;;  %v3227_v35 = vpack.c.bf16 %v3220_v34, %v3220_v34  ;;  %v3661_v34 = vld [vmem:[#allocation3 + $0x1b] sm:$0xff] }
 0x3f4   : > { %4826 = vmatmul.mubr.msk.bf16.gmra.mrb[212].mxu0 %vm2216_vm5, %v2923_v21  ;;  %4799 = vmatprep.mubr.msk.bf16.mxu1 %vm5020_vm1, %v5019_v1  ;;  %v3511_v21 = vld [vmem:[#allocation3 + $0x22] sm:$0xff] }
 0x3f5   : > { %4829 = vmatprep.mubr.msk.bf16.mxu0 %vm5020_vm1, %v5019_v1 }
 0x3fb   : > { %4800 = vmatmul.mubr.msk.bf16.gmra.mrb[188].mxu1 %vm2216_vm5, %v2773_v58  ;;  %v3372_v58 = vpack.c.bf16 %v3210_v57, %v5987_v45  ;;  %v3515_v45 = vld [vmem:[#allocation3 + $0x42] sm:$0xff]  ;;  %v3376_v57 = vpack.c.bf16 %v3218_v29, %v6030_v17 }
 0x3fc   : > { %4830 = vmatmul.mubr.msk.bf16.gmra.mrb[216].mxu0 %vm2216_vm5, %v2924_v14  ;;  %4803 = vmatprep.mubr.msk.bf16.mxu1 %vm5020_vm1, %v5019_v1  ;;  %v3523_v14 = vpack.c.bf16 %v3511_v21, %v3510_v51  ;;  %v3674_v51 = vpack.c.bf16 %v3662_v32, %v3661_v34 }
 0x3fd   : > { %4833 = vmatprep.mubr.msk.bf16.mxu0 %vm5020_vm1, %v5019_v1 }
 0x403   : > { %4804 = vmatmul.mubr.msk.bf16.gmra.mrb[192].mxu1 %vm2216_vm5, %v2774_v31  ;;  %v3512_v31 = vld [vmem:[#allocation3 + $0x2a] sm:$0xff] }
 0x404   : > { %4834 = vmatmul.mubr.msk.bf16.gmra.mrb[220].mxu0 %vm2216_vm5, %v2925_v62  ;;  %4839 = vmatprep.mubr.msk.bf16.mxu1 %vm5020_vm1, %v5019_v1  ;;  %v3373_v62 = vpack.c.bf16 %v3212_v60, %v6002_v53  ;;  %v3524_v0 = vpack.c.bf16 %v3513_v27, %v3512_v31  ;;  %v3519_v53 = vld [vmem:[#allocation3 + $0x62] sm:$0xff]  ;;  %v3371_v60 = vld [vmem:[#allocation3 + $0x79] sm:$0xff] }
 0x405   : > { %4869 = vmatprep.mubr.msk.bf16.mxu0 %vm5020_vm1, %v5019_v1 }
 0x40b   : > { %4840 = vmatmul.mubr.msk.bf16.vlgmr.msra.gmra.mrb[196].mxu1 %vm2216_vm5, %v3070_v9  ;;  %v3517_v9 = vld [vmem:[#allocation3 + $0x52] sm:$0xff] }
 0x40c   : > { %4870 = vmatmul.mubr.msk.bf16.vlgmr.msra.gmra.mrb[224].mxu0 %vm2216_vm5, %v3221_v52  ;;  %4898 = vmatpush3.bf16.msra.mxu1 %v5008_v55  ;;  %v3525_v55 = vpack.c.bf16 %v3515_v45, %v3514_v48  ;;  %v3516_v52 = vld [vmem:[#allocation3 + $0x4a] sm:$0xff] }
 0x40d   : > { %4843 = vmatprep.mubr.msk.bf16.mxu1 %vm5020_vm1, %v5019_v1  ;;  %4873 = vmatprep.mubr.msk.bf16.mxu0 %vm5020_vm1, %v5019_v1  ;;  %v3526_v12 = vpack.c.bf16 %v3517_v9, %v3516_v52  ;;  %v3663_v48 = vld [vmem:[#allocation3 + $0x2b] sm:$0xff] }
 0x40e   : > { %4928 = vmatpush3.bf16.msra.mxu0 %v5009_v25  ;;  %4957 = vmatprep.subr.bf16.mxu1 %v5019_v1  ;;  %v3375_v25 = vpack.c.bf16 %v3216_v3, %v6021_v59 }
 0x413   : > { %4844 = vmatmul.mubr.msk.bf16.gmra.mrb[200].mxu1 %vm2216_vm5, %v3071_v61  ;;  %v3527_v61 = vpack.c.bf16 %v3519_v53, %v3518_v49  ;;  %v3666_v53 = vld [vmem:[#allocation3 + $0x43] sm:$0xff] }
 0x414   : > { %4874 = vmatmul.mubr.msk.bf16.gmra.mrb[228].mxu0 %vm2216_vm5, %v3222_v47  ;;  %4847 = vmatprep.mubr.msk.bf16.mxu1 %vm5020_vm1, %v5019_v1  ;;  %v3520_v47 = vld [vmem:[#allocation3 + $0x6a] sm:$0xff] }
 0x415   : > { %4877 = vmatprep.mubr.msk.bf16.mxu0 %vm5020_vm1, %v5019_v1  ;;  %v3528_v24 = vpack.c.bf16 %v3521_v37, %v3520_v47 }
 0x41b   : > { %4848 = vmatmul.mubr.msk.bf16.gmra.mrb[204].mxu1 %vm2216_vm5, %v3072_v44  ;;  %v3522_v44 = vld [vmem:[#allocation3 + $0x7a] sm:$0xff] }
 0x41c   : > { %4878 = vmatmul.mubr.msk.bf16.gmra.mrb[232].mxu0 %vm2216_vm5, %v3223_v6  ;;  %4851 = vmatprep.mubr.msk.bf16.mxu1 %vm5020_vm1, %v5019_v1 }
 0x41d   : > { %4881 = vmatprep.mubr.msk.bf16.mxu0 %vm5020_vm1, %v5019_v1 }
 0x423   : > { %4852 = vmatmul.mubr.msk.bf16.gmra.mrb[208].mxu1 %vm2216_vm5, %v3073_v8  ;;  %v3378_v8 = vpack.c.bf16 %v3371_v60, %v3371_v60 }
 0x424   : > { %4882 = vmatmul.mubr.msk.bf16.gmra.mrb[236].mxu0 %vm2216_vm5, %v3224_v16  ;;  %4855 = vmatprep.mubr.msk.bf16.mxu1 %vm5020_vm1, %v5019_v1  ;;  %v3529_v16 = vpack.c.bf16 %v3522_v44, %v3522_v44 }
 0x425   : > { %4885 = vmatprep.mubr.msk.bf16.mxu0 %vm5020_vm1, %v5019_v1 }
 0x42b   : > { %4856 = vmatmul.mubr.msk.bf16.gmra.mrb[212].mxu1 %vm2216_vm5, %v3074_v15 }
 0x42c   : > { %4886 = vmatmul.mubr.msk.bf16.gmra.mrb[240].mxu0 %vm2216_vm5, %v3225_v28  ;;  %4859 = vmatprep.mubr.msk.bf16.mxu1 %vm5020_vm1, %v5019_v1 }
 0x42d   : > { %4889 = vmatprep.mubr.msk.bf16.mxu0 %vm5020_vm1, %v5019_v1 }
 0x433   : > { %4860 = vmatmul.mubr.msk.bf16.gmra.mrb[216].mxu1 %vm2216_vm5, %v3075_v41 }
 0x434   : > { %4890 = vmatmul.mubr.msk.bf16.gmra.mrb[244].mxu0 %vm2216_vm5, %v3226_v42  ;;  %4863 = vmatprep.mubr.msk.bf16.mxu1 %vm5020_vm1, %v5019_v1 }
 0x435   : > { %4893 = vmatprep.mubr.msk.bf16.mxu0 %vm5020_vm1, %v5019_v1 }
 0x43b   : > { %4864 = vmatmul.mubr.msk.bf16.gmra.mrb[220].mxu1 %vm2216_vm5, %v3076_v13 }
 0x43c   : > { %4894 = vmatmul.mubr.msk.bf16.gmra.mrb[248].mxu0 %vm2216_vm5, %v3227_v35  ;;  %4899 = vmatprep.mubr.msk.bf16.mxu1 %vm5020_vm1, %v5019_v1 }
 0x43d   : > { %4929 = vmatprep.mubr.msk.bf16.mxu0 %vm5020_vm1, %v5019_v1 }
 0x443   : > { %4900 = vmatmul.mubr.msk.bf16.vlgmr.msra.gmra.mrb[224].mxu1 %vm2216_vm5, %v3372_v58 }
 0x444   : > { %4930 = vmatmul.mubr.msk.bf16.vlgmr.msra.gmra.mrb[252].mxu0 %vm2216_vm5, %v3523_v14  ;;  %4958 = vmatpush3.bf16.msra.mxu1 %v5010_v46  ;;  %v3664_v14 = vld [vmem:[#allocation3 + $0x33] sm:$0xff] }
 0x445   : > { %4903 = vmatprep.mubr.msk.bf16.mxu1 %vm5020_vm1, %v5019_v1  ;;  %4933 = vmatprep.mubr.msk.bf16.mxu0 %vm5020_vm1, %v5019_v1  ;;  %v3675_v52 = vpack.c.bf16 %v3664_v14, %v3663_v48 }
 0x44b   : > { %4904 = vmatmul.mubr.msk.bf16.gmra.mrb[228].mxu1 %vm2216_vm5, %v3373_v62 }
 0x44c   : > { %4934 = vmatmul.mubr.msk.bf16.gmra.mrb[0].mxu0 %vm2216_vm5, %v3524_v0  ;;  %4907 = vmatprep.mubr.msk.bf16.mxu1 %vm5020_vm1, %v5019_v1 }
 0x44d   : > { %4937 = vmatprep.mubr.msk.bf16.mxu0 %vm5020_vm1, %v5019_v1 }
 0x453   : > { %4908 = vmatmul.mubr.msk.bf16.gmra.mrb[232].mxu1 %vm2216_vm5, %v3374_v43 }
 0x454   : > { %4938 = vmatmul.mubr.msk.bf16.gmra.mrb[4].mxu0 %vm2216_vm5, %v3525_v55  ;;  %4911 = vmatprep.mubr.msk.bf16.mxu1 %vm5020_vm1, %v5019_v1 }
 0x455   : > { %4941 = vmatprep.mubr.msk.bf16.mxu0 %vm5020_vm1, %v5019_v1 }
 0x45b   : > { %4912 = vmatmul.mubr.msk.bf16.gmra.mrb[236].mxu1 %vm2216_vm5, %v3375_v25 }
 0x45c   : > { %4942 = vmatmul.mubr.msk.bf16.gmra.mrb[8].mxu0 %vm2216_vm5, %v3526_v12  ;;  %4915 = vmatprep.mubr.msk.bf16.mxu1 %vm5020_vm1, %v5019_v1 }
 0x45d   : > { %4945 = vmatprep.mubr.msk.bf16.mxu0 %vm5020_vm1, %v5019_v1 }
 0x463   : > { %4916 = vmatmul.mubr.msk.bf16.gmra.mrb[240].mxu1 %vm2216_vm5, %v3376_v57 }
 0x464   : > { %4946 = vmatmul.mubr.msk.bf16.gmra.mrb[12].mxu0 %vm2216_vm5, %v3527_v61  ;;  %4919 = vmatprep.mubr.msk.bf16.mxu1 %vm5020_vm1, %v5019_v1 }
 0x465   : > { %4949 = vmatprep.mubr.msk.bf16.mxu0 %vm5020_vm1, %v5019_v1 }
 0x46b   : > { %4920 = vmatmul.mubr.msk.bf16.gmra.mrb[244].mxu1 %vm2216_vm5, %v3377_v20  ;;  %v3665_v20 = vld [vmem:[#allocation3 + $0x3b] sm:$0xff] }
 0x46c   : > { %4950 = vmatmul.mubr.msk.bf16.gmra.mrb[16].mxu0 %vm2216_vm5, %v3528_v24  ;;  %4923 = vmatprep.mubr.msk.bf16.mxu1 %vm5020_vm1, %v5019_v1 }
 0x46d   : > { %4953 = vmatprep.mubr.msk.bf16.mxu0 %vm5020_vm1, %v5019_v1 }
 0x46e   : > { %v2586_v6 = vpop.f32.mrb[140].mxu1 }
 0x46f   : > { %v2701_v38 = vpop.f32.mrb[168].mxu0  ;;  %v4721_v19 = vpop.f32.mrb[141].mxu1 }
 0x470   : > { %v6099_v59 = vadd.f32 %v2701_v38, %v2586_v6  ;;  %v4751_v30 = vpop.f32.mrb[169].mxu0  ;;  %v2589_v10 = vpop.f32.mrb[142].mxu1  ;;  %v3676_v6 = vpack.c.bf16 %v3666_v53, %v3665_v20  ;;  %v3673_v20 = vld [vmem:[#allocation3 + $0x7b] sm:$0xff] }
 0x471   : > { %v2704_v17 = vpop.f32.mrb[170].mxu0  ;;  %v4722_v3 = vpop.f32.mrb[143].mxu1  ;;  %v3668_v30 = vld [vmem:[#allocation3 + $0x53] sm:$0xff] }
 0x472   : > { %v6101_v5 = vadd.f32 %v2704_v17, %v2589_v10  ;;  %v4752_v15 = vpop.f32.mrb[171].mxu0 }
 0x473   : > { %4924 = vmatmul.mubr.msk.bf16.gmra.mrb[248].mxu1 %vm2216_vm5, %v3378_v8  ;;  %v3667_v15 = vld [vmem:[#allocation3 + $0x4b] sm:$0xff] }
 0x474   : > { %4954 = vmatmul.mubr.msk.bf16.gmra.mrb[20].mxu0 %vm2216_vm5, %v3529_v16  ;;  %4959 = vmatprep.mubr.msk.bf16.mxu1 %vm5020_vm1, %v5019_v1 }
 0x476   : > { %v2594_v28 = vpop.f32.mrb[144].mxu1 }
 0x477   : > { %v2709_v39 = vpop.f32.mrb[172].mxu0  ;;  %v4725_v29 = vpop.f32.mrb[145].mxu1 }
 0x478   : > { %v6107_v56 = vadd.f32 %v2709_v39, %v2594_v28  ;;  %v4755_v41 = vpop.f32.mrb[173].mxu0  ;;  %v2597_v42 = vpop.f32.mrb[146].mxu1  ;;  %v3677_v29 = vpack.c.bf16 %v3668_v30, %v3667_v15  ;;  %v3680_v30 = vpack.c.bf16 %v3673_v20, %v3673_v20 }
 0x479   : > { %v2712_v33 = vpop.f32.mrb[174].mxu0  ;;  %v4726_v35 = vpop.f32.mrb[147].mxu1 }
 0x47a   : > { %v6109_v13 = vadd.f32 %v2712_v33, %v2597_v42  ;;  %v4756_v21 = vpop.f32.mrb[175].mxu0  ;;  %v3670_v33 = vld [vmem:[#allocation3 + $0x63] sm:$0xff] }
 0x47b   : > { %4960 = vmatmul.mubr.msk.bf16.vlgmr.msra.gmra.mrb[252].mxu1 %vm2216_vm5, %v3674_v51 }
 0x47c   : > { %4963 = vmatprep.mubr.msk.bf16.mxu1 %vm5020_vm1, %v5019_v1 }
 0x47e   : > { %v2602_v46 = vpop.f32.mrb[148].mxu1 }
 0x47f   : > { %v2717_v58 = vpop.f32.mrb[176].mxu0  ;;  %v4729_v31 = vpop.f32.mrb[149].mxu1 }
 0x480   : > { %v6114_v27 = vadd.f32 %v2717_v58, %v2602_v46  ;;  %v4759_v62 = vpop.f32.mrb[177].mxu0  ;;  %v2605_v0 = vpop.f32.mrb[150].mxu1  ;;  %v3669_v58 = vld [vmem:[#allocation3 + $0x5b] sm:$0xff] }
 0x481   : > { %v2720_v45 = vpop.f32.mrb[178].mxu0  ;;  %v4730_v55 = vpop.f32.mrb[151].mxu1 }
 0x482   : > { %v6116_v43 = vadd.f32 %v2720_v45, %v2605_v0  ;;  %v4760_v9 = vpop.f32.mrb[179].mxu0  ;;  %v3678_v0 = vpack.c.bf16 %v3670_v33, %v3669_v58  ;;  %v3671_v55 = vld [vmem:[#allocation3 + $0x6b] sm:$0xff] }
 0x483   : > { %4964 = vmatmul.mubr.msk.bf16.gmra.mrb[0].mxu1 %vm2216_vm5, %v3675_v52  ;;  %v3672_v9 = vld [vmem:[#allocation3 + $0x73] sm:$0xff] }
 0x484   : > { %4967 = vmatprep.mubr.msk.bf16.mxu1 %vm5020_vm1, %v5019_v1 }
 0x486   : > { %v2610_v25 = vpop.f32.mrb[152].mxu1 }
 0x487   : > { %v2725_v12 = vpop.f32.mrb[180].mxu0  ;;  %v4733_v57 = vpop.f32.mrb[153].mxu1 }
 0x488   : > { %v6121_v49 = vadd.f32 %v2725_v12, %v2610_v25  ;;  %v4763_v61 = vpop.f32.mrb[181].mxu0  ;;  %v2613_v47 = vpop.f32.mrb[154].mxu1 }
 0x489   : > { %v2728_v37 = vpop.f32.mrb[182].mxu0  ;;  %v4734_v60 = vpop.f32.mrb[155].mxu1 }
 0x48a   : > { %v6123_v24 = vadd.f32 %v2728_v37, %v2613_v47  ;;  %v4764_v44 = vpop.f32.mrb[183].mxu0  ;;  %v3679_v37 = vpack.c.bf16 %v3672_v9, %v3671_v55 }
 0x48b   : > { %4968 = vmatmul.mubr.msk.bf16.gmra.mrb[4].mxu1 %vm2216_vm5, %v3676_v6 }
 0x48c   : > { %4971 = vmatprep.mubr.msk.bf16.mxu1 %vm5020_vm1, %v5019_v1 }
 0x48e   : > { %v2618_v38 = vpop.f32.mrb[156].mxu1 }
 0x48f   : > { %v2733_v19 = vpop.f32.mrb[184].mxu0  ;;  %v4737_v16 = vpop.f32.mrb[157].mxu1 }
 0x490   : > { %v6128_v8 = vadd.f32 %v2733_v19, %v2618_v38  ;;  %v4767_v10 = vpop.f32.mrb[185].mxu0  ;;  %v2621_v17 = vpop.f32.mrb[158].mxu1 }
 0x491   : > { %v2736_v3 = vpop.f32.mrb[186].mxu0  ;;  %v4738_v39 = vpop.f32.mrb[159].mxu1 }
 0x492   : > { %v6130_v28 = vadd.f32 %v2736_v3, %v2621_v17  ;;  %v4768_v32 = vpop.f32.mrb[187].mxu0 }
 0x493   : > { %4972 = vmatmul.mubr.msk.bf16.gmra.mrb[8].mxu1 %vm2216_vm5, %v3677_v29 }
 0x494   : > { %4975 = vmatprep.mubr.msk.bf16.mxu1 %vm5020_vm1, %v5019_v1 }
 0x496   : > { %v2626_v41 = vpop.f32.mrb[160].mxu1 }
 0x497   : > { %v2741_v42 = vpop.f32.mrb[188].mxu0  ;;  %v4741_v35 = vpop.f32.mrb[161].mxu1 }
 0x498   : > { %v6135_v34 = vadd.f32 %v2741_v42, %v2626_v41  ;;  %v4771_v21 = vpop.f32.mrb[189].mxu0  ;;  %v2629_v51 = vpop.f32.mrb[162].mxu1 }
 0x499   : > { %v2744_v46 = vpop.f32.mrb[190].mxu0  ;;  %v4742_v31 = vpop.f32.mrb[163].mxu1 }
 0x49a   : > { %v6137_v14 = vadd.f32 %v2744_v46, %v2629_v51  ;;  %v4772_v62 = vpop.f32.mrb[191].mxu0 }
 0x49b   : > { %4976 = vmatmul.mubr.msk.bf16.gmra.mrb[12].mxu1 %vm2216_vm5, %v3678_v0 }
 0x49c   : > { %4979 = vmatprep.mubr.msk.bf16.mxu1 %vm5020_vm1, %v5019_v1 }
 0x49e   : > { %v2634_v45 = vpop.f32.mrb[164].mxu1 }
 0x49f   : > { %v2749_v48 = vpop.f32.mrb[192].mxu0  ;;  %v4745_v25 = vpop.f32.mrb[165].mxu1 }
 0x4a0   : > { %v6142_v52 = vadd.f32 %v2749_v48, %v2634_v45  ;;  %v4775_v12 = vpop.f32.mrb[193].mxu0  ;;  %v2637_v53 = vpop.f32.mrb[166].mxu1 }
 0x4a1   : > { %v2752_v57 = vpop.f32.mrb[194].mxu0  ;;  %v4746_v61 = vpop.f32.mrb[167].mxu1 }
 0x4a2   : > { %v4776_v47 = vpop.f32.mrb[195].mxu0 }
 0x4a3   : > { %4980 = vmatmul.mubr.msk.bf16.gmra.mrb[16].mxu1 %vm2216_vm5, %v3679_v37 }
 0x4a4   : > { %4983 = vmatprep.mubr.msk.bf16.mxu1 %vm5020_vm1, %v5019_v1 }
 0x4a6   : > { %v2839_v60 = vpop.f32.mrb[168].mxu1 }
 0x4a7   : > { %v2990_v44 = vpop.f32.mrb[196].mxu0  ;;  %v2893_v6 = vadd.f32 %v2839_v60, %v6099_v59  ;;  %v4781_v38 = vpop.f32.mrb[169].mxu1 }
 0x4a8   : > { %v4811_v19 = vpop.f32.mrb[197].mxu0  ;;  %v2842_v16 = vpop.f32.mrb[170].mxu1 }
 0x4a9   : > { %v2993_v10 = vpop.f32.mrb[198].mxu0  ;;  %v6148_v17 = vadd.f32 %v2990_v44, %v2893_v6  ;;  %v2894_v3 = vadd.f32 %v2842_v16, %v6101_v5  ;;  %v4782_v15 = vpop.f32.mrb[171].mxu1 }
 0x4aa   : > { %v4812_v39 = vpop.f32.mrb[199].mxu0 }
 0x4ab   : > { %v6151_v32 = vadd.f32 %v2993_v10, %v2894_v3  ;;  %4984 = vmatmul.mubr.msk.bf16.gmra.mrb[20].mxu1 %vm2216_vm5, %v3680_v30 }
 0x4ae   : > { %v2847_v1 = vpop.f32.mrb[172].mxu1 }
 0x4af   : > { %v2998_v29 = vpop.f32.mrb[200].mxu0  ;;  %v2895_v41 = vadd.f32 %v2847_v1, %v6107_v56  ;;  %v4785_v59 = vpop.f32.mrb[173].mxu1 }
 0x4b0   : > { %v4815_v42 = vpop.f32.mrb[201].mxu0  ;;  %v2850_v33 = vpop.f32.mrb[174].mxu1 }
 0x4b1   : > { %v3001_v35 = vpop.f32.mrb[202].mxu0  ;;  %v6155_v21 = vadd.f32 %v2998_v29, %v2895_v41  ;;  %v2896_v51 = vadd.f32 %v2850_v33, %v6109_v13  ;;  %v4786_v46 = vpop.f32.mrb[175].mxu1 }
 0x4b2   : > { %v4816_v5 = vpop.f32.mrb[203].mxu0 }
 0x4b3   : > { %v6158_v58 = vadd.f32 %v3001_v35, %v2896_v51 }
 0x4b6   : > { %v2855_v31 = vpop.f32.mrb[176].mxu1 }
 0x4b7   : > { %v3006_v62 = vpop.f32.mrb[204].mxu0  ;;  %v2897_v0 = vadd.f32 %v2855_v31, %v6114_v27  ;;  %v4789_v45 = vpop.f32.mrb[177].mxu1 }
 0x4b8   : > { %v4819_v48 = vpop.f32.mrb[205].mxu0  ;;  %v2858_v55 = vpop.f32.mrb[178].mxu1 }
 0x4b9   : > { %v3009_v56 = vpop.f32.mrb[206].mxu0  ;;  %v6161_v9 = vadd.f32 %v3006_v62, %v2897_v0  ;;  %v2898_v25 = vadd.f32 %v2858_v55, %v6116_v43  ;;  %v4790_v12 = vpop.f32.mrb[179].mxu1 }
 0x4ba   : > { %v4820_v53 = vpop.f32.mrb[207].mxu0 }
 0x4bb   : > { %v6164_v57 = vadd.f32 %v3009_v56, %v2898_v25 }
 0x4be   : > { %v2863_v13 = vpop.f32.mrb[180].mxu1 }
 0x4bf   : > { %v3014_v61 = vpop.f32.mrb[208].mxu0  ;;  %v2899_v47 = vadd.f32 %v2863_v13, %v6121_v49  ;;  %v4793_v37 = vpop.f32.mrb[181].mxu1 }
 0x4c0   : > { %v4823_v20 = vpop.f32.mrb[209].mxu0  ;;  %v2866_v60 = vpop.f32.mrb[182].mxu1 }
 0x4c1   : > { %v3017_v27 = vpop.f32.mrb[210].mxu0  ;;  %v6167_v44 = vadd.f32 %v3014_v61, %v2899_v47  ;;  %v2900_v6 = vadd.f32 %v2866_v60, %v6123_v24  ;;  %v4794_v38 = vpop.f32.mrb[183].mxu1 }
 0x4c2   : > { %v4824_v19 = vpop.f32.mrb[211].mxu0 }
 0x4c3   : > { %v6170_v30 = vadd.f32 %v3017_v27, %v2900_v6 }
 0x4c6   : > { %v2871_v43 = vpop.f32.mrb[184].mxu1 }
 0x4c7   : > { %v3022_v16 = vpop.f32.mrb[212].mxu0  ;;  %v2901_v10 = vadd.f32 %v2871_v43, %v6128_v8  ;;  %v4797_v3 = vpop.f32.mrb[185].mxu1 }
 0x4c8   : > { %v4827_v15 = vpop.f32.mrb[213].mxu0  ;;  %v2874_v39 = vpop.f32.mrb[186].mxu1 }
 0x4c9   : > { %v3025_v49 = vpop.f32.mrb[214].mxu0  ;;  %v6173_v1 = vadd.f32 %v3022_v16, %v2901_v10  ;;  %v2902_v29 = vadd.f32 %v2874_v39, %v6130_v28  ;;  %v4798_v41 = vpop.f32.mrb[187].mxu1 }
 0x4ca   : > { %v4828_v59 = vpop.f32.mrb[215].mxu0 }
 0x4cb   : > { %v6176_v42 = vadd.f32 %v3025_v49, %v2902_v29 }
 0x4ce   : > { %v2879_v24 = vpop.f32.mrb[188].mxu1 }
 0x4cf   : > { %v3030_v33 = vpop.f32.mrb[216].mxu0  ;;  %v2903_v35 = vadd.f32 %v2879_v24, %v6135_v34  ;;  %v4801_v51 = vpop.f32.mrb[189].mxu1 }
 0x4d0   : > { %v4831_v46 = vpop.f32.mrb[217].mxu0  ;;  %v2882_v5 = vpop.f32.mrb[190].mxu1 }
 0x4d1   : > { %v3033_v8 = vpop.f32.mrb[218].mxu0  ;;  %v6179_v31 = vadd.f32 %v3030_v33, %v2903_v35  ;;  %v2904_v62 = vadd.f32 %v2882_v5, %v6137_v14  ;;  %v4802_v0 = vpop.f32.mrb[191].mxu1 }
 0x4d2   : > { %v4832_v45 = vpop.f32.mrb[219].mxu0 }
 0x4d3   : > { %v6182_v48 = vadd.f32 %v3033_v8, %v2904_v62 }
 0x4d6   : > { %v2887_v28 = vpop.f32.mrb[192].mxu1 }
 0x4d7   : > { %v3038_v55 = vpop.f32.mrb[220].mxu0  ;;  %v2905_v56 = vadd.f32 %v2887_v28, %v6142_v52  ;;  %v4805_v25 = vpop.f32.mrb[193].mxu1 }
 0x4d8   : > { %v4835_v12 = vpop.f32.mrb[221].mxu0  ;;  %v2890_v53 = vpop.f32.mrb[194].mxu1 }
 0x4d9   : > { %v3041_v34 = vpop.f32.mrb[222].mxu0  ;;  %v6185_v13 = vadd.f32 %v3038_v55, %v2905_v56  ;;  %v4806_v61 = vpop.f32.mrb[195].mxu1 }
 0x4da   : > { %v4836_v47 = vpop.f32.mrb[223].mxu0 }
 0x4de   : > { %v3141_v37 = vpop.f32.mrb[196].mxu1 }
 0x4df   : > { %v3292_v20 = vpop.f32.mrb[224].mxu0  ;;  %v3195_v14 = vadd.f32 %v3141_v37, %v6148_v17  ;;  %v4841_v60 = vpop.f32.mrb[197].mxu1 }
 0x4e0   : > { %v4871_v27 = vpop.f32.mrb[225].mxu0  ;;  %v3144_v6 = vpop.f32.mrb[198].mxu1 }
 0x4e1   : > { %v3295_v38 = vpop.f32.mrb[226].mxu0  ;;  %v6188_v19 = vadd.f32 %v3292_v20, %v3195_v14  ;;  %v3196_v52 = vadd.f32 %v3144_v6, %v6151_v32  ;;  %v4842_v43 = vpop.f32.mrb[199].mxu1 }
 0x4e2   : > { %v4872_v16 = vpop.f32.mrb[227].mxu0 }
 0x4e3   : > { %v6191_v10 = vadd.f32 %v3295_v38, %v3196_v52 }
 0x4e6   : > { %v3149_v3 = vpop.f32.mrb[200].mxu1 }
 0x4e7   : > { %v3300_v15 = vpop.f32.mrb[228].mxu0  ;;  %v3197_v39 = vadd.f32 %v3149_v3, %v6155_v21  ;;  %v4845_v49 = vpop.f32.mrb[201].mxu1 }
 0x4e8   : > { %v4875_v29 = vpop.f32.mrb[229].mxu0  ;;  %v3152_v41 = vpop.f32.mrb[202].mxu1 }
 0x4e9   : > { %v3303_v17 = vpop.f32.mrb[230].mxu0  ;;  %v6194_v59 = vadd.f32 %v3300_v15, %v3197_v39  ;;  %v3198_v24 = vadd.f32 %v3152_v41, %v6158_v58  ;;  %v4846_v33 = vpop.f32.mrb[203].mxu1 }
 0x4ea   : > { %v4876_v35 = vpop.f32.mrb[231].mxu0 }
 0x4eb   : > { %v6197_v51 = vadd.f32 %v3303_v17, %v3198_v24 }
 0x4ee   : > { %v3157_v32 = vpop.f32.mrb[204].mxu1 }
 0x4ef   : > { %v3308_v46 = vpop.f32.mrb[232].mxu0  ;;  %v3199_v5 = vadd.f32 %v3157_v32, %v6161_v9  ;;  %v4849_v8 = vpop.f32.mrb[205].mxu1 }
 0x4f0   : > { %v4879_v62 = vpop.f32.mrb[233].mxu0  ;;  %v3160_v0 = vpop.f32.mrb[206].mxu1 }
 0x4f1   : > { %v3311_v21 = vpop.f32.mrb[234].mxu0  ;;  %v6200_v45 = vadd.f32 %v3308_v46, %v3199_v5  ;;  %v3200_v28 = vadd.f32 %v3160_v0, %v6164_v57  ;;  %v4850_v55 = vpop.f32.mrb[207].mxu1 }
 0x4f2   : > { %v4880_v56 = vpop.f32.mrb[235].mxu0 }
 0x4f3   : > { %v6203_v25 = vadd.f32 %v3311_v21, %v3200_v28 }
 0x4f6   : > { %v3165_v58 = vpop.f32.mrb[208].mxu1 }
 0x4f7   : > { %v3316_v12 = vpop.f32.mrb[236].mxu0  ;;  %v3201_v53 = vadd.f32 %v3165_v58, %v6167_v44  ;;  %v4853_v34 = vpop.f32.mrb[209].mxu1 }
 0x4f8   : > { %v4883_v61 = vpop.f32.mrb[237].mxu0  ;;  %v3168_v47 = vpop.f32.mrb[210].mxu1 }
 0x4f9   : > { %v3319_v9 = vpop.f32.mrb[238].mxu0  ;;  %v6206_v37 = vadd.f32 %v3316_v12, %v3201_v53  ;;  %v3202_v20 = vadd.f32 %v3168_v47, %v6170_v30  ;;  %v4854_v14 = vpop.f32.mrb[211].mxu1 }
 0x4fa   : > { %v4884_v60 = vpop.f32.mrb[239].mxu0 }
 0x4fb   : > { %v6209_v27 = vadd.f32 %v3319_v9, %v3202_v20 }
 0x4fe   : > { %v3173_v57 = vpop.f32.mrb[212].mxu1 }
 0x4ff   : > { %v3324_v6 = vpop.f32.mrb[240].mxu0  ;;  %v3203_v38 = vadd.f32 %v3173_v57, %v6173_v1  ;;  %v4857_v52 = vpop.f32.mrb[213].mxu1 }
 0x500   : > { %v4887_v43 = vpop.f32.mrb[241].mxu0  ;;  %v3176_v16 = vpop.f32.mrb[214].mxu1 }
 0x501   : > { %v3327_v44 = vpop.f32.mrb[242].mxu0  ;;  %v6212_v3 = vadd.f32 %v3324_v6, %v3203_v38  ;;  %v3204_v15 = vadd.f32 %v3176_v16, %v6176_v42  ;;  %v4858_v39 = vpop.f32.mrb[215].mxu1 }
 0x502   : > { %v4888_v49 = vpop.f32.mrb[243].mxu0 }
 0x503   : > { %v6215_v29 = vadd.f32 %v3327_v44, %v3204_v15 }
 0x506   : > { %v3181_v30 = vpop.f32.mrb[216].mxu1 }
 0x507   : > { %v3332_v41 = vpop.f32.mrb[244].mxu0  ;;  %v3205_v17 = vadd.f32 %v3181_v30, %v6179_v31  ;;  %v4861_v24 = vpop.f32.mrb[217].mxu1 }
 0x508   : > { %v4891_v33 = vpop.f32.mrb[245].mxu0  ;;  %v3184_v35 = vpop.f32.mrb[218].mxu1 }
 0x509   : > { %v3335_v1 = vpop.f32.mrb[246].mxu0  ;;  %v6218_v32 = vadd.f32 %v3332_v41, %v3205_v17  ;;  %v3206_v46 = vadd.f32 %v3184_v35, %v6182_v48  ;;  %v4862_v5 = vpop.f32.mrb[219].mxu1 }
 0x50a   : > { %v4892_v8 = vpop.f32.mrb[247].mxu0 }
 0x50b   : > { %v6221_v62 = vadd.f32 %v3335_v1, %v3206_v46 }
 0x50e   : > { %v3189_v42 = vpop.f32.mrb[220].mxu1 }
 0x50f   : > { %v3340_v0 = vpop.f32.mrb[248].mxu0  ;;  %v3207_v21 = vadd.f32 %v3189_v42, %v6185_v13  ;;  %v4865_v28 = vpop.f32.mrb[221].mxu1 }
 0x510   : > { %v4895_v55 = vpop.f32.mrb[249].mxu0  ;;  %v3192_v56 = vpop.f32.mrb[222].mxu1 }
 0x511   : > { %v3343_v31 = vpop.f32.mrb[250].mxu0  ;;  %v6224_v58 = vadd.f32 %v3340_v0, %v3207_v21  ;;  %v4866_v12 = vpop.f32.mrb[223].mxu1 }
 0x512   : > { %v4896_v53 = vpop.f32.mrb[251].mxu0 }
 0x516   : > { %v3443_v34 = vpop.f32.mrb[224].mxu1 }
 0x517   : > { %v3594_v61 = vpop.f32.mrb[252].mxu0  ;;  %v3497_v48 = vadd.f32 %v3443_v34, %v6188_v19  ;;  %v4901_v47 = vpop.f32.mrb[225].mxu1 }
 0x518   : > { %v4931_v9 = vpop.f32.mrb[253].mxu0  ;;  %v3446_v20 = vpop.f32.mrb[226].mxu1 }
 0x519   : > { %v3597_v14 = vpop.f32.mrb[254].mxu0  ;;  %v6227_v60 = vadd.f32 %v3594_v61, %v3497_v48  ;;  %v3498_v13 = vadd.f32 %v3446_v20, %v6191_v10  ;;  %v4902_v57 = vpop.f32.mrb[227].mxu1 }
 0x51a   : > { %v4932_v6 = vpop.f32.mrb[255].mxu0 }
 0x51b   : > { %v6230_v38 = vadd.f32 %v3597_v14, %v3498_v13 }
 0x51e   : > { %v3451_v52 = vpop.f32.mrb[228].mxu1 }
 0x51f   : > { %v3602_v43 = vpop.f32.mrb[0].mxu0  ;;  %v3499_v16 = vadd.f32 %v3451_v52, %v6194_v59  ;;  %v4905_v44 = vpop.f32.mrb[229].mxu1 }
 0x520   : > { %v4935_v15 = vpop.f32.mrb[1].mxu0  ;;  %v3454_v39 = vpop.f32.mrb[230].mxu1 }
 0x521   : > { %v3605_v19 = vpop.f32.mrb[2].mxu0  ;;  %v6233_v49 = vadd.f32 %v3602_v43, %v3499_v16  ;;  %v3500_v30 = vadd.f32 %v3454_v39, %v6197_v51  ;;  %v4906_v41 = vpop.f32.mrb[231].mxu1 }
 0x522   : > { %v4936_v17 = vpop.f32.mrb[3].mxu0 }
 0x523   : > { %v6236_v24 = vadd.f32 %v3605_v19, %v3500_v30 }
 0x526   : > { %v3459_v10 = vpop.f32.mrb[232].mxu1 }
 0x527   : > { %v3610_v33 = vpop.f32.mrb[4].mxu0  ;;  %v3501_v35 = vadd.f32 %v3459_v10, %v6200_v45  ;;  %v4909_v1 = vpop.f32.mrb[233].mxu1 }
 0x528   : > { %v4939_v46 = vpop.f32.mrb[5].mxu0  ;;  %v3462_v5 = vpop.f32.mrb[234].mxu1 }
 0x529   : > { %v3613_v59 = vpop.f32.mrb[6].mxu0  ;;  %v6239_v8 = vadd.f32 %v3610_v33, %v3501_v35  ;;  %v3502_v42 = vadd.f32 %v3462_v5, %v6203_v25  ;;  %v4910_v0 = vpop.f32.mrb[235].mxu1 }
 0x52a   : > { %v4940_v21 = vpop.f32.mrb[7].mxu0 }
 0x52b   : > { %v6242_v28 = vadd.f32 %v3613_v59, %v3502_v42 }
 0x52e   : > { %v3467_v51 = vpop.f32.mrb[236].mxu1 }
 0x52f   : > { %v3618_v55 = vpop.f32.mrb[8].mxu0  ;;  %v3503_v56 = vadd.f32 %v3467_v51, %v6206_v37  ;;  %v4913_v31 = vpop.f32.mrb[237].mxu1 }
 0x530   : > { %v4943_v12 = vpop.f32.mrb[9].mxu0  ;;  %v3470_v53 = vpop.f32.mrb[238].mxu1 }
 0x531   : > { %v3621_v45 = vpop.f32.mrb[10].mxu0  ;;  %v6245_v34 = vadd.f32 %v3618_v55, %v3503_v56  ;;  %v3504_v61 = vadd.f32 %v3470_v53, %v6209_v27  ;;  %v4914_v48 = vpop.f32.mrb[239].mxu1 }
 0x532   : > { %v4944_v47 = vpop.f32.mrb[11].mxu0 }
 0x533   : > { %v6248_v9 = vadd.f32 %v3621_v45, %v3504_v61 }
 0x536   : > { %v3475_v25 = vpop.f32.mrb[240].mxu1 }
 0x537   : > { %v3626_v20 = vpop.f32.mrb[12].mxu0  ;;  %v3505_v14 = vadd.f32 %v3475_v25, %v6212_v3  ;;  %v4917_v13 = vpop.f32.mrb[241].mxu1 }
 0x538   : > { %v4947_v57 = vpop.f32.mrb[13].mxu0  ;;  %v3478_v6 = vpop.f32.mrb[242].mxu1 }
 0x539   : > { %v3629_v37 = vpop.f32.mrb[14].mxu0  ;;  %v6251_v52 = vadd.f32 %v3626_v20, %v3505_v14  ;;  %v3506_v43 = vadd.f32 %v3478_v6, %v6215_v29  ;;  %v4918_v16 = vpop.f32.mrb[243].mxu1 }
 0x53a   : > { %v4948_v44 = vpop.f32.mrb[15].mxu0 }
 0x53b   : > { %v6254_v15 = vadd.f32 %v3629_v37, %v3506_v43 }
 0x53e   : > { %v3483_v27 = vpop.f32.mrb[244].mxu1 }
 0x53f   : > { %v3634_v39 = vpop.f32.mrb[16].mxu0  ;;  %v3507_v19 = vadd.f32 %v3483_v27, %v6218_v32  ;;  %v4921_v30 = vpop.f32.mrb[245].mxu1 }
 0x540   : > { %v4951_v41 = vpop.f32.mrb[17].mxu0  ;;  %v3486_v17 = vpop.f32.mrb[246].mxu1 }
 0x541   : > { %v3637_v3 = vpop.f32.mrb[18].mxu0  ;;  %v6257_v10 = vadd.f32 %v3634_v39, %v3507_v19  ;;  %v3508_v33 = vadd.f32 %v3486_v17, %v6221_v62  ;;  %v4922_v35 = vpop.f32.mrb[247].mxu1  ;;  %v6268_v62 = vld [vmem:[%s6413_s12] ss:$0 sm:$0xff] }
 0x542   : > { %v4952_v1 = vpop.f32.mrb[19].mxu0 }
 0x543   : > { %v6260_v46 = vadd.f32 %v3637_v3, %v3508_v33 }
 0x546   : > { %v3491_v29 = vpop.f32.mrb[248].mxu1 }
 0x547   : > { %v3642_v5 = vpop.f32.mrb[20].mxu0  ;;  %v3509_v59 = vadd.f32 %v3491_v29, %v6224_v58  ;;  %v4925_v42 = vpop.f32.mrb[249].mxu1  ;;  %v6274_v58 = vld [vmem:[%s6414_s13] ss:$0 sm:$0xff] }
 0x548   : > { %v4955_v0 = vpop.f32.mrb[21].mxu0  ;;  %v3494_v21 = vpop.f32.mrb[250].mxu1 }
 0x549   : > { %v3645_v32 = vpop.f32.mrb[22].mxu0  ;;  %v6263_v51 = vadd.f32 %v3642_v5, %v3509_v59  ;;  %v4926_v55 = vpop.f32.mrb[251].mxu1 }
 0x54a   : > { %v4956_v56 = vpop.f32.mrb[23].mxu0 }
 0x54e   : > { %v3745_v31 = vpop.f32.mrb[252].mxu1 }
 0x54f   : > { %v3799_v12 = vadd.f32 %v3745_v31, %v6227_v60  ;;  %v4961_v53 = vpop.f32.mrb[253].mxu1 }
 0x550   : > { %v3748_v45 = vpop.f32.mrb[254].mxu1 }
 0x551   : > { %v3819_v61 = vadd.f32 %v6268_v62, %v3799_v12  ;;  %v3800_v48 = vadd.f32 %v3748_v45, %v6230_v38  ;;  %v4962_v47 = vpop.f32.mrb[255].mxu1 }
 0x553   : > { %v3820_v25 = vadd.f32 %v6268_v62, %v3800_v48  ;;  %v3839_v20 = vmul.f32 %v6274_v58, %v3819_v61 }
 0x555   : > { %3865 = vrot.lane.b32.xlu0 %v3839_v20, %s5022_s23  ;;  %v3840_v60 = vmul.f32 %v6274_v58, %v3820_v25 }
 0x556   : > { %v3753_v14 = vpop.f32.mrb[0].mxu1 }
 0x557   : > { %v3801_v13 = vadd.f32 %v3753_v14, %v6233_v49  ;;  %v4965_v57 = vpop.f32.mrb[1].mxu1  ;;  %3867 = vrot.lane.b32.xlu1 %v3840_v60, %s5022_s23 }
 0x558   : > { %v3756_v6 = vpop.f32.mrb[2].mxu1 }
 0x559   : > { %v3821_v37 = vadd.f32 %v6268_v62, %v3801_v13  ;;  %v3802_v38 = vadd.f32 %v3756_v6, %v6236_v24  ;;  %v4966_v43 = vpop.f32.mrb[3].mxu1 }
 0x55b   : > { %v3822_v16 = vadd.f32 %v6268_v62, %v3802_v38  ;;  %v3841_v44 = vmul.f32 %v6274_v58, %v3821_v37 }
 0x55d   : > { %3869 = vrot.lane.b32.xlu0 %v3841_v44, %s5022_s23  ;;  %v3842_v27 = vmul.f32 %v6274_v58, %v3822_v16 }
 0x55e   : > { %v3761_v39 = vpop.f32.mrb[4].mxu1 }
 0x55f   : > { %v3803_v49 = vadd.f32 %v3761_v39, %v6239_v8  ;;  %v4969_v19 = vpop.f32.mrb[5].mxu1  ;;  %3871 = vrot.lane.b32.xlu1 %v3842_v27, %s5022_s23 }
 0x560   : > { %v3764_v30 = vpop.f32.mrb[6].mxu1 }
 0x561   : > { %v3823_v41 = vadd.f32 %v6268_v62, %v3803_v49  ;;  %v3804_v24 = vadd.f32 %v3764_v30, %v6242_v28  ;;  %v4970_v17 = vpop.f32.mrb[7].mxu1 }
 0x563   : > { %v3824_v3 = vadd.f32 %v6268_v62, %v3804_v24  ;;  %v3843_v33 = vmul.f32 %v6274_v58, %v3823_v41 }
 0x565   : > { %3873 = vrot.lane.b32.xlu0 %v3843_v33, %s5022_s23  ;;  %v3844_v35 = vmul.f32 %v6274_v58, %v3824_v3 }
 0x566   : > { %v3769_v1 = vpop.f32.mrb[8].mxu1 }
 0x567   : > { %v3805_v8 = vadd.f32 %v3769_v1, %v6245_v34  ;;  %v4973_v29 = vpop.f32.mrb[9].mxu1  ;;  %3875 = vrot.lane.b32.xlu1 %v3844_v35, %s5022_s23 }
 0x568   : > { %v3772_v5 = vpop.f32.mrb[10].mxu1 }
 0x569   : > { %v3825_v59 = vadd.f32 %v6268_v62, %v3805_v8  ;;  %v3806_v28 = vadd.f32 %v3772_v5, %v6248_v9  ;;  %v4974_v42 = vpop.f32.mrb[11].mxu1 }
 0x56b   : > { %v3826_v0 = vadd.f32 %v6268_v62, %v3806_v28  ;;  %v3845_v21 = vmul.f32 %v6274_v58, %v3825_v59 }
 0x56d   : > { %3877 = vrot.lane.b32.xlu0 %v3845_v21, %s5022_s23  ;;  %v3846_v32 = vmul.f32 %v6274_v58, %v3826_v0 }
 0x56e   : > { %v3777_v55 = vpop.f32.mrb[12].mxu1 }
 0x56f   : > { %v3807_v34 = vadd.f32 %v3777_v55, %v6251_v52  ;;  %v4977_v56 = vpop.f32.mrb[13].mxu1  ;;  %3879 = vrot.lane.b32.xlu1 %v3846_v32, %s5022_s23 }
 0x570   : > { %v3780_v31 = vpop.f32.mrb[14].mxu1 }
 0x571   : > { %v3827_v12 = vadd.f32 %v6268_v62, %v3807_v34  ;;  %v3808_v9 = vadd.f32 %v3780_v31, %v6254_v15  ;;  %v4978_v53 = vpop.f32.mrb[15].mxu1 }
 0x573   : > { %v3828_v45 = vadd.f32 %v6268_v62, %v3808_v9  ;;  %v3847_v61 = vmul.f32 %v6274_v58, %v3827_v12 }
 0x575   : > { %3881 = vrot.lane.b32.xlu0 %v3847_v61, %s5022_s23  ;;  %v3848_v48 = vmul.f32 %v6274_v58, %v3828_v45 }
 0x576   : > { %v3785_v47 = vpop.f32.mrb[16].mxu1 }
 0x577   : > { %v3809_v52 = vadd.f32 %v3785_v47, %v6257_v10  ;;  %v4981_v25 = vpop.f32.mrb[17].mxu1  ;;  %3883 = vrot.lane.b32.xlu1 %v3848_v48, %s5022_s23 }
 0x578   : > { %v3788_v20 = vpop.f32.mrb[18].mxu1 }
 0x579   : > { %v3829_v60 = vadd.f32 %v6268_v62, %v3809_v52  ;;  %v3810_v15 = vadd.f32 %v3788_v20, %v6260_v46  ;;  %v4982_v14 = vpop.f32.mrb[19].mxu1 }
 0x57b   : > { %v3830_v13 = vadd.f32 %v6268_v62, %v3810_v15  ;;  %v3849_v57 = vmul.f32 %v6274_v58, %v3829_v60 }
 0x57d   : > { %3885 = vrot.lane.b32.xlu0 %v3849_v57, %s5022_s23  ;;  %v3850_v6 = vmul.f32 %v6274_v58, %v3830_v13 }
 0x57e   : > { %v3793_v37 = vpop.f32.mrb[20].mxu1 }
 0x57f   : > { %v3811_v10 = vadd.f32 %v3793_v37, %v6263_v51  ;;  %v4985_v38 = vpop.f32.mrb[21].mxu1  ;;  %3887 = vrot.lane.b32.xlu1 %v3850_v6, %s5022_s23 }
 0x580   : > { %v3796_v43 = vpop.f32.mrb[22].mxu1 }
 0x581   : > { %v3831_v16 = vadd.f32 %v6268_v62, %v3811_v10  ;;  %v4986_v46 = vpop.f32.mrb[23].mxu1 }
 0x583   : > { %v3851_v44 = vmul.f32 %v6274_v58, %v3831_v16 }
 0x585   : > { %3889 = vrot.lane.b32.xlu0 %v3851_v44, %s5022_s23 }
 0x5c7   : > { %v3866_v27 = vpop.permute.xlu0 %3865 }
 0x5c8   : > { %v3904_v51 = vadd.f32 %v3866_v27, %v5279_v63 }
 0x5c9   : > { %v3868_v39 = vpop.permute.xlu1 %3867 }
 0x5ca   : > { %v3917_v62 = vsel %vm813_vm3, %v5279_v63, %v3904_v51  ;;  %v3905_v58 = vadd.f32 %v3868_v39, %v5283_v4 }
 0x5cb   : > { %3930 = vst.msk [vmem:[%s6331_s26] sm:$0xff] %vm548_vm2, %v3917_v62 }
 0x5cc   : > { %v3918_v49 = vsel %vm813_vm3, %v5283_v4, %v3905_v58 }
 0x5cd   : > { %3931 = vst.msk [vmem:[%s6331_s26 + $0x8] sm:$0xff] %vm548_vm2, %v3918_v49 }
 0x5cf   : > { %v3870_v19 = vpop.permute.xlu0 %3869 }
 0x5d0   : > { %v3906_v30 = vadd.f32 %v3870_v19, %v5290_v11 }
 0x5d1   : > { %v3872_v41 = vpop.permute.xlu1 %3871 }
 0x5d2   : > { %v3919_v24 = vsel %vm813_vm3, %v5290_v11, %v3906_v30  ;;  %v3907_v63 = vadd.f32 %v3872_v41, %v5299_v22 }
 0x5d3   : > { %3932 = vst.msk [vmem:[%s6331_s26 + $0x10] sm:$0xff] %vm548_vm2, %v3919_v24 }
 0x5d4   : > { %v3920_v17 = vsel %vm813_vm3, %v5299_v22, %v3907_v63 }
 0x5d5   : > { %3933 = vst.msk [vmem:[%s6331_s26 + $0x18] sm:$0xff] %vm548_vm2, %v3920_v17 }
 0x5d7   : > { %v3874_v4 = vpop.permute.xlu0 %3873 }
 0x5d8   : > { %v3908_v3 = vadd.f32 %v3874_v4, %v5311_v26 }
 0x5d9   : > { %v3876_v33 = vpop.permute.xlu1 %3875 }
 0x5da   : > { %v3921_v35 = vsel %vm813_vm3, %v5311_v26, %v3908_v3  ;;  %v3909_v11 = vadd.f32 %v3876_v33, %v5315_v36 }
 0x5db   : > { %3934 = vst.msk [vmem:[%s6331_s26 + $0x20] sm:$0xff] %vm548_vm2, %v3921_v35 }
 0x5dc   : > { %v3922_v1 = vsel %vm813_vm3, %v5315_v36, %v3909_v11 }
 0x5dd   : > { %3935 = vst.msk [vmem:[%s6331_s26 + $0x28] sm:$0xff] %vm548_vm2, %v3922_v1 }
 0x5df   : > { %v3878_v22 = vpop.permute.xlu0 %3877 }
 0x5e0   : > { %v3910_v8 = vadd.f32 %v3878_v22, %v5325_v40 }
 0x5e1   : > { %v3880_v29 = vpop.permute.xlu1 %3879 }
 0x5e2   : > { %v3923_v5 = vsel %vm813_vm3, %v5325_v40, %v3910_v8  ;;  %v3911_v26 = vadd.f32 %v3880_v29, %v5329_v50 }
 0x5e3   : > { %3936 = vst.msk [vmem:[%s6331_s26 + $0x30] sm:$0xff] %vm548_vm2, %v3923_v5 }
 0x5e4   : > { %v3924_v59 = vsel %vm813_vm3, %v5329_v50, %v3911_v26 }
 0x5e5   : > { %3937 = vst.msk [vmem:[%s6331_s26 + $0x38] sm:$0xff] %vm548_vm2, %v3924_v59 }
 0x5e7   : > { %v3882_v36 = vpop.permute.xlu0 %3881 }
 0x5e8   : > { %v3912_v28 = vadd.f32 %v3882_v36, %v5339_v54 }
 0x5e9   : > { %v3884_v42 = vpop.permute.xlu1 %3883 }
 0x5ea   : > { %v3925_v0 = vsel %vm813_vm3, %v5339_v54, %v3912_v28  ;;  %v3913_v40 = vadd.f32 %v3884_v42, %v5343_v2 }
 0x5eb   : > { %3938 = vst.msk [vmem:[%s6331_s26 + $0x40] sm:$0xff] %vm548_vm2, %v3925_v0 }
 0x5ec   : > { %v3926_v21 = vsel %vm813_vm3, %v5343_v2, %v3913_v40 }
 0x5ed   : > { %3939 = vst.msk [vmem:[%s6331_s26 + $0x48] sm:$0xff] %vm548_vm2, %v3926_v21 }
 0x5ef   : > { %v3886_v50 = vpop.permute.xlu0 %3885 }
 0x5f0   : > { %v3914_v32 = vadd.f32 %v3886_v50, %v5353_v7 }
 0x5f1   : > { %v3888_v55 = vpop.permute.xlu1 %3887 }
 0x5f2   : > { %v3927_v34 = vsel %vm813_vm3, %v5353_v7, %v3914_v32  ;;  %v3915_v56 = vadd.f32 %v3888_v55, %v5357_v18 }
 0x5f3   : > { %3940 = vst.msk [vmem:[%s6331_s26 + $0x50] sm:$0xff] %vm548_vm2, %v3927_v34 }
 0x5f4   : > { %v3928_v54 = vsel %vm813_vm3, %v5357_v18, %v3915_v56 }
 0x5f5   : > { %3941 = vst.msk [vmem:[%s6331_s26 + $0x58] sm:$0xff] %vm548_vm2, %v3928_v54 }
 0x5f7   : > { %v3890_v31 = vpop.permute.xlu0 %3889 }
 0x5f8   : > { %v3916_v2 = vadd.f32 %v3890_v31, %v5367_v23 }
 0x5fa   : > { %v3929_v12 = vsel %vm813_vm3, %v5367_v23, %v3916_v2 }
 0x5fb   : > { %3942 = vst.msk [vmem:[%s6331_s26 + $0x60] sm:$0xff] %vm548_vm2, %v3929_v12 }
 0x5fc PF: > { %s24_s29 = sadd.s32 1, %s5017_s29  }
 0x5fd   : > { %p21_p4 = scmp.ge.s32.totalorder %s24_s29, 4  }
 0x5ff   :  { %23 = sbr.rel (!%p21_p4) target bundleno = 1 (0x1), region = 125 }

// kernel: flownet_encode.10
= control target key start
LH: loop header
LB: loop body
LE: loop exit
PB: predicated region body
PF: predicated region fallthrough
CT: control target
= control target key end

     0   :  { %s3081_s29 = smov 0   ;;  %s3540_s0 = inlined_call_operand.vmem [shape: f32[80,8], index: 0, kind: input, shape index: {}, may-alias: {0,14}]   ;;  %s3541_s1 = inlined_call_operand.vmem [shape: f32[80,1], index: 1, kind: input, shape index: {}]   ;;  %s3542_s2 = inlined_call_operand.vmem [shape: f32[1,8], index: 2, kind: input, shape index: {}]   ;;  %s3543_s3 = inlined_call_operand.vmem [shape: f32[1,8], index: 3, kind: input, shape index: {}]   ;;  %s3544_s4 = inlined_call_operand.vmem [shape: f32[8,8], index: 4, kind: input, shape index: {}]   ;;  %s3545_s5 = inlined_call_operand.vmem [shape: bf16[9,4,16], index: 5, kind: input, shape index: {}]   ;;  %s3546_s6 = inlined_call_operand.vmem [shape: f32[1,16], index: 6, kind: input, shape index: {}]   ;;  %s3547_s7 = inlined_call_operand.vmem [shape: f32[1,16], index: 7, kind: input, shape index: {}]   ;;  %s3548_s8 = inlined_call_operand.vmem [shape: bf16[16,16], index: 8, kind: input, shape index: {}]   ;;  %s3549_s9 = inlined_call_operand.vmem [shape: f32[1,16], index: 9, kind: input, shape index: {}]   ;;  %s3550_s10 = inlined_call_operand.vmem [shape: f32[1,16], index: 10, kind: input, shape index: {}]   ;;  %s3551_s11 = inlined_call_operand.vmem [shape: bf16[9,16,4], index: 11, kind: input, shape index: {}]   ;;  %s3552_s12 = inlined_call_operand.vmem [shape: f32[1,4], index: 12, kind: input, shape index: {}]   ;;  %s3553_s13 = inlined_call_operand.vmem [shape: f32[1,4], index: 13, kind: input, shape index: {}]   ;;  %s3554_s14 = inlined_call_operand.vmem [shape: f32[80,8], index: 14, kind: output, shape index: {}, may-alias: {0,14}]  }
   0x1 LB: > { %s2491_s30 = sadd.s32 4294967295, %s3000_s29   ;;  %p2495_p0 = scmp.ge.s32.totalorder %s3000_s29, 1  ;;  %s3000_s29 = sphi %s3081_s29, %s24_s29  }
   0x2   : > { %p424_p1 = scmp.lt.s32.totalorder %s3000_s29, 3 }
   0x4   : > { %p425_p2 = pnand %p2495_p0, %p424_p1 }
   0x5   : > { %v523_v0 = vld [vmem:[%s3544_s4] sm:$0xff] (!%p425_p2)  ;;  %s475_s17 = smul.u32 (!%p425_p2), 5, %s2491_s30  ;;  %v3002_v1 = vmov (!%p425_p2), 0.0   ;;  %vm3003_vm0 = vmmov (!%p425_p2), 0   ;;  %v3004_v2 = vmov (!%p425_p2), 0   ;;  %vm524_vm1 = vcmask (!%p425_p2), 64512  }
   0x6   : > { %428 = sbr.rel (%p425_p2) target bundleno = 1250 (0x4e2), region = 76  ;;  %2687 = vmatprep.subr.mxu0 (!%p425_p2), %v3002_v1  ;;  %2689 = vmatprep.mubr.msk.f32.mxu0 (!%p425_p2), %vm3003_vm0, %v3002_v1  ;;  %v2499_v3 = vld [vmem:[%s3542_s2] ss:$0 sm:$0xff] (!%p425_p2)  ;;  %vm665_vm2 = vcmask (!%p425_p2), 31744   ;;  %v2506_v25 = vld [vmem:[%s3545_s5 + $0x2] sm:$0x3] (!%p425_p2) }
   0x7   : > { %2688 = vmatpush3.msra.mxu0 (!%p425_p2), %v523_v0  ;;  %p476_p3 = scmp.lt.s32.totalorder (!%p425_p2), %s475_s17, 9  ;;  %2982 = vset.pattern.permute.xlu0 (!%p425_p2), %v3004_v2  ;;  %v2500_v5 = vld [vmem:[%s3543_s3] ss:$0 sm:$0xff] (!%p425_p2)  ;;  %667 = vst.msk [vmem:[#allocation2 + $0x8] sm:$0xff] (!%p425_p2), %vm665_vm2, %v3002_v1  ;;  %666 = vst.msk [vmem:[#allocation2] sm:$0xff] (!%p425_p2), %vm665_vm2, %v3002_v1  ;;  %vm706_vm3 = vcmask (!%p425_p2), 1041408  }
   0x8   : > { %2983 = vset.pattern.permute.xlu1 (!%p425_p2), %v3004_v2  ;;  %2704 = vmatprep.subr.bf16.mxu1 (!%p425_p2), %v3002_v1  ;;  %668 = vst.msk [vmem:[#allocation2 + $0x10] sm:$0xff] (!%p425_p2), %vm665_vm2, %v3002_v1  ;;  %669 = vst.msk [vmem:[#allocation2 + $0x18] sm:$0xff] (!%p425_p2), %vm665_vm2, %v3002_v1  ;;  %v686_v26 = vld [vmem:[%s3545_s5] sm:$0x3] (!%p425_p2)  ;;  %v708_v27 = vsel (!%p425_p2), %vm706_vm3, %v2506_v25, 0  ;;  %vm1462_vm4 = vcmask (!%p425_p2), 130048  }
   0x9   : > { %2718 = vmatprep.subr.bf16.mxu0 (!%p425_p2), %v3002_v1  ;;  %2706 = vmatprep.mubr.msk.bf16.mxu1 (!%p425_p2), %vm3003_vm0, %v3002_v1  ;;  %670 = vst.msk [vmem:[#allocation2 + $0x20] sm:$0xff] (!%p425_p2), %vm665_vm2, %v3002_v1  ;;  %671 = vst.msk [vmem:[#allocation2 + $0x28] sm:$0xff] (!%p425_p2), %vm665_vm2, %v3002_v1  ;;  %v776_v28 = vsel (!%p425_p2), %vm706_vm3, %v686_v26, 0  ;;  %v2513_v43 = vld [vmem:[%s3545_s5 + $0x4] sm:$0x3] (!%p425_p2) }
   0xa   : > { %672 = vst.msk [vmem:[#allocation2 + $0x30] sm:$0xff] (!%p425_p2), %vm665_vm2, %v3002_v1  ;;  %2705 = vmatpush3.bf16.msra.mxu1 (!%p425_p2), %v708_v27  ;;  %v2517_v47 = vld [vmem:[%s3545_s5 + $0x6] sm:$0x3] (!%p425_p2)  ;;  %v854_v53 = vsel (!%p425_p2), %vm706_vm3, %v2513_v43, 0 }
   0xb   : > { %2732 = vmatprep.subr.bf16.mxu1 (!%p425_p2), %v3002_v1  ;;  %v937_v56 = vsel (!%p425_p2), %vm706_vm3, %v2517_v47, 0  ;;  %1580 = vst.msk [vmem:[#allocation3] sm:$0xff] (!%p425_p2), %vm1462_vm4, %v3002_v1  ;;  %1581 = vst.msk [vmem:[#allocation3 + $0x8] sm:$0xff] (!%p425_p2), %vm1462_vm4, %v3002_v1 }
   0xc   : > { %1582 = vst.msk [vmem:[#allocation3 + $0x10] sm:$0xff] (!%p425_p2), %vm1462_vm4, %v3002_v1  ;;  %1583 = vst.msk [vmem:[#allocation3 + $0x18] sm:$0xff] (!%p425_p2), %vm1462_vm4, %v3002_v1 }
   0xd   : > { %s3556_s17 = smov (!%p476_p3, %s475_s17), 9  ;;  %1584 = vst.msk [vmem:[#allocation3 + $0x20] sm:$0xff] %vm1462_vm4, %v3002_v1  ;;  %1585 = vst.msk [vmem:[#allocation3 + $0x28] sm:$0xff] %vm1462_vm4, %v3002_v1 }
   0xe   : > { %s3102_s20 = sshll.u32 %s3556_s17, 3  ;;  %1586 = vst.msk [vmem:[#allocation3 + $0x30] sm:$0xff] %vm1462_vm4, %v3002_v1 }
   0xf   : > { %s479_s23 = scalar_lea.vmem %s3540_s0, %s3102_s20  ;;  %s485_s28 = scalar_lea.vmem %s3541_s1, %s3102_s20 }
  0x10   : > { %v494_v4 = vld [vmem:[%s479_s23] sm:$0xff]  ;;  %v495_v6 = vld [vmem:[%s479_s23 + $0x8] sm:$0xff]  ;;  %v496_v10 = vld [vmem:[%s479_s23 + $0x10] sm:$0xff]  ;;  %s491_s26 = scalar_lea.vmem %s3554_s14, %s3102_s20 }
  0x11   : > { %v506_v7 = vadd.f32 %v2499_v3, %v494_v4  ;;  %v507_v8 = vadd.f32 %v2499_v3, %v495_v6  ;;  %v630_v9 = vld [vmem:[%s485_s28] sm:$0xff]  ;;  %v632_v11 = vld [vmem:[%s485_s28 + $0x10] sm:$0xff]  ;;  %v631_v13 = vld [vmem:[%s485_s28 + $0x8] sm:$0xff]  ;;  %v508_v16 = vadd.f32 %v2499_v3, %v496_v10 }
  0x12   : > { %637 = vperm.xlu0 %2982, %v630_v9   ;;  %647 = vperm.xlu1 %2983, %v632_v11   ;;  %v633_v14 = vld [vmem:[%s485_s28 + $0x18] sm:$0xff]  ;;  %v634_v18 = vld [vmem:[%s485_s28 + $0x20] sm:$0xff] }
  0x13   : > { %v518_v12 = vmul.f32 %v2500_v5, %v506_v7  ;;  %v519_v15 = vmul.f32 %v2500_v5, %v507_v8  ;;  %v497_v17 = vld [vmem:[%s479_s23 + $0x18] sm:$0xff]  ;;  %v520_v19 = vmul.f32 %v2500_v5, %v508_v16  ;;  %v498_v21 = vld [vmem:[%s479_s23 + $0x20] sm:$0xff]  ;;  %s3005_s23 = smov 4  }
  0x14   : > { %v509_v20 = vadd.f32 %v2499_v3, %v497_v17  ;;  %v510_v23 = vadd.f32 %v2499_v3, %v498_v21 }
  0x15   : > { %2690 = vmatmul.mubr.msk.f32.vlgmr.msra.gmra.mrb[0].mxu0 %vm524_vm1, %v518_v12 }
  0x16   : > { %2692 = vmatprep.mubr.msk.f32.mxu0 %vm3003_vm0, %v3002_v1  ;;  %642 = vperm.xlu0 %2982, %v631_v13   ;;  %v521_v22 = vmul.f32 %v2500_v5, %v509_v20  ;;  %v522_v24 = vmul.f32 %v2500_v5, %v510_v23 }
  0x17   : > { %652 = vperm.xlu1 %2983, %v633_v14   ;;  %2719 = vmatpush3.bf16.msra.mxu0 %v776_v28 }
  0x18   : > { %2746 = vmatprep.subr.bf16.mxu0 %v3002_v1 }
  0x19   : > { %2693 = vmatmul.mubr.msk.f32.gmra.mrb[2].mxu0 %vm524_vm1, %v519_v15 }
  0x1a   : > { %2695 = vmatprep.mubr.msk.f32.mxu0 %vm3003_vm0, %v3002_v1  ;;  %657 = vperm.xlu0 %2982, %v634_v18  }
  0x1b   : > { %1552 = vperm.xlu1 %2983, %v630_v9  }
  0x1d   : > { %2696 = vmatmul.mubr.msk.f32.gmra.mrb[4].mxu0 %vm524_vm1, %v520_v19 }
  0x1e   : > { %2698 = vmatprep.mubr.msk.f32.mxu0 %vm3003_vm0, %v3002_v1  ;;  %1557 = vperm.xlu0 %2982, %v631_v13   ;;  %v2521_v13 = vld [vmem:[%s3545_s5 + $0x8] sm:$0x3] }
  0x1f   : > { %1562 = vperm.xlu1 %2983, %v632_v11   ;;  %v1020_v19 = vsel %vm706_vm3, %v2521_v13, 0 }
  0x21   : > { %2699 = vmatmul.mubr.msk.f32.gmra.mrb[6].mxu0 %vm524_vm1, %v521_v22 }
  0x22   : > { %2701 = vmatprep.mubr.msk.f32.mxu0 %vm3003_vm0, %v3002_v1  ;;  %1567 = vperm.xlu0 %2982, %v633_v14   ;;  %v2525_v14 = vld [vmem:[%s3545_s5 + $0xa] sm:$0x3] }
  0x23   : > { %1572 = vperm.xlu1 %2983, %v634_v18   ;;  %v1103_v20 = vsel %vm706_vm3, %v2525_v14, 0 }
  0x25   : > { %2702 = vmatmul.mubr.msk.f32.gmra.mrb[8].mxu0 %vm524_vm1, %v522_v24 }
  0x26   : > { %2720 = vmatprep.mubr.msk.bf16.mxu0 %vm3003_vm0, %v3002_v1 }
  0x91   : > { %v638_v29 = vpop.permute.xlu0 %637  ;;  %v648_v37 = vpop.permute.xlu1 %647 }
  0x95   : > { %v643_v33 = vpop.permute.xlu0 %642 }
  0x96   : > { %v653_v41 = vpop.permute.xlu1 %652 }
  0x99   : > { %v658_v54 = vpop.permute.xlu0 %657 }
  0xe8   : > { %v606_v30 = vpop.f32.mrb[0].mxu0 }
  0xe9   : > { %v3154_v31 = vmul.f32 %v638_v29, %v606_v30  ;;  %v2691_v32 = vpop.f32.mrb[1].mxu0  ;;  %v2529_v29 = vld [vmem:[%s3545_s5 + $0xc] sm:$0x3]  ;;  %v2533_v30 = vld [vmem:[%s3545_s5 + $0xe] sm:$0x3] }
  0xeb   : > { %673 = vst.msk [vmem:[#allocation2 + $0x8] sm:$0xff] %vm665_vm2, %v3154_v31 }
  0xec   : > { %v611_v34 = vpop.f32.mrb[2].mxu0 }
  0xed   : > { %v3158_v35 = vmul.f32 %v643_v33, %v611_v34  ;;  %v2694_v36 = vpop.f32.mrb[3].mxu0 }
  0xee   : > { %v1186_v36 = vsel %vm706_vm3, %v2529_v29, 0 }
  0xef   : > { %674 = vst.msk [vmem:[#allocation2 + $0x10] sm:$0xff] %vm665_vm2, %v3158_v35 }
  0xf0   : > { %v616_v38 = vpop.f32.mrb[4].mxu0 }
  0xf1   : > { %v3162_v39 = vmul.f32 %v648_v37, %v616_v38  ;;  %v2697_v40 = vpop.f32.mrb[5].mxu0  ;;  %v1269_v37 = vsel %vm706_vm3, %v2533_v30, 0 }
  0xf2   : > { %v687_v46 = vld [vmem:[#allocation2 + $0x2] sm:$0xff] }
  0xf3   : > { %675 = vst.msk [vmem:[#allocation2 + $0x18] sm:$0xff] %vm665_vm2, %v3162_v39  ;;  %v678_v49 = vld [vmem:[#allocation2 + $0x1] sm:$0xff] }
  0xf4   : > { %v621_v42 = vpop.f32.mrb[6].mxu0  ;;  %v834_v15 = vld [vmem:[#allocation2 + $0x3] sm:$0xff] }
  0xf5   : > { %v3169_v44 = vmul.f32 %v653_v41, %v621_v42  ;;  %v2700_v45 = vpop.f32.mrb[7].mxu0  ;;  %v917_v16 = vld [vmem:[#allocation2 + $0x7] sm:$0xff] }
  0xf6   : > { %v688_v48 = vld [vmem:[#allocation2 + $0xa] sm:$0xff] }
  0xf7   : > { %v3174_v50 = vld [vmem:[#allocation2 + $0x9] sm:$0xff]  ;;  %676 = vst.msk [vmem:[#allocation2 + $0x20] sm:$0xff] %vm665_vm2, %v3169_v44  ;;  %v692_v51 = vpack.c.bf16 %v688_v48, %v687_v46 }
  0xf8   : > { %v683_v52 = vpack.c.bf16 %v3174_v50, %v678_v49  ;;  %v626_v55 = vpop.f32.mrb[8].mxu0  ;;  %v3191_v59 = vld [vmem:[#allocation2 + $0xf] sm:$0xff] }
  0xf9   : > { %v3181_v57 = vmul.f32 %v658_v54, %v626_v55  ;;  %2707 = vmatmul.mubr.msk.bf16.vlgmr.msra.gmra.mrb[0].mxu1 %vm665_vm2, %v692_v51  ;;  %v2703_v58 = vpop.f32.mrb[9].mxu0  ;;  %v835_v12 = vld [vmem:[#allocation2 + $0xb] sm:$0xff]  ;;  %v922_v18 = vpack.c.bf16 %v3191_v59, %v917_v16 }
  0xfa   : > { %2721 = vmatmul.mubr.msk.bf16.vlgmr.msra.gmra.mrb[12].mxu0 %vm665_vm2, %v683_v52  ;;  %2733 = vmatpush3.bf16.msra.mxu1 %v854_v53  ;;  %v3193_v60 = vld [vmem:[#allocation2 + $0x17] sm:$0xff]  ;;  %v839_v17 = vpack.c.bf16 %v835_v12, %v834_v15  ;;  %v1000_v32 = vld [vmem:[#allocation2 + $0x8] sm:$0xff] }
  0xfb   : > { %2710 = vmatprep.mubr.msk.bf16.mxu1 %vm3003_vm0, %v3002_v1  ;;  %677 = vst.msk [vmem:[#allocation2 + $0x28] sm:$0xff] %vm665_vm2, %v3181_v57  ;;  %2724 = vmatprep.mubr.msk.bf16.mxu0 %vm3003_vm0, %v3002_v1  ;;  %v1337_v61 = vpack.c.bf16 %v3193_v60, %v3191_v59  ;;  %v689_v62 = vld [vmem:[#allocation2 + $0x12] sm:$0xff]  ;;  %v2984_v59 = vld [vmem:[%s3548_s8] sm:$0xff]  }
  0xfc   : > { %2747 = vmatpush3.bf16.msra.mxu0 %v937_v56  ;;  %2760 = vmatprep.subr.bf16.mxu1 %v3002_v1  ;;  %v680_v0 = vld [vmem:[#allocation2 + $0x11] sm:$0xff] }
  0xfd   : > { %2774 = vmatprep.subr.bf16.mxu0 %v3002_v1  ;;  %v836_v22 = vld [vmem:[#allocation2 + $0x13] sm:$0xff]  ;;  %v1088_v34 = vpack.c.bf16 %v680_v0, %v3174_v50  ;;  %v2537_v50 = vld [vmem:[%s3545_s5 + $0x10] sm:$0x3] }
  0xfe   : > { %v690_v63 = vld [vmem:[#allocation2 + $0x1a] sm:$0xff]  ;;  %v1001_v28 = vld [vmem:[#allocation2 + $0x10] sm:$0xff]  ;;  %v1352_v55 = vsel %vm706_vm3, %v2537_v50, 0 }
  0xff   : > { %v3199_v2 = vld [vmem:[#allocation2 + $0x19] sm:$0xff]  ;;  %v693_v3 = vpack.c.bf16 %v690_v63, %v689_v62  ;;  %v1005_v33 = vpack.c.bf16 %v1001_v28, %v1000_v32  ;;  %v1166_v51 = vld [vmem:[#allocation2 + $0xd] sm:$0xff] }
 0x100   : > { %v684_v4 = vpack.c.bf16 %v3199_v2, %v680_v0  ;;  %v3208_v5 = vld [vmem:[#allocation2 + $0x1f] sm:$0xff]  ;;  %v1167_v48 = vld [vmem:[#allocation2 + $0x15] sm:$0xff] }
 0x101   : > { %2711 = vmatmul.mubr.msk.bf16.gmra.mrb[4].mxu1 %vm665_vm2, %v693_v3  ;;  %v837_v21 = vld [vmem:[#allocation2 + $0x1b] sm:$0xff]  ;;  %v923_v24 = vpack.c.bf16 %v3208_v5, %v3193_v60  ;;  %v1249_v52 = vld [vmem:[#allocation2 + $0xe] sm:$0xff]  ;;  %v1171_v53 = vpack.c.bf16 %v1167_v48, %v1166_v51 }
 0x102   : > { %2725 = vmatmul.mubr.msk.bf16.gmra.mrb[16].mxu0 %vm665_vm2, %v684_v4  ;;  %2714 = vmatprep.mubr.msk.bf16.mxu1 %vm3003_vm0, %v3002_v1  ;;  %v3210_v6 = vld [vmem:[#allocation2 + $0x27] sm:$0xff]  ;;  %v840_v23 = vpack.c.bf16 %v837_v21, %v836_v22  ;;  %v1002_v40 = vld [vmem:[#allocation2 + $0x18] sm:$0xff] }
 0x103   : > { %2728 = vmatprep.mubr.msk.bf16.mxu0 %vm3003_vm0, %v3002_v1  ;;  %v691_v7 = vld [vmem:[#allocation2 + $0x22] sm:$0xff]  ;;  %v1338_v9 = vpack.c.bf16 %v3210_v6, %v3208_v5  ;;  %v924_v27 = vpack.c.bf16 %v3210_v6, %v3210_v6  ;;  %v1250_v49 = vld [vmem:[#allocation2 + $0x16] sm:$0xff]  ;;  %v1170_v3 = vld [vmem:[#allocation2 + $0x2d] sm:$0xff] }
 0x104   : > { %v682_v8 = vld [vmem:[#allocation2 + $0x21] sm:$0xff]  ;;  %v694_v10 = vpack.c.bf16 %v691_v7, %v691_v7  ;;  %v1087_v45 = vld [vmem:[#allocation2 + $0x29] sm:$0xff]  ;;  %v1254_v54 = vpack.c.bf16 %v1250_v49, %v1249_v52  ;;  %v1173_v7 = vpack.c.bf16 %v1170_v3, %v1170_v3 }
 0x105   : > { %v685_v11 = vpack.c.bf16 %v682_v8, %v682_v8  ;;  %v838_v25 = vld [vmem:[#allocation2 + $0x23] sm:$0xff]  ;;  %v1089_v42 = vpack.c.bf16 %v682_v8, %v3199_v2  ;;  %v1090_v47 = vpack.c.bf16 %v1087_v45, %v1087_v45  ;;  %v1253_v4 = vld [vmem:[#allocation2 + $0x2e] sm:$0xff] }
 0x106   : > { %v841_v26 = vpack.c.bf16 %v838_v25, %v838_v25  ;;  %v1003_v38 = vld [vmem:[#allocation2 + $0x20] sm:$0xff]  ;;  %v1004_v43 = vld [vmem:[#allocation2 + $0x28] sm:$0xff]  ;;  %v1256_v8 = vpack.c.bf16 %v1253_v4, %v1253_v4 }
 0x107   : > { %v1006_v41 = vpack.c.bf16 %v1003_v38, %v1002_v40  ;;  %v1007_v46 = vpack.c.bf16 %v1004_v43, %v1004_v43  ;;  %v1169_v56 = vld [vmem:[#allocation2 + $0x25] sm:$0xff]  ;;  %v1168_v62 = vld [vmem:[#allocation2 + $0x1d] sm:$0xff] }
 0x108   : > { %v1252_v58 = vld [vmem:[#allocation2 + $0x26] sm:$0xff]  ;;  %v1251_v63 = vld [vmem:[#allocation2 + $0x1e] sm:$0xff]  ;;  %v1172_v0 = vpack.c.bf16 %v1169_v56, %v1168_v62 }
 0x109   : > { %2715 = vmatmul.mubr.msk.bf16.gmra.mrb[8].mxu1 %vm665_vm2, %v694_v10  ;;  %v1255_v2 = vpack.c.bf16 %v1252_v58, %v1251_v63  ;;  %v1336_v10 = vld [vmem:[#allocation2 + $0x2f] sm:$0xff] }
 0x10a   : > { %2729 = vmatmul.mubr.msk.bf16.gmra.mrb[20].mxu0 %vm665_vm2, %v685_v11  ;;  %2734 = vmatprep.mubr.msk.bf16.mxu1 %vm3003_vm0, %v3002_v1  ;;  %v1339_v11 = vpack.c.bf16 %v1336_v10, %v1336_v10  ;;  %v2985_v60 = vld [vmem:[%s3551_s11 + $0x8] sm:$0xff]  }
 0x10b   : > { %2748 = vmatprep.mubr.msk.bf16.mxu0 %vm3003_vm0, %v3002_v1 }
 0x111   : > { %2735 = vmatmul.mubr.msk.bf16.vlgmr.msra.gmra.mrb[12].mxu1 %vm665_vm2, %v839_v17 }
 0x112   : > { %2749 = vmatmul.mubr.msk.bf16.vlgmr.msra.gmra.mrb[24].mxu0 %vm665_vm2, %v922_v18  ;;  %2761 = vmatpush3.bf16.msra.mxu1 %v1020_v19 }
 0x113   : > { %2738 = vmatprep.mubr.msk.bf16.mxu1 %vm3003_vm0, %v3002_v1  ;;  %2752 = vmatprep.mubr.msk.bf16.mxu0 %vm3003_vm0, %v3002_v1 }
 0x114   : > { %2775 = vmatpush3.bf16.msra.mxu0 %v1103_v20  ;;  %2788 = vmatprep.subr.bf16.mxu1 %v3002_v1 }
 0x115   : > { %2802 = vmatprep.subr.bf16.mxu0 %v3002_v1 }
 0x119   : > { %2739 = vmatmul.mubr.msk.bf16.gmra.mrb[16].mxu1 %vm665_vm2, %v840_v23 }
 0x11a   : > { %2753 = vmatmul.mubr.msk.bf16.gmra.mrb[28].mxu0 %vm665_vm2, %v923_v24  ;;  %2742 = vmatprep.mubr.msk.bf16.mxu1 %vm3003_vm0, %v3002_v1 }
 0x11b   : > { %2756 = vmatprep.mubr.msk.bf16.mxu0 %vm3003_vm0, %v3002_v1 }
 0x121   : > { %2743 = vmatmul.mubr.msk.bf16.gmra.mrb[20].mxu1 %vm665_vm2, %v841_v26 }
 0x122   : > { %2757 = vmatmul.mubr.msk.bf16.gmra.mrb[32].mxu0 %vm665_vm2, %v924_v27  ;;  %2762 = vmatprep.mubr.msk.bf16.mxu1 %vm3003_vm0, %v3002_v1 }
 0x123   : > { %2776 = vmatprep.mubr.msk.bf16.mxu0 %vm3003_vm0, %v3002_v1 }
 0x129   : > { %2763 = vmatmul.mubr.msk.bf16.vlgmr.msra.gmra.mrb[24].mxu1 %vm665_vm2, %v1005_v33 }
 0x12a   : > { %2777 = vmatmul.mubr.msk.bf16.vlgmr.msra.gmra.mrb[36].mxu0 %vm665_vm2, %v1088_v34  ;;  %2789 = vmatpush3.bf16.msra.mxu1 %v1186_v36 }
 0x12b   : > { %2766 = vmatprep.mubr.msk.bf16.mxu1 %vm3003_vm0, %v3002_v1  ;;  %2780 = vmatprep.mubr.msk.bf16.mxu0 %vm3003_vm0, %v3002_v1 }
 0x12c   : > { %2803 = vmatpush3.bf16.msra.mxu0 %v1269_v37  ;;  %2816 = vmatprep.subr.bf16.mxu1 %v3002_v1 }
 0x12d   : > { %2830 = vmatprep.subr.bf16.mxu0 %v3002_v1 }
 0x131   : > { %2767 = vmatmul.mubr.msk.bf16.gmra.mrb[28].mxu1 %vm665_vm2, %v1006_v41 }
 0x132   : > { %2781 = vmatmul.mubr.msk.bf16.gmra.mrb[40].mxu0 %vm665_vm2, %v1089_v42  ;;  %2770 = vmatprep.mubr.msk.bf16.mxu1 %vm3003_vm0, %v3002_v1 }
 0x133   : > { %2784 = vmatprep.mubr.msk.bf16.mxu0 %vm3003_vm0, %v3002_v1 }
 0x139   : > { %2771 = vmatmul.mubr.msk.bf16.gmra.mrb[32].mxu1 %vm665_vm2, %v1007_v46 }
 0x13a   : > { %2785 = vmatmul.mubr.msk.bf16.gmra.mrb[44].mxu0 %vm665_vm2, %v1090_v47  ;;  %2790 = vmatprep.mubr.msk.bf16.mxu1 %vm3003_vm0, %v3002_v1 }
 0x13b   : > { %2804 = vmatprep.mubr.msk.bf16.mxu0 %vm3003_vm0, %v3002_v1 }
 0x141   : > { %2791 = vmatmul.mubr.msk.bf16.vlgmr.msra.gmra.mrb[36].mxu1 %vm665_vm2, %v1171_v53 }
 0x142   : > { %2805 = vmatmul.mubr.msk.bf16.vlgmr.msra.gmra.mrb[48].mxu0 %vm665_vm2, %v1254_v54  ;;  %2817 = vmatpush3.bf16.msra.mxu1 %v1352_v55 }
 0x143   : > { %2794 = vmatprep.mubr.msk.bf16.mxu1 %vm3003_vm0, %v3002_v1  ;;  %2808 = vmatprep.mubr.msk.bf16.mxu0 %vm3003_vm0, %v3002_v1 }
 0x144   : > { %2844 = vmatprep.subr.bf16.mxu1 %v3002_v1  ;;  %2831 = vmatpush3.bf16.msra.mxu0 %v2984_v59 }
 0x145   : > { %2858 = vmatprep.subr.bf16.mxu0 %v3002_v1 }
 0x149   : > { %2795 = vmatmul.mubr.msk.bf16.gmra.mrb[40].mxu1 %vm665_vm2, %v1172_v0 }
 0x14a   : > { %2809 = vmatmul.mubr.msk.bf16.gmra.mrb[52].mxu0 %vm665_vm2, %v1255_v2  ;;  %2798 = vmatprep.mubr.msk.bf16.mxu1 %vm3003_vm0, %v3002_v1 }
 0x14b   : > { %2812 = vmatprep.mubr.msk.bf16.mxu0 %vm3003_vm0, %v3002_v1 }
 0x151   : > { %2799 = vmatmul.mubr.msk.bf16.gmra.mrb[44].mxu1 %vm665_vm2, %v1173_v7 }
 0x152   : > { %2813 = vmatmul.mubr.msk.bf16.gmra.mrb[56].mxu0 %vm665_vm2, %v1256_v8  ;;  %2818 = vmatprep.mubr.msk.bf16.mxu1 %vm3003_vm0, %v3002_v1 }
 0x153   : > { %2832 = vmatprep.mubr.msk.bf16.mxu0 %vm3003_vm0, %v3002_v1 }
 0x159   : > { %2819 = vmatmul.mubr.msk.bf16.vlgmr.msra.gmra.mrb[48].mxu1 %vm665_vm2, %v1337_v61 }
 0x15a   : > { %2822 = vmatprep.mubr.msk.bf16.mxu1 %vm3003_vm0, %v3002_v1  ;;  %2845 = vmatpush3.bf16.msra.mxu1 %v2985_v60 }
 0x15b   : > { %2872 = vmatprep.subr.bf16.mxu1 %v3002_v1 }
 0x161   : > { %2823 = vmatmul.mubr.msk.bf16.gmra.mrb[52].mxu1 %vm665_vm2, %v1338_v9 }
 0x162   : > { %2826 = vmatprep.mubr.msk.bf16.mxu1 %vm3003_vm0, %v3002_v1 }
 0x169   : > { %2827 = vmatmul.mubr.msk.bf16.gmra.mrb[56].mxu1 %vm665_vm2, %v1339_v11 }
 0x16a   : > { %2846 = vmatprep.mubr.msk.bf16.mxu1 %vm3003_vm0, %v3002_v1 }
 0x1cc   : > { %v744_v61 = vpop.f32.mrb[0].mxu1 }
 0x1cd   : > { %v812_v5 = vpop.f32.mrb[12].mxu0  ;;  %v2708_v9 = vpop.f32.mrb[1].mxu1 }
 0x1ce   : > { %v813_v6 = vadd.f32 %v812_v5, %v744_v61  ;;  %v2722_v12 = vpop.f32.mrb[13].mxu0  ;;  %v747_v13 = vpop.f32.mrb[2].mxu1 }
 0x1cf   : > { %v815_v14 = vpop.f32.mrb[14].mxu0  ;;  %v2709_v16 = vpop.f32.mrb[3].mxu1 }
 0x1d0   : > { %v816_v15 = vadd.f32 %v815_v14, %v747_v13  ;;  %v2723_v17 = vpop.f32.mrb[15].mxu0 }
 0x1d4   : > { %v752_v18 = vpop.f32.mrb[4].mxu1 }
 0x1d5   : > { %v820_v19 = vpop.f32.mrb[16].mxu0  ;;  %v2712_v21 = vpop.f32.mrb[5].mxu1 }
 0x1d6   : > { %v821_v20 = vadd.f32 %v820_v19, %v752_v18  ;;  %v2726_v22 = vpop.f32.mrb[17].mxu0  ;;  %v755_v23 = vpop.f32.mrb[6].mxu1 }
 0x1d7   : > { %v823_v24 = vpop.f32.mrb[18].mxu0  ;;  %v2713_v26 = vpop.f32.mrb[7].mxu1 }
 0x1d8   : > { %v824_v25 = vadd.f32 %v823_v24, %v755_v23  ;;  %v2727_v27 = vpop.f32.mrb[19].mxu0 }
 0x1dc   : > { %v760_v28 = vpop.f32.mrb[8].mxu1 }
 0x1dd   : > { %v828_v29 = vpop.f32.mrb[20].mxu0  ;;  %v2716_v32 = vpop.f32.mrb[9].mxu1 }
 0x1de   : > { %v829_v30 = vadd.f32 %v828_v29, %v760_v28  ;;  %v2730_v33 = vpop.f32.mrb[21].mxu0  ;;  %v763_v34 = vpop.f32.mrb[10].mxu1 }
 0x1df   : > { %v831_v36 = vpop.f32.mrb[22].mxu0  ;;  %v2717_v37 = vpop.f32.mrb[11].mxu1 }
 0x1e0   : > { %v2731_v38 = vpop.f32.mrb[23].mxu0 }
 0x1e4   : > { %v890_v40 = vpop.f32.mrb[12].mxu1 }
 0x1e5   : > { %v973_v41 = vpop.f32.mrb[24].mxu0  ;;  %v912_v42 = vadd.f32 %v890_v40, %v813_v6  ;;  %v2736_v43 = vpop.f32.mrb[13].mxu1 }
 0x1e6   : > { %v2750_v45 = vpop.f32.mrb[25].mxu0  ;;  %v893_v46 = vpop.f32.mrb[14].mxu1 }
 0x1e7   : > { %v976_v47 = vpop.f32.mrb[26].mxu0  ;;  %v995_v48 = vadd.f32 %v973_v41, %v912_v42  ;;  %v913_v49 = vadd.f32 %v893_v46, %v816_v15  ;;  %v2737_v50 = vpop.f32.mrb[15].mxu1 }
 0x1e8   : > { %v2751_v51 = vpop.f32.mrb[27].mxu0 }
 0x1e9   : > { %v996_v52 = vadd.f32 %v976_v47, %v913_v49 }
 0x1ec   : > { %v898_v53 = vpop.f32.mrb[16].mxu1 }
 0x1ed   : > { %v981_v54 = vpop.f32.mrb[28].mxu0  ;;  %v914_v55 = vadd.f32 %v898_v53, %v821_v20  ;;  %v2740_v56 = vpop.f32.mrb[17].mxu1 }
 0x1ee   : > { %v2754_v58 = vpop.f32.mrb[29].mxu0  ;;  %v901_v62 = vpop.f32.mrb[18].mxu1 }
 0x1ef   : > { %v984_v63 = vpop.f32.mrb[30].mxu0  ;;  %v997_v0 = vadd.f32 %v981_v54, %v914_v55  ;;  %v915_v2 = vadd.f32 %v901_v62, %v824_v25  ;;  %v2741_v3 = vpop.f32.mrb[19].mxu1 }
 0x1f0   : > { %v2755_v4 = vpop.f32.mrb[31].mxu0 }
 0x1f1   : > { %v998_v7 = vadd.f32 %v984_v63, %v915_v2 }
 0x1f4   : > { %v906_v8 = vpop.f32.mrb[20].mxu1 }
 0x1f5   : > { %v989_v10 = vpop.f32.mrb[32].mxu0  ;;  %v916_v11 = vadd.f32 %v906_v8, %v829_v30  ;;  %v2744_v59 = vpop.f32.mrb[21].mxu1 }
 0x1f6   : > { %v2758_v60 = vpop.f32.mrb[33].mxu0  ;;  %v909_v61 = vpop.f32.mrb[22].mxu1 }
 0x1f7   : > { %v992_v5 = vpop.f32.mrb[34].mxu0  ;;  %v999_v6 = vadd.f32 %v989_v10, %v916_v11  ;;  %v2745_v9 = vpop.f32.mrb[23].mxu1 }
 0x1f8   : > { %v2759_v12 = vpop.f32.mrb[35].mxu0 }
 0x1fc   : > { %v1056_v13 = vpop.f32.mrb[24].mxu1 }
 0x1fd   : > { %v1139_v14 = vpop.f32.mrb[36].mxu0  ;;  %v1078_v15 = vadd.f32 %v1056_v13, %v995_v48  ;;  %v2764_v16 = vpop.f32.mrb[25].mxu1 }
 0x1fe   : > { %v2778_v17 = vpop.f32.mrb[37].mxu0  ;;  %v1059_v18 = vpop.f32.mrb[26].mxu1 }
 0x1ff   : > { %v1142_v19 = vpop.f32.mrb[38].mxu0  ;;  %v1161_v20 = vadd.f32 %v1139_v14, %v1078_v15  ;;  %v1079_v21 = vadd.f32 %v1059_v18, %v996_v52  ;;  %v2765_v22 = vpop.f32.mrb[27].mxu1 }
 0x200   : > { %v2779_v23 = vpop.f32.mrb[39].mxu0 }
 0x201   : > { %v1162_v24 = vadd.f32 %v1142_v19, %v1079_v21 }
 0x204   : > { %v1064_v25 = vpop.f32.mrb[28].mxu1 }
 0x205   : > { %v1147_v26 = vpop.f32.mrb[40].mxu0  ;;  %v1080_v27 = vadd.f32 %v1064_v25, %v997_v0  ;;  %v2768_v28 = vpop.f32.mrb[29].mxu1 }
 0x206   : > { %v2782_v29 = vpop.f32.mrb[41].mxu0  ;;  %v1067_v30 = vpop.f32.mrb[30].mxu1 }
 0x207   : > { %v1150_v32 = vpop.f32.mrb[42].mxu0  ;;  %v1163_v33 = vadd.f32 %v1147_v26, %v1080_v27  ;;  %v1081_v34 = vadd.f32 %v1067_v30, %v998_v7  ;;  %v2769_v36 = vpop.f32.mrb[31].mxu1  ;;  %v2542_v27 = vld [vmem:[%s3547_s7] ss:$0 sm:$0xff] }
 0x208   : > { %v2783_v37 = vpop.f32.mrb[43].mxu0 }
 0x209   : > { %v1164_v38 = vadd.f32 %v1150_v32, %v1081_v34 }
 0x20c   : > { %v1072_v40 = vpop.f32.mrb[32].mxu1 }
 0x20d   : > { %v1155_v41 = vpop.f32.mrb[44].mxu0  ;;  %v1082_v42 = vadd.f32 %v1072_v40, %v999_v6  ;;  %v2772_v43 = vpop.f32.mrb[33].mxu1 }
 0x20e   : > { %v2786_v45 = vpop.f32.mrb[45].mxu0  ;;  %v1075_v46 = vpop.f32.mrb[34].mxu1 }
 0x20f   : > { %v1158_v47 = vpop.f32.mrb[46].mxu0  ;;  %v1165_v48 = vadd.f32 %v1155_v41, %v1082_v42  ;;  %v2773_v49 = vpop.f32.mrb[35].mxu1 }
 0x210   : > { %v2787_v50 = vpop.f32.mrb[47].mxu0 }
 0x214   : > { %v1222_v51 = vpop.f32.mrb[36].mxu1 }
 0x215   : > { %v1305_v52 = vpop.f32.mrb[48].mxu0  ;;  %v1244_v53 = vadd.f32 %v1222_v51, %v1161_v20  ;;  %v2792_v54 = vpop.f32.mrb[37].mxu1 }
 0x216   : > { %v2806_v55 = vpop.f32.mrb[49].mxu0  ;;  %v1225_v56 = vpop.f32.mrb[38].mxu1 }
 0x217   : > { %v1308_v58 = vpop.f32.mrb[50].mxu0  ;;  %v1327_v62 = vadd.f32 %v1305_v52, %v1244_v53  ;;  %v1245_v63 = vadd.f32 %v1225_v56, %v1162_v24  ;;  %v2793_v0 = vpop.f32.mrb[39].mxu1  ;;  %v2541_v24 = vld [vmem:[%s3546_s6] ss:$0 sm:$0xff] }
 0x218   : > { %v2807_v2 = vpop.f32.mrb[51].mxu0 }
 0x219   : > { %v1328_v3 = vadd.f32 %v1308_v58, %v1245_v63 }
 0x21c   : > { %v1230_v4 = vpop.f32.mrb[40].mxu1 }
 0x21d   : > { %v1313_v7 = vpop.f32.mrb[52].mxu0  ;;  %v1246_v8 = vadd.f32 %v1230_v4, %v1163_v33  ;;  %v2796_v10 = vpop.f32.mrb[41].mxu1 }
 0x21e   : > { %v2810_v11 = vpop.f32.mrb[53].mxu0  ;;  %v1233_v59 = vpop.f32.mrb[42].mxu1 }
 0x21f   : > { %v1316_v60 = vpop.f32.mrb[54].mxu0  ;;  %v1329_v61 = vadd.f32 %v1313_v7, %v1246_v8  ;;  %v1247_v5 = vadd.f32 %v1233_v59, %v1164_v38  ;;  %v2797_v6 = vpop.f32.mrb[43].mxu1  ;;  %v2986_v7 = vld [vmem:[%s3551_s11] sm:$0xff]  }
 0x220   : > { %v2811_v9 = vpop.f32.mrb[55].mxu0  ;;  %v2543_v8 = vld [vmem:[%s3549_s9] ss:$0 sm:$0xff] }
 0x221   : > { %v1330_v12 = vadd.f32 %v1316_v60, %v1247_v5  ;;  %v2548_v11 = vld [vmem:[%s3550_s10] ss:$0 sm:$0xff] }
 0x224   : > { %v1238_v13 = vpop.f32.mrb[44].mxu1 }
 0x225   : > { %v1321_v14 = vpop.f32.mrb[56].mxu0  ;;  %v1248_v15 = vadd.f32 %v1238_v13, %v1165_v48  ;;  %v2800_v16 = vpop.f32.mrb[45].mxu1 }
 0x226   : > { %v2814_v17 = vpop.f32.mrb[57].mxu0  ;;  %v1241_v18 = vpop.f32.mrb[46].mxu1 }
 0x227   : > { %v1324_v19 = vpop.f32.mrb[58].mxu0  ;;  %v1331_v20 = vadd.f32 %v1321_v14, %v1248_v15  ;;  %v2801_v21 = vpop.f32.mrb[47].mxu1 }
 0x228   : > { %v2815_v22 = vpop.f32.mrb[59].mxu0  ;;  %v1553_v14 = vpop.permute.xlu1 %1552 }
 0x229   : > { %v1558_v17 = vpop.permute.xlu0 %1557 }
 0x22c   : > { %v1388_v23 = vpop.f32.mrb[48].mxu1 }
 0x22d   : > { %v1410_v25 = vadd.f32 %v1388_v23, %v1327_v62  ;;  %v2820_v26 = vpop.f32.mrb[49].mxu1 }
 0x22e   : > { %v1391_v28 = vpop.f32.mrb[50].mxu1 }
 0x22f   : > { %v1422_v29 = vadd.f32 %v2541_v24, %v1410_v25  ;;  %v1411_v30 = vadd.f32 %v1391_v28, %v1328_v3  ;;  %v2821_v32 = vpop.f32.mrb[51].mxu1  ;;  %v1563_v28 = vpop.permute.xlu1 %1562 }
 0x230   : > { %v1568_v32 = vpop.permute.xlu0 %1567 }
 0x231   : > { %v1434_v33 = vmul.f32 %v2542_v27, %v1422_v29  ;;  %v1423_v34 = vadd.f32 %v2541_v24, %v1411_v30 }
 0x233   : > { %v1435_v36 = vmul.f32 %v2542_v27, %v1423_v34  ;;  %v1439_v38 = vmax.f32 %v1434_v33, 0.0 }
 0x234   : > { %v1396_v37 = vpop.f32.mrb[52].mxu1 }
 0x235   : > { %v1440_v40 = vmax.f32 %v1435_v36, 0.0  ;;  %v1412_v41 = vadd.f32 %v1396_v37, %v1329_v61  ;;  %v2824_v42 = vpop.f32.mrb[53].mxu1 }
 0x236   : > { %v1399_v43 = vpop.f32.mrb[54].mxu1 }
 0x237   : > { %v1444_v45 = vpack.c.bf16 %v1440_v40, %v1439_v38  ;;  %v1424_v46 = vadd.f32 %v2541_v24, %v1412_v41  ;;  %v1413_v47 = vadd.f32 %v1399_v43, %v1330_v12  ;;  %v2825_v48 = vpop.f32.mrb[55].mxu1  ;;  %v2987_v40 = vld [vmem:[%s3551_s11 + $0x10] sm:$0xff]  }
 0x239   : > { %v1436_v49 = vmul.f32 %v2542_v27, %v1424_v46  ;;  %v1425_v50 = vadd.f32 %v2541_v24, %v1413_v47  ;;  %2833 = vmatmul.mubr.msk.bf16.vlgmr.msra.gmra.mrb[60].mxu0 %vm1462_vm4, %v1444_v45 }
 0x23a   : > { %2836 = vmatprep.mubr.msk.bf16.mxu0 %vm3003_vm0, %v3002_v1  ;;  %2859 = vmatpush3.bf16.msra.mxu0 %v2986_v7 }
 0x23b   : > { %v1437_v51 = vmul.f32 %v2542_v27, %v1425_v50  ;;  %v1441_v53 = vmax.f32 %v1436_v49, 0.0  ;;  %2886 = vmatprep.subr.bf16.mxu0 %v3002_v1  ;;  %v2988_v50 = vld [vmem:[%s3551_s11 + $0x18] sm:$0xff]  }
 0x23c   : > { %v1404_v52 = vpop.f32.mrb[56].mxu1 }
 0x23d   : > { %v1442_v54 = vmax.f32 %v1437_v51, 0.0  ;;  %v1414_v55 = vadd.f32 %v1404_v52, %v1331_v20  ;;  %v2828_v56 = vpop.f32.mrb[57].mxu1  ;;  %v1573_v52 = vpop.permute.xlu1 %1572 }
 0x23e   : > { %v1407_v58 = vpop.f32.mrb[58].mxu1 }
 0x23f   : > { %v1445_v62 = vpack.c.bf16 %v1442_v54, %v1441_v53  ;;  %v1426_v63 = vadd.f32 %v2541_v24, %v1414_v55  ;;  %v2829_v0 = vpop.f32.mrb[59].mxu1 }
 0x241   : > { %v1438_v2 = vmul.f32 %v2542_v27, %v1426_v63  ;;  %2837 = vmatmul.mubr.msk.bf16.gmra.mrb[64].mxu0 %vm1462_vm4, %v1445_v62 }
 0x242   : > { %2840 = vmatprep.mubr.msk.bf16.mxu0 %vm3003_vm0, %v3002_v1 }
 0x243   : > { %v1443_v3 = vmax.f32 %v1438_v2, 0.0 }
 0x245   : > { %v1446_v4 = vpack.c.bf16 %v1443_v3, %v1443_v3 }
 0x249   : > { %2841 = vmatmul.mubr.msk.bf16.gmra.mrb[68].mxu0 %vm1462_vm4, %v1446_v4 }
 0x24a   : > { %2860 = vmatprep.mubr.msk.bf16.mxu0 %vm3003_vm0, %v3002_v1 }
 0x30c   : > { %v1506_v10 = vpop.f32.mrb[60].mxu0 }
 0x30d   : > { %v1507_v59 = vadd.f32 %v2543_v8, %v1506_v10  ;;  %v2834_v60 = vpop.f32.mrb[61].mxu0 }
 0x30e   : > { %v1509_v61 = vpop.f32.mrb[62].mxu0 }
 0x30f   : > { %v1535_v5 = vmul.f32 %v2548_v11, %v1507_v59  ;;  %v1510_v6 = vadd.f32 %v2543_v8, %v1509_v61  ;;  %v2835_v9 = vpop.f32.mrb[63].mxu0 }
 0x310   : > { %v2989_v9 = vld [vmem:[%s3551_s11 + $0x20] sm:$0xff]  }
 0x311   : > { %v1540_v12 = vmax.f32 %v1535_v5, 0.0  ;;  %v1536_v13 = vmul.f32 %v2548_v11, %v1510_v6 }
 0x313   : > { %v1575_v15 = vmul.f32 %v1553_v14, %v1540_v12  ;;  %v1541_v16 = vmax.f32 %v1536_v13, 0.0  ;;  %v2990_v14 = vld [vmem:[%s3551_s11 + $0x28] sm:$0xff]  }
 0x314   : > { %v1514_v18 = vpop.f32.mrb[64].mxu0 }
 0x315   : > { %1587 = vst.msk [vmem:[#allocation3 + $0x8] sm:$0xff] %vm1462_vm4, %v1575_v15  ;;  %v1576_v19 = vmul.f32 %v1558_v17, %v1541_v16  ;;  %v1515_v20 = vadd.f32 %v2543_v8, %v1514_v18  ;;  %v2838_v21 = vpop.f32.mrb[65].mxu0 }
 0x316   : > { %v1517_v22 = vpop.f32.mrb[66].mxu0 }
 0x317   : > { %1588 = vst.msk [vmem:[#allocation3 + $0x10] sm:$0xff] %vm1462_vm4, %v1576_v19  ;;  %v1537_v23 = vmul.f32 %v2548_v11, %v1515_v20  ;;  %v1518_v24 = vadd.f32 %v2543_v8, %v1517_v22  ;;  %v2839_v25 = vpop.f32.mrb[67].mxu0 }
 0x319   : > { %v1542_v26 = vmax.f32 %v1537_v23, 0.0  ;;  %v1538_v27 = vmul.f32 %v2548_v11, %v1518_v24  ;;  %v2991_v24 = vld [vmem:[%s3551_s11 + $0x30] sm:$0xff]  }
 0x31b   : > { %v1577_v29 = vmul.f32 %v1563_v28, %v1542_v26  ;;  %v1543_v30 = vmax.f32 %v1538_v27, 0.0  ;;  %v2992_v27 = vld [vmem:[%s3551_s11 + $0x38] sm:$0xff]  }
 0x31c   : > { %v1522_v33 = vpop.f32.mrb[68].mxu0  ;;  %v1602_v38 = vld [vmem:[#allocation3 + $0x2] sm:$0xff] }
 0x31d   : > { %1589 = vst.msk [vmem:[#allocation3 + $0x18] sm:$0xff] %vm1462_vm4, %v1577_v29  ;;  %v1578_v34 = vmul.f32 %v1568_v32, %v1543_v30  ;;  %v1523_v36 = vadd.f32 %v2543_v8, %v1522_v33  ;;  %v2842_v37 = vpop.f32.mrb[69].mxu0  ;;  %v1592_v43 = vld [vmem:[#allocation3 + $0x1] sm:$0xff] }
 0x31e   : > { %v1525_v41 = vpop.f32.mrb[70].mxu0  ;;  %v1603_v42 = vld [vmem:[#allocation3 + $0xa] sm:$0xff] }
 0x31f   : > { %v3374_v45 = vld [vmem:[#allocation3 + $0x9] sm:$0xff]  ;;  %1590 = vst.msk [vmem:[#allocation3 + $0x20] sm:$0xff] %vm1462_vm4, %v1578_v34  ;;  %v1539_v46 = vmul.f32 %v2548_v11, %v1523_v36  ;;  %v2843_v47 = vpop.f32.mrb[71].mxu0  ;;  %v1607_v48 = vpack.c.bf16 %v1603_v42, %v1602_v38 }
 0x320   : > { %v1597_v49 = vpack.c.bf16 %v3374_v45, %v1592_v43  ;;  %v3390_v55 = vld [vmem:[#allocation3 + $0xf] sm:$0xff]  ;;  %v1755_v5 = vld [vmem:[#allocation3 + $0x3] sm:$0xff] }
 0x321   : > { %v1544_v51 = vmax.f32 %v1539_v46, 0.0  ;;  %2847 = vmatmul.mubr.msk.bf16.vlgmr.msra.gmra.mrb[60].mxu1 %vm1462_vm4, %v1607_v48  ;;  %v1756_v61 = vld [vmem:[#allocation3 + $0xb] sm:$0xff] }
 0x322   : > { %2861 = vmatmul.mubr.msk.bf16.vlgmr.msra.gmra.mrb[72].mxu0 %vm1462_vm4, %v1597_v49  ;;  %2873 = vmatpush3.bf16.msra.mxu1 %v2987_v40  ;;  %v1842_v6 = vld [vmem:[#allocation3 + $0x7] sm:$0xff]  ;;  %v1760_v12 = vpack.c.bf16 %v1756_v61, %v1755_v5  ;;  %v1930_v22 = vld [vmem:[#allocation3 + $0x10] sm:$0xff] }
 0x323   : > { %2850 = vmatprep.mubr.msk.bf16.mxu1 %vm3003_vm0, %v3002_v1  ;;  %v1579_v53 = vmul.f32 %v1573_v52, %v1544_v51  ;;  %2864 = vmatprep.mubr.msk.bf16.mxu0 %vm3003_vm0, %v3002_v1  ;;  %v1847_v13 = vpack.c.bf16 %v3390_v55, %v1842_v6  ;;  %v1929_v23 = vld [vmem:[#allocation3 + $0x8] sm:$0xff] }
 0x324   : > { %2887 = vmatpush3.bf16.msra.mxu0 %v2988_v50  ;;  %2900 = vmatprep.subr.bf16.mxu1 %v3002_v1  ;;  %v1604_v54 = vld [vmem:[#allocation3 + $0x12] sm:$0xff]  ;;  %v1934_v25 = vpack.c.bf16 %v1930_v22, %v1929_v23  ;;  %v2993_v43 = vld [vmem:[%s3551_s11 + $0x40] sm:$0xff]  }
 0x325   : > { %2914 = vmatprep.subr.bf16.mxu0 %v3002_v1  ;;  %1591 = vst.msk [vmem:[#allocation3 + $0x28] sm:$0xff] %vm1462_vm4, %v1579_v53  ;;  %v3392_v56 = vld [vmem:[#allocation3 + $0x17] sm:$0xff]  ;;  %v2103_v41 = vld [vmem:[#allocation3 + $0xd] sm:$0xff] }
 0x326   : > { %v1605_v58 = vld [vmem:[#allocation3 + $0x1a] sm:$0xff]  ;;  %v1594_v62 = vld [vmem:[#allocation3 + $0x11] sm:$0xff]  ;;  %v2282_v0 = vpack.c.bf16 %v3392_v56, %v3390_v55 }
 0x327   : > { %v3394_v63 = vld [vmem:[#allocation3 + $0x19] sm:$0xff]  ;;  %v1608_v2 = vpack.c.bf16 %v1605_v58, %v1604_v54  ;;  %v2021_v26 = vpack.c.bf16 %v1594_v62, %v3374_v45  ;;  %v2190_v42 = vld [vmem:[#allocation3 + $0xe] sm:$0xff] }
 0x328   : > { %v1598_v3 = vpack.c.bf16 %v3394_v63, %v1594_v62  ;;  %v3405_v8 = vld [vmem:[#allocation3 + $0x1f] sm:$0xff]  ;;  %v1757_v16 = vld [vmem:[#allocation3 + $0x13] sm:$0xff] }
 0x329   : > { %2851 = vmatmul.mubr.msk.bf16.gmra.mrb[64].mxu1 %vm1462_vm4, %v1608_v2  ;;  %v1758_v15 = vld [vmem:[#allocation3 + $0x1b] sm:$0xff]  ;;  %v1848_v18 = vpack.c.bf16 %v3405_v8, %v3392_v56 }
 0x32a   : > { %2865 = vmatmul.mubr.msk.bf16.gmra.mrb[76].mxu0 %vm1462_vm4, %v1598_v3  ;;  %2854 = vmatprep.mubr.msk.bf16.mxu1 %vm3003_vm0, %v3002_v1  ;;  %v1761_v17 = vpack.c.bf16 %v1758_v15, %v1757_v16  ;;  %v1932_v28 = vld [vmem:[#allocation3 + $0x20] sm:$0xff]  ;;  %v1931_v29 = vld [vmem:[#allocation3 + $0x18] sm:$0xff] }
 0x32b   : > { %2868 = vmatprep.mubr.msk.bf16.mxu0 %vm3003_vm0, %v3002_v1  ;;  %v1935_v30 = vpack.c.bf16 %v1932_v28, %v1931_v29  ;;  %v2104_v38 = vld [vmem:[#allocation3 + $0x15] sm:$0xff]  ;;  %v2105_v49 = vld [vmem:[#allocation3 + $0x1d] sm:$0xff] }
 0x32c   : > { %v1606_v4 = vld [vmem:[#allocation3 + $0x22] sm:$0xff]  ;;  %v2191_v40 = vld [vmem:[#allocation3 + $0x16] sm:$0xff]  ;;  %v2108_v45 = vpack.c.bf16 %v2104_v38, %v2103_v41  ;;  %v2107_v53 = vld [vmem:[#allocation3 + $0x2d] sm:$0xff] }
 0x32d   : > { %v1596_v7 = vld [vmem:[#allocation3 + $0x21] sm:$0xff]  ;;  %v1609_v59 = vpack.c.bf16 %v1606_v4, %v1606_v4  ;;  %v2020_v34 = vld [vmem:[#allocation3 + $0x29] sm:$0xff]  ;;  %v2195_v46 = vpack.c.bf16 %v2191_v40, %v2190_v42  ;;  %v2110_v58 = vpack.c.bf16 %v2107_v53, %v2107_v53 }
 0x32e   : > { %v3407_v10 = vld [vmem:[#allocation3 + $0x27] sm:$0xff]  ;;  %v1599_v60 = vpack.c.bf16 %v1596_v7, %v1596_v7  ;;  %v2022_v32 = vpack.c.bf16 %v1596_v7, %v3394_v63  ;;  %v2023_v37 = vpack.c.bf16 %v2020_v34, %v2020_v34  ;;  %v2192_v50 = vld [vmem:[#allocation3 + $0x1e] sm:$0xff]  ;;  %v2281_v63 = vld [vmem:[#allocation3 + $0x2f] sm:$0xff] }
 0x32f   : > { %v2283_v11 = vpack.c.bf16 %v3407_v10, %v3405_v8  ;;  %v1759_v19 = vld [vmem:[#allocation3 + $0x23] sm:$0xff]  ;;  %v1849_v21 = vpack.c.bf16 %v3407_v10, %v3407_v10  ;;  %v2194_v54 = vld [vmem:[#allocation3 + $0x2e] sm:$0xff]  ;;  %v2284_v2 = vpack.c.bf16 %v2281_v63, %v2281_v63 }
 0x330   : > { %v1762_v20 = vpack.c.bf16 %v1759_v19, %v1759_v19  ;;  %v1933_v33 = vld [vmem:[#allocation3 + $0x28] sm:$0xff]  ;;  %v2197_v62 = vpack.c.bf16 %v2194_v54, %v2194_v54 }
 0x331   : > { %2855 = vmatmul.mubr.msk.bf16.gmra.mrb[68].mxu1 %vm1462_vm4, %v1609_v59  ;;  %v1936_v36 = vpack.c.bf16 %v1933_v33, %v1933_v33  ;;  %v2106_v47 = vld [vmem:[#allocation3 + $0x25] sm:$0xff] }
 0x332   : > { %2869 = vmatmul.mubr.msk.bf16.gmra.mrb[80].mxu0 %vm1462_vm4, %v1599_v60  ;;  %2874 = vmatprep.mubr.msk.bf16.mxu1 %vm3003_vm0, %v3002_v1  ;;  %v2193_v48 = vld [vmem:[#allocation3 + $0x26] sm:$0xff]  ;;  %v2109_v51 = vpack.c.bf16 %v2106_v47, %v2105_v49 }
 0x333   : > { %2888 = vmatprep.mubr.msk.bf16.mxu0 %vm3003_vm0, %v3002_v1  ;;  %v2196_v52 = vpack.c.bf16 %v2193_v48, %v2192_v50 }
 0x339   : > { %2875 = vmatmul.mubr.msk.bf16.vlgmr.msra.gmra.mrb[72].mxu1 %vm1462_vm4, %v1760_v12 }
 0x33a   : > { %2889 = vmatmul.mubr.msk.bf16.vlgmr.msra.gmra.mrb[84].mxu0 %vm1462_vm4, %v1847_v13  ;;  %2901 = vmatpush3.bf16.msra.mxu1 %v2989_v9 }
 0x33b   : > { %2878 = vmatprep.mubr.msk.bf16.mxu1 %vm3003_vm0, %v3002_v1  ;;  %2892 = vmatprep.mubr.msk.bf16.mxu0 %vm3003_vm0, %v3002_v1 }
 0x33c   : > { %2915 = vmatpush3.bf16.msra.mxu0 %v2990_v14  ;;  %2928 = vmatprep.subr.bf16.mxu1 %v3002_v1 }
 0x33d   : > { %2942 = vmatprep.subr.bf16.mxu0 %v3002_v1 }
 0x341   : > { %2879 = vmatmul.mubr.msk.bf16.gmra.mrb[76].mxu1 %vm1462_vm4, %v1761_v17 }
 0x342   : > { %2893 = vmatmul.mubr.msk.bf16.gmra.mrb[88].mxu0 %vm1462_vm4, %v1848_v18  ;;  %2882 = vmatprep.mubr.msk.bf16.mxu1 %vm3003_vm0, %v3002_v1 }
 0x343   : > { %2896 = vmatprep.mubr.msk.bf16.mxu0 %vm3003_vm0, %v3002_v1 }
 0x349   : > { %2883 = vmatmul.mubr.msk.bf16.gmra.mrb[80].mxu1 %vm1462_vm4, %v1762_v20 }
 0x34a   : > { %2897 = vmatmul.mubr.msk.bf16.gmra.mrb[92].mxu0 %vm1462_vm4, %v1849_v21  ;;  %2902 = vmatprep.mubr.msk.bf16.mxu1 %vm3003_vm0, %v3002_v1 }
 0x34b   : > { %2916 = vmatprep.mubr.msk.bf16.mxu0 %vm3003_vm0, %v3002_v1 }
 0x351   : > { %2903 = vmatmul.mubr.msk.bf16.vlgmr.msra.gmra.mrb[84].mxu1 %vm1462_vm4, %v1934_v25 }
 0x352   : > { %2917 = vmatmul.mubr.msk.bf16.vlgmr.msra.gmra.mrb[96].mxu0 %vm1462_vm4, %v2021_v26  ;;  %2929 = vmatpush3.bf16.msra.mxu1 %v2991_v24 }
 0x353   : > { %2906 = vmatprep.mubr.msk.bf16.mxu1 %vm3003_vm0, %v3002_v1  ;;  %2920 = vmatprep.mubr.msk.bf16.mxu0 %vm3003_vm0, %v3002_v1 }
 0x354   : > { %2943 = vmatpush3.bf16.msra.mxu0 %v2992_v27  ;;  %2956 = vmatprep.subr.bf16.mxu1 %v3002_v1 }
 0x359   : > { %2907 = vmatmul.mubr.msk.bf16.gmra.mrb[88].mxu1 %vm1462_vm4, %v1935_v30 }
 0x35a   : > { %2921 = vmatmul.mubr.msk.bf16.gmra.mrb[100].mxu0 %vm1462_vm4, %v2022_v32  ;;  %2910 = vmatprep.mubr.msk.bf16.mxu1 %vm3003_vm0, %v3002_v1 }
 0x35b   : > { %2924 = vmatprep.mubr.msk.bf16.mxu0 %vm3003_vm0, %v3002_v1 }
 0x361   : > { %2911 = vmatmul.mubr.msk.bf16.gmra.mrb[92].mxu1 %vm1462_vm4, %v1936_v36 }
 0x362   : > { %2925 = vmatmul.mubr.msk.bf16.gmra.mrb[104].mxu0 %vm1462_vm4, %v2023_v37  ;;  %2930 = vmatprep.mubr.msk.bf16.mxu1 %vm3003_vm0, %v3002_v1 }
 0x363   : > { %2944 = vmatprep.mubr.msk.bf16.mxu0 %vm3003_vm0, %v3002_v1 }
 0x369   : > { %2931 = vmatmul.mubr.msk.bf16.vlgmr.msra.gmra.mrb[96].mxu1 %vm1462_vm4, %v2108_v45 }
 0x36a   : > { %2945 = vmatmul.mubr.msk.bf16.vlgmr.msra.gmra.mrb[108].mxu0 %vm1462_vm4, %v2195_v46  ;;  %2957 = vmatpush3.bf16.msra.mxu1 %v2993_v43 }
 0x36b   : > { %2934 = vmatprep.mubr.msk.bf16.mxu1 %vm3003_vm0, %v3002_v1  ;;  %2948 = vmatprep.mubr.msk.bf16.mxu0 %vm3003_vm0, %v3002_v1 }
 0x371   : > { %2935 = vmatmul.mubr.msk.bf16.gmra.mrb[100].mxu1 %vm1462_vm4, %v2109_v51 }
 0x372   : > { %2949 = vmatmul.mubr.msk.bf16.gmra.mrb[112].mxu0 %vm1462_vm4, %v2196_v52  ;;  %2938 = vmatprep.mubr.msk.bf16.mxu1 %vm3003_vm0, %v3002_v1 }
 0x373   : > { %2952 = vmatprep.mubr.msk.bf16.mxu0 %vm3003_vm0, %v3002_v1 }
 0x379   : > { %2939 = vmatmul.mubr.msk.bf16.gmra.mrb[104].mxu1 %vm1462_vm4, %v2110_v58 }
 0x37a   : > { %2953 = vmatmul.mubr.msk.bf16.gmra.mrb[116].mxu0 %vm1462_vm4, %v2197_v62  ;;  %2958 = vmatprep.mubr.msk.bf16.mxu1 %vm3003_vm0, %v3002_v1 }
 0x381   : > { %2959 = vmatmul.mubr.msk.bf16.vlgmr.msra.gmra.mrb[108].mxu1 %vm1462_vm4, %v2282_v0 }
 0x382   : > { %2962 = vmatprep.mubr.msk.bf16.mxu1 %vm3003_vm0, %v3002_v1 }
 0x389   : > { %2963 = vmatmul.mubr.msk.bf16.gmra.mrb[112].mxu1 %vm1462_vm4, %v2283_v11 }
 0x38a   : > { %2966 = vmatprep.mubr.msk.bf16.mxu1 %vm3003_vm0, %v3002_v1 }
 0x391   : > { %2967 = vmatmul.mubr.msk.bf16.gmra.mrb[116].mxu1 %vm1462_vm4, %v2284_v2 }
 0x3f4   : > { %v1662_v3 = vpop.f32.mrb[60].mxu1 }
 0x3f5   : > { %v1733_v4 = vpop.f32.mrb[72].mxu0  ;;  %v2848_v56 = vpop.f32.mrb[61].mxu1 }
 0x3f6   : > { %v1734_v55 = vadd.f32 %v1733_v4, %v1662_v3  ;;  %v2862_v0 = vpop.f32.mrb[73].mxu0  ;;  %v1665_v7 = vpop.f32.mrb[62].mxu1 }
 0x3f7   : > { %v1736_v59 = vpop.f32.mrb[74].mxu0  ;;  %v2849_v61 = vpop.f32.mrb[63].mxu1 }
 0x3f8   : > { %v1737_v60 = vadd.f32 %v1736_v59, %v1665_v7  ;;  %v2863_v5 = vpop.f32.mrb[75].mxu0 }
 0x3fc   : > { %v1670_v8 = vpop.f32.mrb[64].mxu1 }
 0x3fd   : > { %v1741_v10 = vpop.f32.mrb[76].mxu0  ;;  %v2852_v6 = vpop.f32.mrb[65].mxu1 }
 0x3fe   : > { %v1742_v11 = vadd.f32 %v1741_v10, %v1670_v8  ;;  %v2866_v9 = vpop.f32.mrb[77].mxu0  ;;  %v1673_v1 = vpop.f32.mrb[66].mxu1 }
 0x3ff   : > { %v1744_v12 = vpop.f32.mrb[78].mxu0  ;;  %v2853_v14 = vpop.f32.mrb[67].mxu1 }
 0x400   : > { %v1745_v13 = vadd.f32 %v1744_v12, %v1673_v1  ;;  %v2867_v15 = vpop.f32.mrb[79].mxu0 }
 0x404   : > { %v1678_v16 = vpop.f32.mrb[68].mxu1 }
 0x405   : > { %v1749_v17 = vpop.f32.mrb[80].mxu0  ;;  %v2856_v19 = vpop.f32.mrb[69].mxu1 }
 0x406   : > { %v1750_v18 = vadd.f32 %v1749_v17, %v1678_v16  ;;  %v2870_v20 = vpop.f32.mrb[81].mxu0  ;;  %v1681_v21 = vpop.f32.mrb[70].mxu1 }
 0x407   : > { %v1752_v22 = vpop.f32.mrb[82].mxu0  ;;  %v2857_v23 = vpop.f32.mrb[71].mxu1 }
 0x408   : > { %v2871_v24 = vpop.f32.mrb[83].mxu0 }
 0x40c   : > { %v1815_v25 = vpop.f32.mrb[72].mxu1 }
 0x40d   : > { %v1902_v26 = vpop.f32.mrb[84].mxu0  ;;  %v1837_v27 = vadd.f32 %v1815_v25, %v1734_v55  ;;  %v2876_v28 = vpop.f32.mrb[73].mxu1 }
 0x40e   : > { %v2890_v29 = vpop.f32.mrb[85].mxu0  ;;  %v1818_v30 = vpop.f32.mrb[74].mxu1 }
 0x40f   : > { %v1905_v32 = vpop.f32.mrb[86].mxu0  ;;  %v1924_v33 = vadd.f32 %v1902_v26, %v1837_v27  ;;  %v1838_v34 = vadd.f32 %v1818_v30, %v1737_v60  ;;  %v2877_v36 = vpop.f32.mrb[75].mxu1 }
 0x410   : > { %v2891_v37 = vpop.f32.mrb[87].mxu0 }
 0x411   : > { %v1925_v38 = vadd.f32 %v1905_v32, %v1838_v34 }
 0x414   : > { %v1823_v40 = vpop.f32.mrb[76].mxu1 }
 0x415   : > { %v1910_v41 = vpop.f32.mrb[88].mxu0  ;;  %v1839_v42 = vadd.f32 %v1823_v40, %v1742_v11  ;;  %v2880_v43 = vpop.f32.mrb[77].mxu1 }
 0x416   : > { %v2894_v45 = vpop.f32.mrb[89].mxu0  ;;  %v1826_v46 = vpop.f32.mrb[78].mxu1 }
 0x417   : > { %v1913_v47 = vpop.f32.mrb[90].mxu0  ;;  %v1926_v48 = vadd.f32 %v1910_v41, %v1839_v42  ;;  %v1840_v49 = vadd.f32 %v1826_v46, %v1745_v13  ;;  %v2881_v50 = vpop.f32.mrb[79].mxu1 }
 0x418   : > { %v2895_v51 = vpop.f32.mrb[91].mxu0 }
 0x419   : > { %v1927_v52 = vadd.f32 %v1913_v47, %v1840_v49 }
 0x41c   : > { %v1831_v53 = vpop.f32.mrb[80].mxu1 }
 0x41d   : > { %v1918_v54 = vpop.f32.mrb[92].mxu0  ;;  %v1841_v58 = vadd.f32 %v1831_v53, %v1750_v18  ;;  %v2884_v62 = vpop.f32.mrb[81].mxu1 }
 0x41e   : > { %v2898_v63 = vpop.f32.mrb[93].mxu0  ;;  %v1834_v2 = vpop.f32.mrb[82].mxu1 }
 0x41f   : > { %v1921_v3 = vpop.f32.mrb[94].mxu0  ;;  %v1928_v4 = vadd.f32 %v1918_v54, %v1841_v58  ;;  %v2885_v55 = vpop.f32.mrb[83].mxu1 }
 0x420   : > { %v2899_v56 = vpop.f32.mrb[95].mxu0 }
 0x424   : > { %v1989_v0 = vpop.f32.mrb[84].mxu1 }
 0x425   : > { %v2076_v7 = vpop.f32.mrb[96].mxu0  ;;  %v2011_v59 = vadd.f32 %v1989_v0, %v1924_v33  ;;  %v2904_v60 = vpop.f32.mrb[85].mxu1 }
 0x426   : > { %v2918_v61 = vpop.f32.mrb[97].mxu0  ;;  %v1992_v5 = vpop.f32.mrb[86].mxu1 }
 0x427   : > { %v2079_v8 = vpop.f32.mrb[98].mxu0  ;;  %v2098_v10 = vadd.f32 %v2076_v7, %v2011_v59  ;;  %v2012_v11 = vadd.f32 %v1992_v5, %v1925_v38  ;;  %v2905_v6 = vpop.f32.mrb[87].mxu1 }
 0x428   : > { %v2919_v9 = vpop.f32.mrb[99].mxu0 }
 0x429   : > { %v2099_v1 = vadd.f32 %v2079_v8, %v2012_v11  ;;  %v2601_v9 = vld [vmem:[%s3552_s12] ss:$0 sm:$0xff] }
 0x42c   : > { %v1997_v12 = vpop.f32.mrb[88].mxu1 }
 0x42d   : > { %v2084_v13 = vpop.f32.mrb[100].mxu0  ;;  %v2013_v14 = vadd.f32 %v1997_v12, %v1926_v48  ;;  %v2908_v15 = vpop.f32.mrb[89].mxu1 }
 0x42e   : > { %v2922_v16 = vpop.f32.mrb[101].mxu0  ;;  %v2000_v17 = vpop.f32.mrb[90].mxu1 }
 0x42f   : > { %v2087_v18 = vpop.f32.mrb[102].mxu0  ;;  %v2100_v19 = vadd.f32 %v2084_v13, %v2013_v14  ;;  %v2014_v20 = vadd.f32 %v2000_v17, %v1927_v52  ;;  %v2909_v21 = vpop.f32.mrb[91].mxu1  ;;  %v2602_v14 = vld [vmem:[%s3553_s13] ss:$0 sm:$0xff] }
 0x430   : > { %v2923_v22 = vpop.f32.mrb[103].mxu0 }
 0x431   : > { %v2101_v23 = vadd.f32 %v2087_v18, %v2014_v20 }
 0x434   : > { %v2005_v24 = vpop.f32.mrb[92].mxu1 }
 0x435   : > { %v2092_v25 = vpop.f32.mrb[104].mxu0  ;;  %v2015_v26 = vadd.f32 %v2005_v24, %v1928_v4  ;;  %v2912_v27 = vpop.f32.mrb[93].mxu1 }
 0x436   : > { %v2926_v28 = vpop.f32.mrb[105].mxu0  ;;  %v2008_v29 = vpop.f32.mrb[94].mxu1 }
 0x437   : > { %v2095_v30 = vpop.f32.mrb[106].mxu0  ;;  %v2102_v32 = vadd.f32 %v2092_v25, %v2015_v26  ;;  %v2913_v33 = vpop.f32.mrb[95].mxu1 }
 0x438   : > { %v2927_v34 = vpop.f32.mrb[107].mxu0 }
 0x43c   : > { %v2163_v36 = vpop.f32.mrb[96].mxu1 }
 0x43d   : > { %v2250_v37 = vpop.f32.mrb[108].mxu0  ;;  %v2185_v38 = vadd.f32 %v2163_v36, %v2098_v10  ;;  %v2932_v40 = vpop.f32.mrb[97].mxu1 }
 0x43e   : > { %v2946_v41 = vpop.f32.mrb[109].mxu0  ;;  %v2166_v42 = vpop.f32.mrb[98].mxu1 }
 0x43f   : > { %v2253_v43 = vpop.f32.mrb[110].mxu0  ;;  %v2272_v45 = vadd.f32 %v2250_v37, %v2185_v38  ;;  %v2186_v46 = vadd.f32 %v2166_v42, %v2099_v1  ;;  %v2933_v47 = vpop.f32.mrb[99].mxu1 }
 0x440   : > { %v2947_v48 = vpop.f32.mrb[111].mxu0 }
 0x441   : > { %v2273_v49 = vadd.f32 %v2253_v43, %v2186_v46 }
 0x444   : > { %v2171_v50 = vpop.f32.mrb[100].mxu1 }
 0x445   : > { %v2258_v51 = vpop.f32.mrb[112].mxu0  ;;  %v2187_v52 = vadd.f32 %v2171_v50, %v2100_v19  ;;  %v2936_v53 = vpop.f32.mrb[101].mxu1 }
 0x446   : > { %v2950_v54 = vpop.f32.mrb[113].mxu0  ;;  %v2174_v58 = vpop.f32.mrb[102].mxu1 }
 0x447   : > { %v2261_v62 = vpop.f32.mrb[114].mxu0  ;;  %v2274_v63 = vadd.f32 %v2258_v51, %v2187_v52  ;;  %v2188_v2 = vadd.f32 %v2174_v58, %v2101_v23  ;;  %v2937_v3 = vpop.f32.mrb[103].mxu1 }
 0x448   : > { %v2951_v4 = vpop.f32.mrb[115].mxu0 }
 0x449   : > { %v2275_v55 = vadd.f32 %v2261_v62, %v2188_v2 }
 0x44c   : > { %v2179_v56 = vpop.f32.mrb[104].mxu1 }
 0x44d   : > { %v2266_v0 = vpop.f32.mrb[116].mxu0  ;;  %v2189_v7 = vadd.f32 %v2179_v56, %v2102_v32  ;;  %v2940_v59 = vpop.f32.mrb[105].mxu1 }
 0x44e   : > { %v2954_v60 = vpop.f32.mrb[117].mxu0  ;;  %v2182_v61 = vpop.f32.mrb[106].mxu1 }
 0x44f   : > { %v2269_v5 = vpop.f32.mrb[118].mxu0  ;;  %v2276_v8 = vadd.f32 %v2266_v0, %v2189_v7  ;;  %v2941_v10 = vpop.f32.mrb[107].mxu1 }
 0x450   : > { %v2955_v11 = vpop.f32.mrb[119].mxu0 }
 0x454   : > { %v2337_v6 = vpop.f32.mrb[108].mxu1 }
 0x455   : > { %v2359_v1 = vadd.f32 %v2337_v6, %v2272_v45  ;;  %v2960_v12 = vpop.f32.mrb[109].mxu1 }
 0x456   : > { %v2340_v13 = vpop.f32.mrb[110].mxu1 }
 0x457   : > { %v2371_v15 = vadd.f32 %v2601_v9, %v2359_v1  ;;  %v2360_v16 = vadd.f32 %v2340_v13, %v2273_v49  ;;  %v2961_v17 = vpop.f32.mrb[111].mxu1 }
 0x459   : > { %v2372_v18 = vadd.f32 %v2601_v9, %v2360_v16  ;;  %v2383_v19 = vmul.f32 %v2602_v14, %v2371_v15 }
 0x45b   : > { %2393 = vrot.lane.b32.xlu0 %v2383_v19, %s3005_s23  ;;  %v2384_v20 = vmul.f32 %v2602_v14, %v2372_v18 }
 0x45c   : > { %v2345_v21 = vpop.f32.mrb[112].mxu1 }
 0x45d   : > { %v2361_v22 = vadd.f32 %v2345_v21, %v2274_v63  ;;  %v2964_v23 = vpop.f32.mrb[113].mxu1  ;;  %2395 = vrot.lane.b32.xlu1 %v2384_v20, %s3005_s23 }
 0x45e   : > { %v2348_v24 = vpop.f32.mrb[114].mxu1 }
 0x45f   : > { %v2373_v25 = vadd.f32 %v2601_v9, %v2361_v22  ;;  %v2362_v26 = vadd.f32 %v2348_v24, %v2275_v55  ;;  %v2965_v27 = vpop.f32.mrb[115].mxu1 }
 0x461   : > { %v2374_v28 = vadd.f32 %v2601_v9, %v2362_v26  ;;  %v2385_v29 = vmul.f32 %v2602_v14, %v2373_v25 }
 0x463   : > { %2397 = vrot.lane.b32.xlu0 %v2385_v29, %s3005_s23  ;;  %v2386_v30 = vmul.f32 %v2602_v14, %v2374_v28 }
 0x464   : > { %v2353_v32 = vpop.f32.mrb[116].mxu1 }
 0x465   : > { %v2363_v33 = vadd.f32 %v2353_v32, %v2276_v8  ;;  %v2968_v34 = vpop.f32.mrb[117].mxu1  ;;  %2399 = vrot.lane.b32.xlu1 %v2386_v30, %s3005_s23 }
 0x466   : > { %v2356_v36 = vpop.f32.mrb[118].mxu1 }
 0x467   : > { %v2375_v37 = vadd.f32 %v2601_v9, %v2363_v33  ;;  %v2969_v38 = vpop.f32.mrb[119].mxu1 }
 0x469   : > { %v2387_v40 = vmul.f32 %v2602_v14, %v2375_v37 }
 0x46b   : > { %2401 = vrot.lane.b32.xlu0 %v2387_v40, %s3005_s23 }
 0x4cd   : > { %v2394_v41 = vpop.permute.xlu0 %2393 }
 0x4ce   : > { %v2408_v42 = vadd.f32 %v2394_v41, %v3154_v31 }
 0x4cf   : > { %v2396_v43 = vpop.permute.xlu1 %2395 }
 0x4d0   : > { %v2413_v45 = vsel %vm665_vm2, %v3154_v31, %v2408_v42  ;;  %v2409_v46 = vadd.f32 %v2396_v43, %v3158_v35 }
 0x4d1   : > { %2418 = vst.msk [vmem:[%s491_s26] sm:$0xff] %vm524_vm1, %v2413_v45 }
 0x4d2   : > { %v2414_v47 = vsel %vm665_vm2, %v3158_v35, %v2409_v46 }
 0x4d3   : > { %2419 = vst.msk [vmem:[%s491_s26 + $0x8] sm:$0xff] %vm524_vm1, %v2414_v47 }
 0x4d5   : > { %v2398_v48 = vpop.permute.xlu0 %2397 }
 0x4d6   : > { %v2410_v49 = vadd.f32 %v2398_v48, %v3162_v39 }
 0x4d7   : > { %v2400_v50 = vpop.permute.xlu1 %2399 }
 0x4d8   : > { %v2415_v51 = vsel %vm665_vm2, %v3162_v39, %v2410_v49  ;;  %v2411_v52 = vadd.f32 %v2400_v50, %v3169_v44 }
 0x4d9   : > { %2420 = vst.msk [vmem:[%s491_s26 + $0x10] sm:$0xff] %vm524_vm1, %v2415_v51 }
 0x4da   : > { %v2416_v31 = vsel %vm665_vm2, %v3169_v44, %v2411_v52 }
 0x4db   : > { %2421 = vst.msk [vmem:[%s491_s26 + $0x18] sm:$0xff] %vm524_vm1, %v2416_v31 }
 0x4dd   : > { %v2402_v53 = vpop.permute.xlu0 %2401 }
 0x4de   : > { %v2412_v35 = vadd.f32 %v2402_v53, %v3181_v57 }
 0x4e0   : > { %v2417_v54 = vsel %vm665_vm2, %v3181_v57, %v2412_v35 }
 0x4e1   : > { %2422 = vst.msk [vmem:[%s491_s26 + $0x20] sm:$0xff] %vm524_vm1, %v2417_v54 }
 0x4e2 PF: > { %s24_s29 = sadd.s32 1, %s3000_s29  }
 0x4e3   : > { %p21_p4 = scmp.ge.s32.totalorder %s24_s29, 4  }
 0x4e5   :  { %23 = sbr.rel (!%p21_p4) target bundleno = 1 (0x1), region = 125 }

</bundles_post_ra>
